<compile_context>
chip_gen: v6e
topology: v6e:2x2x1
jax: 0.10.0
libtpu: 0.0.40
codegen_flags: <defaults>
</compile_context>

<pallas_src>
import functools

import jax
import jax.numpy as jnp
from jax.experimental import pallas as pl
from jax.experimental.pallas import tpu as pltpu

# ----------------------- synthetic, deterministic configuration --------------
VOXEL_SIZE = (0.1, 0.1, 0.1)                      # (vx, vy, vz)
PC_RANGE = (0.0, -4.0, -2.0, 8.0, 4.0, 2.0)       # (xmin,ymin,zmin,xmax,ymax,zmax)
BATCH_SIZE = 2
NUM_KEYPOINTS = 64                                # MODEL_CFG.NUM_KEYPOINTS
NUM_RAW_POINTS = 256                              # raw points per batch
NSAMPLE = 3                                       # top3 interpolation

# per-source: (lateral_channels, lateral_downsample_factor, voxels_per_batch)
SRC_CFG = {
    'x_conv1': (16, 1, 96),
    'x_conv2': (32, 2, 64),
    'x_conv3': (32, 4, 48),
    'x_conv4': (64, 8, 32),
}
ORDER = ('x_conv4', 'x_conv3', 'x_conv2', 'x_conv1')   # decode order
INIT_SOURCE = 'x_conv4'                           # INIT_BLOCK.SOURCE
INIT_OUT = 64                                     # INIT_BLOCK.OUT_CHANNELS
BLOCK_OUT = {'x_conv4': 64, 'x_conv3': 64, 'x_conv2': 32, 'x_conv1': 32}
OUT_BLOCK_CHANNELS = 64                           # OUT_BLOCK.OUT_CHANNELS
BN_EPS = 1e-3

F32 = jnp.float32
BF16 = jnp.bfloat16


# ============================ fused Pallas kernel =============================
def _fused_decoder_kernel(
        pts_ref,
        vt4, vf4, vt3, vf3, vt2, vf2, vt1, vf1,
        w1_4, t1_4, w2_4, t2_4, wd_4, td_4,
        w1_3, t1_3, w2_3, t2_3, wd_3, td_3,
        w1_2, t1_2, w2_2, t2_2, wd_2, td_2,
        w1_1, t1_1, w2_1, t2_1, wd_1, td_1,
        wo, to,
        kp_out_ref, feat_out_ref):
    """Whole decoder forward for one batch element (grid=(B,), 'parallel')."""
    nk = NUM_KEYPOINTS

    # -------------- furthest point sampling (sequential, fully on-chip) ------
    pts = pts_ref[0]                                             # (3, NP) f32
    n_pts = pts.shape[1]
    lane_np = jax.lax.broadcasted_iota(jnp.int32, (1, n_pts), 1)
    lane_nk = jax.lax.broadcasted_iota(jnp.int32, (1, nk), 1)
    sub_nk = jax.lax.broadcasted_iota(jnp.int32, (nk, 1), 0)

    def fps_body(j, carry):
        dist, kp_t, kpx, kpy, kpz = carry
        # first-index argmax of running min-distance (1st iter: all equal -> 0,
        # matching pointnet2 furthest_point_sample starting at index 0)
        dmax = jnp.max(dist, axis=-1, keepdims=True)
        cand = jnp.where(dist >= dmax, lane_np, n_pts)
        far = jnp.min(cand, axis=-1, keepdims=True)              # (1, 1) int32
        sel = (lane_np == far).astype(F32)                       # (1, NP)
        centroid = jnp.sum(pts * sel, axis=-1, keepdims=True)    # (3, 1)
        # record keypoint j both in row layout (coords output) and in column
        # layout (broadcast-ready for the interpolation distance computation)
        lane_oh = (lane_nk == j).astype(F32)                     # (1, NK)
        sub_oh = (sub_nk == j).astype(F32)                       # (NK, 1)
        kp_t = kp_t + centroid * lane_oh                         # (3, NK)
        kpx = kpx + centroid[0:1, :] * sub_oh
        kpy = kpy + centroid[1:2, :] * sub_oh
        kpz = kpz + centroid[2:3, :] * sub_oh
        diff = pts - centroid
        d = (diff[0:1, :] * diff[0:1, :] + diff[1:2, :] * diff[1:2, :]
             + diff[2:3, :] * diff[2:3, :])                      # (1, NP)
        dist = jnp.minimum(dist, d)
        return dist, kp_t, kpx, kpy, kpz

    carry0 = (jnp.full((1, n_pts), 1e10, F32),
              jnp.zeros((3, nk), F32),
              jnp.zeros((nk, 1), F32),
              jnp.zeros((nk, 1), F32),
              jnp.zeros((nk, 1), F32))
    _, kp_t, kpx, kpy, kpz = jax.lax.fori_loop(0, nk, fps_body, carry0)
    kp_out_ref[0] = kp_t                                         # (3, NK)

    # -------------- top-3 inverse-(squared)-distance interpolation -----------
    # TODO(synk): at realistic NK/V sizes, tile over V with a running
    # top-nsample instead of materializing the full (NK, V) distance matrix.
    def interp(vt_ref, vf_ref):
        vt = vt_ref[0]                                           # (3, V) f32
        dx = kpx - vt[0:1, :]                                    # (NK, V)
        dy = kpy - vt[1:2, :]
        dz = kpz - vt[2:3, :]
        d = dx * dx + dy * dy + dz * dz
        v = d.shape[1]
        col = jax.lax.broadcasted_iota(jnp.int32, d.shape, 1)
        w = jnp.zeros(d.shape, F32)
        dd = d
        for _ in range(NSAMPLE):
            dmin = jnp.min(dd, axis=-1, keepdims=True)           # (NK, 1)
            cand = jnp.where(dd <= dmin, col, v)
            first = jnp.min(cand, axis=-1, keepdims=True)        # first argmin
            onehot = col == first
            w = w + jnp.where(onehot,
                              pl.reciprocal(dmin + 1e-8, approx=True), 0.0)
            dd = jnp.where(onehot, jnp.float32(1e10), dd)
        wsum = jnp.sum(w, axis=-1, keepdims=True)                # (NK, 1)
        raw = jnp.dot(w.astype(BF16), vf_ref[0],                 # (NK, C) MXU
                      preferred_element_type=F32)
        # normalize after the matmul: one (NK,1) EUP reciprocal instead of an
        # (NK,V) elementwise divide.
        return raw * pl.reciprocal(wsum, approx=True)

    # -------------- fused MLPs (BN folded into bf16 weights) -----------------
    def linear_bn(x, w_ref, t_ref):
        return jnp.dot(x.astype(BF16), w_ref[...],
                       preferred_element_type=F32) + t_ref[...]

    def resblock(x_res, x_id, w1, t1, w2, t2, wd, td):
        h = jnp.maximum(linear_bn(x_res, w1, t1), 0.0)
        h = linear_bn(h, w2, t2)
        ident = linear_bn(x_id, wd, td)
        return jnp.maximum(h + ident, 0.0)

    # INIT block output == x_conv4 interpolation, which is also the residual
    # input of the first decode block -> compute once and reuse (dedup).
    interp4 = interp(vt4, vf4)                                   # (NK, 64)
    feats = resblock(interp4, interp4, w1_4, t1_4, w2_4, t2_4, wd_4, td_4)
    feats = resblock(interp(vt3, vf3), feats, w1_3, t1_3, w2_3, t2_3, wd_3, td_3)
    feats = resblock(interp(vt2, vf2), feats, w1_2, t1_2, w2_2, t2_2, wd_2, td_2)
    feats = resblock(interp(vt1, vf1), feats, w1_1, t1_1, w2_1, t2_1, wd_1, td_1)
    feats = jnp.maximum(linear_bn(feats, wo, to), 0.0)           # OUT block
    feat_out_ref[0] = feats                                      # (NK, 64)


def fused_decoder(pts_t, vox_ts, vox_fs, params, batch_size):
    """Single pallas_call over the batch axis (parallel -> both v7x TCs busy)."""
    nk = NUM_KEYPOINTS
    n_pts = pts_t.shape[2]

    inputs = [pts_t]
    in_specs = [pl.BlockSpec((1, 3, n_pts), lambda i: (i, 0, 0))]
    for name in ORDER:
        vt = vox_ts[name]
        vf = vox_fs[name]
        inputs += [vt, vf]
        in_specs += [
            pl.BlockSpec((1,) + vt.shape[1:], lambda i: (i, 0, 0)),
            pl.BlockSpec((1,) + vf.shape[1:], lambda i: (i, 0, 0)),
        ]
    const2d = lambda i: (0, 0)
    for name in ORDER:
        p = params[name]
        for key in ('w1', 't1', 'w2', 't2', 'wd', 'td'):
            inputs.append(p[key])
            in_specs.append(pl.BlockSpec(p[key].shape, const2d))
    for key in ('w', 't'):
        inputs.append(params['out'][key])
        in_specs.append(pl.BlockSpec(params['out'][key].shape, const2d))

    out_shape = (
        jax.ShapeDtypeStruct((batch_size, 3, nk), F32),
        jax.ShapeDtypeStruct((batch_size, nk, OUT_BLOCK_CHANNELS), F32),
    )
    out_specs = (
        pl.BlockSpec((1, 3, nk), lambda i: (i, 0, 0)),
        pl.BlockSpec((1, nk, OUT_BLOCK_CHANNELS), lambda i: (i, 0, 0)),
    )
    return pl.pallas_call(
        _fused_decoder_kernel,
        out_shape=out_shape,
        grid=(batch_size,),
        in_specs=in_specs,
        out_specs=out_specs,
        compiler_params=pltpu.CompilerParams(
            dimension_semantics=("parallel",)),
    )(*inputs)


# ============================ plain-JAX glue ==================================
def get_voxel_centers(coords_zyx, downsample_times, voxel_size, pc_range):
    """coords_zyx: (B, V, 3) int [z, y, x] -> (B, V, 3) float xyz centers."""
    xyz = jnp.stack([coords_zyx[..., 2], coords_zyx[..., 1], coords_zyx[..., 0]],
                    axis=-1).astype(F32)
    vs = jnp.asarray(voxel_size, F32) * downsample_times
    return (xyz + 0.5) * vs + jnp.asarray(pc_range[:3], F32)


def make_bn(key, c):
    kg, kb, km, kv = jax.random.split(key, 4)
    gamma = 1.0 + 0.1 * jax.random.normal(kg, (c,))
    beta = 0.1 * jax.random.normal(kb, (c,))
    mean = 0.1 * jax.random.normal(km, (c,))
    var = 1.0 + 0.1 * jax.random.uniform(kv, (c,))
    scale = gamma / jnp.sqrt(var + BN_EPS)
    shift = beta - mean * scale
    return scale.reshape(1, c).astype(F32), shift.reshape(1, c).astype(F32)


def make_linear_bn(key, cin, cout):
    """Bias-free Linear + eval-mode BN folded: y = x @ (W*scale) + shift."""
    kw, kb = jax.random.split(key)
    w = (0.05 * jax.random.normal(kw, (cin, cout))).astype(F32)
    scale, shift = make_bn(kb, cout)
    w_fold = (w * scale).astype(BF16)    # bf16 MXU operand, f32 accumulation
    return w_fold, shift


def init_params(key):
    params = {}
    prefix = INIT_OUT
    for name in ORDER:
        cl = SRC_CFG[name][0]
        co = BLOCK_OUT[name]
        key, k1, k2, k3 = jax.random.split(key, 4)
        w1, t1 = make_linear_bn(k1, cl, co)
        w2, t2 = make_linear_bn(k2, co, co)
        wd, td = make_linear_bn(k3, prefix, co)
        params[name] = {'w1': w1, 't1': t1, 'w2': w2, 't2': t2,
                        'wd': wd, 'td': td}
        prefix = co
    key, ko = jax.random.split(key)
    wo, to_ = make_linear_bn(ko, prefix, OUT_BLOCK_CHANNELS)
    params['out'] = {'w': wo, 't': to_}
    return params


@functools.partial(jax.jit, static_argnames=('batch_size',))
def forward(params, points, ms_feats, batch_size):
    """ResidualVoxelToPointDecoder forward (inference / eval-mode BatchNorm)."""
    # raw points -> transposed (B, 3, NP) for the in-kernel FPS
    pts_b = points[:, 1:4].reshape(batch_size, NUM_RAW_POINTS, 3)
    pts_t = jnp.transpose(pts_b, (0, 2, 1))

    # lateral voxel centers -> transposed (B, 3, V); features -> bf16
    vox_ts, vox_fs = {}, {}
    for name in ORDER:
        src = ms_feats[name]
        ds = SRC_CFG[name][1]
        vox_xyz = get_voxel_centers(src['indices'][:, :, 1:4], ds,
                                    VOXEL_SIZE, PC_RANGE)          # (B, V, 3)
        vox_ts[name] = jnp.transpose(vox_xyz, (0, 2, 1))           # (B, 3, V)
        vox_fs[name] = src['features'].astype(BF16)                # (B, V, C)

    kp_t, feats = fused_decoder(pts_t, vox_ts, vox_fs, params, batch_size)

    keypoints = jnp.transpose(kp_t, (0, 2, 1)).reshape(
        batch_size * NUM_KEYPOINTS, 3)
    bs_col = jnp.repeat(jnp.arange(batch_size, dtype=F32),
                        NUM_KEYPOINTS)[:, None]
    point_coords = jnp.concatenate([bs_col, keypoints], axis=1)
    point_feats = feats.reshape(batch_size * NUM_KEYPOINTS, OUT_BLOCK_CHANNELS)
    return point_coords, point_feats


# ================================ main ========================================
if __name__ == "__main__":
    key = jax.random.PRNGKey(0)

    # raw points, (B*NP, 4) = [bs_idx, x, y, z]
    key, kp = jax.random.split(key)
    lo = jnp.asarray(PC_RANGE[:3], F32)
    hi = jnp.asarray(PC_RANGE[3:], F32)
    pts = jax.random.uniform(kp, (BATCH_SIZE, NUM_RAW_POINTS, 3),
                             dtype=F32) * (hi - lo) + lo
    bs_col = jnp.repeat(jnp.arange(BATCH_SIZE, dtype=F32),
                        NUM_RAW_POINTS)[:, None]
    points = jnp.concatenate([bs_col, pts.reshape(-1, 3)], axis=1)

    # synthetic multi-scale sparse voxel features (densified per batch)
    # TODO(synk): true SPTensor variable-length per-batch voxel lists are
    # densified to fixed-size (B, V, ...) slabs.
    ms_feats = {}
    for name, (c, ds, v) in SRC_CFG.items():
        key, ki, kf = jax.random.split(key, 3)
        gz = int(round((PC_RANGE[5] - PC_RANGE[2]) / (VOXEL_SIZE[2] * ds)))
        gy = int(round((PC_RANGE[4] - PC_RANGE[1]) / (VOXEL_SIZE[1] * ds)))
        gx = int(round((PC_RANGE[3] - PC_RANGE[0]) / (VOXEL_SIZE[0] * ds)))
        zyx = jnp.stack([
            jax.random.randint(jax.random.fold_in(ki, 0), (BATCH_SIZE, v), 0, gz),
            jax.random.randint(jax.random.fold_in(ki, 1), (BATCH_SIZE, v), 0, gy),
            jax.random.randint(jax.random.fold_in(ki, 2), (BATCH_SIZE, v), 0, gx),
        ], axis=-1).astype(jnp.int32)
        bcol = jnp.broadcast_to(
            jnp.arange(BATCH_SIZE, dtype=jnp.int32)[:, None, None],
            (BATCH_SIZE, v, 1))
        indices = jnp.concatenate([bcol, zyx], axis=-1)              # (B, V, 4)
        features = 0.5 * jax.random.normal(kf, (BATCH_SIZE, v, c), dtype=F32)
        ms_feats[name] = {'indices': indices, 'features': features}

    params = init_params(jax.random.PRNGKey(1))

    coords, feats = forward(params, points, ms_feats, batch_size=BATCH_SIZE)
    coords, feats = jax.block_until_ready((coords, feats))

    assert coords.shape == (BATCH_SIZE * NUM_KEYPOINTS, 4)
    assert feats.shape == (BATCH_SIZE * NUM_KEYPOINTS, OUT_BLOCK_CHANNELS)
    assert bool(jnp.all(jnp.isfinite(coords)))
    assert bool(jnp.all(jnp.isfinite(feats)))
    print("KERNEL_OK")
</pallas_src>

<mosaic_0001>
module attributes {stable_mosaic.version = 11 : i64} {
  func.func @_fused_decoder_kernel(%arg0: i32, %arg1: memref<1x3x256xf32, #tpu.memory_space<vmem>>, %arg2: memref<1x3x32xf32, #tpu.memory_space<vmem>>, %arg3: memref<1x32x64xbf16, #tpu.memory_space<vmem>>, %arg4: memref<1x3x48xf32, #tpu.memory_space<vmem>>, %arg5: memref<1x48x32xbf16, #tpu.memory_space<vmem>>, %arg6: memref<1x3x64xf32, #tpu.memory_space<vmem>>, %arg7: memref<1x64x32xbf16, #tpu.memory_space<vmem>>, %arg8: memref<1x3x96xf32, #tpu.memory_space<vmem>>, %arg9: memref<1x96x16xbf16, #tpu.memory_space<vmem>>, %arg10: memref<64x64xbf16, #tpu.memory_space<vmem>>, %arg11: memref<1x64xf32, #tpu.memory_space<vmem>>, %arg12: memref<64x64xbf16, #tpu.memory_space<vmem>>, %arg13: memref<1x64xf32, #tpu.memory_space<vmem>>, %arg14: memref<64x64xbf16, #tpu.memory_space<vmem>>, %arg15: memref<1x64xf32, #tpu.memory_space<vmem>>, %arg16: memref<32x64xbf16, #tpu.memory_space<vmem>>, %arg17: memref<1x64xf32, #tpu.memory_space<vmem>>, %arg18: memref<64x64xbf16, #tpu.memory_space<vmem>>, %arg19: memref<1x64xf32, #tpu.memory_space<vmem>>, %arg20: memref<64x64xbf16, #tpu.memory_space<vmem>>, %arg21: memref<1x64xf32, #tpu.memory_space<vmem>>, %arg22: memref<32x32xbf16, #tpu.memory_space<vmem>>, %arg23: memref<1x32xf32, #tpu.memory_space<vmem>>, %arg24: memref<32x32xbf16, #tpu.memory_space<vmem>>, %arg25: memref<1x32xf32, #tpu.memory_space<vmem>>, %arg26: memref<64x32xbf16, #tpu.memory_space<vmem>>, %arg27: memref<1x32xf32, #tpu.memory_space<vmem>>, %arg28: memref<16x32xbf16, #tpu.memory_space<vmem>>, %arg29: memref<1x32xf32, #tpu.memory_space<vmem>>, %arg30: memref<32x32xbf16, #tpu.memory_space<vmem>>, %arg31: memref<1x32xf32, #tpu.memory_space<vmem>>, %arg32: memref<32x32xbf16, #tpu.memory_space<vmem>>, %arg33: memref<1x32xf32, #tpu.memory_space<vmem>>, %arg34: memref<32x64xbf16, #tpu.memory_space<vmem>>, %arg35: memref<1x64xf32, #tpu.memory_space<vmem>>, %arg36: memref<1x3x64xf32, #tpu.memory_space<vmem>>, %arg37: memref<1x64x64xf32, #tpu.memory_space<vmem>>) attributes {dimension_semantics = [#tpu.dimension_semantics<parallel>], iteration_bounds = array<i64: 2>, scalar_prefetch = 0 : i64, scratch_operands = 0 : i64, tpu.core_type = #tpu.core_type<tc>, window_params = [{transform_indices = @transform_0, window_bounds = array<i64: 1, 3, 256>}, {transform_indices = @transform_1, window_bounds = array<i64: 1, 3, 32>}, {transform_indices = @transform_2, window_bounds = array<i64: 1, 32, 64>}, {transform_indices = @transform_3, window_bounds = array<i64: 1, 3, 48>}, {transform_indices = @transform_4, window_bounds = array<i64: 1, 48, 32>}, {transform_indices = @transform_5, window_bounds = array<i64: 1, 3, 64>}, {transform_indices = @transform_6, window_bounds = array<i64: 1, 64, 32>}, {transform_indices = @transform_7, window_bounds = array<i64: 1, 3, 96>}, {transform_indices = @transform_8, window_bounds = array<i64: 1, 96, 16>}, {pipeline_mode = #tpu.pipeline_mode<synchronous>, transform_indices = @transform_9, window_bounds = array<i64: 64, 64>}, {pipeline_mode = #tpu.pipeline_mode<synchronous>, transform_indices = @transform_10, window_bounds = array<i64: 1, 64>}, {pipeline_mode = #tpu.pipeline_mode<synchronous>, transform_indices = @transform_11, window_bounds = array<i64: 64, 64>}, {pipeline_mode = #tpu.pipeline_mode<synchronous>, transform_indices = @transform_12, window_bounds = array<i64: 1, 64>}, {pipeline_mode = #tpu.pipeline_mode<synchronous>, transform_indices = @transform_13, window_bounds = array<i64: 64, 64>}, {pipeline_mode = #tpu.pipeline_mode<synchronous>, transform_indices = @transform_14, window_bounds = array<i64: 1, 64>}, {pipeline_mode = #tpu.pipeline_mode<synchronous>, transform_indices = @transform_15, window_bounds = array<i64: 32, 64>}, {pipeline_mode = #tpu.pipeline_mode<synchronous>, transform_indices = @transform_16, window_bounds = array<i64: 1, 64>}, {pipeline_mode = #tpu.pipeline_mode<synchronous>, transform_indices = @transform_17, window_bounds = array<i64: 64, 64>}, {pipeline_mode = #tpu.pipeline_mode<synchronous>, transform_indices = @transform_18, window_bounds = array<i64: 1, 64>}, {pipeline_mode = #tpu.pipeline_mode<synchronous>, transform_indices = @transform_19, window_bounds = array<i64: 64, 64>}, {pipeline_mode = #tpu.pipeline_mode<synchronous>, transform_indices = @transform_20, window_bounds = array<i64: 1, 64>}, {pipeline_mode = #tpu.pipeline_mode<synchronous>, transform_indices = @transform_21, window_bounds = array<i64: 32, 32>}, {pipeline_mode = #tpu.pipeline_mode<synchronous>, transform_indices = @transform_22, window_bounds = array<i64: 1, 32>}, {pipeline_mode = #tpu.pipeline_mode<synchronous>, transform_indices = @transform_23, window_bounds = array<i64: 32, 32>}, {pipeline_mode = #tpu.pipeline_mode<synchronous>, transform_indices = @transform_24, window_bounds = array<i64: 1, 32>}, {pipeline_mode = #tpu.pipeline_mode<synchronous>, transform_indices = @transform_25, window_bounds = array<i64: 64, 32>}, {pipeline_mode = #tpu.pipeline_mode<synchronous>, transform_indices = @transform_26, window_bounds = array<i64: 1, 32>}, {pipeline_mode = #tpu.pipeline_mode<synchronous>, transform_indices = @transform_27, window_bounds = array<i64: 16, 32>}, {pipeline_mode = #tpu.pipeline_mode<synchronous>, transform_indices = @transform_28, window_bounds = array<i64: 1, 32>}, {pipeline_mode = #tpu.pipeline_mode<synchronous>, transform_indices = @transform_29, window_bounds = array<i64: 32, 32>}, {pipeline_mode = #tpu.pipeline_mode<synchronous>, transform_indices = @transform_30, window_bounds = array<i64: 1, 32>}, {pipeline_mode = #tpu.pipeline_mode<synchronous>, transform_indices = @transform_31, window_bounds = array<i64: 32, 32>}, {pipeline_mode = #tpu.pipeline_mode<synchronous>, transform_indices = @transform_32, window_bounds = array<i64: 1, 32>}, {pipeline_mode = #tpu.pipeline_mode<synchronous>, transform_indices = @transform_33, window_bounds = array<i64: 32, 64>}, {pipeline_mode = #tpu.pipeline_mode<synchronous>, transform_indices = @transform_34, window_bounds = array<i64: 1, 64>}, {transform_indices = @transform_35, window_bounds = array<i64: 1, 3, 64>}, {transform_indices = @transform_36, window_bounds = array<i64: 1, 64, 64>}]} {
    %c0 = arith.constant 0 : index
    %c0_0 = arith.constant 0 : index
    %c0_1 = arith.constant 0 : index
    %0 = vector.load %arg1[%c0, %c0_0, %c0_1] : memref<1x3x256xf32, #tpu.memory_space<vmem>>, vector<1x3x256xf32>
    %1 = vector.shape_cast %0 : vector<1x3x256xf32> to vector<3x256xf32>
    %2 = tpu.iota {dimensions = array<i32: 1>} : vector<1x256xi32>
    %3 = tpu.iota {dimensions = array<i32: 1>} : vector<1x64xi32>
    %4 = tpu.iota {dimensions = array<i32: 0>} : vector<64x1xi32>
    %cst = arith.constant 1.000000e+10 : f32
    %5 = vector.broadcast %cst : f32 to vector<1x256xf32>
    %cst_2 = arith.constant 0.000000e+00 : f32
    %6 = vector.broadcast %cst_2 : f32 to vector<3x64xf32>
    %cst_3 = arith.constant 0.000000e+00 : f32
    %7 = vector.broadcast %cst_3 : f32 to vector<64x1xf32>
    %cst_4 = arith.constant 0.000000e+00 : f32
    %8 = vector.broadcast %cst_4 : f32 to vector<64x1xf32>
    %cst_5 = arith.constant 0.000000e+00 : f32
    %9 = vector.broadcast %cst_5 : f32 to vector<64x1xf32>
    %c0_i32 = arith.constant 0 : i32
    %c64_i32 = arith.constant 64 : i32
    %10 = arith.addi %c0_i32, %c64_i32 : i32
    %c1_i32 = arith.constant 1 : i32
    %11:5 = scf.for %arg38 = %c0_i32 to %10 step %c1_i32 iter_args(%arg39 = %5, %arg40 = %6, %arg41 = %7, %arg42 = %8, %arg43 = %9) -> (vector<1x256xf32>, vector<3x64xf32>, vector<64x1xf32>, vector<64x1xf32>, vector<64x1xf32>)  : i32 {
      %cst_188 = arith.constant dense<0xFF800000> : vector<1xf32>
      %470 = vector.multi_reduction <maximumf>, %arg39, %cst_188 [1] : vector<1x256xf32> to vector<1xf32>
      %471 = vector.shape_cast %470 : vector<1xf32> to vector<1x1xf32>
      %472 = vector.broadcast %471 : vector<1x1xf32> to vector<1x256xf32>
      %473 = arith.cmpf oge, %arg39, %472 : vector<1x256xf32>
      %c256_i32 = arith.constant 256 : i32
      %474 = vector.broadcast %c256_i32 : i32 to vector<1x256xi32>
      %475 = arith.select %473, %2, %474 : vector<1x256xi1>, vector<1x256xi32>
      %cst_189 = arith.constant dense<2147483647> : vector<1xi32>
      %476 = vector.multi_reduction <minsi>, %475, %cst_189 [1] : vector<1x256xi32> to vector<1xi32>
      %477 = vector.shape_cast %476 : vector<1xi32> to vector<1x1xi32>
      %478 = vector.broadcast %477 : vector<1x1xi32> to vector<1x256xi32>
      %479 = arith.cmpi eq, %2, %478 : vector<1x256xi32>
      %480 = arith.extui %479 : vector<1x256xi1> to vector<1x256xi32>
      %481 = arith.sitofp %480 : vector<1x256xi32> to vector<1x256xf32>
      %482 = vector.broadcast %481 : vector<1x256xf32> to vector<3x256xf32>
      %483 = arith.mulf %1, %482 : vector<3x256xf32>
      %cst_190 = arith.constant dense<0.000000e+00> : vector<3xf32>
      %484 = vector.multi_reduction <add>, %483, %cst_190 [1] : vector<3x256xf32> to vector<3xf32>
      %485 = vector.shape_cast %484 : vector<3xf32> to vector<3x1xf32>
      %486 = vector.broadcast %arg38 : i32 to vector<1x64xi32>
      %487 = arith.cmpi eq, %3, %486 : vector<1x64xi32>
      %488 = arith.extui %487 : vector<1x64xi1> to vector<1x64xi32>
      %489 = arith.sitofp %488 : vector<1x64xi32> to vector<1x64xf32>
      %490 = vector.broadcast %arg38 : i32 to vector<64x1xi32>
      %491 = arith.cmpi eq, %4, %490 : vector<64x1xi32>
      %492 = arith.extui %491 : vector<64x1xi1> to vector<64x1xi32>
      %493 = arith.sitofp %492 : vector<64x1xi32> to vector<64x1xf32>
      %494 = vector.broadcast %485 : vector<3x1xf32> to vector<3x64xf32>
      %495 = vector.broadcast %489 : vector<1x64xf32> to vector<3x64xf32>
      %496 = arith.mulf %494, %495 : vector<3x64xf32>
      %497 = arith.addf %arg40, %496 : vector<3x64xf32>
      %498 = vector.extract_strided_slice %485 {offsets = [0, 0], sizes = [1, 1], strides = [1, 1]} : vector<3x1xf32> to vector<1x1xf32>
      %499 = vector.broadcast %498 : vector<1x1xf32> to vector<64x1xf32>
      %500 = arith.mulf %499, %493 : vector<64x1xf32>
      %501 = arith.addf %arg41, %500 : vector<64x1xf32>
      %502 = vector.extract_strided_slice %485 {offsets = [1, 0], sizes = [1, 1], strides = [1, 1]} : vector<3x1xf32> to vector<1x1xf32>
      %503 = vector.broadcast %502 : vector<1x1xf32> to vector<64x1xf32>
      %504 = arith.mulf %503, %493 : vector<64x1xf32>
      %505 = arith.addf %arg42, %504 : vector<64x1xf32>
      %506 = vector.extract_strided_slice %485 {offsets = [2, 0], sizes = [1, 1], strides = [1, 1]} : vector<3x1xf32> to vector<1x1xf32>
      %507 = vector.broadcast %506 : vector<1x1xf32> to vector<64x1xf32>
      %508 = arith.mulf %507, %493 : vector<64x1xf32>
      %509 = arith.addf %arg43, %508 : vector<64x1xf32>
      %510 = vector.broadcast %485 : vector<3x1xf32> to vector<3x256xf32>
      %511 = arith.subf %1, %510 : vector<3x256xf32>
      %512 = vector.extract_strided_slice %511 {offsets = [0, 0], sizes = [1, 256], strides = [1, 1]} : vector<3x256xf32> to vector<1x256xf32>
      %513 = vector.extract_strided_slice %511 {offsets = [0, 0], sizes = [1, 256], strides = [1, 1]} : vector<3x256xf32> to vector<1x256xf32>
      %514 = arith.mulf %512, %513 : vector<1x256xf32>
      %515 = vector.extract_strided_slice %511 {offsets = [1, 0], sizes = [1, 256], strides = [1, 1]} : vector<3x256xf32> to vector<1x256xf32>
      %516 = vector.extract_strided_slice %511 {offsets = [1, 0], sizes = [1, 256], strides = [1, 1]} : vector<3x256xf32> to vector<1x256xf32>
      %517 = arith.mulf %515, %516 : vector<1x256xf32>
      %518 = arith.addf %514, %517 : vector<1x256xf32>
      %519 = vector.extract_strided_slice %511 {offsets = [2, 0], sizes = [1, 256], strides = [1, 1]} : vector<3x256xf32> to vector<1x256xf32>
      %520 = vector.extract_strided_slice %511 {offsets = [2, 0], sizes = [1, 256], strides = [1, 1]} : vector<3x256xf32> to vector<1x256xf32>
      %521 = arith.mulf %519, %520 : vector<1x256xf32>
      %522 = arith.addf %518, %521 : vector<1x256xf32>
      %523 = arith.minimumf %arg39, %522 : vector<1x256xf32>
      scf.yield %523, %497, %501, %505, %509 : vector<1x256xf32>, vector<3x64xf32>, vector<64x1xf32>, vector<64x1xf32>, vector<64x1xf32>
    }
    %c64_i32_6 = arith.constant 64 : i32
    %c0_7 = arith.constant 0 : index
    %c0_8 = arith.constant 0 : index
    %c0_9 = arith.constant 0 : index
    %12 = vector.load %arg36[%c0_7, %c0_8, %c0_9] : memref<1x3x64xf32, #tpu.memory_space<vmem>>, vector<1x3x64xf32>
    %13 = vector.shape_cast %12 : vector<1x3x64xf32> to vector<3x64xf32>
    %14 = vector.shape_cast %11#1 : vector<3x64xf32> to vector<1x3x64xf32>
    tpu.vector_store %arg36[%c0_7, %c0_8, %c0_9], %14 {strides = array<i32>} : memref<1x3x64xf32, #tpu.memory_space<vmem>>, vector<1x3x64xf32>,
    %c0_10 = arith.constant 0 : index
    %c0_11 = arith.constant 0 : index
    %c0_12 = arith.constant 0 : index
    %15 = vector.load %arg2[%c0_10, %c0_11, %c0_12] : memref<1x3x32xf32, #tpu.memory_space<vmem>>, vector<1x3x32xf32>
    %16 = vector.shape_cast %15 : vector<1x3x32xf32> to vector<3x32xf32>
    %17 = vector.extract_strided_slice %16 {offsets = [0, 0], sizes = [1, 32], strides = [1, 1]} : vector<3x32xf32> to vector<1x32xf32>
    %18 = vector.broadcast %11#2 : vector<64x1xf32> to vector<64x32xf32>
    %19 = vector.broadcast %17 : vector<1x32xf32> to vector<64x32xf32>
    %20 = arith.subf %18, %19 : vector<64x32xf32>
    %21 = vector.extract_strided_slice %16 {offsets = [1, 0], sizes = [1, 32], strides = [1, 1]} : vector<3x32xf32> to vector<1x32xf32>
    %22 = vector.broadcast %11#3 : vector<64x1xf32> to vector<64x32xf32>
    %23 = vector.broadcast %21 : vector<1x32xf32> to vector<64x32xf32>
    %24 = arith.subf %22, %23 : vector<64x32xf32>
    %25 = vector.extract_strided_slice %16 {offsets = [2, 0], sizes = [1, 32], strides = [1, 1]} : vector<3x32xf32> to vector<1x32xf32>
    %26 = vector.broadcast %11#4 : vector<64x1xf32> to vector<64x32xf32>
    %27 = vector.broadcast %25 : vector<1x32xf32> to vector<64x32xf32>
    %28 = arith.subf %26, %27 : vector<64x32xf32>
    %29 = arith.mulf %20, %20 : vector<64x32xf32>
    %30 = arith.mulf %24, %24 : vector<64x32xf32>
    %31 = arith.addf %29, %30 : vector<64x32xf32>
    %32 = arith.mulf %28, %28 : vector<64x32xf32>
    %33 = arith.addf %31, %32 : vector<64x32xf32>
    %34 = tpu.iota {dimensions = array<i32: 1>} : vector<64x32xi32>
    %cst_13 = arith.constant 0.000000e+00 : f32
    %35 = vector.broadcast %cst_13 : f32 to vector<64x32xf32>
    %cst_14 = arith.constant dense<0x7F800000> : vector<64xf32>
    %36 = vector.multi_reduction <minimumf>, %33, %cst_14 [1] : vector<64x32xf32> to vector<64xf32>
    %37 = vector.shape_cast %36 : vector<64xf32> to vector<64x1xf32>
    %38 = vector.broadcast %37 : vector<64x1xf32> to vector<64x32xf32>
    %39 = arith.cmpf ole, %33, %38 : vector<64x32xf32>
    %c32_i32 = arith.constant 32 : i32
    %40 = vector.broadcast %c32_i32 : i32 to vector<64x32xi32>
    %41 = arith.select %39, %34, %40 : vector<64x32xi1>, vector<64x32xi32>
    %cst_15 = arith.constant dense<2147483647> : vector<64xi32>
    %42 = vector.multi_reduction <minsi>, %41, %cst_15 [1] : vector<64x32xi32> to vector<64xi32>
    %43 = vector.shape_cast %42 : vector<64xi32> to vector<64x1xi32>
    %44 = vector.broadcast %43 : vector<64x1xi32> to vector<64x32xi32>
    %45 = arith.cmpi eq, %34, %44 : vector<64x32xi32>
    %cst_16 = arith.constant 9.99999993E-9 : f32
    %46 = vector.broadcast %cst_16 : f32 to vector<64x1xf32>
    %47 = arith.addf %37, %46 : vector<64x1xf32>
    %48 = tpu.reciprocal %47 {approx = true} : vector<64x1xf32> -> vector<64x1xf32>
    %cst_17 = arith.constant 0.000000e+00 : f32
    %49 = vector.shape_cast %48 : vector<64x1xf32> to vector<64x1xf32>
    %50 = vector.broadcast %49 : vector<64x1xf32> to vector<64x32xf32>
    %51 = vector.broadcast %cst_17 : f32 to vector<64x32xf32>
    %52 = arith.select %45, %50, %51 : vector<64x32xi1>, vector<64x32xf32>
    %53 = arith.addf %35, %52 : vector<64x32xf32>
    %cst_18 = arith.constant 1.000000e+10 : f32
    %54 = vector.broadcast %cst_18 : f32 to vector<64x32xf32>
    %55 = arith.select %45, %54, %33 : vector<64x32xi1>, vector<64x32xf32>
    %cst_19 = arith.constant dense<0x7F800000> : vector<64xf32>
    %56 = vector.multi_reduction <minimumf>, %55, %cst_19 [1] : vector<64x32xf32> to vector<64xf32>
    %57 = vector.shape_cast %56 : vector<64xf32> to vector<64x1xf32>
    %58 = vector.broadcast %57 : vector<64x1xf32> to vector<64x32xf32>
    %59 = arith.cmpf ole, %55, %58 : vector<64x32xf32>
    %c32_i32_20 = arith.constant 32 : i32
    %60 = vector.broadcast %c32_i32_20 : i32 to vector<64x32xi32>
    %61 = arith.select %59, %34, %60 : vector<64x32xi1>, vector<64x32xi32>
    %cst_21 = arith.constant dense<2147483647> : vector<64xi32>
    %62 = vector.multi_reduction <minsi>, %61, %cst_21 [1] : vector<64x32xi32> to vector<64xi32>
    %63 = vector.shape_cast %62 : vector<64xi32> to vector<64x1xi32>
    %64 = vector.broadcast %63 : vector<64x1xi32> to vector<64x32xi32>
    %65 = arith.cmpi eq, %34, %64 : vector<64x32xi32>
    %cst_22 = arith.constant 9.99999993E-9 : f32
    %66 = vector.broadcast %cst_22 : f32 to vector<64x1xf32>
    %67 = arith.addf %57, %66 : vector<64x1xf32>
    %68 = tpu.reciprocal %67 {approx = true} : vector<64x1xf32> -> vector<64x1xf32>
    %cst_23 = arith.constant 0.000000e+00 : f32
    %69 = vector.shape_cast %68 : vector<64x1xf32> to vector<64x1xf32>
    %70 = vector.broadcast %69 : vector<64x1xf32> to vector<64x32xf32>
    %71 = vector.broadcast %cst_23 : f32 to vector<64x32xf32>
    %72 = arith.select %65, %70, %71 : vector<64x32xi1>, vector<64x32xf32>
    %73 = arith.addf %53, %72 : vector<64x32xf32>
    %cst_24 = arith.constant 1.000000e+10 : f32
    %74 = vector.broadcast %cst_24 : f32 to vector<64x32xf32>
    %75 = arith.select %65, %74, %55 : vector<64x32xi1>, vector<64x32xf32>
    %cst_25 = arith.constant dense<0x7F800000> : vector<64xf32>
    %76 = vector.multi_reduction <minimumf>, %75, %cst_25 [1] : vector<64x32xf32> to vector<64xf32>
    %77 = vector.shape_cast %76 : vector<64xf32> to vector<64x1xf32>
    %78 = vector.broadcast %77 : vector<64x1xf32> to vector<64x32xf32>
    %79 = arith.cmpf ole, %75, %78 : vector<64x32xf32>
    %c32_i32_26 = arith.constant 32 : i32
    %80 = vector.broadcast %c32_i32_26 : i32 to vector<64x32xi32>
    %81 = arith.select %79, %34, %80 : vector<64x32xi1>, vector<64x32xi32>
    %cst_27 = arith.constant dense<2147483647> : vector<64xi32>
    %82 = vector.multi_reduction <minsi>, %81, %cst_27 [1] : vector<64x32xi32> to vector<64xi32>
    %83 = vector.shape_cast %82 : vector<64xi32> to vector<64x1xi32>
    %84 = vector.broadcast %83 : vector<64x1xi32> to vector<64x32xi32>
    %85 = arith.cmpi eq, %34, %84 : vector<64x32xi32>
    %cst_28 = arith.constant 9.99999993E-9 : f32
    %86 = vector.broadcast %cst_28 : f32 to vector<64x1xf32>
    %87 = arith.addf %77, %86 : vector<64x1xf32>
    %88 = tpu.reciprocal %87 {approx = true} : vector<64x1xf32> -> vector<64x1xf32>
    %cst_29 = arith.constant 0.000000e+00 : f32
    %89 = vector.shape_cast %88 : vector<64x1xf32> to vector<64x1xf32>
    %90 = vector.broadcast %89 : vector<64x1xf32> to vector<64x32xf32>
    %91 = vector.broadcast %cst_29 : f32 to vector<64x32xf32>
    %92 = arith.select %85, %90, %91 : vector<64x32xi1>, vector<64x32xf32>
    %93 = arith.addf %73, %92 : vector<64x32xf32>
    %cst_30 = arith.constant dense<0.000000e+00> : vector<64xf32>
    %94 = vector.multi_reduction <add>, %93, %cst_30 [1] : vector<64x32xf32> to vector<64xf32>
    %95 = vector.shape_cast %94 : vector<64xf32> to vector<64x1xf32>
    %96 = arith.truncf %93 : vector<64x32xf32> to vector<64x32xbf16>
    %c0_31 = arith.constant 0 : index
    %c0_32 = arith.constant 0 : index
    %c0_33 = arith.constant 0 : index
    %97 = vector.load %arg3[%c0_31, %c0_32, %c0_33] : memref<1x32x64xbf16, #tpu.memory_space<vmem>>, vector<1x32x64xbf16>
    %98 = vector.shape_cast %97 : vector<1x32x64xbf16> to vector<32x64xbf16>
    %cst_34 = arith.constant dense<0.000000e+00> : vector<64x64xf32>
    %99 = tpu.matmul %96, %98, %cst_34 {dimension_numbers = #tpu.dot_dimension_numbers<[1], [0], [0], [1], [0, 0, 1, 1], [], []>} : vector<64x32xbf16>, vector<32x64xbf16>, vector<64x64xf32> -> vector<64x64xf32>
    %100 = tpu.reciprocal %95 {approx = true} : vector<64x1xf32> -> vector<64x1xf32>
    %101 = vector.broadcast %100 : vector<64x1xf32> to vector<64x64xf32>
    %102 = arith.mulf %99, %101 : vector<64x64xf32>
    %103 = arith.truncf %102 : vector<64x64xf32> to vector<64x64xbf16>
    %c0_35 = arith.constant 0 : index
    %c0_36 = arith.constant 0 : index
    %104 = vector.load %arg10[%c0_35, %c0_36] : memref<64x64xbf16, #tpu.memory_space<vmem>>, vector<64x64xbf16>
    %cst_37 = arith.constant dense<0.000000e+00> : vector<64x64xf32>
    %105 = tpu.matmul %103, %104, %cst_37 {dimension_numbers = #tpu.dot_dimension_numbers<[1], [0], [0], [1], [0, 0, 1, 1], [], []>} : vector<64x64xbf16>, vector<64x64xbf16>, vector<64x64xf32> -> vector<64x64xf32>
    %c0_38 = arith.constant 0 : index
    %c0_39 = arith.constant 0 : index
    %106 = vector.load %arg11[%c0_38, %c0_39] : memref<1x64xf32, #tpu.memory_space<vmem>>, vector<1x64xf32>
    %107 = vector.broadcast %106 : vector<1x64xf32> to vector<64x64xf32>
    %108 = arith.addf %105, %107 : vector<64x64xf32>
    %cst_40 = arith.constant 0.000000e+00 : f32
    %109 = vector.broadcast %cst_40 : f32 to vector<64x64xf32>
    %110 = arith.maximumf %108, %109 : vector<64x64xf32>
    %111 = arith.truncf %110 : vector<64x64xf32> to vector<64x64xbf16>
    %c0_41 = arith.constant 0 : index
    %c0_42 = arith.constant 0 : index
    %112 = vector.load %arg12[%c0_41, %c0_42] : memref<64x64xbf16, #tpu.memory_space<vmem>>, vector<64x64xbf16>
    %cst_43 = arith.constant dense<0.000000e+00> : vector<64x64xf32>
    %113 = tpu.matmul %111, %112, %cst_43 {dimension_numbers = #tpu.dot_dimension_numbers<[1], [0], [0], [1], [0, 0, 1, 1], [], []>} : vector<64x64xbf16>, vector<64x64xbf16>, vector<64x64xf32> -> vector<64x64xf32>
    %c0_44 = arith.constant 0 : index
    %c0_45 = arith.constant 0 : index
    %114 = vector.load %arg13[%c0_44, %c0_45] : memref<1x64xf32, #tpu.memory_space<vmem>>, vector<1x64xf32>
    %115 = vector.broadcast %114 : vector<1x64xf32> to vector<64x64xf32>
    %116 = arith.addf %113, %115 : vector<64x64xf32>
    %117 = arith.truncf %102 : vector<64x64xf32> to vector<64x64xbf16>
    %c0_46 = arith.constant 0 : index
    %c0_47 = arith.constant 0 : index
    %118 = vector.load %arg14[%c0_46, %c0_47] : memref<64x64xbf16, #tpu.memory_space<vmem>>, vector<64x64xbf16>
    %cst_48 = arith.constant dense<0.000000e+00> : vector<64x64xf32>
    %119 = tpu.matmul %117, %118, %cst_48 {dimension_numbers = #tpu.dot_dimension_numbers<[1], [0], [0], [1], [0, 0, 1, 1], [], []>} : vector<64x64xbf16>, vector<64x64xbf16>, vector<64x64xf32> -> vector<64x64xf32>
    %c0_49 = arith.constant 0 : index
    %c0_50 = arith.constant 0 : index
    %120 = vector.load %arg15[%c0_49, %c0_50] : memref<1x64xf32, #tpu.memory_space<vmem>>, vector<1x64xf32>
    %121 = vector.broadcast %120 : vector<1x64xf32> to vector<64x64xf32>
    %122 = arith.addf %119, %121 : vector<64x64xf32>
    %123 = arith.addf %116, %122 : vector<64x64xf32>
    %cst_51 = arith.constant 0.000000e+00 : f32
    %124 = vector.broadcast %cst_51 : f32 to vector<64x64xf32>
    %125 = arith.maximumf %123, %124 : vector<64x64xf32>
    %c0_52 = arith.constant 0 : index
    %c0_53 = arith.constant 0 : index
    %c0_54 = arith.constant 0 : index
    %126 = vector.load %arg4[%c0_52, %c0_53, %c0_54] : memref<1x3x48xf32, #tpu.memory_space<vmem>>, vector<1x3x48xf32>
    %127 = vector.shape_cast %126 : vector<1x3x48xf32> to vector<3x48xf32>
    %128 = vector.extract_strided_slice %127 {offsets = [0, 0], sizes = [1, 48], strides = [1, 1]} : vector<3x48xf32> to vector<1x48xf32>
    %129 = vector.broadcast %11#2 : vector<64x1xf32> to vector<64x48xf32>
    %130 = vector.broadcast %128 : vector<1x48xf32> to vector<64x48xf32>
    %131 = arith.subf %129, %130 : vector<64x48xf32>
    %132 = vector.extract_strided_slice %127 {offsets = [1, 0], sizes = [1, 48], strides = [1, 1]} : vector<3x48xf32> to vector<1x48xf32>
    %133 = vector.broadcast %11#3 : vector<64x1xf32> to vector<64x48xf32>
    %134 = vector.broadcast %132 : vector<1x48xf32> to vector<64x48xf32>
    %135 = arith.subf %133, %134 : vector<64x48xf32>
    %136 = vector.extract_strided_slice %127 {offsets = [2, 0], sizes = [1, 48], strides = [1, 1]} : vector<3x48xf32> to vector<1x48xf32>
    %137 = vector.broadcast %11#4 : vector<64x1xf32> to vector<64x48xf32>
    %138 = vector.broadcast %136 : vector<1x48xf32> to vector<64x48xf32>
    %139 = arith.subf %137, %138 : vector<64x48xf32>
    %140 = arith.mulf %131, %131 : vector<64x48xf32>
    %141 = arith.mulf %135, %135 : vector<64x48xf32>
    %142 = arith.addf %140, %141 : vector<64x48xf32>
    %143 = arith.mulf %139, %139 : vector<64x48xf32>
    %144 = arith.addf %142, %143 : vector<64x48xf32>
    %145 = tpu.iota {dimensions = array<i32: 1>} : vector<64x48xi32>
    %cst_55 = arith.constant 0.000000e+00 : f32
    %146 = vector.broadcast %cst_55 : f32 to vector<64x48xf32>
    %cst_56 = arith.constant dense<0x7F800000> : vector<64xf32>
    %147 = vector.multi_reduction <minimumf>, %144, %cst_56 [1] : vector<64x48xf32> to vector<64xf32>
    %148 = vector.shape_cast %147 : vector<64xf32> to vector<64x1xf32>
    %149 = vector.broadcast %148 : vector<64x1xf32> to vector<64x48xf32>
    %150 = arith.cmpf ole, %144, %149 : vector<64x48xf32>
    %c48_i32 = arith.constant 48 : i32
    %151 = vector.broadcast %c48_i32 : i32 to vector<64x48xi32>
    %152 = arith.select %150, %145, %151 : vector<64x48xi1>, vector<64x48xi32>
    %cst_57 = arith.constant dense<2147483647> : vector<64xi32>
    %153 = vector.multi_reduction <minsi>, %152, %cst_57 [1] : vector<64x48xi32> to vector<64xi32>
    %154 = vector.shape_cast %153 : vector<64xi32> to vector<64x1xi32>
    %155 = vector.broadcast %154 : vector<64x1xi32> to vector<64x48xi32>
    %156 = arith.cmpi eq, %145, %155 : vector<64x48xi32>
    %cst_58 = arith.constant 9.99999993E-9 : f32
    %157 = vector.broadcast %cst_58 : f32 to vector<64x1xf32>
    %158 = arith.addf %148, %157 : vector<64x1xf32>
    %159 = tpu.reciprocal %158 {approx = true} : vector<64x1xf32> -> vector<64x1xf32>
    %cst_59 = arith.constant 0.000000e+00 : f32
    %160 = vector.shape_cast %159 : vector<64x1xf32> to vector<64x1xf32>
    %161 = vector.broadcast %160 : vector<64x1xf32> to vector<64x48xf32>
    %162 = vector.broadcast %cst_59 : f32 to vector<64x48xf32>
    %163 = arith.select %156, %161, %162 : vector<64x48xi1>, vector<64x48xf32>
    %164 = arith.addf %146, %163 : vector<64x48xf32>
    %cst_60 = arith.constant 1.000000e+10 : f32
    %165 = vector.broadcast %cst_60 : f32 to vector<64x48xf32>
    %166 = arith.select %156, %165, %144 : vector<64x48xi1>, vector<64x48xf32>
    %cst_61 = arith.constant dense<0x7F800000> : vector<64xf32>
    %167 = vector.multi_reduction <minimumf>, %166, %cst_61 [1] : vector<64x48xf32> to vector<64xf32>
    %168 = vector.shape_cast %167 : vector<64xf32> to vector<64x1xf32>
    %169 = vector.broadcast %168 : vector<64x1xf32> to vector<64x48xf32>
    %170 = arith.cmpf ole, %166, %169 : vector<64x48xf32>
    %c48_i32_62 = arith.constant 48 : i32
    %171 = vector.broadcast %c48_i32_62 : i32 to vector<64x48xi32>
    %172 = arith.select %170, %145, %171 : vector<64x48xi1>, vector<64x48xi32>
    %cst_63 = arith.constant dense<2147483647> : vector<64xi32>
    %173 = vector.multi_reduction <minsi>, %172, %cst_63 [1] : vector<64x48xi32> to vector<64xi32>
    %174 = vector.shape_cast %173 : vector<64xi32> to vector<64x1xi32>
    %175 = vector.broadcast %174 : vector<64x1xi32> to vector<64x48xi32>
    %176 = arith.cmpi eq, %145, %175 : vector<64x48xi32>
    %cst_64 = arith.constant 9.99999993E-9 : f32
    %177 = vector.broadcast %cst_64 : f32 to vector<64x1xf32>
    %178 = arith.addf %168, %177 : vector<64x1xf32>
    %179 = tpu.reciprocal %178 {approx = true} : vector<64x1xf32> -> vector<64x1xf32>
    %cst_65 = arith.constant 0.000000e+00 : f32
    %180 = vector.shape_cast %179 : vector<64x1xf32> to vector<64x1xf32>
    %181 = vector.broadcast %180 : vector<64x1xf32> to vector<64x48xf32>
    %182 = vector.broadcast %cst_65 : f32 to vector<64x48xf32>
    %183 = arith.select %176, %181, %182 : vector<64x48xi1>, vector<64x48xf32>
    %184 = arith.addf %164, %183 : vector<64x48xf32>
    %cst_66 = arith.constant 1.000000e+10 : f32
    %185 = vector.broadcast %cst_66 : f32 to vector<64x48xf32>
    %186 = arith.select %176, %185, %166 : vector<64x48xi1>, vector<64x48xf32>
    %cst_67 = arith.constant dense<0x7F800000> : vector<64xf32>
    %187 = vector.multi_reduction <minimumf>, %186, %cst_67 [1] : vector<64x48xf32> to vector<64xf32>
    %188 = vector.shape_cast %187 : vector<64xf32> to vector<64x1xf32>
    %189 = vector.broadcast %188 : vector<64x1xf32> to vector<64x48xf32>
    %190 = arith.cmpf ole, %186, %189 : vector<64x48xf32>
    %c48_i32_68 = arith.constant 48 : i32
    %191 = vector.broadcast %c48_i32_68 : i32 to vector<64x48xi32>
    %192 = arith.select %190, %145, %191 : vector<64x48xi1>, vector<64x48xi32>
    %cst_69 = arith.constant dense<2147483647> : vector<64xi32>
    %193 = vector.multi_reduction <minsi>, %192, %cst_69 [1] : vector<64x48xi32> to vector<64xi32>
    %194 = vector.shape_cast %193 : vector<64xi32> to vector<64x1xi32>
    %195 = vector.broadcast %194 : vector<64x1xi32> to vector<64x48xi32>
    %196 = arith.cmpi eq, %145, %195 : vector<64x48xi32>
    %cst_70 = arith.constant 9.99999993E-9 : f32
    %197 = vector.broadcast %cst_70 : f32 to vector<64x1xf32>
    %198 = arith.addf %188, %197 : vector<64x1xf32>
    %199 = tpu.reciprocal %198 {approx = true} : vector<64x1xf32> -> vector<64x1xf32>
    %cst_71 = arith.constant 0.000000e+00 : f32
    %200 = vector.shape_cast %199 : vector<64x1xf32> to vector<64x1xf32>
    %201 = vector.broadcast %200 : vector<64x1xf32> to vector<64x48xf32>
    %202 = vector.broadcast %cst_71 : f32 to vector<64x48xf32>
    %203 = arith.select %196, %201, %202 : vector<64x48xi1>, vector<64x48xf32>
    %204 = arith.addf %184, %203 : vector<64x48xf32>
    %cst_72 = arith.constant dense<0.000000e+00> : vector<64xf32>
    %205 = vector.multi_reduction <add>, %204, %cst_72 [1] : vector<64x48xf32> to vector<64xf32>
    %206 = vector.shape_cast %205 : vector<64xf32> to vector<64x1xf32>
    %207 = arith.truncf %204 : vector<64x48xf32> to vector<64x48xbf16>
    %c0_73 = arith.constant 0 : index
    %c0_74 = arith.constant 0 : index
    %c0_75 = arith.constant 0 : index
    %208 = vector.load %arg5[%c0_73, %c0_74, %c0_75] : memref<1x48x32xbf16, #tpu.memory_space<vmem>>, vector<1x48x32xbf16>
    %209 = vector.shape_cast %208 : vector<1x48x32xbf16> to vector<48x32xbf16>
    %cst_76 = arith.constant dense<0.000000e+00> : vector<64x32xf32>
    %210 = tpu.matmul %207, %209, %cst_76 {dimension_numbers = #tpu.dot_dimension_numbers<[1], [0], [0], [1], [0, 0, 1, 1], [], []>} : vector<64x48xbf16>, vector<48x32xbf16>, vector<64x32xf32> -> vector<64x32xf32>
    %211 = tpu.reciprocal %206 {approx = true} : vector<64x1xf32> -> vector<64x1xf32>
    %212 = vector.broadcast %211 : vector<64x1xf32> to vector<64x32xf32>
    %213 = arith.mulf %210, %212 : vector<64x32xf32>
    %214 = arith.truncf %213 : vector<64x32xf32> to vector<64x32xbf16>
    %c0_77 = arith.constant 0 : index
    %c0_78 = arith.constant 0 : index
    %215 = vector.load %arg16[%c0_77, %c0_78] : memref<32x64xbf16, #tpu.memory_space<vmem>>, vector<32x64xbf16>
    %cst_79 = arith.constant dense<0.000000e+00> : vector<64x64xf32>
    %216 = tpu.matmul %214, %215, %cst_79 {dimension_numbers = #tpu.dot_dimension_numbers<[1], [0], [0], [1], [0, 0, 1, 1], [], []>} : vector<64x32xbf16>, vector<32x64xbf16>, vector<64x64xf32> -> vector<64x64xf32>
    %c0_80 = arith.constant 0 : index
    %c0_81 = arith.constant 0 : index
    %217 = vector.load %arg17[%c0_80, %c0_81] : memref<1x64xf32, #tpu.memory_space<vmem>>, vector<1x64xf32>
    %218 = vector.broadcast %217 : vector<1x64xf32> to vector<64x64xf32>
    %219 = arith.addf %216, %218 : vector<64x64xf32>
    %cst_82 = arith.constant 0.000000e+00 : f32
    %220 = vector.broadcast %cst_82 : f32 to vector<64x64xf32>
    %221 = arith.maximumf %219, %220 : vector<64x64xf32>
    %222 = arith.truncf %221 : vector<64x64xf32> to vector<64x64xbf16>
    %c0_83 = arith.constant 0 : index
    %c0_84 = arith.constant 0 : index
    %223 = vector.load %arg18[%c0_83, %c0_84] : memref<64x64xbf16, #tpu.memory_space<vmem>>, vector<64x64xbf16>
    %cst_85 = arith.constant dense<0.000000e+00> : vector<64x64xf32>
    %224 = tpu.matmul %222, %223, %cst_85 {dimension_numbers = #tpu.dot_dimension_numbers<[1], [0], [0], [1], [0, 0, 1, 1], [], []>} : vector<64x64xbf16>, vector<64x64xbf16>, vector<64x64xf32> -> vector<64x64xf32>
    %c0_86 = arith.constant 0 : index
    %c0_87 = arith.constant 0 : index
    %225 = vector.load %arg19[%c0_86, %c0_87] : memref<1x64xf32, #tpu.memory_space<vmem>>, vector<1x64xf32>
    %226 = vector.broadcast %225 : vector<1x64xf32> to vector<64x64xf32>
    %227 = arith.addf %224, %226 : vector<64x64xf32>
    %228 = arith.truncf %125 : vector<64x64xf32> to vector<64x64xbf16>
    %c0_88 = arith.constant 0 : index
    %c0_89 = arith.constant 0 : index
    %229 = vector.load %arg20[%c0_88, %c0_89] : memref<64x64xbf16, #tpu.memory_space<vmem>>, vector<64x64xbf16>
    %cst_90 = arith.constant dense<0.000000e+00> : vector<64x64xf32>
    %230 = tpu.matmul %228, %229, %cst_90 {dimension_numbers = #tpu.dot_dimension_numbers<[1], [0], [0], [1], [0, 0, 1, 1], [], []>} : vector<64x64xbf16>, vector<64x64xbf16>, vector<64x64xf32> -> vector<64x64xf32>
    %c0_91 = arith.constant 0 : index
    %c0_92 = arith.constant 0 : index
    %231 = vector.load %arg21[%c0_91, %c0_92] : memref<1x64xf32, #tpu.memory_space<vmem>>, vector<1x64xf32>
    %232 = vector.broadcast %231 : vector<1x64xf32> to vector<64x64xf32>
    %233 = arith.addf %230, %232 : vector<64x64xf32>
    %234 = arith.addf %227, %233 : vector<64x64xf32>
    %cst_93 = arith.constant 0.000000e+00 : f32
    %235 = vector.broadcast %cst_93 : f32 to vector<64x64xf32>
    %236 = arith.maximumf %234, %235 : vector<64x64xf32>
    %c0_94 = arith.constant 0 : index
    %c0_95 = arith.constant 0 : index
    %c0_96 = arith.constant 0 : index
    %237 = vector.load %arg6[%c0_94, %c0_95, %c0_96] : memref<1x3x64xf32, #tpu.memory_space<vmem>>, vector<1x3x64xf32>
    %238 = vector.shape_cast %237 : vector<1x3x64xf32> to vector<3x64xf32>
    %239 = vector.extract_strided_slice %238 {offsets = [0, 0], sizes = [1, 64], strides = [1, 1]} : vector<3x64xf32> to vector<1x64xf32>
    %240 = vector.broadcast %11#2 : vector<64x1xf32> to vector<64x64xf32>
    %241 = vector.broadcast %239 : vector<1x64xf32> to vector<64x64xf32>
    %242 = arith.subf %240, %241 : vector<64x64xf32>
    %243 = vector.extract_strided_slice %238 {offsets = [1, 0], sizes = [1, 64], strides = [1, 1]} : vector<3x64xf32> to vector<1x64xf32>
    %244 = vector.broadcast %11#3 : vector<64x1xf32> to vector<64x64xf32>
    %245 = vector.broadcast %243 : vector<1x64xf32> to vector<64x64xf32>
    %246 = arith.subf %244, %245 : vector<64x64xf32>
    %247 = vector.extract_strided_slice %238 {offsets = [2, 0], sizes = [1, 64], strides = [1, 1]} : vector<3x64xf32> to vector<1x64xf32>
    %248 = vector.broadcast %11#4 : vector<64x1xf32> to vector<64x64xf32>
    %249 = vector.broadcast %247 : vector<1x64xf32> to vector<64x64xf32>
    %250 = arith.subf %248, %249 : vector<64x64xf32>
    %251 = arith.mulf %242, %242 : vector<64x64xf32>
    %252 = arith.mulf %246, %246 : vector<64x64xf32>
    %253 = arith.addf %251, %252 : vector<64x64xf32>
    %254 = arith.mulf %250, %250 : vector<64x64xf32>
    %255 = arith.addf %253, %254 : vector<64x64xf32>
    %256 = tpu.iota {dimensions = array<i32: 1>} : vector<64x64xi32>
    %cst_97 = arith.constant 0.000000e+00 : f32
    %257 = vector.broadcast %cst_97 : f32 to vector<64x64xf32>
    %cst_98 = arith.constant dense<0x7F800000> : vector<64xf32>
    %258 = vector.multi_reduction <minimumf>, %255, %cst_98 [1] : vector<64x64xf32> to vector<64xf32>
    %259 = vector.shape_cast %258 : vector<64xf32> to vector<64x1xf32>
    %260 = vector.broadcast %259 : vector<64x1xf32> to vector<64x64xf32>
    %261 = arith.cmpf ole, %255, %260 : vector<64x64xf32>
    %c64_i32_99 = arith.constant 64 : i32
    %262 = vector.broadcast %c64_i32_99 : i32 to vector<64x64xi32>
    %263 = arith.select %261, %256, %262 : vector<64x64xi1>, vector<64x64xi32>
    %cst_100 = arith.constant dense<2147483647> : vector<64xi32>
    %264 = vector.multi_reduction <minsi>, %263, %cst_100 [1] : vector<64x64xi32> to vector<64xi32>
    %265 = vector.shape_cast %264 : vector<64xi32> to vector<64x1xi32>
    %266 = vector.broadcast %265 : vector<64x1xi32> to vector<64x64xi32>
    %267 = arith.cmpi eq, %256, %266 : vector<64x64xi32>
    %cst_101 = arith.constant 9.99999993E-9 : f32
    %268 = vector.broadcast %cst_101 : f32 to vector<64x1xf32>
    %269 = arith.addf %259, %268 : vector<64x1xf32>
    %270 = tpu.reciprocal %269 {approx = true} : vector<64x1xf32> -> vector<64x1xf32>
    %cst_102 = arith.constant 0.000000e+00 : f32
    %271 = vector.shape_cast %270 : vector<64x1xf32> to vector<64x1xf32>
    %272 = vector.broadcast %271 : vector<64x1xf32> to vector<64x64xf32>
    %273 = vector.broadcast %cst_102 : f32 to vector<64x64xf32>
    %274 = arith.select %267, %272, %273 : vector<64x64xi1>, vector<64x64xf32>
    %275 = arith.addf %257, %274 : vector<64x64xf32>
    %cst_103 = arith.constant 1.000000e+10 : f32
    %276 = vector.broadcast %cst_103 : f32 to vector<64x64xf32>
    %277 = arith.select %267, %276, %255 : vector<64x64xi1>, vector<64x64xf32>
    %cst_104 = arith.constant dense<0x7F800000> : vector<64xf32>
    %278 = vector.multi_reduction <minimumf>, %277, %cst_104 [1] : vector<64x64xf32> to vector<64xf32>
    %279 = vector.shape_cast %278 : vector<64xf32> to vector<64x1xf32>
    %280 = vector.broadcast %279 : vector<64x1xf32> to vector<64x64xf32>
    %281 = arith.cmpf ole, %277, %280 : vector<64x64xf32>
    %c64_i32_105 = arith.constant 64 : i32
    %282 = vector.broadcast %c64_i32_105 : i32 to vector<64x64xi32>
    %283 = arith.select %281, %256, %282 : vector<64x64xi1>, vector<64x64xi32>
    %cst_106 = arith.constant dense<2147483647> : vector<64xi32>
    %284 = vector.multi_reduction <minsi>, %283, %cst_106 [1] : vector<64x64xi32> to vector<64xi32>
    %285 = vector.shape_cast %284 : vector<64xi32> to vector<64x1xi32>
    %286 = vector.broadcast %285 : vector<64x1xi32> to vector<64x64xi32>
    %287 = arith.cmpi eq, %256, %286 : vector<64x64xi32>
    %cst_107 = arith.constant 9.99999993E-9 : f32
    %288 = vector.broadcast %cst_107 : f32 to vector<64x1xf32>
    %289 = arith.addf %279, %288 : vector<64x1xf32>
    %290 = tpu.reciprocal %289 {approx = true} : vector<64x1xf32> -> vector<64x1xf32>
    %cst_108 = arith.constant 0.000000e+00 : f32
    %291 = vector.shape_cast %290 : vector<64x1xf32> to vector<64x1xf32>
    %292 = vector.broadcast %291 : vector<64x1xf32> to vector<64x64xf32>
    %293 = vector.broadcast %cst_108 : f32 to vector<64x64xf32>
    %294 = arith.select %287, %292, %293 : vector<64x64xi1>, vector<64x64xf32>
    %295 = arith.addf %275, %294 : vector<64x64xf32>
    %cst_109 = arith.constant 1.000000e+10 : f32
    %296 = vector.broadcast %cst_109 : f32 to vector<64x64xf32>
    %297 = arith.select %287, %296, %277 : vector<64x64xi1>, vector<64x64xf32>
    %cst_110 = arith.constant dense<0x7F800000> : vector<64xf32>
    %298 = vector.multi_reduction <minimumf>, %297, %cst_110 [1] : vector<64x64xf32> to vector<64xf32>
    %299 = vector.shape_cast %298 : vector<64xf32> to vector<64x1xf32>
    %300 = vector.broadcast %299 : vector<64x1xf32> to vector<64x64xf32>
    %301 = arith.cmpf ole, %297, %300 : vector<64x64xf32>
    %c64_i32_111 = arith.constant 64 : i32
    %302 = vector.broadcast %c64_i32_111 : i32 to vector<64x64xi32>
    %303 = arith.select %301, %256, %302 : vector<64x64xi1>, vector<64x64xi32>
    %cst_112 = arith.constant dense<2147483647> : vector<64xi32>
    %304 = vector.multi_reduction <minsi>, %303, %cst_112 [1] : vector<64x64xi32> to vector<64xi32>
    %305 = vector.shape_cast %304 : vector<64xi32> to vector<64x1xi32>
    %306 = vector.broadcast %305 : vector<64x1xi32> to vector<64x64xi32>
    %307 = arith.cmpi eq, %256, %306 : vector<64x64xi32>
    %cst_113 = arith.constant 9.99999993E-9 : f32
    %308 = vector.broadcast %cst_113 : f32 to vector<64x1xf32>
    %309 = arith.addf %299, %308 : vector<64x1xf32>
    %310 = tpu.reciprocal %309 {approx = true} : vector<64x1xf32> -> vector<64x1xf32>
    %cst_114 = arith.constant 0.000000e+00 : f32
    %311 = vector.shape_cast %310 : vector<64x1xf32> to vector<64x1xf32>
    %312 = vector.broadcast %311 : vector<64x1xf32> to vector<64x64xf32>
    %313 = vector.broadcast %cst_114 : f32 to vector<64x64xf32>
    %314 = arith.select %307, %312, %313 : vector<64x64xi1>, vector<64x64xf32>
    %315 = arith.addf %295, %314 : vector<64x64xf32>
    %cst_115 = arith.constant dense<0.000000e+00> : vector<64xf32>
    %316 = vector.multi_reduction <add>, %315, %cst_115 [1] : vector<64x64xf32> to vector<64xf32>
    %317 = vector.shape_cast %316 : vector<64xf32> to vector<64x1xf32>
    %318 = arith.truncf %315 : vector<64x64xf32> to vector<64x64xbf16>
    %c0_116 = arith.constant 0 : index
    %c0_117 = arith.constant 0 : index
    %c0_118 = arith.constant 0 : index
    %319 = vector.load %arg7[%c0_116, %c0_117, %c0_118] : memref<1x64x32xbf16, #tpu.memory_space<vmem>>, vector<1x64x32xbf16>
    %320 = vector.shape_cast %319 : vector<1x64x32xbf16> to vector<64x32xbf16>
    %cst_119 = arith.constant dense<0.000000e+00> : vector<64x32xf32>
    %321 = tpu.matmul %318, %320, %cst_119 {dimension_numbers = #tpu.dot_dimension_numbers<[1], [0], [0], [1], [0, 0, 1, 1], [], []>} : vector<64x64xbf16>, vector<64x32xbf16>, vector<64x32xf32> -> vector<64x32xf32>
    %322 = tpu.reciprocal %317 {approx = true} : vector<64x1xf32> -> vector<64x1xf32>
    %323 = vector.broadcast %322 : vector<64x1xf32> to vector<64x32xf32>
    %324 = arith.mulf %321, %323 : vector<64x32xf32>
    %325 = arith.truncf %324 : vector<64x32xf32> to vector<64x32xbf16>
    %c0_120 = arith.constant 0 : index
    %c0_121 = arith.constant 0 : index
    %326 = vector.load %arg22[%c0_120, %c0_121] : memref<32x32xbf16, #tpu.memory_space<vmem>>, vector<32x32xbf16>
    %cst_122 = arith.constant dense<0.000000e+00> : vector<64x32xf32>
    %327 = tpu.matmul %325, %326, %cst_122 {dimension_numbers = #tpu.dot_dimension_numbers<[1], [0], [0], [1], [0, 0, 1, 1], [], []>} : vector<64x32xbf16>, vector<32x32xbf16>, vector<64x32xf32> -> vector<64x32xf32>
    %c0_123 = arith.constant 0 : index
    %c0_124 = arith.constant 0 : index
    %328 = vector.load %arg23[%c0_123, %c0_124] : memref<1x32xf32, #tpu.memory_space<vmem>>, vector<1x32xf32>
    %329 = vector.broadcast %328 : vector<1x32xf32> to vector<64x32xf32>
    %330 = arith.addf %327, %329 : vector<64x32xf32>
    %cst_125 = arith.constant 0.000000e+00 : f32
    %331 = vector.broadcast %cst_125 : f32 to vector<64x32xf32>
    %332 = arith.maximumf %330, %331 : vector<64x32xf32>
    %333 = arith.truncf %332 : vector<64x32xf32> to vector<64x32xbf16>
    %c0_126 = arith.constant 0 : index
    %c0_127 = arith.constant 0 : index
    %334 = vector.load %arg24[%c0_126, %c0_127] : memref<32x32xbf16, #tpu.memory_space<vmem>>, vector<32x32xbf16>
    %cst_128 = arith.constant dense<0.000000e+00> : vector<64x32xf32>
    %335 = tpu.matmul %333, %334, %cst_128 {dimension_numbers = #tpu.dot_dimension_numbers<[1], [0], [0], [1], [0, 0, 1, 1], [], []>} : vector<64x32xbf16>, vector<32x32xbf16>, vector<64x32xf32> -> vector<64x32xf32>
    %c0_129 = arith.constant 0 : index
    %c0_130 = arith.constant 0 : index
    %336 = vector.load %arg25[%c0_129, %c0_130] : memref<1x32xf32, #tpu.memory_space<vmem>>, vector<1x32xf32>
    %337 = vector.broadcast %336 : vector<1x32xf32> to vector<64x32xf32>
    %338 = arith.addf %335, %337 : vector<64x32xf32>
    %339 = arith.truncf %236 : vector<64x64xf32> to vector<64x64xbf16>
    %c0_131 = arith.constant 0 : index
    %c0_132 = arith.constant 0 : index
    %340 = vector.load %arg26[%c0_131, %c0_132] : memref<64x32xbf16, #tpu.memory_space<vmem>>, vector<64x32xbf16>
    %cst_133 = arith.constant dense<0.000000e+00> : vector<64x32xf32>
    %341 = tpu.matmul %339, %340, %cst_133 {dimension_numbers = #tpu.dot_dimension_numbers<[1], [0], [0], [1], [0, 0, 1, 1], [], []>} : vector<64x64xbf16>, vector<64x32xbf16>, vector<64x32xf32> -> vector<64x32xf32>
    %c0_134 = arith.constant 0 : index
    %c0_135 = arith.constant 0 : index
    %342 = vector.load %arg27[%c0_134, %c0_135] : memref<1x32xf32, #tpu.memory_space<vmem>>, vector<1x32xf32>
    %343 = vector.broadcast %342 : vector<1x32xf32> to vector<64x32xf32>
    %344 = arith.addf %341, %343 : vector<64x32xf32>
    %345 = arith.addf %338, %344 : vector<64x32xf32>
    %cst_136 = arith.constant 0.000000e+00 : f32
    %346 = vector.broadcast %cst_136 : f32 to vector<64x32xf32>
    %347 = arith.maximumf %345, %346 : vector<64x32xf32>
    %c0_137 = arith.constant 0 : index
    %c0_138 = arith.constant 0 : index
    %c0_139 = arith.constant 0 : index
    %348 = vector.load %arg8[%c0_137, %c0_138, %c0_139] : memref<1x3x96xf32, #tpu.memory_space<vmem>>, vector<1x3x96xf32>
    %349 = vector.shape_cast %348 : vector<1x3x96xf32> to vector<3x96xf32>
    %350 = vector.extract_strided_slice %349 {offsets = [0, 0], sizes = [1, 96], strides = [1, 1]} : vector<3x96xf32> to vector<1x96xf32>
    %351 = vector.broadcast %11#2 : vector<64x1xf32> to vector<64x96xf32>
    %352 = vector.broadcast %350 : vector<1x96xf32> to vector<64x96xf32>
    %353 = arith.subf %351, %352 : vector<64x96xf32>
    %354 = vector.extract_strided_slice %349 {offsets = [1, 0], sizes = [1, 96], strides = [1, 1]} : vector<3x96xf32> to vector<1x96xf32>
    %355 = vector.broadcast %11#3 : vector<64x1xf32> to vector<64x96xf32>
    %356 = vector.broadcast %354 : vector<1x96xf32> to vector<64x96xf32>
    %357 = arith.subf %355, %356 : vector<64x96xf32>
    %358 = vector.extract_strided_slice %349 {offsets = [2, 0], sizes = [1, 96], strides = [1, 1]} : vector<3x96xf32> to vector<1x96xf32>
    %359 = vector.broadcast %11#4 : vector<64x1xf32> to vector<64x96xf32>
    %360 = vector.broadcast %358 : vector<1x96xf32> to vector<64x96xf32>
    %361 = arith.subf %359, %360 : vector<64x96xf32>
    %362 = arith.mulf %353, %353 : vector<64x96xf32>
    %363 = arith.mulf %357, %357 : vector<64x96xf32>
    %364 = arith.addf %362, %363 : vector<64x96xf32>
    %365 = arith.mulf %361, %361 : vector<64x96xf32>
    %366 = arith.addf %364, %365 : vector<64x96xf32>
    %367 = tpu.iota {dimensions = array<i32: 1>} : vector<64x96xi32>
    %cst_140 = arith.constant 0.000000e+00 : f32
    %368 = vector.broadcast %cst_140 : f32 to vector<64x96xf32>
    %cst_141 = arith.constant dense<0x7F800000> : vector<64xf32>
    %369 = vector.multi_reduction <minimumf>, %366, %cst_141 [1] : vector<64x96xf32> to vector<64xf32>
    %370 = vector.shape_cast %369 : vector<64xf32> to vector<64x1xf32>
    %371 = vector.broadcast %370 : vector<64x1xf32> to vector<64x96xf32>
    %372 = arith.cmpf ole, %366, %371 : vector<64x96xf32>
    %c96_i32 = arith.constant 96 : i32
    %373 = vector.broadcast %c96_i32 : i32 to vector<64x96xi32>
    %374 = arith.select %372, %367, %373 : vector<64x96xi1>, vector<64x96xi32>
    %cst_142 = arith.constant dense<2147483647> : vector<64xi32>
    %375 = vector.multi_reduction <minsi>, %374, %cst_142 [1] : vector<64x96xi32> to vector<64xi32>
    %376 = vector.shape_cast %375 : vector<64xi32> to vector<64x1xi32>
    %377 = vector.broadcast %376 : vector<64x1xi32> to vector<64x96xi32>
    %378 = arith.cmpi eq, %367, %377 : vector<64x96xi32>
    %cst_143 = arith.constant 9.99999993E-9 : f32
    %379 = vector.broadcast %cst_143 : f32 to vector<64x1xf32>
    %380 = arith.addf %370, %379 : vector<64x1xf32>
    %381 = tpu.reciprocal %380 {approx = true} : vector<64x1xf32> -> vector<64x1xf32>
    %cst_144 = arith.constant 0.000000e+00 : f32
    %382 = vector.shape_cast %381 : vector<64x1xf32> to vector<64x1xf32>
    %383 = vector.broadcast %382 : vector<64x1xf32> to vector<64x96xf32>
    %384 = vector.broadcast %cst_144 : f32 to vector<64x96xf32>
    %385 = arith.select %378, %383, %384 : vector<64x96xi1>, vector<64x96xf32>
    %386 = arith.addf %368, %385 : vector<64x96xf32>
    %cst_145 = arith.constant 1.000000e+10 : f32
    %387 = vector.broadcast %cst_145 : f32 to vector<64x96xf32>
    %388 = arith.select %378, %387, %366 : vector<64x96xi1>, vector<64x96xf32>
    %cst_146 = arith.constant dense<0x7F800000> : vector<64xf32>
    %389 = vector.multi_reduction <minimumf>, %388, %cst_146 [1] : vector<64x96xf32> to vector<64xf32>
    %390 = vector.shape_cast %389 : vector<64xf32> to vector<64x1xf32>
    %391 = vector.broadcast %390 : vector<64x1xf32> to vector<64x96xf32>
    %392 = arith.cmpf ole, %388, %391 : vector<64x96xf32>
    %c96_i32_147 = arith.constant 96 : i32
    %393 = vector.broadcast %c96_i32_147 : i32 to vector<64x96xi32>
    %394 = arith.select %392, %367, %393 : vector<64x96xi1>, vector<64x96xi32>
    %cst_148 = arith.constant dense<2147483647> : vector<64xi32>
    %395 = vector.multi_reduction <minsi>, %394, %cst_148 [1] : vector<64x96xi32> to vector<64xi32>
    %396 = vector.shape_cast %395 : vector<64xi32> to vector<64x1xi32>
    %397 = vector.broadcast %396 : vector<64x1xi32> to vector<64x96xi32>
    %398 = arith.cmpi eq, %367, %397 : vector<64x96xi32>
    %cst_149 = arith.constant 9.99999993E-9 : f32
    %399 = vector.broadcast %cst_149 : f32 to vector<64x1xf32>
    %400 = arith.addf %390, %399 : vector<64x1xf32>
    %401 = tpu.reciprocal %400 {approx = true} : vector<64x1xf32> -> vector<64x1xf32>
    %cst_150 = arith.constant 0.000000e+00 : f32
    %402 = vector.shape_cast %401 : vector<64x1xf32> to vector<64x1xf32>
    %403 = vector.broadcast %402 : vector<64x1xf32> to vector<64x96xf32>
    %404 = vector.broadcast %cst_150 : f32 to vector<64x96xf32>
    %405 = arith.select %398, %403, %404 : vector<64x96xi1>, vector<64x96xf32>
    %406 = arith.addf %386, %405 : vector<64x96xf32>
    %cst_151 = arith.constant 1.000000e+10 : f32
    %407 = vector.broadcast %cst_151 : f32 to vector<64x96xf32>
    %408 = arith.select %398, %407, %388 : vector<64x96xi1>, vector<64x96xf32>
    %cst_152 = arith.constant dense<0x7F800000> : vector<64xf32>
    %409 = vector.multi_reduction <minimumf>, %408, %cst_152 [1] : vector<64x96xf32> to vector<64xf32>
    %410 = vector.shape_cast %409 : vector<64xf32> to vector<64x1xf32>
    %411 = vector.broadcast %410 : vector<64x1xf32> to vector<64x96xf32>
    %412 = arith.cmpf ole, %408, %411 : vector<64x96xf32>
    %c96_i32_153 = arith.constant 96 : i32
    %413 = vector.broadcast %c96_i32_153 : i32 to vector<64x96xi32>
    %414 = arith.select %412, %367, %413 : vector<64x96xi1>, vector<64x96xi32>
    %cst_154 = arith.constant dense<2147483647> : vector<64xi32>
    %415 = vector.multi_reduction <minsi>, %414, %cst_154 [1] : vector<64x96xi32> to vector<64xi32>
    %416 = vector.shape_cast %415 : vector<64xi32> to vector<64x1xi32>
    %417 = vector.broadcast %416 : vector<64x1xi32> to vector<64x96xi32>
    %418 = arith.cmpi eq, %367, %417 : vector<64x96xi32>
    %cst_155 = arith.constant 9.99999993E-9 : f32
    %419 = vector.broadcast %cst_155 : f32 to vector<64x1xf32>
    %420 = arith.addf %410, %419 : vector<64x1xf32>
    %421 = tpu.reciprocal %420 {approx = true} : vector<64x1xf32> -> vector<64x1xf32>
    %cst_156 = arith.constant 0.000000e+00 : f32
    %422 = vector.shape_cast %421 : vector<64x1xf32> to vector<64x1xf32>
    %423 = vector.broadcast %422 : vector<64x1xf32> to vector<64x96xf32>
    %424 = vector.broadcast %cst_156 : f32 to vector<64x96xf32>
    %425 = arith.select %418, %423, %424 : vector<64x96xi1>, vector<64x96xf32>
    %426 = arith.addf %406, %425 : vector<64x96xf32>
    %cst_157 = arith.constant dense<0.000000e+00> : vector<64xf32>
    %427 = vector.multi_reduction <add>, %426, %cst_157 [1] : vector<64x96xf32> to vector<64xf32>
    %428 = vector.shape_cast %427 : vector<64xf32> to vector<64x1xf32>
    %429 = arith.truncf %426 : vector<64x96xf32> to vector<64x96xbf16>
    %c0_158 = arith.constant 0 : index
    %c0_159 = arith.constant 0 : index
    %c0_160 = arith.constant 0 : index
    %430 = vector.load %arg9[%c0_158, %c0_159, %c0_160] : memref<1x96x16xbf16, #tpu.memory_space<vmem>>, vector<1x96x16xbf16>
    %431 = vector.shape_cast %430 : vector<1x96x16xbf16> to vector<96x16xbf16>
    %cst_161 = arith.constant dense<0.000000e+00> : vector<64x16xf32>
    %432 = tpu.matmul %429, %431, %cst_161 {dimension_numbers = #tpu.dot_dimension_numbers<[1], [0], [0], [1], [0, 0, 1, 1], [], []>} : vector<64x96xbf16>, vector<96x16xbf16>, vector<64x16xf32> -> vector<64x16xf32>
    %433 = tpu.reciprocal %428 {approx = true} : vector<64x1xf32> -> vector<64x1xf32>
    %434 = vector.broadcast %433 : vector<64x1xf32> to vector<64x16xf32>
    %435 = arith.mulf %432, %434 : vector<64x16xf32>
    %436 = arith.truncf %435 : vector<64x16xf32> to vector<64x16xbf16>
    %c0_162 = arith.constant 0 : index
    %c0_163 = arith.constant 0 : index
    %437 = vector.load %arg28[%c0_162, %c0_163] : memref<16x32xbf16, #tpu.memory_space<vmem>>, vector<16x32xbf16>
    %cst_164 = arith.constant dense<0.000000e+00> : vector<64x32xf32>
    %438 = tpu.matmul %436, %437, %cst_164 {dimension_numbers = #tpu.dot_dimension_numbers<[1], [0], [0], [1], [0, 0, 1, 1], [], []>} : vector<64x16xbf16>, vector<16x32xbf16>, vector<64x32xf32> -> vector<64x32xf32>
    %c0_165 = arith.constant 0 : index
    %c0_166 = arith.constant 0 : index
    %439 = vector.load %arg29[%c0_165, %c0_166] : memref<1x32xf32, #tpu.memory_space<vmem>>, vector<1x32xf32>
    %440 = vector.broadcast %439 : vector<1x32xf32> to vector<64x32xf32>
    %441 = arith.addf %438, %440 : vector<64x32xf32>
    %cst_167 = arith.constant 0.000000e+00 : f32
    %442 = vector.broadcast %cst_167 : f32 to vector<64x32xf32>
    %443 = arith.maximumf %441, %442 : vector<64x32xf32>
    %444 = arith.truncf %443 : vector<64x32xf32> to vector<64x32xbf16>
    %c0_168 = arith.constant 0 : index
    %c0_169 = arith.constant 0 : index
    %445 = vector.load %arg30[%c0_168, %c0_169] : memref<32x32xbf16, #tpu.memory_space<vmem>>, vector<32x32xbf16>
    %cst_170 = arith.constant dense<0.000000e+00> : vector<64x32xf32>
    %446 = tpu.matmul %444, %445, %cst_170 {dimension_numbers = #tpu.dot_dimension_numbers<[1], [0], [0], [1], [0, 0, 1, 1], [], []>} : vector<64x32xbf16>, vector<32x32xbf16>, vector<64x32xf32> -> vector<64x32xf32>
    %c0_171 = arith.constant 0 : index
    %c0_172 = arith.constant 0 : index
    %447 = vector.load %arg31[%c0_171, %c0_172] : memref<1x32xf32, #tpu.memory_space<vmem>>, vector<1x32xf32>
    %448 = vector.broadcast %447 : vector<1x32xf32> to vector<64x32xf32>
    %449 = arith.addf %446, %448 : vector<64x32xf32>
    %450 = arith.truncf %347 : vector<64x32xf32> to vector<64x32xbf16>
    %c0_173 = arith.constant 0 : index
    %c0_174 = arith.constant 0 : index
    %451 = vector.load %arg32[%c0_173, %c0_174] : memref<32x32xbf16, #tpu.memory_space<vmem>>, vector<32x32xbf16>
    %cst_175 = arith.constant dense<0.000000e+00> : vector<64x32xf32>
    %452 = tpu.matmul %450, %451, %cst_175 {dimension_numbers = #tpu.dot_dimension_numbers<[1], [0], [0], [1], [0, 0, 1, 1], [], []>} : vector<64x32xbf16>, vector<32x32xbf16>, vector<64x32xf32> -> vector<64x32xf32>
    %c0_176 = arith.constant 0 : index
    %c0_177 = arith.constant 0 : index
    %453 = vector.load %arg33[%c0_176, %c0_177] : memref<1x32xf32, #tpu.memory_space<vmem>>, vector<1x32xf32>
    %454 = vector.broadcast %453 : vector<1x32xf32> to vector<64x32xf32>
    %455 = arith.addf %452, %454 : vector<64x32xf32>
    %456 = arith.addf %449, %455 : vector<64x32xf32>
    %cst_178 = arith.constant 0.000000e+00 : f32
    %457 = vector.broadcast %cst_178 : f32 to vector<64x32xf32>
    %458 = arith.maximumf %456, %457 : vector<64x32xf32>
    %459 = arith.truncf %458 : vector<64x32xf32> to vector<64x32xbf16>
    %c0_179 = arith.constant 0 : index
    %c0_180 = arith.constant 0 : index
    %460 = vector.load %arg34[%c0_179, %c0_180] : memref<32x64xbf16, #tpu.memory_space<vmem>>, vector<32x64xbf16>
    %cst_181 = arith.constant dense<0.000000e+00> : vector<64x64xf32>
    %461 = tpu.matmul %459, %460, %cst_181 {dimension_numbers = #tpu.dot_dimension_numbers<[1], [0], [0], [1], [0, 0, 1, 1], [], []>} : vector<64x32xbf16>, vector<32x64xbf16>, vector<64x64xf32> -> vector<64x64xf32>
    %c0_182 = arith.constant 0 : index
    %c0_183 = arith.constant 0 : index
    %462 = vector.load %arg35[%c0_182, %c0_183] : memref<1x64xf32, #tpu.memory_space<vmem>>, vector<1x64xf32>
    %463 = vector.broadcast %462 : vector<1x64xf32> to vector<64x64xf32>
    %464 = arith.addf %461, %463 : vector<64x64xf32>
    %cst_184 = arith.constant 0.000000e+00 : f32
    %465 = vector.broadcast %cst_184 : f32 to vector<64x64xf32>
    %466 = arith.maximumf %464, %465 : vector<64x64xf32>
    %c0_185 = arith.constant 0 : index
    %c0_186 = arith.constant 0 : index
    %c0_187 = arith.constant 0 : index
    %467 = vector.load %arg37[%c0_185, %c0_186, %c0_187] : memref<1x64x64xf32, #tpu.memory_space<vmem>>, vector<1x64x64xf32>
    %468 = vector.shape_cast %467 : vector<1x64x64xf32> to vector<64x64xf32>
    %469 = vector.shape_cast %466 : vector<64x64xf32> to vector<1x64x64xf32>
    tpu.vector_store %arg37[%c0_185, %c0_186, %c0_187], %469 {strides = array<i32>} : memref<1x64x64xf32, #tpu.memory_space<vmem>>, vector<1x64x64xf32>,
    return
  }
  func.func @transform_0(%arg0: i32) -> (i32, i32, i32) {
    %c0_i32 = arith.constant 0 : i32
    %c0_i32_0 = arith.constant 0 : i32
    %c0_i32_1 = arith.constant 0 : i32
    return %arg0, %c0_i32, %c0_i32_0 : i32, i32, i32
  }
  func.func @transform_1(%arg0: i32) -> (i32, i32, i32) {
    %c0_i32 = arith.constant 0 : i32
    %c0_i32_0 = arith.constant 0 : i32
    %c0_i32_1 = arith.constant 0 : i32
    return %arg0, %c0_i32, %c0_i32_0 : i32, i32, i32
  }
  func.func @transform_2(%arg0: i32) -> (i32, i32, i32) {
    %c0_i32 = arith.constant 0 : i32
    %c0_i32_0 = arith.constant 0 : i32
    %c0_i32_1 = arith.constant 0 : i32
    return %arg0, %c0_i32, %c0_i32_0 : i32, i32, i32
  }
  func.func @transform_3(%arg0: i32) -> (i32, i32, i32) {
    %c0_i32 = arith.constant 0 : i32
    %c0_i32_0 = arith.constant 0 : i32
    %c0_i32_1 = arith.constant 0 : i32
    return %arg0, %c0_i32, %c0_i32_0 : i32, i32, i32
  }
  func.func @transform_4(%arg0: i32) -> (i32, i32, i32) {
    %c0_i32 = arith.constant 0 : i32
    %c0_i32_0 = arith.constant 0 : i32
    %c0_i32_1 = arith.constant 0 : i32
    return %arg0, %c0_i32, %c0_i32_0 : i32, i32, i32
  }
  func.func @transform_5(%arg0: i32) -> (i32, i32, i32) {
    %c0_i32 = arith.constant 0 : i32
    %c0_i32_0 = arith.constant 0 : i32
    %c0_i32_1 = arith.constant 0 : i32
    return %arg0, %c0_i32, %c0_i32_0 : i32, i32, i32
  }
  func.func @transform_6(%arg0: i32) -> (i32, i32, i32) {
    %c0_i32 = arith.constant 0 : i32
    %c0_i32_0 = arith.constant 0 : i32
    %c0_i32_1 = arith.constant 0 : i32
    return %arg0, %c0_i32, %c0_i32_0 : i32, i32, i32
  }
  func.func @transform_7(%arg0: i32) -> (i32, i32, i32) {
    %c0_i32 = arith.constant 0 : i32
    %c0_i32_0 = arith.constant 0 : i32
    %c0_i32_1 = arith.constant 0 : i32
    return %arg0, %c0_i32, %c0_i32_0 : i32, i32, i32
  }
  func.func @transform_8(%arg0: i32) -> (i32, i32, i32) {
    %c0_i32 = arith.constant 0 : i32
    %c0_i32_0 = arith.constant 0 : i32
    %c0_i32_1 = arith.constant 0 : i32
    return %arg0, %c0_i32, %c0_i32_0 : i32, i32, i32
  }
  func.func @transform_9(%arg0: i32) -> (i32, i32) {
    %c0_i32 = arith.constant 0 : i32
    %c0_i32_0 = arith.constant 0 : i32
    %c0_i32_1 = arith.constant 0 : i32
    return %c0_i32, %c0_i32_0 : i32, i32
  }
  func.func @transform_10(%arg0: i32) -> (i32, i32) {
    %c0_i32 = arith.constant 0 : i32
    %c0_i32_0 = arith.constant 0 : i32
    %c0_i32_1 = arith.constant 0 : i32
    return %c0_i32, %c0_i32_0 : i32, i32
  }
  func.func @transform_11(%arg0: i32) -> (i32, i32) {
    %c0_i32 = arith.constant 0 : i32
    %c0_i32_0 = arith.constant 0 : i32
    %c0_i32_1 = arith.constant 0 : i32
    return %c0_i32, %c0_i32_0 : i32, i32
  }
  func.func @transform_12(%arg0: i32) -> (i32, i32) {
    %c0_i32 = arith.constant 0 : i32
    %c0_i32_0 = arith.constant 0 : i32
    %c0_i32_1 = arith.constant 0 : i32
    return %c0_i32, %c0_i32_0 : i32, i32
  }
  func.func @transform_13(%arg0: i32) -> (i32, i32) {
    %c0_i32 = arith.constant 0 : i32
    %c0_i32_0 = arith.constant 0 : i32
    %c0_i32_1 = arith.constant 0 : i32
    return %c0_i32, %c0_i32_0 : i32, i32
  }
  func.func @transform_14(%arg0: i32) -> (i32, i32) {
    %c0_i32 = arith.constant 0 : i32
    %c0_i32_0 = arith.constant 0 : i32
    %c0_i32_1 = arith.constant 0 : i32
    return %c0_i32, %c0_i32_0 : i32, i32
  }
  func.func @transform_15(%arg0: i32) -> (i32, i32) {
    %c0_i32 = arith.constant 0 : i32
    %c0_i32_0 = arith.constant 0 : i32
    %c0_i32_1 = arith.constant 0 : i32
    return %c0_i32, %c0_i32_0 : i32, i32
  }
  func.func @transform_16(%arg0: i32) -> (i32, i32) {
    %c0_i32 = arith.constant 0 : i32
    %c0_i32_0 = arith.constant 0 : i32
    %c0_i32_1 = arith.constant 0 : i32
    return %c0_i32, %c0_i32_0 : i32, i32
  }
  func.func @transform_17(%arg0: i32) -> (i32, i32) {
    %c0_i32 = arith.constant 0 : i32
    %c0_i32_0 = arith.constant 0 : i32
    %c0_i32_1 = arith.constant 0 : i32
    return %c0_i32, %c0_i32_0 : i32, i32
  }
  func.func @transform_18(%arg0: i32) -> (i32, i32) {
    %c0_i32 = arith.constant 0 : i32
    %c0_i32_0 = arith.constant 0 : i32
    %c0_i32_1 = arith.constant 0 : i32
    return %c0_i32, %c0_i32_0 : i32, i32
  }
  func.func @transform_19(%arg0: i32) -> (i32, i32) {
    %c0_i32 = arith.constant 0 : i32
    %c0_i32_0 = arith.constant 0 : i32
    %c0_i32_1 = arith.constant 0 : i32
    return %c0_i32, %c0_i32_0 : i32, i32
  }
  func.func @transform_20(%arg0: i32) -> (i32, i32) {
    %c0_i32 = arith.constant 0 : i32
    %c0_i32_0 = arith.constant 0 : i32
    %c0_i32_1 = arith.constant 0 : i32
    return %c0_i32, %c0_i32_0 : i32, i32
  }
  func.func @transform_21(%arg0: i32) -> (i32, i32) {
    %c0_i32 = arith.constant 0 : i32
    %c0_i32_0 = arith.constant 0 : i32
    %c0_i32_1 = arith.constant 0 : i32
    return %c0_i32, %c0_i32_0 : i32, i32
  }
  func.func @transform_22(%arg0: i32) -> (i32, i32) {
    %c0_i32 = arith.constant 0 : i32
    %c0_i32_0 = arith.constant 0 : i32
    %c0_i32_1 = arith.constant 0 : i32
    return %c0_i32, %c0_i32_0 : i32, i32
  }
  func.func @transform_23(%arg0: i32) -> (i32, i32) {
    %c0_i32 = arith.constant 0 : i32
    %c0_i32_0 = arith.constant 0 : i32
    %c0_i32_1 = arith.constant 0 : i32
    return %c0_i32, %c0_i32_0 : i32, i32
  }
  func.func @transform_24(%arg0: i32) -> (i32, i32) {
    %c0_i32 = arith.constant 0 : i32
    %c0_i32_0 = arith.constant 0 : i32
    %c0_i32_1 = arith.constant 0 : i32
    return %c0_i32, %c0_i32_0 : i32, i32
  }
  func.func @transform_25(%arg0: i32) -> (i32, i32) {
    %c0_i32 = arith.constant 0 : i32
    %c0_i32_0 = arith.constant 0 : i32
    %c0_i32_1 = arith.constant 0 : i32
    return %c0_i32, %c0_i32_0 : i32, i32
  }
  func.func @transform_26(%arg0: i32) -> (i32, i32) {
    %c0_i32 = arith.constant 0 : i32
    %c0_i32_0 = arith.constant 0 : i32
    %c0_i32_1 = arith.constant 0 : i32
    return %c0_i32, %c0_i32_0 : i32, i32
  }
  func.func @transform_27(%arg0: i32) -> (i32, i32) {
    %c0_i32 = arith.constant 0 : i32
    %c0_i32_0 = arith.constant 0 : i32
    %c0_i32_1 = arith.constant 0 : i32
    return %c0_i32, %c0_i32_0 : i32, i32
  }
  func.func @transform_28(%arg0: i32) -> (i32, i32) {
    %c0_i32 = arith.constant 0 : i32
    %c0_i32_0 = arith.constant 0 : i32
    %c0_i32_1 = arith.constant 0 : i32
    return %c0_i32, %c0_i32_0 : i32, i32
  }
  func.func @transform_29(%arg0: i32) -> (i32, i32) {
    %c0_i32 = arith.constant 0 : i32
    %c0_i32_0 = arith.constant 0 : i32
    %c0_i32_1 = arith.constant 0 : i32
    return %c0_i32, %c0_i32_0 : i32, i32
  }
  func.func @transform_30(%arg0: i32) -> (i32, i32) {
    %c0_i32 = arith.constant 0 : i32
    %c0_i32_0 = arith.constant 0 : i32
    %c0_i32_1 = arith.constant 0 : i32
    return %c0_i32, %c0_i32_0 : i32, i32
  }
  func.func @transform_31(%arg0: i32) -> (i32, i32) {
    %c0_i32 = arith.constant 0 : i32
    %c0_i32_0 = arith.constant 0 : i32
    %c0_i32_1 = arith.constant 0 : i32
    return %c0_i32, %c0_i32_0 : i32, i32
  }
  func.func @transform_32(%arg0: i32) -> (i32, i32) {
    %c0_i32 = arith.constant 0 : i32
    %c0_i32_0 = arith.constant 0 : i32
    %c0_i32_1 = arith.constant 0 : i32
    return %c0_i32, %c0_i32_0 : i32, i32
  }
  func.func @transform_33(%arg0: i32) -> (i32, i32) {
    %c0_i32 = arith.constant 0 : i32
    %c0_i32_0 = arith.constant 0 : i32
    %c0_i32_1 = arith.constant 0 : i32
    return %c0_i32, %c0_i32_0 : i32, i32
  }
  func.func @transform_34(%arg0: i32) -> (i32, i32) {
    %c0_i32 = arith.constant 0 : i32
    %c0_i32_0 = arith.constant 0 : i32
    %c0_i32_1 = arith.constant 0 : i32
    return %c0_i32, %c0_i32_0 : i32, i32
  }
  func.func @transform_35(%arg0: i32) -> (i32, i32, i32) {
    %c0_i32 = arith.constant 0 : i32
    %c0_i32_0 = arith.constant 0 : i32
    %c0_i32_1 = arith.constant 0 : i32
    return %arg0, %c0_i32, %c0_i32_0 : i32, i32, i32
  }
  func.func @transform_36(%arg0: i32) -> (i32, i32, i32) {
    %c0_i32 = arith.constant 0 : i32
    %c0_i32_0 = arith.constant 0 : i32
    %c0_i32_1 = arith.constant 0 : i32
    return %arg0, %c0_i32, %c0_i32_0 : i32, i32, i32
  }
}

</mosaic_0001>

<bundles_post_ra>
// kernel: forward.1
= control target key start
LH: loop header
LB: loop body
LE: loop exit
PB: predicated region body
PF: predicated region fallthrough
CT: control target
= control target key end

     0   :  { %s8046_s6 = smov 1   ;;  %s8047_s10 = smov 2   ;;  %s11929_s0 = inlined_call_operand.smem [shape: u32[37], index: -1, kind: input, shape index: {}] }
   0x1   :  { %s8092_s5 = sld [smem:[%s11929_s0]]   ;;  %s8048_s14 = smov 3  }
   0x2   :  { %s8097_s9 = sld [smem:[%s11929_s0 + %s8046_s6]]   ;;  %s8049_s18 = smov 4  }
   0x3   :  { %s8102_s13 = sld [smem:[%s11929_s0 + %s8047_s10]]   ;;  %s8050_s22 = smov 5  }
   0x4   :  { %s8107_s17 = sld [smem:[%s11929_s0 + %s8048_s14]]   ;;  %s8051_s26 = smov 6  }
   0x5   :  { %s8112_s21 = sld [smem:[%s11929_s0 + %s8049_s18]]   ;;  %s8052_s30 = smov 7  }
   0x6   :  { %s8117_s25 = sld [smem:[%s11929_s0 + %s8050_s22]]   ;;  %s8053_s4 = smov 8  }
   0x7   :  { %12061 = sst [smem:[#allocation2_spill]] %s8092_s5  ;;  %s8054_s10 = smov 9  }
   0x8   :  { %s8122_s29 = sld [smem:[%s11929_s0 + %s8051_s26]]   ;;  %s8055_s15 = smov 10  }
   0x9   :  { %s8127_s3 = sld [smem:[%s11929_s0 + %s8052_s30]]   ;;  %s8056_s20 = smov 11  }
   0xa   :  { %s8132_s8 = sld [smem:[%s11929_s0 + %s8053_s4]]   ;;  %s8057_s26 = smov 12  }
   0xb   :  { %s8137_s14 = sld [smem:[%s11929_s0 + %s8054_s10]]   ;;  %s8058_s1 = smov 13  }
   0xc   :  { %s8142_s19 = sld [smem:[%s11929_s0 + %s8055_s15]]   ;;  %s8059_s7 = smov 14  }
   0xd   :  { %s8147_s24 = sld [smem:[%s11929_s0 + %s8056_s20]]   ;;  %s8060_s15 = smov 15  }
   0xe   :  { %s8152_s30 = sld [smem:[%s11929_s0 + %s8057_s26]]   ;;  %s8061_s22 = smov 16  }
   0xf   :  { %s8157_s6 = sld [smem:[%s11929_s0 + %s8058_s1]]   ;;  %s8062_s28 = smov 17  }
  0x10   :  { %s8162_s12 = sld [smem:[%s11929_s0 + %s8059_s7]]   ;;  %s8063_s7 = smov 18  }
  0x11   :  { %s8167_s20 = sld [smem:[%s11929_s0 + %s8060_s15]]   ;;  %s8064_s15 = smov 19  }
  0x12   :  { %s8172_s27 = sld [smem:[%s11929_s0 + %s8061_s22]]   ;;  %s8065_s22 = smov 20  }
  0x13   :  { %s8177_s4 = sld [smem:[%s11929_s0 + %s8062_s28]]   ;;  %s8066_s28 = smov 21  }
  0x14   :  { %12062 = sst [smem:[#allocation3_spill]] %s8152_s30 }
  0x15   :  { %s8182_s30 = sld [smem:[%s11929_s0 + %s8063_s7]]   ;;  %s8067_s7 = smov 22  }
  0x16   :  { %12063 = sst [smem:[#allocation4_spill]] %s8162_s12 }
  0x17   :  { %12064 = sst [smem:[#allocation5_spill]] %s8167_s20 }
  0x18   :  { %12065 = sst [smem:[#allocation6_spill]] %s8172_s27 }
  0x19   :  { %12066 = sst [smem:[#allocation7_spill]] %s8177_s4 }
  0x1a   :  { %s8187_s12 = sld [smem:[%s11929_s0 + %s8064_s15]]   ;;  %s8068_s15 = smov 23  }
  0x1b   :  { %12067 = sst [smem:[#allocation8_spill]] %s8182_s30 }
  0x1c   :  { %s8192_s27 = sld [smem:[%s11929_s0 + %s8065_s22]]   ;;  %s8069_s22 = smov 24  }
  0x1d   :  { %s8197_s4 = sld [smem:[%s11929_s0 + %s8066_s28]]   ;;  %s8070_s28 = smov 25  }
  0x1e   :  { %s8202_s30 = sld [smem:[%s11929_s0 + %s8067_s7]]   ;;  %s8071_s7 = smov 26  }
  0x20   :  { %12068 = sst [smem:[#allocation9_spill]] %s8187_s12 }
  0x21   :  { %s8207_s12 = sld [smem:[%s11929_s0 + %s8068_s15]]   ;;  %s8072_s15 = smov 27  }
  0x22   :  { %12069 = sst [smem:[#allocation10_spill]] %s8192_s27 }
  0x23   :  { %12070 = sst [smem:[#allocation11_spill]] %s8197_s4 }
  0x24   :  { %12071 = sst [smem:[#allocation12_spill]] %s8202_s30 }
  0x25   :  { %s8212_s27 = sld [smem:[%s11929_s0 + %s8069_s22]]   ;;  %s8073_s22 = smov 28  }
  0x26   :  { %s8217_s4 = sld [smem:[%s11929_s0 + %s8070_s28]]   ;;  %s8074_s28 = smov 29  }
  0x27   :  { %12072 = sst [smem:[#allocation13_spill]] %s8207_s12 }
  0x28   :  { %s8222_s30 = sld [smem:[%s11929_s0 + %s8071_s7]]   ;;  %s8075_s7 = smov 30  }
  0x29   :  { %s8227_s12 = sld [smem:[%s11929_s0 + %s8072_s15]]   ;;  %s8076_s15 = smov 31  }
  0x2b   :  { %12073 = sst [smem:[#allocation14_spill]] %s8212_s27 }
  0x2c   :  { %12074 = sst [smem:[#allocation15_spill]] %s8217_s4 }
  0x2d   :  { %s8232_s27 = sld [smem:[%s11929_s0 + %s8073_s22]]   ;;  %s8077_s22 = smov 32  }
  0x2e   :  { %12075 = sst [smem:[#allocation16_spill]] %s8222_s30 }
  0x2f   :  { %12076 = sst [smem:[#allocation17_spill]] %s8227_s12 }
  0x30   :  { %s8237_s4 = sld [smem:[%s11929_s0 + %s8074_s28]]   ;;  %s8078_s28 = smov 33  }
  0x31   :  { %s8242_s30 = sld [smem:[%s11929_s0 + %s8075_s7]]   ;;  %s8079_s7 = smov 34  }
  0x32   :  { %s8247_s12 = sld [smem:[%s11929_s0 + %s8076_s15]]   ;;  %s8080_s15 = smov 35  }
  0x33   :  { %12077 = sst [smem:[#allocation18_spill]] %s8232_s27 }
  0x34   :  { %s8252_s27 = sld [smem:[%s11929_s0 + %s8077_s22]]   ;;  %s8081_s22 = smov 36  }
  0x36   :  { %12078 = sst [smem:[#allocation19_spill]] %s8237_s4 }
  0x37   :  { %12079 = sst [smem:[#allocation20_spill]] %s8242_s30 }
  0x38   :  { %12080 = sst [smem:[#allocation21_spill]] %s8247_s12 }
  0x39   :  { %s8257_s4 = sld [smem:[%s11929_s0 + %s8078_s28]]   ;;  %s8274_s28 = smov 0  }
  0x3a   :  { %12081 = sst [smem:[#allocation22_spill]] %s8252_s27 }
  0x3b   :  { %s8262_s30 = sld [smem:[%s11929_s0 + %s8079_s7]]  }
  0x3c   :  { %s8267_s12 = sld [smem:[%s11929_s0 + %s8080_s15]]  }
  0x3d   :  { %s8272_s27 = sld [smem:[%s11929_s0 + %s8081_s22]]  }
  0x3f   :  { %12082 = sst [smem:[#allocation23_spill]] %s8257_s4 }
  0x41   :  { %12083 = sst [smem:[#allocation24_spill]] %s8262_s30 }
  0x42 LB: > { %12084 = sst [smem:[#allocation25_spill]] %s7936_s28  ;;  %s6718_s1 = sadd.s32 4294967295, %s7936_s28   ;;  %s7936_s28 = sphi %s8274_s28, %s84_s28  }
  0x43   : > { %p6722_p0 = scmp.ge.s32.totalorder %s7936_s28, 1  ;;  %p1078_p1 = scmp.lt.s32.totalorder %s7936_s28, 3 }
  0x45   : > { %p1079_p2 = pnand %p6722_p0, %p1078_p1 }
  0x47   : > { %1082 = sbr.rel (%p1079_p2) target bundleno = 5114 (0x13fa), region = 160 }
  0x4c   : > { %p1208_p3 = scmp.lt.s32.totalorder %s6718_s1, 1  ;;  %s12085_s5 = sld [smem:[#allocation2_spill]]  ;;  %v1260_v0 = vlaneseq  ;;  %v8349_v12 = vmov 0.0   ;;  %v8351_v13 = vmov 0.0   ;;  %v8353_v14 = vmov 0.0  }
  0x4d   : > { %v8355_v15 = vmov 0.0   ;;  %v8357_v16 = vmov 0.0   ;;  %v8359_v17 = vmov 0.0   ;;  %v8361_v18 = vmov 0.0  }
  0x4e   : > { %s12417_s1 = smov (!%p1208_p3, %s6718_s1), 1  ;;  %v8284_v1 = vand.u32 127, %v1260_v0  ;;  %v8286_v2 = vshrl.u32 %v1260_v0, 7  ;;  %v8363_v19 = vmov 0.0   ;;  %v8365_v20 = vmov 0.0  }
  0x4f   : > { %s6886_s0 = sshll.u32 %s12417_s1, 3  ;;  %s8290_s2 = sshll.u32 %s12417_s1, 2  ;;  %v8367_v21 = vmov 0.0   ;;  %v8369_v22 = vmov 0.0   ;;  %v8371_v23 = vmov 0.0   ;;  %v8373_v24 = vmov 0.0  }
  0x50   : > { %12086 = vst [vmem:[#allocation26_spill] sm:$0xff] %v8286_v2  ;;  %v8293_v3 = vadd.s32 128, %v8284_v1  ;;  %v8296_v4 = vadd.s32 8, %v8286_v2  ;;  %v8299_v5 = vadd.s32 16, %v8286_v2  ;;  %v8302_v6 = vadd.s32 24, %v8286_v2  ;;  %s6887_s11 = sshll.u32 %s12417_s1, 4  ;;  %s1225_s15 = scalar_lea.vmem %s8107_s17, %s8290_s2 }
  0x51   : > { %v8308_v7 = vadd.s32 32, %v8286_v2  ;;  %v8311_v8 = vadd.s32 40, %v8286_v2  ;;  %v8314_v9 = vadd.s32 48, %v8286_v2  ;;  %v8317_v10 = vadd.s32 56, %v8286_v2  ;;  %s8325_s16 = scalar_lea.vmem %s8102_s13, %s6887_s11  ;;  %s7250_s18 = smul.u32 24, %s12417_s1 }
  0x52   : > { %12087 = vst [vmem:[#allocation27_spill] sm:$0xff] %v8293_v3  ;;  %12088 = vst [vmem:[#allocation28_spill] sm:$0xff] %v8296_v4  ;;  %s1212_s7 = scalar_lea.vmem %s12085_s5, %s6886_s0  ;;  %s1234_s22 = scalar_lea.vmem %s8117_s25, %s8290_s2  ;;  %v8375_v25 = vmov 0.0   ;;  %v8377_v26 = vmov 0.0   ;;  %v8379_v27 = vmov 0.0   ;;  %v8381_v28 = vmov 0.0  }
  0x53   : > { %12089 = vst [vmem:[#allocation29_spill] sm:$0xff] %v8299_v5  ;;  %12090 = vst [vmem:[#allocation30_spill] sm:$0xff] %v8302_v6  ;;  %v8322_v11 = vld [vmem:[%s1212_s7] sm:$0x77]  ;;  %s6888_s23 = sshll.u32 %s12417_s1, 5  ;;  %s8332_s26 = scalar_lea.vmem %s8112_s21, %s7250_s18  ;;  %v8383_v29 = vmov 0.0  }
  0x54   : > { %12091 = vst [vmem:[#allocation31_spill] sm:$0xff] %v8308_v7  ;;  %12092 = vst [vmem:[#allocation32_spill] sm:$0xff] %v8311_v8  ;;  %s8335_s0 = scalar_lea.vmem %s8122_s29, %s6888_s23  ;;  %s1243_s10 = scalar_lea.vmem %s8127_s3, %s8290_s2  ;;  %v8385_v30 = vmov 0.0   ;;  %v8387_v31 = vmov 0.0   ;;  %v8389_v32 = vmov 0.0   ;;  %v8391_v33 = vmov 0.0  }
  0x55   : > { %s7251_s5 = smul.u32 48, %s12417_s1  ;;  %s1252_s28 = scalar_lea.vmem %s8267_s12, %s8290_s2  ;;  %v8393_v34 = vmov 0.0   ;;  %v8395_v35 = vmov 0.0   ;;  %v8397_v36 = vmov 0.0   ;;  %v8399_v37 = vmov 1e+10  }
  0x56   : > { %s6889_s30 = sshll.u32 %s12417_s1, 6 }
  0x57   : > { %s8344_s4 = scalar_lea.vmem %s8132_s8, %s7251_s5  ;;  %s8347_s20 = scalar_lea.vmem %s8272_s27, %s6889_s30 }
  0x58   : > { %s8401_s5 = smov 0  }
  0x59 LB: >> { %v12093_v3 = vld [vmem:[#allocation27_spill] sm:$0xff]  ;;  %v12094_v2 = vld [vmem:[#allocation26_spill] sm:$0xff]  ;;  %vm1315_vm0 = vcmask 1040384   ;;  %v8082_v45 = vmov 839922192   ;;  %vm1381_vm6 = vcmask 1042432   ;;  %v7944_v13 = vphi %v8351_v13, %v12155_v13   ;;  %v7940_v12 = vphi %v8349_v12, %v12154_v12   ;;  %s8044_s5 = sphi %s8401_s5, %s1277_s5   ;;  %v8040_v37 = vphi %v8399_v37, %v1497_v37   ;;  %v8036_v36 = vphi %v8397_v36, %v12178_v36   ;;  %v8032_v35 = vphi %v8395_v35, %v12177_v35   ;;  %v8028_v34 = vphi %v8393_v34, %v12176_v34   ;;  %v8024_v33 = vphi %v8391_v33, %v12175_v33   ;;  %v8020_v32 = vphi %v8389_v32, %v12174_v32   ;;  %v8016_v31 = vphi %v8387_v31, %v12173_v31   ;;  %v8012_v30 = vphi %v8385_v30, %v12172_v30   ;;  %v8008_v29 = vphi %v8383_v29, %v12171_v29   ;;  %v8004_v28 = vphi %v8381_v28, %v12170_v28   ;;  %v8000_v27 = vphi %v8379_v27, %v12169_v27   ;;  %v7996_v26 = vphi %v8377_v26, %v12168_v26   ;;  %v7992_v25 = vphi %v8375_v25, %v12167_v25   ;;  %v7988_v24 = vphi %v8373_v24, %v12166_v24   ;;  %v7984_v23 = vphi %v8371_v23, %v12165_v23   ;;  %v7980_v22 = vphi %v8369_v22, %v12164_v22   ;;  %v7976_v21 = vphi %v8367_v21, %v12163_v21   ;;  %v7972_v20 = vphi %v8365_v20, %v12162_v20   ;;  %v7968_v19 = vphi %v8363_v19, %v12161_v19   ;;  %v7964_v18 = vphi %v8361_v18, %v12160_v18   ;;  %v7960_v17 = vphi %v8359_v17, %v12159_v17   ;;  %v7956_v16 = vphi %v8357_v16, %v12158_v16   ;;  %v7952_v15 = vphi %v8355_v15, %v12157_v15   ;;  %v7948_v14 = vphi %v8353_v14, %v12156_v14  }
  0x5a   : >> { %v8485_v38 = vsub.s32 0, %v12094_v2  ;;  %v1311_v39 = vsub.s32 4, %v12094_v2  ;;  %v1323_v46 = vunpack.c.l.s4 %v8082_v45  ;;  %v1331_v49 = vcombine.low %v8284_v1, %v12093_v3  ;;  %v12096_v4 = vld [vmem:[#allocation28_spill] sm:$0xff]  ;;  %v12097_v5 = vld [vmem:[#allocation29_spill] sm:$0xff]  ;;  %v12098_v6 = vld [vmem:[#allocation30_spill] sm:$0xff] }
  0x5b   : >> { %v12099_v7 = vld [vmem:[#allocation31_spill] sm:$0xff]  ;;  %v12100_v8 = vld [vmem:[#allocation32_spill] sm:$0xff] }
  0x5c   : >> { %12095 = vst [vmem:[#allocation33_spill] sm:$0xff] %v8485_v38  ;;  %v1308_v40 = vrot.slane %v8040_v37, %v8485_v38  ;;  %v1312_v41 = vrot.slane %v8040_v37, %v1311_v39  ;;  %v1324_v47 = vunpack.c.0.s8 %v1323_v46 }
  0x5e   : >> { %v1316_v42 = vsel %vm1315_vm0, %v1308_v40, -inf  ;;  %v1317_v43 = vsel %vm1315_vm0, %v1312_v41, -inf  ;;  %v8494_v48 = vsub.s32 %v1324_v47, %v12094_v2 }
  0x5f   : >> { %v1318_v44 = vmax.f32 %v1316_v42, %v1317_v43  ;;  %v8083_v43 = vmov 0.0  }
  0x61   : >> { %1319 = vmax.xlane.f32.xlu0 %v1318_v44 }
  0xea   : >> { %v1320_v50 = vpop.xlane.xlu0 %1319 }
  0xeb   : >> { %v1328_v51 = vrot.slane %v1320_v50, %v8494_v48 }
  0xed   : >> { %vm1330_vm1 = vcmp.ge.f32.partialorder %v8040_v37, %v1328_v51 }
  0xee   : >> { %v1332_v52 = vsel %vm1330_vm1, %v1331_v49, 256 }
  0xef   : >> { %v1336_v53 = vrot.slane %v1332_v52, %v8485_v38  ;;  %v1340_v54 = vrot.slane %v1332_v52, %v1311_v39 }
  0xf1   : >> { %v1341_v55 = vsel %vm1315_vm0, %v1336_v53, 2147483647  ;;  %v1342_v56 = vsel %vm1315_vm0, %v1340_v54, 2147483647 }
  0xf2   : >> { %vm1343_vm2 = vcmp.lt.s32.totalorder %v1341_v55, %v1342_v56 }
  0xf3   : >> { %v1344_v57 = vsel %vm1343_vm2, %v1341_v55, %v1342_v56  ;;  %v1387_v55 = vstv %s8044_s5  ;;  %v8519_v56 = vsub.s32 1, %v12094_v2  ;;  %s1277_s5 = sadd.s32 1, %s8044_s5  }
  0xf4   : >> { %v1346_v58 = vshra.s32 %v1344_v57, 16  ;;  %v1345_v60 = vand.u32 65535, %v1344_v57  ;;  %vm1388_vm7 = vcmp.eq.s32.totalorder %v8284_v1, %v1387_v55  ;;  %vm1391_vm8 = vcmp.eq.s32.totalorder %v12094_v2, %v1387_v55  ;;  %p8606_p4 = scmp.ge.s32.totalorder %s1277_s5, 64  }
  0xf5   : >> { %vm1392_vm9 = vcmp.eq.s32.totalorder %v12096_v4, %v1387_v55  ;;  %vm1393_vm10 = vcmp.eq.s32.totalorder %v12097_v5, %v1387_v55  ;;  %vm1394_vm11 = vcmp.eq.s32.totalorder %v12098_v6, %v1387_v55  ;;  %vm1395_vm12 = vcmp.eq.s32.totalorder %v12099_v7, %v1387_v55  ;;  %12101 = vst [vmem:[#allocation34_spill] sm:$0xff] %v8519_v56  ;;  %s12179_s1 = scalar_lea.vmem (%p8606_p4), %s8097_s9, %s8290_s2  ;;  %s12352_s7 = sld [smem:[#allocation9_spill]] (%p8606_p4) }
  0xf6   : >> { %v1348_v59 = vcvt.s32.f32 %v1346_v58  ;;  %v1347_v62 = vcvt.s32.f32 %v1345_v60  ;;  %vm1396_vm13 = vcmp.eq.s32.totalorder %v12100_v8, %v1387_v55  ;;  %vm1397_vm14 = vcmp.eq.s32.totalorder %v8314_v9, %v1387_v55  ;;  %s12366_s11 = sld [smem:[#allocation3_spill]] (%p8606_p4) }
  0xf7   : >> { %vm1398_vm15 = vcmp.eq.s32.totalorder %v8317_v10, %v1387_v55  ;;  %v8522_v57 = vsub.s32 2, %v12094_v2  ;;  %v6740_v58 = vsel %vm1388_vm7, 1.0, %v8083_v43  ;;  %v6742_v60 = vsel %vm1392_vm9, 1.0, %v8083_v43  ;;  %s12391_s18 = sld [smem:[#allocation11_spill]] (%p8606_p4) }
  0xf8   : >> { %1349 = vmin.xlane.f32.xlu0 %v1348_v59  ;;  %vm1577_vm0 = vcmask (%p8606_p4), 261120   ;;  %s12401_s23 = sld [smem:[#allocation8_spill]] (%p8606_p4) }
  0xf9   : >> { %12102 = vst [vmem:[#allocation35_spill] sm:$0xff] %v8522_v57  ;;  %s12404_s5 = sld [smem:[#allocation12_spill]] (%p8606_p4) }
  0xfa   : > { %s12406_s30 = sld [smem:[#allocation21_spill]] (%p8606_p4) }
 0x181   : >> { %v1350_v61 = vpop.xlane.xlu0 %1349 }
 0x182   : >> { %vm1351_vm3 = vcmp.eq.f32.partialorder %v1348_v59, %v1350_v61  ;;  %v1356_v0 = vcvt.f32.s32 %v1350_v61  ;;  %v6741_v59 = vsel %vm1391_vm8, 1.0, %v8083_v43  ;;  %v6743_v61 = vsel %vm1393_vm10, 1.0, %v8083_v43 }
 0x183   : >> { %v1352_v63 = vsel %vm1351_vm3, %v1347_v62, inf  ;;  %v6744_v62 = vsel %vm1394_vm11, 1.0, %v8083_v43 }
 0x184   : >> { %1353 = vmin.xlane.f32.xlu1 %v1352_v63  ;;  %v1357_v41 = vshll.u32 %v1356_v0, 16  ;;  %v6745_v63 = vsel %vm1395_vm12, 1.0, %v8083_v43  ;;  %v6746_v0 = vsel %vm1396_vm13, 1.0, %v8083_v43 }
 0x20d   : >> { %v1354_v40 = vpop.xlane.xlu1 %1353 }
 0x20e   : >> { %v1355_v42 = vcvt.f32.s32 %v1354_v40  ;;  %v6747_v40 = vsel %vm1397_vm14, 1.0, %v8083_v43 }
 0x210   : >> { %v1358_v39 = vadd.s32 %v1357_v41, %v1355_v42  ;;  %v6748_v41 = vsel %vm1398_vm15, 1.0, %v8083_v43 }
 0x212   : >> { %vm1359_vm4 = vcmp.eq.s32.totalorder %v8284_v1, %v1358_v39  ;;  %vm1360_vm5 = vcmp.eq.s32.totalorder %v12093_v3, %v1358_v39 }
 0x213   : >> { %v6738_v44 = vsel %vm1359_vm4, 1.0, %v8083_v43  ;;  %v6739_v45 = vsel %vm1360_vm5, 1.0, %v8083_v43 }
 0x214   : >> { %v1368_v46 = vrot.slane %v6738_v44, %v8485_v38  ;;  %v1372_v47 = vrot.slane %v6739_v45, %v8485_v38 }
 0x216   : >> { %v1375_v49 = vcombine.low %v1368_v46, %v1372_v47 }
 0x218   : >> { %v1377_v50 = vmul.f32 %v1375_v49, %v8322_v11 }
 0x21a   : >> { %v1379_v51 = vcombine.high %v1377_v50, %v1377_v50  ;;  %v1382_v52 = vsel %vm1381_vm6, %v1377_v50, 0.0 }
 0x21c   : >> { %v1383_v53 = vsel %vm1381_vm6, %v1379_v51, 0.0 }
 0x21d   : >> { %v1384_v54 = vadd.f32 %v1383_v53, %v1382_v52 }
 0x21f   : >> { %1385 = vadd.xlane.f32.xlu1 %v1384_v54 }
 0x2a8   : >> { %v1386_v42 = vpop.xlane.xlu1 %1385 }
 0x2a9   : >> { %v1415_v39 = vmul.f32 %v6740_v58, %v1386_v42  ;;  %v1420_v44 = vrot.slane %v1386_v42, %v8485_v38  ;;  %v1440_v45 = vrot.slane %v1386_v42, %v8519_v56  ;;  %v1460_v46 = vrot.slane %v1386_v42, %v8522_v57 }
 0x2aa   : >> { %v1484_v47 = vrot.slane %v1386_v42, %v8494_v48 }
 0x2ab   : >> { %v8529_v36 = vadd.f32 %v8036_v36, %v1415_v39   ;;  %v1421_v50 = vmul.f32 %v6741_v59, %v1420_v44  ;;  %v1422_v51 = vmul.f32 %v6742_v60, %v1420_v44  ;;  %v1423_v52 = vmul.f32 %v6743_v61, %v1420_v44 }
 0x2ac   : >> { %v1424_v53 = vmul.f32 %v6744_v62, %v1420_v44  ;;  %v1425_v54 = vmul.f32 %v6745_v63, %v1420_v44  ;;  %v1426_v55 = vmul.f32 %v6746_v0, %v1420_v44  ;;  %v1427_v43 = vmul.f32 %v6747_v40, %v1420_v44 }
 0x2ad   : >> { %12103 = vst [vmem:[#allocation36_spill] sm:$0xff] %v8529_v36  ;;  %v12104_v49 = vmov %v8529_v36  ;;  %v1428_v2 = vmul.f32 %v6748_v41, %v1420_v44  ;;  %v8532_v35 = vadd.f32 %v8032_v35, %v1421_v50   ;;  %v8535_v34 = vadd.f32 %v8028_v34, %v1422_v51  }
 0x2ae   : >> { %v8538_v33 = vadd.f32 %v8024_v33, %v1423_v52   ;;  %v8541_v32 = vadd.f32 %v8020_v32, %v1424_v53   ;;  %v8544_v31 = vadd.f32 %v8016_v31, %v1425_v54   ;;  %v8547_v30 = vadd.f32 %v8012_v30, %v1426_v55  }
 0x2af   : >> { %12105 = vst [vmem:[#allocation37_spill] sm:$0xff] %v8532_v35  ;;  %v12106_v58 = vmov %v8532_v35  ;;  %12107 = vst [vmem:[#allocation38_spill] sm:$0xff] %v8535_v34  ;;  %v12108_v3 = vmov %v8535_v34  ;;  %v8550_v29 = vadd.f32 %v8008_v29, %v1427_v43   ;;  %v8553_v28 = vadd.f32 %v8004_v28, %v1428_v2  }
 0x2b0   : >> { %12109 = vst [vmem:[#allocation39_spill] sm:$0xff] %v8538_v33  ;;  %v12110_v48 = vmov %v8538_v33  ;;  %12111 = vst [vmem:[#allocation40_spill] sm:$0xff] %v8541_v32  ;;  %v12112_v42 = vmov %v8541_v32  ;;  %v12114_v39 = vmov %v8544_v31  ;;  %v12116_v4 = vmov %v8547_v30 }
 0x2b1   : >> { %12113 = vst [vmem:[#allocation41_spill] sm:$0xff] %v8544_v31  ;;  %12115 = vst [vmem:[#allocation42_spill] sm:$0xff] %v8547_v30  ;;  %v12118_v44 = vmov %v8550_v29  ;;  %v12120_v50 = vmov %v8553_v28  ;;  %v1441_v35 = vmul.f32 %v6741_v59, %v1440_v45  ;;  %v1442_v34 = vmul.f32 %v6742_v60, %v1440_v45 }
 0x2b2   : >> { %12117 = vst [vmem:[#allocation43_spill] sm:$0xff] %v8550_v29  ;;  %12119 = vst [vmem:[#allocation44_spill] sm:$0xff] %v8553_v28  ;;  %v1443_v36 = vmul.f32 %v6743_v61, %v1440_v45  ;;  %v1444_v51 = vmul.f32 %v6744_v62, %v1440_v45  ;;  %v1445_v33 = vmul.f32 %v6745_v63, %v1440_v45 }
 0x2b3   : >> { %v1446_v52 = vmul.f32 %v6746_v0, %v1440_v45  ;;  %v1447_v53 = vmul.f32 %v6747_v40, %v1440_v45  ;;  %v1448_v32 = vmul.f32 %v6748_v41, %v1440_v45  ;;  %v8556_v27 = vadd.f32 %v8000_v27, %v1441_v35  }
 0x2b4   : >> { %v8559_v26 = vadd.f32 %v7996_v26, %v1442_v34   ;;  %v8562_v25 = vadd.f32 %v7992_v25, %v1443_v36   ;;  %v8565_v24 = vadd.f32 %v7988_v24, %v1444_v51   ;;  %v8568_v23 = vadd.f32 %v7984_v23, %v1445_v33  }
 0x2b5   : >> { %12121 = vst [vmem:[#allocation45_spill] sm:$0xff] %v8556_v27  ;;  %v12122_v54 = vmov %v8556_v27  ;;  %v8571_v22 = vadd.f32 %v7980_v22, %v1446_v52   ;;  %v8574_v21 = vadd.f32 %v7976_v21, %v1447_v53   ;;  %v8577_v20 = vadd.f32 %v7972_v20, %v1448_v32  }
 0x2b6   : >> { %12123 = vst [vmem:[#allocation46_spill] sm:$0xff] %v8559_v26  ;;  %v12124_v55 = vmov %v8559_v26  ;;  %12125 = vst [vmem:[#allocation47_spill] sm:$0xff] %v8562_v25  ;;  %v12126_v43 = vmov %v8562_v25  ;;  %v12128_v2 = vmov %v8565_v24  ;;  %v12130_v5 = vmov %v8568_v23 }
 0x2b7   : >> { %12127 = vst [vmem:[#allocation48_spill] sm:$0xff] %v8565_v24  ;;  %12129 = vst [vmem:[#allocation49_spill] sm:$0xff] %v8568_v23  ;;  %v12132_v6 = vmov %v8571_v22  ;;  %v12134_v45 = vmov %v8574_v21  ;;  %v12136_v7 = vmov %v8577_v20  ;;  %v1461_v27 = vmul.f32 %v6741_v59, %v1460_v46 }
 0x2b8   : >> { %12131 = vst [vmem:[#allocation50_spill] sm:$0xff] %v8571_v22  ;;  %12133 = vst [vmem:[#allocation51_spill] sm:$0xff] %v8574_v21  ;;  %v1462_v26 = vmul.f32 %v6742_v60, %v1460_v46  ;;  %v1463_v28 = vmul.f32 %v6743_v61, %v1460_v46  ;;  %v1464_v29 = vmul.f32 %v6744_v62, %v1460_v46  ;;  %v12165_v23 = vmov %v12130_v5 }
 0x2b9   : >> { %12135 = vst [vmem:[#allocation52_spill] sm:$0xff] %v8577_v20  ;;  %v1465_v25 = vmul.f32 %v6745_v63, %v1460_v46  ;;  %v1466_v30 = vmul.f32 %v6746_v0, %v1460_v46  ;;  %v1467_v31 = vmul.f32 %v6747_v40, %v1460_v46  ;;  %v1468_v24 = vmul.f32 %v6748_v41, %v1460_v46  ;;  %v1500_v63 = vld [vmem:[%s12179_s1] sm:$0x7] (%p8606_p4)  ;;  %s12407_s1 = sld [smem:[#allocation14_spill]] (%p8606_p4) }
 0x2ba   : >> { %v8580_v19 = vadd.f32 %v7968_v19, %v1461_v27   ;;  %v8583_v18 = vadd.f32 %v7964_v18, %v1462_v26   ;;  %v8586_v17 = vadd.f32 %v7960_v17, %v1463_v28   ;;  %v8589_v16 = vadd.f32 %v7956_v16, %v1464_v29  }
 0x2bb   : >> { %v8592_v15 = vadd.f32 %v7952_v15, %v1465_v25   ;;  %v8595_v14 = vadd.f32 %v7948_v14, %v1466_v30   ;;  %v8598_v13 = vadd.f32 %v7944_v13, %v1467_v31   ;;  %v8601_v12 = vadd.f32 %v7940_v12, %v1468_v24  }
 0x2bc   : >> { %12137 = vst [vmem:[#allocation53_spill] sm:$0xff] %v8580_v19  ;;  %v12138_v51 = vmov %v8580_v19  ;;  %12139 = vst [vmem:[#allocation54_spill] sm:$0xff] %v8583_v18  ;;  %v12140_v52 = vmov %v8583_v18  ;;  %v12142_v53 = vmov %v8586_v17  ;;  %v12144_v8 = vmov %v8589_v16 }
 0x2bd   : >> { %12141 = vst [vmem:[#allocation55_spill] sm:$0xff] %v8586_v17  ;;  %12143 = vst [vmem:[#allocation56_spill] sm:$0xff] %v8589_v16  ;;  %v12146_v59 = vmov %v8592_v15  ;;  %v12148_v60 = vmov %v8595_v14  ;;  %v12150_v61 = vmov %v8598_v13  ;;  %v12152_v62 = vmov %v8601_v12 }
 0x2be   : >> { %12145 = vst [vmem:[#allocation57_spill] sm:$0xff] %v8592_v15  ;;  %12147 = vst [vmem:[#allocation58_spill] sm:$0xff] %v8595_v14  ;;  %v1486_v18 = vsub.f32 %v8322_v11, %v1484_v47  ;;  %v12156_v14 = vmov %v12148_v60  ;;  %v12157_v15 = vmov %v12146_v59  ;;  %v12158_v16 = vmov %v12144_v8 }
 0x2bf   : >> { %12149 = vst [vmem:[#allocation59_spill] sm:$0xff] %v8598_v13  ;;  %12151 = vst [vmem:[#allocation60_spill] sm:$0xff] %v8601_v12  ;;  %v12154_v12 = vmov %v12152_v62  ;;  %v12155_v13 = vmov %v12150_v61  ;;  %v12166_v24 = vmov %v12128_v2  ;;  %v12167_v25 = vmov %v12126_v43 }
 0x2c0   : >> { %v1487_v19 = vmul.f32 %v1486_v18, %v1486_v18  ;;  %v12160_v18 = vmov %v12140_v52  ;;  %v12168_v26 = vmov %v12124_v55  ;;  %v12169_v27 = vmov %v12122_v54 }
 0x2c1   : >> { %v12170_v28 = vmov %v12120_v50  ;;  %v12171_v29 = vmov %v12118_v44  ;;  %v12172_v30 = vmov %v12116_v4  ;;  %v12173_v31 = vmov %v12114_v39 }
 0x2c2   : >> { %v6749_v20 = vrot.slane %v1487_v19, 9  ;;  %v6750_v21 = vrot.slane %v1487_v19, 10  ;;  %v12174_v32 = vmov %v12112_v42  ;;  %v12175_v33 = vmov %v12110_v48 }
 0x2c3   : >> { %v12176_v34 = vmov %v12108_v3  ;;  %v12177_v35 = vmov %v12106_v58  ;;  %v12178_v36 = vmov %v12104_v49  ;;  %v1504_v0 = vrot.slane (%p8606_p4), %v1500_v63, %v8485_v38 }
 0x2c4   : >> { %v1492_v17 = vadd.f32 %v6749_v20, %v1487_v19  ;;  %v12161_v19 = vmov %v12138_v51  ;;  %v12162_v20 = vmov %v12136_v7  ;;  %1276 = sbr.rel (!%p8606_p4) target bundleno = 89 (0x59), region = 269  ;;  %v8696_v40 = vrot.slane (%p8606_p4), %v1500_v63, %v8519_v56 }
 0x2c5   : > { %v8699_v41 = vrot.slane (%p8606_p4), %v1500_v63, %v8522_v57  ;;  %v1505_v46 = vsub.f32 (%p8606_p4), %v12106_v58, %v1504_v0  ;;  %v1507_v10 = vsub.f32 (%p8606_p4), %v12110_v48, %v1504_v0  ;;  %v1506_v13 = vsub.f32 (%p8606_p4), %v12108_v3, %v1504_v0 }
 0x2c6   : >> { %v1496_v22 = vadd.f32 %v6750_v21, %v1492_v17  ;;  %v12159_v17 = vmov %v12142_v53  ;;  %v12163_v21 = vmov %v12134_v45  ;;  %v1519_v11 = vsub.f32 (%p8606_p4), %v12126_v43, %v8696_v40 }
 0x2c7   : > { %v1529_v9 = vsub.f32 (%p8606_p4), %v12138_v51, %v8699_v41  ;;  %v1531_v12 = vsub.f32 (%p8606_p4), %v12142_v53, %v8699_v41  ;;  %v1518_v14 = vsub.f32 (%p8606_p4), %v12124_v55, %v8696_v40  ;;  %v1537_v15 = vmul.f32 (%p8606_p4), %v1505_v46, %v1505_v46 }
 0x2c8   : >> { %v1497_v37 = vmin.f32 %v8040_v37, %v1496_v22   ;;  %v12164_v22 = vmov %v12132_v6  ;;  %v1539_v47 = vmul.f32 (%p8606_p4), %v1507_v10, %v1507_v10  ;;  %v1547_v35 = vmul.f32 (%p8606_p4), %v1519_v11, %v1519_v11 }
 0x2c9   : > { %v1517_v37 = vsub.f32 %v12122_v54, %v8696_v40  ;;  %v1561_v23 = vmul.f32 %v1529_v9, %v1529_v9  ;;  %v1563_v34 = vmul.f32 %v1531_v12, %v1531_v12  ;;  %v1530_v36 = vsub.f32 %v12140_v52, %v8699_v41 }
 0x2ca   : > { %v1538_v33 = vmul.f32 %v1506_v13, %v1506_v13  ;;  %v1546_v27 = vmul.f32 %v1518_v14, %v1518_v14  ;;  %v1508_v26 = vsub.f32 %v12112_v42, %v1504_v0  ;;  %v1520_v28 = vsub.f32 %v12128_v2, %v8696_v40 }
 0x2cb   : > { %v1545_v16 = vmul.f32 %v1517_v37, %v1517_v37  ;;  %v1555_v29 = vadd.f32 %v1547_v35, %v1539_v47  ;;  %v1562_v25 = vmul.f32 %v1530_v36, %v1530_v36  ;;  %v1532_v30 = vsub.f32 %v12144_v8, %v8699_v41 }
 0x2cc   : > { %v1509_v31 = vsub.f32 %v12114_v39, %v1504_v0  ;;  %v1554_v18 = vadd.f32 %v1546_v27, %v1538_v33  ;;  %v1540_v19 = vmul.f32 %v1508_v26, %v1508_v26  ;;  %v1548_v20 = vmul.f32 %v1520_v28, %v1520_v28 }
 0x2cd   : > { %v1553_v32 = vadd.f32 %v1545_v16, %v1537_v15  ;;  %v8724_v17 = vadd.f32 %v1563_v34, %v1555_v29  ;;  %v1564_v21 = vmul.f32 %v1532_v30, %v1532_v30  ;;  %v1521_v22 = vsub.f32 %v12130_v5, %v8696_v40 }
 0x2ce   : > { %v1533_v63 = vsub.f32 %v12146_v59, %v8699_v41  ;;  %v8732_v37 = vadd.f32 %v1562_v25, %v1554_v18  ;;  %v1556_v9 = vadd.f32 %v1548_v20, %v1540_v19  ;;  %v1541_v10 = vmul.f32 %v1509_v31, %v1509_v31 }
 0x2cf   : > { %v8722_v24 = vadd.f32 %v1561_v23, %v1553_v32  ;;  %v1584_v11 = vsel %vm1577_vm0, %v8724_v17, inf  ;;  %v1549_v12 = vmul.f32 %v1521_v22, %v1521_v22  ;;  %v1510_v14 = vsub.f32 %v12116_v4, %v1504_v0 }
 0x2d0   : > { %v1565_v13 = vmul.f32 %v1533_v63, %v1533_v63  ;;  %1585 = vmin.xlane.f32.xlu1 %v1584_v11  ;;  %v1581_v15 = vsel %vm1577_vm0, %v8732_v37, inf  ;;  %v8739_v16 = vadd.f32 %v1564_v21, %v1556_v9  ;;  %v1522_v23 = vsub.f32 %v12132_v6, %v8696_v40 }
 0x2d1   : > { %v1578_v46 = vsel %vm1577_vm0, %v8722_v24, inf  ;;  %v1534_v47 = vsub.f32 %v12148_v60, %v8699_v41  ;;  %v1557_v35 = vadd.f32 %v1549_v12, %v1541_v10  ;;  %v1542_v34 = vmul.f32 %v1510_v14, %v1510_v14 }
 0x2d2   : > { %1579 = vmin.xlane.f32.xlu0 %v1578_v46  ;;  %v1511_v36 = vsub.f32 %v12118_v44, %v1504_v0  ;;  %v1523_v33 = vsub.f32 %v12134_v45, %v8696_v40  ;;  %v1587_v32 = vsel %vm1577_vm0, %v8739_v16, inf  ;;  %v1550_v27 = vmul.f32 %v1522_v23, %v1522_v23 }
 0x2d3   : > { %v1566_v26 = vmul.f32 %v1534_v47, %v1534_v47  ;;  %v1535_v28 = vsub.f32 %v12150_v61, %v8699_v41  ;;  %v8752_v29 = vadd.f32 %v1565_v13, %v1557_v35  ;;  %v1512_v31 = vsub.f32 %v12120_v50, %v1504_v0 }
 0x2d4   : > { %v1543_v25 = vmul.f32 %v1511_v36, %v1511_v36  ;;  %v1551_v30 = vmul.f32 %v1523_v33, %v1523_v33  ;;  %1588 = vmin.xlane.f32.xlu1 %v1587_v32  ;;  %v1558_v18 = vadd.f32 %v1550_v27, %v1542_v34  ;;  %v1524_v20 = vsub.f32 %v12136_v7, %v8696_v40 }
 0x2d5   : > { %v1567_v19 = vmul.f32 %v1535_v28, %v1535_v28  ;;  %v1536_v21 = vsub.f32 %v12152_v62, %v8699_v41  ;;  %v1590_v22 = vsel %vm1577_vm0, %v8752_v29, inf  ;;  %v1544_v46 = vmul.f32 %v1512_v31, %v1512_v31 }
 0x2d6   : > { %1582 = vmin.xlane.f32.xlu0 %v1581_v15  ;;  %v1559_v63 = vadd.f32 %v1551_v30, %v1543_v25  ;;  %v8761_v9 = vadd.f32 %v1566_v26, %v1558_v18  ;;  %v1552_v10 = vmul.f32 %v1524_v20, %v1524_v20 }
 0x2d7   : > { %v1568_v11 = vmul.f32 %v1536_v21, %v1536_v21 }
 0x2d8   : > { %v8763_v0 = vadd.f32 %v1567_v19, %v1559_v63  ;;  %v1593_v12 = vsel %vm1577_vm0, %v8761_v9, inf  ;;  %v1560_v13 = vadd.f32 %v1552_v10, %v1544_v46 }
 0x2d9   : > { %1594 = vmin.xlane.f32.xlu1 %v1593_v12 }
 0x2da   : > { %1591 = vmin.xlane.f32.xlu0 %v1590_v22  ;;  %v1596_v40 = vsel %vm1577_vm0, %v8763_v0, inf  ;;  %v8769_v41 = vadd.f32 %v1568_v11, %v1560_v13 }
 0x2dc   : > { %v1599_v14 = vsel %vm1577_vm0, %v8769_v41, inf }
 0x2dd   : > { %1600 = vmin.xlane.f32.xlu1 %v1599_v14 }
 0x2de   : > { %1597 = vmin.xlane.f32.xlu0 %v1596_v40 }
 0x359   : > { %v8777_v23 = vpop.xlane.xlu1 %1585 }
 0x35a   : > { %12181 = vst [vmem:[#allocation27_spill] sm:$0xff] %v8777_v23  ;;  %vm1604_vm2 = vcmp.le.f32.partialorder %v8724_v17, %v8777_v23 }
 0x35b   : > { %v8773_v15 = vpop.xlane.xlu0 %1579  ;;  %v1612_v35 = vsel %vm1604_vm2, %v8284_v1, 32 }
 0x35c   : > { %12180 = vst [vmem:[#allocation26_spill] sm:$0xff] %v8773_v15  ;;  %vm1602_vm1 = vcmp.le.f32.partialorder %v8722_v24, %v8773_v15  ;;  %v1648_v32 = vsel %vm1577_vm0, %v1612_v35, 2147483647 }
 0x35d   : > { %v1610_v47 = vsel %vm1602_vm1, %v8284_v1, 32  ;;  %v8789_v27 = vpop.xlane.xlu1 %1588  ;;  %v1650_v26 = vshra.s32 %v1648_v32, 16 }
 0x35e   : > { %v1618_v34 = vsel %vm1577_vm0, %v1610_v47, 2147483647  ;;  %12183 = vst [vmem:[#allocation29_spill] sm:$0xff] %v8789_v27  ;;  %vm1605_vm4 = vcmp.le.f32.partialorder %v8739_v16, %v8789_v27 }
 0x35f   : > { %v8784_v36 = vpop.xlane.xlu0 %1582  ;;  %v1620_v33 = vshra.s32 %v1618_v34, 16  ;;  %v1613_v30 = vsel %vm1605_vm4, %v8284_v1, 32  ;;  %v1652_v19 = vcvt.s32.f32 %v1650_v26 }
 0x360   : > { %12182 = vst [vmem:[#allocation28_spill] sm:$0xff] %v8784_v36  ;;  %vm1603_vm3 = vcmp.le.f32.partialorder %v8732_v37, %v8784_v36  ;;  %v1663_v21 = vsel %vm1577_vm0, %v1613_v30, 2147483647  ;;  %v1649_v36 = vand.u32 65535, %v1648_v32 }
 0x361   : > { %v1611_v28 = vsel %vm1603_vm3, %v8284_v1, 32  ;;  %v1622_v25 = vcvt.s32.f32 %v1620_v33  ;;  %v1665_v22 = vshra.s32 %v1663_v21, 16 }
 0x362   : > { %v1633_v31 = vsel %vm1577_vm0, %v1611_v28, 2147483647  ;;  %v8802_v46 = vpop.xlane.xlu1 %1594  ;;  %v1651_v61 = vcvt.s32.f32 %v1649_v36 }
 0x363   : > { %1623 = vmin.xlane.f32.xlu0 %v1622_v25  ;;  %v8796_v18 = vpop.xlane.xlu0 %1591  ;;  %v1635_v20 = vshra.s32 %v1633_v31, 16  ;;  %12185 = vst [vmem:[#allocation31_spill] sm:$0xff] %v8802_v46  ;;  %vm1607_vm6 = vcmp.le.f32.partialorder %v8761_v9, %v8802_v46  ;;  %v1667_v13 = vcvt.s32.f32 %v1665_v22  ;;  %v1634_v27 = vand.u32 65535, %v1633_v31 }
 0x364   : > { %12184 = vst [vmem:[#allocation30_spill] sm:$0xff] %v8796_v18  ;;  %vm1606_vm5 = vcmp.le.f32.partialorder %v8752_v29, %v8796_v18  ;;  %v1615_v11 = vsel %vm1607_vm6, %v8284_v1, 32 }
 0x365   : > { %v1614_v63 = vsel %vm1606_vm5, %v8284_v1, 32  ;;  %v1637_v10 = vcvt.s32.f32 %v1635_v20  ;;  %v1693_v33 = vsel %vm1577_vm0, %v1615_v11, 2147483647  ;;  %v1619_v11 = vand.u32 65535, %v1618_v34 }
 0x366   : > { %v1678_v40 = vsel %vm1577_vm0, %v1614_v63, 2147483647  ;;  %v8813_v35 = vpop.xlane.xlu1 %1600  ;;  %v1695_v30 = vshra.s32 %v1693_v33, 16  ;;  %v1636_v62 = vcvt.s32.f32 %v1634_v27 }
 0x367   : > { %1653 = vmin.xlane.f32.xlu0 %v1652_v19  ;;  %1638 = vmin.xlane.f32.xlu1 %v1637_v10  ;;  %v8807_v12 = vpop.xlane.xlu0 %1597  ;;  %v1680_v14 = vshra.s32 %v1678_v40, 16  ;;  %12187 = vst [vmem:[#allocation61_spill] sm:$0xff] %v8813_v35  ;;  %vm1609_vm8 = vcmp.le.f32.partialorder %v8769_v41, %v8813_v35 }
 0x368   : > { %12186 = vst [vmem:[#allocation32_spill] sm:$0xff] %v8807_v12  ;;  %vm1608_vm7 = vcmp.le.f32.partialorder %v8763_v0, %v8807_v12  ;;  %v1617_v28 = vsel %vm1609_vm8, %v8284_v1, 32  ;;  %v1697_v49 = vcvt.s32.f32 %v1695_v30  ;;  %v1679_v30 = vand.u32 65535, %v1678_v40 }
 0x369   : > { %v1616_v47 = vsel %vm1608_vm7, %v8284_v1, 32  ;;  %v1682_v26 = vcvt.s32.f32 %v1680_v14  ;;  %v1723_v63 = vsel %vm1577_vm0, %v1617_v28, 2147483647  ;;  %v1621_v14 = vcvt.s32.f32 %v1619_v11 }
 0x36a   : > { %v1708_v20 = vsel %vm1577_vm0, %v1616_v47, 2147483647  ;;  %v1725_v12 = vshra.s32 %v1723_v63, 16  ;;  %v1664_v28 = vand.u32 65535, %v1663_v21  ;;  %v1694_v11 = vand.u32 65535, %v1693_v33 }
 0x36b   : > { %1668 = vmin.xlane.f32.xlu1 %v1667_v13  ;;  %1683 = vmin.xlane.f32.xlu0 %v1682_v26  ;;  %v1710_v22 = vshra.s32 %v1708_v20, 16  ;;  %v1681_v32 = vcvt.s32.f32 %v1679_v30 }
 0x36c   : > { %v1727_v18 = vcvt.s32.f32 %v1725_v12  ;;  %v1666_v7 = vcvt.s32.f32 %v1664_v28  ;;  %v1696_v21 = vcvt.s32.f32 %v1694_v11 }
 0x36d   : > { %v1712_v46 = vcvt.s32.f32 %v1710_v22 }
 0x36f   : > { %1698 = vmin.xlane.f32.xlu1 %v1697_v49  ;;  %1713 = vmin.xlane.f32.xlu0 %v1712_v46 }
 0x373   : > { %1728 = vmin.xlane.f32.xlu1 %v1727_v18 }
 0x3ec   : > { %v1624_v35 = vpop.xlane.xlu0 %1623 }
 0x3ed   : > { %vm1625_vm9 = vcmp.eq.f32.partialorder %v1622_v25, %v1624_v35  ;;  %v1709_v25 = vand.u32 65535, %v1708_v20 }
 0x3ee   : > { %v1626_v23 = vsel %vm1625_vm9, %v1621_v14, inf }
 0x3ef   : > { %1627 = vmin.xlane.f32.xlu0 %v1626_v23 }
 0x3f0   : > { %v1639_v47 = vpop.xlane.xlu1 %1638  ;;  %v1654_v15 = vpop.xlane.xlu0 %1653 }
 0x3f1   : > { %vm1640_vm10 = vcmp.eq.f32.partialorder %v1637_v10, %v1639_v47  ;;  %vm1655_vm11 = vcmp.eq.f32.partialorder %v1652_v19, %v1654_v15  ;;  %v1724_v19 = vand.u32 65535, %v1723_v63  ;;  %v1660_v30 = vcvt.f32.s32 %v1654_v15 }
 0x3f2   : > { %v1641_v22 = vsel %vm1640_vm10, %v1636_v62, inf  ;;  %v1656_v12 = vsel %vm1655_vm11, %v1651_v61, inf  ;;  %v1711_v61 = vcvt.s32.f32 %v1709_v25 }
 0x3f3   : > { %1642 = vmin.xlane.f32.xlu1 %v1641_v22  ;;  %1657 = vmin.xlane.f32.xlu0 %v1656_v12  ;;  %v1661_v25 = vshll.u32 %v1660_v30, 16 }
 0x3f4   : > { %v1669_v34 = vpop.xlane.xlu1 %1668  ;;  %v1684_v31 = vpop.xlane.xlu0 %1683 }
 0x3f5   : > { %vm1670_vm12 = vcmp.eq.f32.partialorder %v1667_v13, %v1669_v34  ;;  %vm1685_vm13 = vcmp.eq.f32.partialorder %v1682_v26, %v1684_v31  ;;  %v1726_v13 = vcvt.s32.f32 %v1724_v19  ;;  %v1645_v26 = vcvt.f32.s32 %v1639_v47 }
 0x3f6   : > { %v1671_v23 = vsel %vm1670_vm12, %v1666_v7, inf  ;;  %v1686_v27 = vsel %vm1685_vm13, %v1681_v32, inf  ;;  %v1630_v7 = vcvt.f32.s32 %v1624_v35  ;;  %v1675_v12 = vcvt.f32.s32 %v1669_v34 }
 0x3f7   : > { %1672 = vmin.xlane.f32.xlu1 %v1671_v23  ;;  %1687 = vmin.xlane.f32.xlu0 %v1686_v27  ;;  %v1690_v11 = vcvt.f32.s32 %v1684_v31 }
 0x3f8   : > { %v1699_v36 = vpop.xlane.xlu1 %1698  ;;  %v1714_v10 = vpop.xlane.xlu0 %1713  ;;  %v1631_v28 = vshll.u32 %v1630_v7, 16  ;;  %v1676_v34 = vshll.u32 %v1675_v12, 16 }
 0x3f9   : > { %vm1700_vm14 = vcmp.eq.f32.partialorder %v1697_v49, %v1699_v36  ;;  %vm1715_vm15 = vcmp.eq.f32.partialorder %v1712_v46, %v1714_v10  ;;  %v1646_v49 = vshll.u32 %v1645_v26, 16  ;;  %v1691_v31 = vshll.u32 %v1690_v11, 16 }
 0x3fa   : > { %v1701_v62 = vsel %vm1700_vm14, %v1696_v21, inf  ;;  %v1716_v40 = vsel %vm1715_vm15, %v1711_v61, inf  ;;  %v1705_v19 = vcvt.f32.s32 %v1699_v36 }
 0x3fb   : > { %1702 = vmin.xlane.f32.xlu1 %v1701_v62  ;;  %1717 = vmin.xlane.f32.xlu0 %v1716_v40 }
 0x3fc   : > { %v1729_v33 = vpop.xlane.xlu1 %1728 }
 0x3fd   : > { %vm1730_vm1 = vcmp.eq.f32.partialorder %v1727_v18, %v1729_v33 }
 0x3fe   : > { %v1731_v20 = vsel %vm1730_vm1, %v1726_v13, inf }
 0x3ff   : > { %1732 = vmin.xlane.f32.xlu1 %v1731_v20 }
 0x478   : > { %v1628_v14 = vpop.xlane.xlu0 %1627 }
 0x479   : > { %v1629_v22 = vcvt.f32.s32 %v1628_v14 }
 0x47b   : > { %v8821_v63 = vadd.s32 %v1631_v28, %v1629_v22  ;;  %v1735_v28 = vcvt.f32.s32 %v1729_v33 }
 0x47c   : > { %v1643_v46 = vpop.xlane.xlu1 %1642  ;;  %v1658_v32 = vpop.xlane.xlu0 %1657 }
 0x47d   : > { %v1644_v23 = vcvt.f32.s32 %v1643_v46  ;;  %v1659_v27 = vcvt.f32.s32 %v1658_v32  ;;  %vm1738_vm2 = vcmp.eq.s32.totalorder %v8284_v1, %v8821_v63 }
 0x47e   : > { %v8829_v18 = vsel %vm1738_vm2, 1e+10, %v8722_v24  ;;  %v1720_v24 = vcvt.f32.s32 %v1714_v10 }
 0x47f   : > { %12188 = vst [vmem:[#allocation62_spill] sm:$0xff] %v8829_v18  ;;  %v8831_v15 = vadd.s32 %v1646_v49, %v1644_v23  ;;  %v8833_v35 = vadd.s32 %v1661_v25, %v1659_v27  ;;  %v1786_v47 = vsel %vm1577_vm0, %v8829_v18, inf  ;;  %v1736_v23 = vshll.u32 %v1735_v28, 16 }
 0x480   : > { %v1673_v21 = vpop.xlane.xlu1 %1672  ;;  %1787 = vmin.xlane.f32.xlu0 %v1786_v47  ;;  %v1688_v62 = vpop.xlane.xlu0 %1687 }
 0x481   : > { %12189 = vst [vmem:[#allocation63_spill] sm:$0xff] %v8833_v35  ;;  %v1674_v61 = vcvt.f32.s32 %v1673_v21  ;;  %vm1739_vm3 = vcmp.eq.s32.totalorder %v8284_v1, %v8831_v15  ;;  %vm1740_vm4 = vcmp.eq.s32.totalorder %v8284_v1, %v8833_v35  ;;  %v1689_v40 = vcvt.f32.s32 %v1688_v62 }
 0x482   : > { %v8845_v13 = vsel %vm1739_vm3, 1e+10, %v8732_v37  ;;  %v8851_v36 = vsel %vm1740_vm4, 1e+10, %v8724_v17  ;;  %v1706_v37 = vshll.u32 %v1705_v19, 16  ;;  %v1721_v17 = vshll.u32 %v1720_v24, 16 }
 0x483   : > { %12190 = vst [vmem:[#allocation64_spill] sm:$0xff] %v8845_v13  ;;  %12191 = vst [vmem:[#allocation65_spill] sm:$0xff] %v8851_v36  ;;  %v8853_v20 = vadd.s32 %v1676_v34, %v1674_v61  ;;  %v1789_v7 = vsel %vm1577_vm0, %v8845_v13, inf  ;;  %v1792_v10 = vsel %vm1577_vm0, %v8851_v36, inf  ;;  %v8859_v26 = vadd.s32 %v1691_v31, %v1689_v40 }
 0x484   : > { %1790 = vmin.xlane.f32.xlu1 %v1789_v7  ;;  %v1703_v14 = vpop.xlane.xlu1 %1702  ;;  %1793 = vmin.xlane.f32.xlu0 %v1792_v10  ;;  %v1718_v22 = vpop.xlane.xlu0 %1717 }
 0x485   : > { %12192 = vst [vmem:[#allocation66_spill] sm:$0xff] %v8853_v20  ;;  %12193 = vst [vmem:[#allocation67_spill] sm:$0xff] %v8859_v26  ;;  %v1704_v30 = vcvt.f32.s32 %v1703_v14  ;;  %vm1741_vm5 = vcmp.eq.s32.totalorder %v8284_v1, %v8853_v20  ;;  %v1719_v49 = vcvt.f32.s32 %v1718_v22  ;;  %vm1742_vm6 = vcmp.eq.s32.totalorder %v8284_v1, %v8859_v26 }
 0x486   : > { %v8867_v12 = vsel %vm1741_vm5, 1e+10, %v8739_v16  ;;  %v8879_v46 = vsel %vm1742_vm6, 1e+10, %v8752_v29 }
 0x487   : > { %12194 = vst [vmem:[#allocation68_spill] sm:$0xff] %v8867_v12  ;;  %v8871_v11 = vadd.s32 %v1706_v37, %v1704_v30  ;;  %v1795_v33 = vsel %vm1577_vm0, %v8867_v12, inf  ;;  %12196 = vst [vmem:[#allocation70_spill] sm:$0xff] %v8879_v46  ;;  %v8881_v32 = vadd.s32 %v1721_v17, %v1719_v49  ;;  %v1798_v16 = vsel %vm1577_vm0, %v8879_v46, inf }
 0x488   : > { %1796 = vmin.xlane.f32.xlu1 %v1795_v33  ;;  %v1733_v25 = vpop.xlane.xlu1 %1732  ;;  %1799 = vmin.xlane.f32.xlu0 %v1798_v16 }
 0x489   : > { %12195 = vst [vmem:[#allocation69_spill] sm:$0xff] %v8871_v11  ;;  %12197 = vst [vmem:[#allocation71_spill] sm:$0xff] %v8881_v32  ;;  %v1734_v27 = vcvt.f32.s32 %v1733_v25  ;;  %vm1743_vm7 = vcmp.eq.s32.totalorder %v8284_v1, %v8871_v11  ;;  %vm1744_vm8 = vcmp.eq.s32.totalorder %v8284_v1, %v8881_v32 }
 0x48a   : > { %v8891_v47 = vsel %vm1743_vm7, 1e+10, %v8761_v9  ;;  %v8903_v31 = vsel %vm1744_vm8, 1e+10, %v8763_v0 }
 0x48b   : > { %12198 = vst [vmem:[#allocation72_spill] sm:$0xff] %v8891_v47  ;;  %v8895_v29 = vadd.s32 %v1736_v23, %v1734_v27  ;;  %v1801_v34 = vsel %vm1577_vm0, %v8891_v47, inf  ;;  %12200 = vst [vmem:[#allocation74_spill] sm:$0xff] %v8903_v31  ;;  %v1804_v21 = vsel %vm1577_vm0, %v8903_v31, inf }
 0x48c   : > { %1802 = vmin.xlane.f32.xlu1 %v1801_v34  ;;  %1805 = vmin.xlane.f32.xlu0 %v1804_v21 }
 0x48d   : > { %12199 = vst [vmem:[#allocation73_spill] sm:$0xff] %v8895_v29  ;;  %vm1745_vm9 = vcmp.eq.s32.totalorder %v8284_v1, %v8895_v29 }
 0x48e   : > { %v8913_v9 = vsel %vm1745_vm9, 1e+10, %v8769_v41 }
 0x48f   : > { %12201 = vst [vmem:[#allocation75_spill] sm:$0xff] %v8913_v9  ;;  %v1807_v19 = vsel %vm1577_vm0, %v8913_v9, inf }
 0x490   : > { %1808 = vmin.xlane.f32.xlu1 %v1807_v19 }
 0x509   : > { %v8917_v0 = vpop.xlane.xlu0 %1787 }
 0x50a   : > { %vm1810_vm10 = vcmp.le.f32.partialorder %v8829_v18, %v8917_v0 }
 0x50b   : > { %v1818_v61 = vsel %vm1810_vm10, %v8284_v1, 32 }
 0x50c   : > { %v8923_v62 = vsel %vm1577_vm0, %v1818_v61, 2147483647 }
 0x50d   : > { %v8925_v24 = vpop.xlane.xlu1 %1790  ;;  %v8927_v40 = vpop.xlane.xlu0 %1793  ;;  %v1828_v41 = vshra.s32 %v8923_v62, 16 }
 0x50e   : > { %vm1811_vm11 = vcmp.le.f32.partialorder %v8845_v13, %v8925_v24  ;;  %vm1812_vm12 = vcmp.le.f32.partialorder %v8851_v36, %v8927_v40 }
 0x50f   : > { %v1819_v7 = vsel %vm1811_vm11, %v8284_v1, 32  ;;  %v1820_v10 = vsel %vm1812_vm12, %v8284_v1, 32  ;;  %v8936_v14 = vcvt.s32.f32 %v1828_v41 }
 0x510   : > { %v8939_v37 = vsel %vm1577_vm0, %v1819_v7, 2147483647  ;;  %v8942_v28 = vsel %vm1577_vm0, %v1820_v10, 2147483647 }
 0x511   : > { %v8944_v30 = vpop.xlane.xlu1 %1796  ;;  %1831 = vmin.xlane.f32.xlu0 %v8936_v14  ;;  %v1843_v22 = vshra.s32 %v8939_v37, 16  ;;  %v1858_v17 = vshra.s32 %v8942_v28, 16  ;;  %v8951_v49 = vpop.xlane.xlu0 %1799  ;;  %v1842_v26 = vand.u32 65535, %v8939_v37  ;;  %v1857_v36 = vand.u32 65535, %v8942_v28 }
 0x512   : > { %vm1813_vm13 = vcmp.le.f32.partialorder %v8867_v12, %v8944_v30  ;;  %vm1814_vm14 = vcmp.le.f32.partialorder %v8879_v46, %v8951_v49  ;;  %v1827_v12 = vand.u32 65535, %v8923_v62 }
 0x513   : > { %v1821_v33 = vsel %vm1813_vm13, %v8284_v1, 32  ;;  %v8956_v25 = vcvt.s32.f32 %v1843_v22  ;;  %v1822_v16 = vsel %vm1814_vm14, %v8284_v1, 32  ;;  %v8959_v23 = vcvt.s32.f32 %v1858_v17 }
 0x514   : > { %v1871_v27 = vsel %vm1577_vm0, %v1821_v33, 2147483647  ;;  %v1886_v19 = vsel %vm1577_vm0, %v1822_v16, 2147483647  ;;  %v1844_v37 = vcvt.s32.f32 %v1842_v26  ;;  %vm2777_vm14 = vcmask 392192  }
 0x515   : > { %1846 = vmin.xlane.f32.xlu1 %v8956_v25  ;;  %v8963_v34 = vpop.xlane.xlu1 %1802  ;;  %v1873_v21 = vshra.s32 %v1871_v27, 16  ;;  %1861 = vmin.xlane.f32.xlu0 %v8959_v23  ;;  %v8969_v61 = vpop.xlane.xlu0 %1805  ;;  %v1888_v41 = vshra.s32 %v1886_v19, 16  ;;  %v1887_v13 = vand.u32 65535, %v1886_v19 }
 0x516   : > { %vm1815_vm15 = vcmp.le.f32.partialorder %v8891_v47, %v8963_v34  ;;  %12202 = vst [vmem:[#allocation76_spill] sm:$0xff] %v8969_v61  ;;  %vm1816_vm1 = vcmp.le.f32.partialorder %v8903_v31, %v8969_v61 }
 0x517   : > { %v1823_v7 = vsel %vm1815_vm15, %v8284_v1, 32  ;;  %v8974_v10 = vcvt.s32.f32 %v1873_v21  ;;  %v1824_v22 = vsel %vm1816_vm1, %v8284_v1, 32  ;;  %v8977_v17 = vcvt.s32.f32 %v1888_v41 }
 0x518   : > { %v1901_v33 = vsel %vm1577_vm0, %v1823_v7, 2147483647  ;;  %v1916_v47 = vsel %vm1577_vm0, %v1824_v22, 2147483647 }
 0x519   : > { %1876 = vmin.xlane.f32.xlu1 %v8974_v10  ;;  %v8981_v16 = vpop.xlane.xlu1 %1808  ;;  %v1903_v29 = vshra.s32 %v1901_v33, 16  ;;  %1891 = vmin.xlane.f32.xlu0 %v8977_v17  ;;  %v1918_v21 = vshra.s32 %v1916_v47, 16  ;;  %v1902_v18 = vand.u32 65535, %v1901_v33  ;;  %v1889_v33 = vcvt.s32.f32 %v1887_v13 }
 0x51a   : > { %12203 = vst [vmem:[#allocation77_spill] sm:$0xff] %v8981_v16  ;;  %vm1817_vm10 = vcmp.le.f32.partialorder %v8913_v9, %v8981_v16  ;;  %v2700_v9 = vld [vmem:[%s1225_s15] sm:$0x7]  ;;  %s12383_s15 = sld [smem:[#allocation7_spill]] }
 0x51b   : > { %v1825_v41 = vsel %vm1817_vm10, %v8284_v1, 32  ;;  %v8988_v31 = vcvt.s32.f32 %v1903_v29  ;;  %v8990_v7 = vcvt.s32.f32 %v1918_v21  ;;  %v9002_v46 = vrot.slane %v2700_v9, %v8485_v38 }
 0x51c   : > { %v1931_v32 = vsel %vm1577_vm0, %v1825_v41, 2147483647  ;;  %v9005_v29 = vrot.slane %v2700_v9, %v8519_v56  ;;  %v1872_v38 = vand.u32 65535, %v1871_v27  ;;  %v1917_v56 = vand.u32 65535, %v1916_v47 }
 0x51d   : > { %1906 = vmin.xlane.f32.xlu1 %v8988_v31  ;;  %v1933_v11 = vshra.s32 %v1931_v32, 16  ;;  %1921 = vmin.xlane.f32.xlu0 %v8990_v7  ;;  %v2705_v21 = vsub.f32 %v12106_v58, %v9002_v46  ;;  %v1829_v58 = vcvt.s32.f32 %v1827_v12  ;;  %v2707_v47 = vsub.f32 %v12110_v48, %v9002_v46 }
 0x51e   : > { %v2717_v41 = vsub.f32 %v12122_v54, %v9005_v29  ;;  %v2718_v62 = vsub.f32 %v12124_v55, %v9005_v29  ;;  %v2719_v28 = vsub.f32 %v12126_v43, %v9005_v29  ;;  %v1859_v27 = vcvt.s32.f32 %v1857_v36 }
 0x51f   : > { %v8995_v22 = vcvt.s32.f32 %v1933_v11  ;;  %v9013_v11 = vrot.slane %v2700_v9, %v8522_v57  ;;  %v2737_v16 = vmul.f32 %v2705_v21, %v2705_v21  ;;  %v2706_v9 = vsub.f32 %v12108_v3, %v9002_v46 }
 0x520   : > { %v2745_v20 = vmul.f32 %v2717_v41, %v2717_v41  ;;  %v1874_v19 = vcvt.s32.f32 %v1872_v38  ;;  %v1904_v21 = vcvt.s32.f32 %v1902_v18  ;;  %v1919_v41 = vcvt.s32.f32 %v1917_v56 }
 0x521   : > { %1936 = vmin.xlane.f32.xlu1 %v8995_v22  ;;  %v2729_v54 = vsub.f32 %v12138_v51, %v9013_v11  ;;  %v1932_v51 = vand.u32 65535, %v1931_v32  ;;  %v2730_v26 = vsub.f32 %v12140_v52, %v9013_v11  ;;  %v2746_v48 = vmul.f32 %v2718_v62, %v2718_v62  ;;  %v12218_v63 = vld [vmem:[#allocation77_spill] sm:$0xff] }
 0x522   : > { %v2753_v3 = vadd.f32 %v2745_v20, %v2737_v16  ;;  %v2731_v38 = vsub.f32 %v12142_v53, %v9013_v11  ;;  %v2747_v56 = vmul.f32 %v2719_v28, %v2719_v28  ;;  %v2720_v13 = vsub.f32 %v12128_v2, %v9005_v29 }
 0x523   : > { %v2761_v57 = vmul.f32 %v2729_v54, %v2729_v54  ;;  %v2708_v54 = vsub.f32 %v12112_v42, %v9002_v46  ;;  %v1934_v20 = vcvt.s32.f32 %v1932_v51  ;;  %v2709_v32 = vsub.f32 %v12114_v39, %v9002_v46 }
 0x524   : > { %v2762_v62 = vmul.f32 %v2730_v26, %v2730_v26  ;;  %v2732_v28 = vsub.f32 %v12144_v8, %v9013_v11 }
 0x525   : > { %v2741_v26 = vmul.f32 %v2709_v32, %v2709_v32 }
 0x526   : > { %v2764_v32 = vmul.f32 %v2732_v28, %v2732_v28 }
 0x59a   : > { %v9017_v61 = vpop.xlane.xlu0 %1831 }
 0x59b   : > { %vm1833_vm11 = vcmp.eq.f32.partialorder %v8936_v14, %v9017_v61  ;;  %v2738_v14 = vmul.f32 %v2706_v9, %v2706_v9  ;;  %v9053_v9 = vadd.f32 %v2761_v57, %v2753_v3  ;;  %v2748_v3 = vmul.f32 %v2720_v13, %v2720_v13 }
 0x59c   : > { %v1834_v12 = vsel %vm1833_vm11, %v1829_v58, inf  ;;  %v2739_v58 = vmul.f32 %v2707_v47, %v2707_v47  ;;  %v2763_v47 = vmul.f32 %v2731_v38, %v2731_v38 }
 0x59d   : > { %1835 = vmin.xlane.f32.xlu0 %v1834_v12  ;;  %v2778_v38 = vsel %vm2777_vm14, %v9053_v9, inf }
 0x59e   : > { %v9031_v55 = vpop.xlane.xlu1 %1846  ;;  %v9035_v35 = vpop.xlane.xlu0 %1861  ;;  %v2755_v51 = vadd.f32 %v2747_v56, %v2739_v58 }
 0x59f   : > { %vm1848_vm12 = vcmp.eq.f32.partialorder %v8956_v25, %v9031_v55  ;;  %vm1863_vm13 = vcmp.eq.f32.partialorder %v8959_v23, %v9035_v35  ;;  %v2721_v25 = vsub.f32 %v12130_v5, %v9005_v29  ;;  %v2754_v23 = vadd.f32 %v2746_v48, %v2738_v14 }
 0x5a0   : > { %v1849_v18 = vsel %vm1848_vm12, %v1844_v37, inf  ;;  %v1864_v36 = vsel %vm1863_vm13, %v1859_v27, inf  ;;  %v2740_v27 = vmul.f32 %v2708_v54, %v2708_v54  ;;  %v2733_v48 = vsub.f32 %v12146_v59, %v9013_v11 }
 0x5a1   : > { %1850 = vmin.xlane.f32.xlu1 %v1849_v18  ;;  %1865 = vmin.xlane.f32.xlu0 %v1864_v36  ;;  %v2749_v14 = vmul.f32 %v2721_v25, %v2721_v25  ;;  %v9069_v58 = vadd.f32 %v2762_v62, %v2754_v23  ;;  %v9079_v56 = vadd.f32 %v2763_v47, %v2755_v51 }
 0x5a2   : > { %v9051_v16 = vpop.xlane.xlu1 %1876  ;;  %v9055_v37 = vpop.xlane.xlu0 %1891  ;;  %v2711_v18 = vsub.f32 %v12118_v44, %v9002_v46  ;;  %v2723_v54 = vsub.f32 %v12134_v45, %v9005_v29  ;;  %v2756_v36 = vadd.f32 %v2748_v3, %v2740_v27  ;;  %v2765_v62 = vmul.f32 %v2733_v48, %v2733_v48 }
 0x5a3   : > { %vm1878_vm15 = vcmp.eq.f32.partialorder %v8974_v10, %v9051_v16  ;;  %vm1893_vm1 = vcmp.eq.f32.partialorder %v8977_v17, %v9055_v37  ;;  %v2710_v17 = vsub.f32 %v12116_v4, %v9002_v46  ;;  %v2757_v23 = vadd.f32 %v2749_v14, %v2741_v26 }
 0x5a4   : > { %v1879_v12 = vsel %vm1878_vm15, %v1874_v19, inf  ;;  %v1894_v57 = vsel %vm1893_vm1, %v1889_v33, inf  ;;  %v2722_v19 = vsub.f32 %v12132_v6, %v9005_v29  ;;  %v2743_v27 = vmul.f32 %v2711_v18, %v2711_v18 }
 0x5a5   : > { %1880 = vmin.xlane.f32.xlu1 %v1879_v12  ;;  %1895 = vmin.xlane.f32.xlu0 %v1894_v57  ;;  %v2742_v47 = vmul.f32 %v2710_v17, %v2710_v17  ;;  %v12204_v57 = vld [vmem:[#allocation52_spill] sm:$0xff]  ;;  %v2751_v3 = vmul.f32 %v2723_v54, %v2723_v54  ;;  %v2781_v26 = vsel %vm2777_vm14, %v9069_v58, inf  ;;  %v9101_v14 = vadd.f32 %v2764_v32, %v2756_v36 }
 0x5a6   : > { %v9065_v10 = vpop.xlane.xlu1 %1906  ;;  %v9075_v33 = vpop.xlane.xlu0 %1921  ;;  %v2750_v12 = vmul.f32 %v2722_v19, %v2722_v19  ;;  %v9107_v18 = vadd.f32 %v2765_v62, %v2757_v23 }
 0x5a7   : > { %vm1908_vm10 = vcmp.eq.f32.partialorder %v8988_v31, %v9065_v10  ;;  %vm1923_vm11 = vcmp.eq.f32.partialorder %v8990_v7, %v9075_v33  ;;  %v2734_v31 = vsub.f32 %v12148_v60, %v9013_v11  ;;  %v2724_v7 = vsub.f32 %v12204_v57, %v9005_v29  ;;  %v12206_v29 = vld [vmem:[#allocation60_spill] sm:$0xff] }
 0x5a8   : > { %v1909_v13 = vsel %vm1908_vm10, %v1904_v21, inf  ;;  %v1924_v25 = vsel %vm1923_vm11, %v1919_v41, inf  ;;  %v2712_v21 = vsub.f32 %v12120_v50, %v9002_v46  ;;  %v12205_v41 = vld [vmem:[#allocation59_spill] sm:$0xff]  ;;  %v2758_v46 = vadd.f32 %v2750_v12, %v2742_v47 }
 0x5a9   : > { %1910 = vmin.xlane.f32.xlu1 %v1909_v13  ;;  %1925 = vmin.xlane.f32.xlu0 %v1924_v25  ;;  %v2735_v28 = vsub.f32 %v12205_v41, %v9013_v11  ;;  %v2766_v17 = vmul.f32 %v2734_v31, %v2734_v31  ;;  %v2736_v19 = vsub.f32 %v12206_v29, %v9013_v11  ;;  %v2784_v25 = vsel %vm2777_vm14, %v9079_v56, inf }
 0x5aa   : > { %v9089_v51 = vpop.xlane.xlu1 %1936  ;;  %v2744_v13 = vmul.f32 %v2712_v21, %v2712_v21  ;;  %v2787_v36 = vsel %vm2777_vm14, %v9101_v14, inf  ;;  %v2790_v11 = vsel %vm2777_vm14, %v9107_v18, inf }
 0x5ab   : > { %vm1938_vm12 = vcmp.eq.f32.partialorder %v8995_v22, %v9089_v51  ;;  %v2752_v22 = vmul.f32 %v2724_v7, %v2724_v7  ;;  %v2767_v54 = vmul.f32 %v2735_v28, %v2735_v28  ;;  %v9111_v32 = vadd.f32 %v2766_v17, %v2758_v46  ;;  %v12207_v7 = vld [vmem:[#allocation26_spill] sm:$0xff]  ;;  %v12210_v17 = vld [vmem:[#allocation29_spill] sm:$0xff] }
 0x5ac   : > { %v1939_v48 = vsel %vm1938_vm12, %v1934_v20, inf  ;;  %v2759_v20 = vadd.f32 %v2751_v3, %v2743_v27  ;;  %v2768_v31 = vmul.f32 %v2736_v19, %v2736_v19  ;;  %v1746_v28 = vadd.f32 1e-08, %v12207_v7  ;;  %v12208_v27 = vld [vmem:[#allocation27_spill] sm:$0xff] }
 0x5ad   : > { %1940 = vmin.xlane.f32.xlu1 %v1939_v48  ;;  %2779 = vmin.xlane.f32.xlu0 %v2778_v38  ;;  %v2760_v38 = vadd.f32 %v2752_v22, %v2744_v13  ;;  %v2793_v23 = vsel %vm2777_vm14, %v9111_v32, inf  ;;  %v1748_v3 = vadd.f32 1e-08, %v12208_v27  ;;  %v12209_v48 = vld [vmem:[#allocation28_spill] sm:$0xff]  ;;  %v1749_v46 = vadd.f32 1e-08, %v12210_v17 }
 0x5ae   : > { %v9115_v47 = vadd.f32 %v2767_v54, %v2759_v20  ;;  %7566 = vrcp.f32 %v1746_v28  ;;  %v1954_v19 = vadd.f32 1e-08, %v8917_v0  ;;  %v12211_v13 = vld [vmem:[#allocation30_spill] sm:$0xff]  ;;  %v1955_v54 = vadd.f32 1e-08, %v8925_v24 }
 0x5af   : > { %v9119_v62 = vadd.f32 %v2768_v31, %v2760_v38  ;;  %7568 = vrcp.f32 %v1748_v3  ;;  %v1750_v22 = vadd.f32 1e-08, %v12211_v13  ;;  %v12213_v38 = vld [vmem:[#allocation32_spill] sm:$0xff]  ;;  %v1958_v0 = vadd.f32 1e-08, %v8951_v49 }
 0x5b0   : > { %v2796_v12 = vsel %vm2777_vm14, %v9115_v47, inf  ;;  %v1752_v31 = vadd.f32 1e-08, %v12213_v38  ;;  %v1959_v28 = vadd.f32 1e-08, %v8963_v34  ;;  %v1853_v3 = vcvt.f32.s32 %v9031_v55 }
 0x5b1   : > { %2782 = vmin.xlane.f32.xlu1 %v2781_v26  ;;  %2785 = vmin.xlane.f32.xlu0 %v2784_v25  ;;  %v2799_v21 = vsel %vm2777_vm14, %v9119_v62, inf  ;;  %v1747_v26 = vadd.f32 1e-08, %v12209_v48  ;;  %v12212_v25 = vld [vmem:[#allocation31_spill] sm:$0xff] }
 0x5b2   : > { %v1751_v20 = vadd.f32 1e-08, %v12212_v25  ;;  %v1854_v38 = vshll.u32 %v1853_v3, 16 }
 0x5b3   : > { %7570 = vrcp.f32 %v1747_v26 }
 0x5b4   : > { %7572 = vrcp.f32 %v1749_v46  ;;  %v1928_v46 = vcvt.f32.s32 %v9075_v33 }
 0x5b5   : > { %2788 = vmin.xlane.f32.xlu1 %v2787_v36  ;;  %2791 = vmin.xlane.f32.xlu0 %v2790_v11  ;;  %7574 = vrcp.f32 %v1954_v19  ;;  %v1956_v36 = vadd.f32 1e-08, %v8927_v40  ;;  %v1957_v11 = vadd.f32 1e-08, %v8944_v30  ;;  %v12216_v19 = vld [vmem:[#allocation76_spill] sm:$0xff] }
 0x5b6   : > { %7576 = vrcp.f32 %v1750_v22  ;;  %v1960_v55 = vadd.f32 1e-08, %v12216_v19  ;;  %v12220_v22 = vld [vmem:[#allocation64_spill] sm:$0xff] }
 0x5b7   : > { %7578 = vrcp.f32 %v1751_v20  ;;  %v1961_v20 = vadd.f32 1e-08, %v12218_v63 }
 0x5b8   : > { %7580 = vrcp.f32 %v1955_v54  ;;  %v1898_v54 = vcvt.f32.s32 %v9055_v37 }
 0x5b9   : > { %2794 = vmin.xlane.f32.xlu1 %v2793_v23  ;;  %2797 = vmin.xlane.f32.xlu0 %v2796_v12  ;;  %7582 = vrcp.f32 %v1956_v36  ;;  %v1838_v23 = vcvt.f32.s32 %v9017_v61  ;;  %v12214_v12 = vld [vmem:[#allocation61_spill] sm:$0xff]  ;;  %v1868_v61 = vcvt.f32.s32 %v9035_v35  ;;  %v1883_v35 = vcvt.f32.s32 %v9051_v16 }
 0x5ba   : > { %7584 = vrcp.f32 %v1752_v31  ;;  %v1899_v3 = vshll.u32 %v1898_v54, 16 }
 0x5bb   : > { %7586 = vrcp.f32 %v1957_v11  ;;  %v7567_v7 = vpop.eup %7566  ;;  %v1839_v27 = vshll.u32 %v1838_v23, 16 }
 0x5bc   : > { %7588 = vrcp.f32 %v1958_v0  ;;  %v7569_v40 = vpop.eup %7568  ;;  %v1762_v49 = vsel %vm1738_vm2, %v7567_v7, 0.0  ;;  %v1869_v0 = vshll.u32 %v1868_v61, 16 }
 0x5bd   : > { %2800 = vmin.xlane.f32.xlu1 %v2799_v21  ;;  %v1753_v21 = vadd.f32 1e-08, %v12214_v12  ;;  %v1764_v34 = vsel %vm1740_vm4, %v7569_v40, 0.0  ;;  %v12219_v12 = vld [vmem:[#allocation62_spill] sm:$0xff] }
 0x5bf   : > { %7590 = vrcp.f32 %v1753_v21 }
 0x5c0   : > { %v7571_v48 = vpop.eup %7570  ;;  %7592 = vrcp.f32 %v1959_v28 }
 0x5c1   : > { %v7573_v26 = vpop.eup %7572  ;;  %v1763_v17 = vsel %vm1739_vm3, %v7571_v48, 0.0  ;;  %7594 = vrcp.f32 %v1960_v55 }
 0x5c2   : > { %v9155_v25 = vsel %vm1741_vm5, %v7573_v26, 0.0  ;;  %v7575_v36 = vpop.eup %7574  ;;  %7596 = vrcp.f32 %v1961_v20  ;;  %v1913_v26 = vcvt.f32.s32 %v9065_v10  ;;  %v12221_v10 = vld [vmem:[#allocation65_spill] sm:$0xff] }
 0x626   : > { %v1836_v24 = vpop.xlane.xlu0 %1835 }
 0x627   : > { %v1837_v30 = vcvt.f32.s32 %v1836_v24  ;;  %v7577_v24 = vpop.eup %7576 }
 0x628   : > { %v7579_v28 = vpop.eup %7578 }
 0x629   : > { %v1840_v13 = vadd.s32 %v1839_v27, %v1837_v30  ;;  %v1884_v27 = vshll.u32 %v1883_v35, 16  ;;  %v7581_v61 = vpop.eup %7580 }
 0x62a   : > { %v1851_v15 = vpop.xlane.xlu1 %1850  ;;  %v1866_v11 = vpop.xlane.xlu0 %1865 }
 0x62b   : > { %v1852_v31 = vcvt.f32.s32 %v1851_v15  ;;  %vm1946_vm2 = vcmp.eq.s32.totalorder %v8284_v1, %v1840_v13  ;;  %v1867_v23 = vcvt.f32.s32 %v1866_v11  ;;  %v7583_v13 = vpop.eup %7582 }
 0x62c   : > { %v9162_v21 = vsel %vm1946_vm2, 1e+10, %v12219_v12  ;;  %v1970_v7 = vsel %vm1946_vm2, %v7575_v36, 0.0  ;;  %v7585_v35 = vpop.eup %7584 }
 0x62d   : > { %v1994_v16 = vsel %vm1577_vm0, %v9162_v21, inf  ;;  %v9166_v37 = vadd.f32 %v1970_v7, %v1762_v49  ;;  %v1855_v40 = vadd.s32 %v1854_v38, %v1852_v31  ;;  %v1870_v48 = vadd.s32 %v1869_v0, %v1867_v23  ;;  %v7587_v38 = vpop.eup %7586 }
 0x62e   : > { %v1881_v30 = vpop.xlane.xlu1 %1880  ;;  %1995 = vmin.xlane.f32.xlu0 %v1994_v16  ;;  %v1896_v55 = vpop.xlane.xlu0 %1895  ;;  %v1768_v16 = vsel %vm1744_vm8, %v7585_v35, 0.0 }
 0x62f   : > { %v1882_v19 = vcvt.f32.s32 %v1881_v30  ;;  %vm1947_vm3 = vcmp.eq.s32.totalorder %v8284_v1, %v1855_v40  ;;  %v1897_v49 = vcvt.f32.s32 %v1896_v55  ;;  %vm1948_vm4 = vcmp.eq.s32.totalorder %v8284_v1, %v1870_v48  ;;  %v7589_v7 = vpop.eup %7588 }
 0x630   : > { %v9172_v63 = vsel %vm1947_vm3, 1e+10, %v12220_v22  ;;  %v1971_v20 = vsel %vm1947_vm3, %v7581_v61, 0.0  ;;  %v9180_v33 = vsel %vm1948_vm4, 1e+10, %v12221_v10  ;;  %v1972_v36 = vsel %vm1948_vm4, %v7583_v13, 0.0 }
 0x631   : > { %v1997_v54 = vsel %vm1577_vm0, %v9172_v63, inf  ;;  %v9177_v15 = vadd.f32 %v1971_v20, %v1763_v17  ;;  %v2000_v11 = vsel %vm1577_vm0, %v9180_v33, inf  ;;  %v9184_v0 = vadd.f32 %v1972_v36, %v1764_v34  ;;  %v7591_v34 = vpop.eup %7590 }
 0x632   : > { %1998 = vmin.xlane.f32.xlu1 %v1997_v54  ;;  %v1911_v31 = vpop.xlane.xlu1 %1910  ;;  %v1885_v23 = vadd.s32 %v1884_v27, %v1882_v19  ;;  %v1900_v12 = vadd.s32 %v1899_v3, %v1897_v49  ;;  %v1766_v17 = vsel %vm1742_vm6, %v7577_v24, 0.0  ;;  %v1914_v40 = vshll.u32 %v1913_v26, 16  ;;  %2001 = vmin.xlane.f32.xlu0 %v2000_v11  ;;  %v1926_v61 = vpop.xlane.xlu0 %1925  ;;  %v12223_v27 = vld [vmem:[#allocation68_spill] sm:$0xff]  ;;  %v12224_v49 = vld [vmem:[#allocation70_spill] sm:$0xff] }
 0x633   : > { %v1929_v30 = vshll.u32 %v1928_v46, 16  ;;  %v1912_v48 = vcvt.f32.s32 %v1911_v31  ;;  %v1943_v55 = vcvt.f32.s32 %v9089_v51  ;;  %v1927_v13 = vcvt.f32.s32 %v1926_v61  ;;  %v7593_v11 = vpop.eup %7592 }
 0x634   : > { %vm1949_vm5 = vcmp.eq.s32.totalorder %v8284_v1, %v1885_v23  ;;  %vm1950_vm13 = vcmp.eq.s32.totalorder %v8284_v1, %v1900_v12  ;;  %v1767_v12 = vsel %vm1743_vm7, %v7579_v28, 0.0 }
 0x635   : > { %v9193_v3 = vsel %vm1949_vm5, 1e+10, %v12223_v27  ;;  %v1973_v19 = vsel %vm1949_vm5, %v7587_v38, 0.0  ;;  %v9196_v22 = vsel %vm1950_vm13, 1e+10, %v12224_v49  ;;  %v1974_v24 = vsel %vm1950_vm13, %v7589_v7, 0.0 }
 0x636   : > { %v2003_v26 = vsel %vm1577_vm0, %v9193_v3, inf  ;;  %v9201_v46 = vadd.f32 %v1973_v19, %v9155_v25  ;;  %v1941_v51 = vpop.xlane.xlu1 %1940  ;;  %v2006_v20 = vsel %vm1577_vm0, %v9196_v22, inf  ;;  %v9205_v54 = vadd.f32 %v1974_v24, %v1766_v17  ;;  %v9207_v36 = vpop.xlane.xlu0 %2779  ;;  %v12237_v7 = vld [vmem:[#allocation75_spill] sm:$0xff] }
 0x637   : > { %2004 = vmin.xlane.f32.xlu1 %v2003_v26  ;;  %v1942_v10 = vcvt.f32.s32 %v1941_v51  ;;  %2007 = vmin.xlane.f32.xlu0 %v2006_v20  ;;  %12226 = vst [vmem:[#allocation27_spill] sm:$0xff] %v9207_v36  ;;  %v1915_v38 = vadd.s32 %v1914_v40, %v1912_v48  ;;  %v1930_v31 = vadd.s32 %v1929_v30, %v1927_v13  ;;  %v1944_v23 = vshll.u32 %v1943_v55, 16  ;;  %v7595_v17 = vpop.eup %7594  ;;  %v12229_v40 = vld [vmem:[#allocation72_spill] sm:$0xff]  ;;  %v12231_v55 = vld [vmem:[#allocation74_spill] sm:$0xff] }
 0x638   : > { %12225 = vst [vmem:[#allocation26_spill] sm:$0xff] %v9205_v54  ;;  %vm2802_vm6 = vcmp.le.f32.partialorder %v9053_v9, %v9207_v36  ;;  %v7597_v27 = vpop.eup %7596 }
 0x639   : > { %vm1951_vm15 = vcmp.eq.s32.totalorder %v8284_v1, %v1915_v38  ;;  %vm1952_vm1 = vcmp.eq.s32.totalorder %v8284_v1, %v1930_v31  ;;  %v1945_v28 = vadd.s32 %v1944_v23, %v1942_v10  ;;  %v2810_v35 = vsel %vm2802_vm6, %v8284_v1, 48 }
 0x63a   : > { %v9220_v30 = vsel %vm1951_vm15, 1e+10, %v12229_v40  ;;  %v1975_v48 = vsel %vm1951_vm15, %v7593_v11, 0.0  ;;  %v9222_v61 = vpop.xlane.xlu1 %2782  ;;  %v9227_v13 = vsel %vm1952_vm1, 1e+10, %v12231_v55  ;;  %v9236_v24 = vpop.xlane.xlu0 %2785  ;;  %v1976_v20 = vsel %vm1952_vm1, %v7595_v17, 0.0 }
 0x63b   : > { %12230 = vst [vmem:[#allocation28_spill] sm:$0xff] %v9222_v61  ;;  %v2009_v19 = vsel %vm1577_vm0, %v9220_v30, inf  ;;  %v9232_v49 = vadd.f32 %v1975_v48, %v1767_v12  ;;  %vm2803_vm7 = vcmp.le.f32.partialorder %v9069_v58, %v9222_v61  ;;  %12233 = vst [vmem:[#allocation30_spill] sm:$0xff] %v9236_v24  ;;  %v2012_v51 = vsel %vm1577_vm0, %v9227_v13, inf }
 0x63c   : > { %2010 = vmin.xlane.f32.xlu1 %v2009_v19  ;;  %v2811_v26 = vsel %vm2803_vm7, %v8284_v1, 48  ;;  %vm2804_vm8 = vcmp.le.f32.partialorder %v9079_v56, %v9236_v24  ;;  %2013 = vmin.xlane.f32.xlu0 %v2012_v51  ;;  %v9245_v10 = vadd.f32 %v1976_v20, %v1768_v16  ;;  %v1769_v23 = vsel %vm1745_vm9, %v7591_v34, 0.0 }
 0x63d   : > { %12232 = vst [vmem:[#allocation29_spill] sm:$0xff] %v9232_v49  ;;  %v2812_v38 = vsel %vm2804_vm8, %v8284_v1, 48  ;;  %vm1953_vm10 = vcmp.eq.s32.totalorder %v8284_v1, %v1945_v28  ;;  %v9255_v12 = vsel %vm2777_vm14, %v2810_v35, 2147483647  ;;  %v9258_v31 = vsel %vm2777_vm14, %v2811_v26, 2147483647 }
 0x63e   : > { %12234 = vst [vmem:[#allocation31_spill] sm:$0xff] %v9245_v10  ;;  %v9252_v25 = vpop.xlane.xlu1 %2788  ;;  %v9261_v17 = vsel %vm1953_vm10, 1e+10, %v12237_v7  ;;  %v1977_v16 = vsel %vm1953_vm10, %v7597_v27, 0.0  ;;  %v9265_v40 = vpop.xlane.xlu0 %2791  ;;  %v9268_v34 = vsel %vm2777_vm14, %v2812_v38, 2147483647 }
 0x63f   : > { %12236 = vst [vmem:[#allocation32_spill] sm:$0xff] %v9252_v25  ;;  %vm2805_vm11 = vcmp.le.f32.partialorder %v9101_v14, %v9252_v25  ;;  %12238 = vst [vmem:[#allocation61_spill] sm:$0xff] %v9265_v40  ;;  %v2015_v48 = vsel %vm1577_vm0, %v9261_v17, inf  ;;  %v9272_v55 = vadd.f32 %v1977_v16, %v1769_v23  ;;  %v2820_v35 = vshra.s32 %v9255_v12, 16 }
 0x640   : > { %v2813_v28 = vsel %vm2805_vm11, %v8284_v1, 48  ;;  %2016 = vmin.xlane.f32.xlu1 %v2015_v48  ;;  %vm2806_vm9 = vcmp.le.f32.partialorder %v9107_v18, %v9265_v40  ;;  %v2835_v27 = vshra.s32 %v9258_v31, 16  ;;  %v2850_v51 = vshra.s32 %v9268_v34, 16 }
 0x641   : > { %12239 = vst [vmem:[#allocation63_spill] sm:$0xff] %v9272_v55  ;;  %v2814_v19 = vsel %vm2806_vm9, %v8284_v1, 48  ;;  %v9284_v20 = vsel %vm2777_vm14, %v2813_v28, 2147483647  ;;  %v9286_v38 = vcvt.s32.f32 %v2820_v35  ;;  %v2819_v2 = vand.u32 65535, %v9255_v12 }
 0x642   : > { %v9280_v26 = vpop.xlane.xlu1 %2794  ;;  %v9288_v11 = vcvt.s32.f32 %v2835_v27  ;;  %v9292_v23 = vpop.xlane.xlu0 %2797  ;;  %v9299_v16 = vcvt.s32.f32 %v2850_v51  ;;  %v2865_v28 = vshra.s32 %v9284_v20, 16  ;;  %v9304_v35 = vsel %vm2777_vm14, %v2814_v19, 2147483647 }
 0x643   : > { %12240 = vst [vmem:[#allocation76_spill] sm:$0xff] %v9280_v26  ;;  %vm2807_vm12 = vcmp.le.f32.partialorder %v9111_v32, %v9280_v26  ;;  %12241 = vst [vmem:[#allocation66_spill] sm:$0xff] %v9292_v23  ;;  %vm2808_vm2 = vcmp.le.f32.partialorder %v9115_v47, %v9292_v23  ;;  %2823 = vmin.xlane.f32.xlu0 %v9286_v38  ;;  %v2880_v26 = vshra.s32 %v9304_v35, 16  ;;  %v2821_v12 = vcvt.s32.f32 %v2819_v2 }
 0x644   : > { %v2815_v7 = vsel %vm2807_vm12, %v8284_v1, 48  ;;  %2838 = vmin.xlane.f32.xlu1 %v9288_v11  ;;  %v2816_v48 = vsel %vm2808_vm2, %v8284_v1, 48  ;;  %v9315_v25 = vcvt.s32.f32 %v2865_v28 }
 0x645   : > { %v9310_v40 = vsel %vm2777_vm14, %v2815_v7, 2147483647  ;;  %v9313_v23 = vsel %vm2777_vm14, %v2816_v48, 2147483647  ;;  %v9323_v24 = vcvt.s32.f32 %v2880_v26 }
 0x646   : > { %v9306_v27 = vpop.xlane.xlu1 %2800  ;;  %v2895_v19 = vshra.s32 %v9310_v40, 16  ;;  %v2910_v7 = vshra.s32 %v9313_v23, 16 }
 0x647   : > { %12242 = vst [vmem:[#allocation77_spill] sm:$0xff] %v9306_v27  ;;  %vm2809_vm3 = vcmp.le.f32.partialorder %v9119_v62, %v9306_v27  ;;  %2853 = vmin.xlane.f32.xlu0 %v9299_v16 }
 0x648   : > { %v2817_v51 = vsel %vm2809_vm3, %v8284_v1, 48  ;;  %2868 = vmin.xlane.f32.xlu1 %v9315_v25  ;;  %v9329_v28 = vcvt.s32.f32 %v2895_v19  ;;  %v9334_v27 = vcvt.s32.f32 %v2910_v7 }
 0x649   : > { %v9327_v48 = vsel %vm2777_vm14, %v2817_v51, 2147483647 }
 0x64a   : > { %v2925_v61 = vshra.s32 %v9327_v48, 16 }
 0x64b   : > { %2883 = vmin.xlane.f32.xlu0 %v9323_v24 }
 0x64c   : > { %2898 = vmin.xlane.f32.xlu1 %v9329_v28  ;;  %v9336_v36 = vcvt.s32.f32 %v2925_v61 }
 0x64f   : > { %2913 = vmin.xlane.f32.xlu0 %v9334_v27 }
 0x650   : > { %2928 = vmin.xlane.f32.xlu1 %v9336_v36 }
 0x6b7   : > { %v9340_v26 = vpop.xlane.xlu0 %1995 }
 0x6b8   : > { %vm2018_vm4 = vcmp.le.f32.partialorder %v9162_v21, %v9340_v26 }
 0x6b9   : > { %v2026_v51 = vsel %vm2018_vm4, %v8284_v1, 32 }
 0x6ba   : > { %v9346_v19 = vsel %vm1577_vm0, %v2026_v51, 2147483647 }
 0x6bb   : > { %v9348_v29 = vpop.xlane.xlu1 %1998  ;;  %v2036_v7 = vshra.s32 %v9346_v19, 16  ;;  %v9353_v61 = vpop.xlane.xlu0 %2001 }
 0x6bc   : > { %vm2019_vm5 = vcmp.le.f32.partialorder %v9172_v63, %v9348_v29  ;;  %vm2020_vm13 = vcmp.le.f32.partialorder %v9180_v33, %v9353_v61 }
 0x6bd   : > { %v2027_v57 = vsel %vm2019_vm5, %v8284_v1, 32  ;;  %v9358_v21 = vcvt.s32.f32 %v2036_v7  ;;  %v2028_v50 = vsel %vm2020_vm13, %v8284_v1, 32 }
 0x6be   : > { %v9362_v51 = vsel %vm1577_vm0, %v2027_v57, 2147483647  ;;  %v9367_v63 = vsel %vm1577_vm0, %v2028_v50, 2147483647 }
 0x6bf   : > { %2039 = vmin.xlane.f32.xlu0 %v9358_v21  ;;  %v2051_v41 = vshra.s32 %v9362_v51, 16  ;;  %v2066_v33 = vshra.s32 %v9367_v63, 16 }
 0x6c0   : > { %v9369_v60 = vpop.xlane.xlu1 %2004  ;;  %v9371_v45 = vpop.xlane.xlu0 %2007 }
 0x6c1   : > { %vm2021_vm6 = vcmp.le.f32.partialorder %v9193_v3, %v9369_v60  ;;  %vm2022_vm15 = vcmp.le.f32.partialorder %v9196_v22, %v9371_v45  ;;  %v9380_v44 = vcvt.s32.f32 %v2051_v41  ;;  %v9382_v50 = vcvt.s32.f32 %v2066_v33 }
 0x6c2   : > { %v2029_v57 = vsel %vm2021_vm6, %v8284_v1, 32  ;;  %v2030_v7 = vsel %vm2022_vm15, %v8284_v1, 32 }
 0x6c3   : > { %v9385_v6 = vsel %vm1577_vm0, %v2029_v57, 2147483647  ;;  %v9388_v4 = vsel %vm1577_vm0, %v2030_v7, 2147483647  ;;  %2054 = vmin.xlane.f32.xlu1 %v9380_v44  ;;  %2069 = vmin.xlane.f32.xlu0 %v9382_v50 }
 0x6c4   : > { %v2081_v3 = vshra.s32 %v9385_v6, 16  ;;  %v2096_v22 = vshra.s32 %v9388_v4, 16 }
 0x6c5   : > { %v9394_v59 = vpop.xlane.xlu1 %2010  ;;  %v9398_v41 = vpop.xlane.xlu0 %2013 }
 0x6c6   : > { %vm2023_vm1 = vcmp.le.f32.partialorder %v9220_v30, %v9394_v59  ;;  %v9400_v33 = vcvt.s32.f32 %v2081_v3  ;;  %v9402_v57 = vcvt.s32.f32 %v2096_v22  ;;  %vm2024_vm7 = vcmp.le.f32.partialorder %v9227_v13, %v9398_v41 }
 0x6c7   : > { %v2031_v7 = vsel %vm2023_vm1, %v8284_v1, 32  ;;  %v2032_v8 = vsel %vm2024_vm7, %v8284_v1, 32 }
 0x6c8   : > { %2084 = vmin.xlane.f32.xlu1 %v9400_v33  ;;  %2099 = vmin.xlane.f32.xlu0 %v9402_v57  ;;  %v9411_v5 = vsel %vm1577_vm0, %v2031_v7, 2147483647  ;;  %v9415_v3 = vsel %vm1577_vm0, %v2032_v8, 2147483647 }
 0x6c9   : > { %v2111_v30 = vshra.s32 %v9411_v5, 16  ;;  %v9417_v22 = vpop.xlane.xlu1 %2016  ;;  %v2126_v39 = vshra.s32 %v9415_v3, 16 }
 0x6ca   : > { %vm2025_vm8 = vcmp.le.f32.partialorder %v9261_v17, %v9417_v22 }
 0x6cb   : > { %v9422_v13 = vcvt.s32.f32 %v2111_v30  ;;  %v2033_v42 = vsel %vm2025_vm8, %v8284_v1, 32  ;;  %v9426_v7 = vcvt.s32.f32 %v2126_v39  ;;  %v2834_v30 = vand.u32 65535, %v9258_v31 }
 0x6cc   : > { %v9430_v8 = vsel %vm1577_vm0, %v2033_v42, 2147483647  ;;  %v9432_v53 = vpop.xlane.xlu0 %2823  ;;  %v2849_v39 = vand.u32 65535, %v9268_v34  ;;  %v2864_v31 = vand.u32 65535, %v9284_v20  ;;  %v2879_v34 = vand.u32 65535, %v9304_v35 }
 0x6cd   : > { %2114 = vmin.xlane.f32.xlu1 %v9422_v13  ;;  %v9434_v52 = vpop.xlane.xlu1 %2838  ;;  %2129 = vmin.xlane.f32.xlu0 %v9426_v7  ;;  %v2141_v17 = vshra.s32 %v9430_v8, 16  ;;  %vm2825_vm10 = vcmp.eq.f32.partialorder %v9286_v38, %v9432_v53  ;;  %v2836_v49 = vcvt.s32.f32 %v2834_v30  ;;  %v2909_v20 = vand.u32 65535, %v9313_v23 }
 0x6ce   : > { %v2826_v42 = vsel %vm2825_vm10, %v2821_v12, inf  ;;  %vm2840_vm11 = vcmp.eq.f32.partialorder %v9288_v11, %v9434_v52  ;;  %v2851_v2 = vcvt.s32.f32 %v2849_v39  ;;  %v2894_v11 = vand.u32 65535, %v9310_v40 }
 0x6cf   : > { %v9442_v43 = vcvt.s32.f32 %v2141_v17  ;;  %v2841_v38 = vsel %vm2840_vm11, %v2836_v49, inf  ;;  %v2866_v30 = vcvt.s32.f32 %v2864_v31  ;;  %v2881_v39 = vcvt.s32.f32 %v2879_v34 }
 0x6d0   : > { %v9444_v55 = vpop.xlane.xlu0 %2853  ;;  %v2911_v40 = vcvt.s32.f32 %v2909_v20 }
 0x6d1   : > { %2144 = vmin.xlane.f32.xlu1 %v9442_v43  ;;  %v9447_v10 = vpop.xlane.xlu1 %2868  ;;  %2827 = vmin.xlane.f32.xlu0 %v2826_v42  ;;  %vm2855_vm9 = vcmp.eq.f32.partialorder %v9299_v16, %v9444_v55 }
 0x6d2   : > { %v2856_v17 = vsel %vm2855_vm9, %v2851_v2, inf  ;;  %vm2870_vm12 = vcmp.eq.f32.partialorder %v9315_v25, %v9447_v10  ;;  %v2896_v25 = vcvt.s32.f32 %v2894_v11 }
 0x6d3   : > { %v2871_v49 = vsel %vm2870_vm12, %v2866_v30, inf }
 0x6d4   : > { %v9455_v12 = vpop.xlane.xlu0 %2883 }
 0x6d5   : > { %2842 = vmin.xlane.f32.xlu1 %v2841_v38  ;;  %v9457_v54 = vpop.xlane.xlu1 %2898  ;;  %2857 = vmin.xlane.f32.xlu0 %v2856_v17  ;;  %vm2885_vm2 = vcmp.eq.f32.partialorder %v9323_v24, %v9455_v12  ;;  %v2924_v24 = vand.u32 65535, %v9327_v48  ;;  %v2065_v48 = vand.u32 65535, %v9367_v63 }
 0x6d6   : > { %v2886_v16 = vsel %vm2885_vm2, %v2881_v39, inf  ;;  %vm2900_vm3 = vcmp.eq.f32.partialorder %v9329_v28, %v9457_v54  ;;  %v2035_v28 = vand.u32 65535, %v9346_v19  ;;  %v2080_v19 = vand.u32 65535, %v9385_v6 }
 0x6d7   : > { %v2901_v2 = vsel %vm2900_vm3, %v2896_v25, inf  ;;  %v2926_v31 = vcvt.s32.f32 %v2924_v24  ;;  %v2067_v20 = vcvt.s32.f32 %v2065_v48  ;;  %vm1498_vm3 = vcmask 518144  }
 0x6d8   : > { %v9465_v35 = vpop.xlane.xlu0 %2913  ;;  %v2037_v17 = vcvt.s32.f32 %v2035_v28  ;;  %v2082_v25 = vcvt.s32.f32 %v2080_v19 }
 0x6d9   : > { %2872 = vmin.xlane.f32.xlu1 %v2871_v49  ;;  %2887 = vmin.xlane.f32.xlu0 %v2886_v16  ;;  %v9469_v42 = vpop.xlane.xlu1 %2928  ;;  %vm2915_vm4 = vcmp.eq.f32.partialorder %v9334_v27, %v9465_v35  ;;  %v2050_v27 = vand.u32 65535, %v9362_v51  ;;  %v2095_v49 = vand.u32 65535, %v9388_v4  ;;  %v2110_v4 = vand.u32 65535, %v9411_v5 }
 0x6da   : > { %v2916_v23 = vsel %vm2915_vm4, %v2911_v40, inf  ;;  %vm2930_vm5 = vcmp.eq.f32.partialorder %v9336_v36, %v9469_v42 }
 0x6db   : > { %v2931_v34 = vsel %vm2930_vm5, %v2926_v31, inf  ;;  %v2052_v39 = vcvt.s32.f32 %v2050_v27  ;;  %v2097_v40 = vcvt.s32.f32 %v2095_v49  ;;  %v2140_v31 = vand.u32 65535, %v9430_v8 }
 0x6dd   : > { %2902 = vmin.xlane.f32.xlu1 %v2901_v2  ;;  %2917 = vmin.xlane.f32.xlu0 %v2916_v23  ;;  %v2112_v2 = vcvt.s32.f32 %v2110_v4  ;;  %v2142_v27 = vcvt.s32.f32 %v2140_v31  ;;  %v2905_v4 = vcvt.f32.s32 %v9457_v54 }
 0x6e1   : > { %2932 = vmin.xlane.f32.xlu1 %v2931_v34  ;;  %v2845_v34 = vcvt.f32.s32 %v9434_v52  ;;  %v2890_v52 = vcvt.f32.s32 %v9455_v12 }
 0x748   : > { %v9477_v38 = vpop.xlane.xlu0 %2039 }
 0x749   : > { %vm2041_vm13 = vcmp.eq.f32.partialorder %v9358_v21, %v9477_v38 }
 0x74a   : > { %v2042_v11 = vsel %vm2041_vm13, %v2037_v17, inf }
 0x74b   : > { %2043 = vmin.xlane.f32.xlu0 %v2042_v11 }
 0x74c   : > { %v9483_v30 = vpop.xlane.xlu1 %2054  ;;  %v9485_v36 = vpop.xlane.xlu0 %2069 }
 0x74d   : > { %vm2056_vm6 = vcmp.eq.f32.partialorder %v9380_v44, %v9483_v30  ;;  %vm2071_vm15 = vcmp.eq.f32.partialorder %v9382_v50, %v9485_v36  ;;  %v2125_v50 = vand.u32 65535, %v9415_v3 }
 0x74e   : > { %v2057_v21 = vsel %vm2056_vm6, %v2052_v39, inf  ;;  %v2072_v51 = vsel %vm2071_vm15, %v2067_v20, inf  ;;  %v2875_v39 = vcvt.f32.s32 %v9447_v10 }
 0x74f   : > { %2058 = vmin.xlane.f32.xlu1 %v2057_v21  ;;  %2073 = vmin.xlane.f32.xlu0 %v2072_v51 }
 0x751   : > { %v9493_v63 = vpop.xlane.xlu1 %2084  ;;  %v9495_v16 = vpop.xlane.xlu0 %2099 }
 0x752   : > { %vm2086_vm1 = vcmp.eq.f32.partialorder %v9400_v33, %v9493_v63  ;;  %vm2101_vm7 = vcmp.eq.f32.partialorder %v9402_v57, %v9495_v16  ;;  %v2127_v33 = vcvt.s32.f32 %v2125_v50  ;;  %v2830_v57 = vcvt.f32.s32 %v9432_v53 }
 0x753   : > { %v2087_v6 = vsel %vm2086_vm1, %v2082_v25, inf  ;;  %v2102_v44 = vsel %vm2101_vm7, %v2097_v40, inf  ;;  %v2876_v25 = vshll.u32 %v2875_v39, 16  ;;  %v2891_v40 = vshll.u32 %v2890_v52, 16 }
 0x754   : > { %2088 = vmin.xlane.f32.xlu1 %v2087_v6  ;;  %2103 = vmin.xlane.f32.xlu0 %v2102_v44  ;;  %v2831_v48 = vshll.u32 %v2830_v57, 16  ;;  %v2920_v6 = vcvt.f32.s32 %v9465_v35 }
 0x756   : > { %v9503_v24 = vpop.xlane.xlu1 %2114  ;;  %v9505_v23 = vpop.xlane.xlu0 %2129 }
 0x757   : > { %vm2116_vm8 = vcmp.eq.f32.partialorder %v9422_v13, %v9503_v24  ;;  %vm2131_vm10 = vcmp.eq.f32.partialorder %v9426_v7, %v9505_v23  ;;  %v2860_v13 = vcvt.f32.s32 %v9444_v55  ;;  %v2846_v7 = vshll.u32 %v2845_v34, 16 }
 0x758   : > { %v2117_v5 = vsel %vm2116_vm8, %v2112_v2, inf  ;;  %v2132_v3 = vsel %vm2131_vm10, %v2127_v33, inf  ;;  %v7514_v33 = vld [vmem:[%s8325_s16 + $0x8] sm:$0xff]   ;;  %v2921_v34 = vshll.u32 %v2920_v6, 16  ;;  %v2163_v6 = vadd.f32 1e-08, %v9348_v29 }
 0x759   : > { %2118 = vmin.xlane.f32.xlu1 %v2117_v5  ;;  %2133 = vmin.xlane.f32.xlu0 %v2132_v3  ;;  %v2861_v49 = vshll.u32 %v2860_v13, 16  ;;  %v2076_v29 = vcvt.f32.s32 %v9485_v36 }
 0x75a   : > { %v9514_v28 = vpop.xlane.xlu1 %2144  ;;  %v2828_v17 = vpop.xlane.xlu0 %2827  ;;  %7010 = vmatprep.subr.bf16.mxu1 %v7514_v33 }
 0x75b   : > { %v2829_v11 = vcvt.f32.s32 %v2828_v17  ;;  %vm2146_vm11 = vcmp.eq.f32.partialorder %v9442_v43, %v9514_v28  ;;  %v2935_v17 = vcvt.f32.s32 %v9469_v42  ;;  %7011 = vmatpush3.bf16.msra.mxu1 %v7514_v33  ;;  %v2167_v33 = vadd.f32 1e-08, %v9394_v59 }
 0x75c   : > { %v2147_v53 = vsel %vm2146_vm11, %v2142_v27, inf }
 0x75d   : > { %v9519_v8 = vadd.s32 %v2831_v48, %v2829_v11  ;;  %2148 = vmin.xlane.f32.xlu1 %v2147_v53  ;;  %v12243_v11 = vld [vmem:[#allocation36_spill] sm:$0xff]  ;;  %v7515_v53 = vld [vmem:[%s8325_s16] sm:$0xff]   ;;  %s12384_s16 = sld [smem:[#allocation6_spill]] }
 0x75e   : > { %v2843_v20 = vpop.xlane.xlu1 %2842  ;;  %v2858_v19 = vpop.xlane.xlu0 %2857  ;;  %1499 = vst.msk [vmem:[%s1252_s28] sm:$0x7] %vm1498_vm3, %v12243_v11  ;;  %7012 = vmatprep.subr.bf16.mxu1 %v7515_v53  ;;  %s12349_s28 = sld [smem:[#allocation5_spill]] }
 0x75f   : > { %v2844_v21 = vcvt.f32.s32 %v2843_v20  ;;  %v2859_v51 = vcvt.f32.s32 %v2858_v19  ;;  %vm2938_vm9 = vcmp.eq.s32.totalorder %v8284_v1, %v9519_v8  ;;  %7013 = vmatpush3.bf16.msra.mxu1 %v7515_v53  ;;  %v2121_v53 = vcvt.f32.s32 %v9503_v24 }
 0x760   : > { %v9529_v43 = vsel %vm2938_vm9, 1e+10, %v9053_v9 }
 0x761   : > { %v9531_v55 = vadd.s32 %v2846_v7, %v2844_v21  ;;  %v9533_v10 = vadd.s32 %v2861_v49, %v2859_v51  ;;  %v2986_v12 = vsel %vm2777_vm14, %v9529_v43, inf  ;;  %v2936_v49 = vshll.u32 %v2935_v17, 16 }
 0x762   : > { %v2873_v44 = vpop.xlane.xlu1 %2872  ;;  %2987 = vmin.xlane.f32.xlu0 %v2986_v12  ;;  %v2888_v50 = vpop.xlane.xlu0 %2887 }
 0x763   : > { %vm2940_vm12 = vcmp.eq.s32.totalorder %v8284_v1, %v9533_v10  ;;  %v2874_v9 = vcvt.f32.s32 %v2873_v44  ;;  %v2889_v2 = vcvt.f32.s32 %v2888_v50  ;;  %vm2939_vm2 = vcmp.eq.s32.totalorder %v8284_v1, %v9531_v55 }
 0x764   : > { %v9548_v31 = vsel %vm2939_vm2, 1e+10, %v9069_v58  ;;  %v9554_v54 = vsel %vm2940_vm12, 1e+10, %v9079_v56  ;;  %v2906_v58 = vshll.u32 %v2905_v4, 16  ;;  %s12350_s2 = smov %s12349_s28 }
 0x765   : > { %v9556_v35 = vadd.s32 %v2876_v25, %v2874_v9  ;;  %v9558_v57 = vadd.s32 %v2891_v40, %v2889_v2  ;;  %v2989_v5 = vsel %vm2777_vm14, %v9548_v31, inf  ;;  %v2992_v3 = vsel %vm2777_vm14, %v9554_v54, inf }
 0x766   : > { %2990 = vmin.xlane.f32.xlu1 %v2989_v5  ;;  %v2903_v56 = vpop.xlane.xlu1 %2902  ;;  %2993 = vmin.xlane.f32.xlu0 %v2992_v3  ;;  %v2918_v27 = vpop.xlane.xlu0 %2917  ;;  %v2162_v4 = vadd.f32 1e-08, %v9340_v26  ;;  %v2164_v44 = vadd.f32 1e-08, %v9353_v61  ;;  %v2165_v50 = vadd.f32 1e-08, %v9369_v60  ;;  %v2046_v9 = vcvt.f32.s32 %v9477_v38 }
 0x767   : > { %vm2941_vm4 = vcmp.eq.s32.totalorder %v8284_v1, %v9556_v35  ;;  %vm2942_vm5 = vcmp.eq.s32.totalorder %v8284_v1, %v9558_v57  ;;  %v2904_v48 = vcvt.f32.s32 %v2903_v56  ;;  %v2919_v13 = vcvt.f32.s32 %v2918_v27 }
 0x768   : > { %v9578_v42 = vsel %vm2941_vm4, 1e+10, %v9101_v14  ;;  %v9584_v7 = vsel %vm2942_vm5, 1e+10, %v9107_v18  ;;  %7598 = vrcp.f32 %v2162_v4  ;;  %v2047_v5 = vshll.u32 %v2046_v9, 16 }
 0x769   : > { %v9586_v39 = vadd.s32 %v2906_v58, %v2904_v48  ;;  %v9588_v52 = vadd.s32 %v2921_v34, %v2919_v13  ;;  %v2995_v20 = vsel %vm2777_vm14, %v9578_v42, inf  ;;  %v2998_v19 = vsel %vm2777_vm14, %v9584_v7, inf }
 0x76a   : > { %2996 = vmin.xlane.f32.xlu1 %v2995_v20  ;;  %v2933_v14 = vpop.xlane.xlu1 %2932  ;;  %2999 = vmin.xlane.f32.xlu0 %v2998_v19  ;;  %7600 = vrcp.f32 %v2163_v6  ;;  %v2061_v26 = vcvt.f32.s32 %v9483_v30  ;;  %v2168_v60 = vadd.f32 1e-08, %v9398_v41  ;;  %v2091_v38 = vcvt.f32.s32 %v9493_v63 }
 0x76b   : > { %12244 = vst [vmem:[#allocation62_spill] sm:$0xff] %v9588_v52  ;;  %vm2943_vm13 = vcmp.eq.s32.totalorder %v8284_v1, %v9586_v39  ;;  %vm2944_vm6 = vcmp.eq.s32.totalorder %v8284_v1, %v9588_v52  ;;  %v2934_v18 = vcvt.f32.s32 %v2933_v14  ;;  %7602 = vrcp.f32 %v2164_v44 }
 0x76c   : > { %v9602_v21 = vsel %vm2943_vm13, 1e+10, %v9111_v32  ;;  %v9608_v51 = vsel %vm2944_vm6, 1e+10, %v9115_v47  ;;  %7604 = vrcp.f32 %v2165_v50  ;;  %v2062_v61 = vshll.u32 %v2061_v26, 16 }
 0x76d   : > { %12245 = vst [vmem:[#allocation64_spill] sm:$0xff] %v9602_v21  ;;  %12246 = vst [vmem:[#allocation65_spill] sm:$0xff] %v9608_v51  ;;  %v9610_v12 = vadd.s32 %v2936_v49, %v2934_v18  ;;  %v3001_v25 = vsel %vm2777_vm14, %v9602_v21, inf  ;;  %v3004_v40 = vsel %vm2777_vm14, %v9608_v51, inf  ;;  %v2106_v34 = vcvt.f32.s32 %v9495_v16 }
 0x76e   : > { %3002 = vmin.xlane.f32.xlu1 %v3001_v25  ;;  %3005 = vmin.xlane.f32.xlu0 %v3004_v40  ;;  %v2077_v56 = vshll.u32 %v2076_v29, 16  ;;  %v2169_v27 = vadd.f32 1e-08, %v9417_v22  ;;  %v2092_v41 = vshll.u32 %v2091_v38, 16  ;;  %v2136_v22 = vcvt.f32.s32 %v9505_v23 }
 0x76f   : > { %12247 = vst [vmem:[#allocation67_spill] sm:$0xff] %v9610_v12  ;;  %vm2945_vm15 = vcmp.eq.s32.totalorder %v8284_v1, %v9610_v12  ;;  %v2107_v11 = vshll.u32 %v2106_v34, 16  ;;  %v2122_v50 = vshll.u32 %v2121_v53, 16 }
 0x770   : > { %v9622_v32 = vsel %vm2945_vm15, 1e+10, %v9119_v62  ;;  %v2166_v62 = vadd.f32 1e-08, %v9371_v45  ;;  %v2137_v23 = vshll.u32 %v2136_v22, 16 }
 0x771   : > { %12248 = vst [vmem:[#allocation68_spill] sm:$0xff] %v9622_v32  ;;  %v3007_v47 = vsel %vm2777_vm14, %v9622_v32, inf }
 0x772   : > { %3008 = vmin.xlane.f32.xlu1 %v3007_v47  ;;  %7606 = vrcp.f32 %v2166_v62 }
 0x773   : > { %7608 = vrcp.f32 %v2167_v33 }
 0x774   : > { %7610 = vrcp.f32 %v2168_v60 }
 0x775   : > { %v7599_v36 = vpop.eup %7598  ;;  %7612 = vrcp.f32 %v2169_v27 }
 0x777   : > { %v7601_v19 = vpop.eup %7600 }
 0x778   : > { %v7603_v25 = vpop.eup %7602 }
 0x779   : > { %v7605_v6 = vpop.eup %7604 }
 0x77f   : > { %v7607_v29 = vpop.eup %7606 }
 0x780   : > { %v7609_v60 = vpop.eup %7608 }
 0x7d4   : > { %v2044_v2 = vpop.xlane.xlu0 %2043 }
 0x7d5   : > { %v2045_v3 = vcvt.f32.s32 %v2044_v2 }
 0x7d7   : > { %v2048_v58 = vadd.s32 %v2047_v5, %v2045_v3 }
 0x7d8   : > { %v2059_v45 = vpop.xlane.xlu1 %2058  ;;  %v2074_v17 = vpop.xlane.xlu0 %2073 }
 0x7d9   : > { %vm2154_vm1 = vcmp.eq.s32.totalorder %v8284_v1, %v2048_v58  ;;  %v2060_v59 = vcvt.f32.s32 %v2059_v45  ;;  %v2075_v30 = vcvt.f32.s32 %v2074_v17  ;;  %v7611_v17 = vpop.eup %7610 }
 0x7da   : > { %v2178_v16 = vsel %vm2154_vm1, %v7599_v36, 0.0 }
 0x7db   : > { %v2063_v48 = vadd.s32 %v2062_v61, %v2060_v59  ;;  %v2078_v13 = vadd.s32 %v2077_v56, %v2075_v30  ;;  %v9645_v4 = vadd.f32 %v2178_v16, %v9166_v37  ;;  %v2151_v37 = vcvt.f32.s32 %v9514_v28  ;;  %v12249_v56 = vld [vmem:[#allocation26_spill] sm:$0xff]  ;;  %v12250_v30 = vld [vmem:[#allocation29_spill] sm:$0xff]  ;;  %v12252_v16 = vld [vmem:[#allocation63_spill] sm:$0xff] }
 0x7dd   : > { %v2089_v63 = vpop.xlane.xlu1 %2088  ;;  %v2104_v20 = vpop.xlane.xlu0 %2103  ;;  %vm2155_vm7 = vcmp.eq.s32.totalorder %v8284_v1, %v2063_v48  ;;  %vm2156_vm8 = vcmp.eq.s32.totalorder %v8284_v1, %v2078_v13  ;;  %v2152_v45 = vshll.u32 %v2151_v37, 16 }
 0x7de   : > { %v2090_v14 = vcvt.f32.s32 %v2089_v63  ;;  %v2105_v49 = vcvt.f32.s32 %v2104_v20  ;;  %v2179_v18 = vsel %vm2155_vm7, %v7601_v19, 0.0  ;;  %v2180_v44 = vsel %vm2156_vm8, %v7603_v25, 0.0  ;;  %v12251_v63 = vld [vmem:[#allocation31_spill] sm:$0xff] }
 0x7df   : > { %v9648_v24 = vadd.f32 %v2179_v18, %v9177_v15  ;;  %v9656_v15 = vadd.f32 %v2180_v44, %v9184_v0 }
 0x7e0   : > { %v2093_v40 = vadd.s32 %v2092_v41, %v2090_v14  ;;  %v2108_v47 = vadd.s32 %v2107_v11, %v2105_v49  ;;  %v7613_v41 = vpop.eup %7612 }
 0x7e1   : > { %v2218_v62 = vpack.c.bf16 %v9648_v24, %v9645_v4 }
 0x7e2   : > { %vm2157_vm10 = vcmp.eq.s32.totalorder %v8284_v1, %v2093_v40  ;;  %v2119_v9 = vpop.xlane.xlu1 %2118  ;;  %vm2158_vm11 = vcmp.eq.s32.totalorder %v8284_v1, %v2108_v47  ;;  %v2134_v5 = vpop.xlane.xlu0 %2133 }
 0x7e3   : > { %v2181_v2 = vsel %vm2157_vm10, %v7605_v6, 0.0  ;;  %v2120_v33 = vcvt.f32.s32 %v2119_v9  ;;  %v2135_v3 = vcvt.f32.s32 %v2134_v5  ;;  %7014 = vmatprep.mubr.msk.bf16.mxu1 %vm1577_vm0, %v2218_v62  ;;  %v2182_v61 = vsel %vm2158_vm11, %v7607_v29, 0.0 }
 0x7e4   : > { %v9659_v26 = vadd.f32 %v2181_v2, %v9201_v46  ;;  %v9668_v59 = vadd.f32 %v2182_v61, %v12249_v56 }
 0x7e5   : > { %v2123_v58 = vadd.s32 %v2122_v50, %v2120_v33  ;;  %v2138_v38 = vadd.s32 %v2137_v23, %v2135_v3 }
 0x7e6   : > { %v2219_v34 = vpack.c.bf16 %v9659_v26, %v9656_v15  ;;  %v2149_v28 = vpop.xlane.xlu1 %2148 }
 0x7e7   : > { %vm2159_vm3 = vcmp.eq.s32.totalorder %v8284_v1, %v2123_v58  ;;  %vm2160_vm1 = vcmp.eq.s32.totalorder %v8284_v1, %v2138_v38  ;;  %v2150_v46 = vcvt.f32.s32 %v2149_v28 }
 0x7e8   : > { %v2183_v0 = vsel %vm2159_vm3, %v7609_v60, 0.0  ;;  %7015 = vmatmul.mubr.msk.bf16.vlgmr.msra.gmra.mxu1 %vm1577_vm0, %v2219_v34  ;;  %v2184_v48 = vsel %vm2160_vm1, %v7611_v17, 0.0 }
 0x7e9   : > { %v9671_v27 = vadd.f32 %v2183_v0, %v12250_v30  ;;  %v2153_v36 = vadd.s32 %v2152_v45, %v2150_v46  ;;  %v9682_v20 = vadd.f32 %v2184_v48, %v12251_v63 }
 0x7eb   : > { %v2220_v13 = vpack.c.bf16 %v9671_v27, %v9668_v59  ;;  %vm2161_vm7 = vcmp.eq.s32.totalorder %v8284_v1, %v2153_v36  ;;  %v9676_v11 = vpop.xlane.xlu0 %2987 }
 0x7ec   : > { %v2185_v53 = vsel %vm2161_vm7, %v7613_v41, 0.0  ;;  %vm3010_vm8 = vcmp.le.f32.partialorder %v9529_v43, %v9676_v11 }
 0x7ed   : > { %7018 = vmatprep.mubr.msk.bf16.mxu1 %vm1577_vm0, %v2220_v13  ;;  %v9685_v19 = vadd.f32 %v2185_v53, %v12252_v16  ;;  %v3018_v14 = vsel %vm3010_vm8, %v8284_v1, 48 }
 0x7ee   : > { %v3026_v49 = vsel %vm2777_vm14, %v3018_v14, 2147483647 }
 0x7ef   : > { %v9689_v22 = vpop.xlane.xlu1 %2990  ;;  %v9691_v18 = vpop.xlane.xlu0 %2993  ;;  %v2221_v25 = vpack.c.bf16 %v9685_v19, %v9682_v20  ;;  %v3028_v40 = vshra.s32 %v3026_v49, 16 }
 0x7f0   : > { %vm3011_vm10 = vcmp.le.f32.partialorder %v9548_v31, %v9689_v22  ;;  %vm3012_vm11 = vcmp.le.f32.partialorder %v9554_v54, %v9691_v18 }
 0x7f1   : > { %v3019_v47 = vsel %vm3011_vm10, %v8284_v1, 48  ;;  %v3020_v6 = vsel %vm3012_vm11, %v8284_v1, 48  ;;  %7019 = vmatmul.mubr.msk.bf16.gmra.mxu1 %vm1577_vm0, %v2221_v25  ;;  %v3030_v44 = vcvt.s32.f32 %v3028_v40  ;;  %v3027_v40 = vand.u32 65535, %v3026_v49 }
 0x7f2   : > { %v3041_v50 = vsel %vm2777_vm14, %v3019_v47, 2147483647  ;;  %v3056_v9 = vsel %vm2777_vm14, %v3020_v6, 2147483647 }
 0x7f3   : > { %v9704_v62 = vpop.xlane.xlu1 %2996  ;;  %3031 = vmin.xlane.f32.xlu0 %v3030_v44  ;;  %v9706_v23 = vpop.xlane.xlu0 %2999  ;;  %v3043_v2 = vshra.s32 %v3041_v50, 16  ;;  %v3058_v33 = vshra.s32 %v3056_v9, 16  ;;  %v3029_v6 = vcvt.s32.f32 %v3027_v40 }
 0x7f4   : > { %vm3013_vm3 = vcmp.le.f32.partialorder %v9578_v42, %v9704_v62  ;;  %vm3014_vm1 = vcmp.le.f32.partialorder %v9584_v7, %v9706_v23 }
 0x7f5   : > { %v3021_v5 = vsel %vm3013_vm3, %v8284_v1, 48  ;;  %v3022_v37 = vsel %vm3014_vm1, %v8284_v1, 48  ;;  %v3045_v3 = vcvt.s32.f32 %v3043_v2  ;;  %v3060_v29 = vcvt.s32.f32 %v3058_v33 }
 0x7f6   : > { %v3071_v58 = vsel %vm2777_vm14, %v3021_v5, 2147483647  ;;  %v3086_v60 = vsel %vm2777_vm14, %v3022_v37, 2147483647  ;;  %v3042_v2 = vand.u32 65535, %v3041_v50  ;;  %v3057_v33 = vand.u32 65535, %v3056_v9 }
 0x7f7   : > { %3046 = vmin.xlane.f32.xlu1 %v3045_v3  ;;  %v9716_v61 = vpop.xlane.xlu1 %3002  ;;  %3061 = vmin.xlane.f32.xlu0 %v3060_v29  ;;  %v9718_v38 = vpop.xlane.xlu0 %3005  ;;  %v3073_v34 = vshra.s32 %v3071_v58, 16  ;;  %v3088_v28 = vshra.s32 %v3086_v60, 16 }
 0x7f8   : > { %12253 = vst [vmem:[#allocation70_spill] sm:$0xff] %v9718_v38  ;;  %vm3015_vm7 = vcmp.le.f32.partialorder %v9602_v21, %v9716_v61  ;;  %vm3016_vm8 = vcmp.le.f32.partialorder %v9608_v51, %v9718_v38 }
 0x7f9   : > { %v3023_v45 = vsel %vm3015_vm7, %v8284_v1, 48  ;;  %v3024_v0 = vsel %vm3016_vm8, %v8284_v1, 48  ;;  %v3075_v46 = vcvt.s32.f32 %v3073_v34  ;;  %v3090_v17 = vcvt.s32.f32 %v3088_v28 }
 0x7fa   : > { %v3101_v56 = vsel %vm2777_vm14, %v3023_v45, 2147483647  ;;  %v9728_v30 = vsel %vm2777_vm14, %v3024_v0, 2147483647  ;;  %v3044_v28 = vcvt.s32.f32 %v3042_v2  ;;  %v3059_v45 = vcvt.s32.f32 %v3057_v33 }
 0x7fb   : > { %3076 = vmin.xlane.f32.xlu1 %v3075_v46  ;;  %v9730_v36 = vpop.xlane.xlu1 %3008  ;;  %3091 = vmin.xlane.f32.xlu0 %v3090_v17  ;;  %v3103_v48 = vshra.s32 %v3101_v56, 16  ;;  %v3118_v13 = vshra.s32 %v9728_v30, 16  ;;  %v3072_v0 = vand.u32 65535, %v3071_v58  ;;  %v3102_v40 = vand.u32 65535, %v3101_v56 }
 0x7fc   : > { %12254 = vst [vmem:[#allocation69_spill] sm:$0xff] %v9730_v36  ;;  %vm3017_vm10 = vcmp.le.f32.partialorder %v9622_v32, %v9730_v36 }
 0x7fd   : > { %v3025_v41 = vsel %vm3017_vm10, %v8284_v1, 48  ;;  %v3105_v53 = vcvt.s32.f32 %v3103_v48  ;;  %v9736_v63 = vcvt.s32.f32 %v3118_v13  ;;  %v3087_v48 = vand.u32 65535, %v3086_v60 }
 0x7fe   : > { %v9739_v16 = vsel %vm2777_vm14, %v3025_v41, 2147483647  ;;  %v3074_v41 = vcvt.s32.f32 %v3072_v0 }
 0x7ff   : > { %3106 = vmin.xlane.f32.xlu1 %v3105_v53  ;;  %3121 = vmin.xlane.f32.xlu0 %v9736_v63  ;;  %v3133_v14 = vshra.s32 %v9739_v16, 16 }
 0x801   : > { %v9743_v25 = vcvt.s32.f32 %v3133_v14  ;;  %v3089_v14 = vcvt.s32.f32 %v3087_v48  ;;  %v12259_v48 = vld [vmem:[#allocation45_spill] sm:$0xff] }
 0x803   : > { %3136 = vmin.xlane.f32.xlu1 %v9743_v25 }
 0x87c   : > { %v9746_v47 = vpop.xlane.xlu0 %3031 }
 0x87d   : > { %vm3033_vm11 = vcmp.eq.f32.partialorder %v3030_v44, %v9746_v47  ;;  %v3907_v44 = vld [vmem:[%s1234_s22] sm:$0x7]  ;;  %s12392_s22 = sld [smem:[#allocation15_spill]] }
 0x87e   : > { %v3034_v5 = vsel %vm3033_vm11, %v3029_v6, inf  ;;  %v12256_v6 = vld [vmem:[#allocation34_spill] sm:$0xff] }
 0x87f   : > { %3035 = vmin.xlane.f32.xlu0 %v3034_v5  ;;  %v9768_v2 = vrot.slane %v3907_v44, %v12256_v6  ;;  %v3104_v5 = vcvt.s32.f32 %v3102_v40  ;;  %v12262_v40 = vld [vmem:[#allocation39_spill] sm:$0xff] }
 0x880   : > { %v9749_v37 = vpop.xlane.xlu1 %3046  ;;  %v9751_v34 = vpop.xlane.xlu0 %3061 }
 0x881   : > { %vm3048_vm3 = vcmp.eq.f32.partialorder %v3045_v3, %v9749_v37  ;;  %vm3063_vm1 = vcmp.eq.f32.partialorder %v3060_v29, %v9751_v34  ;;  %v12255_v29 = vld [vmem:[#allocation33_spill] sm:$0xff] }
 0x882   : > { %v3049_v49 = vsel %vm3048_vm3, %v3044_v28, inf  ;;  %v3064_v50 = vsel %vm3063_vm1, %v3059_v45, inf  ;;  %v9765_v60 = vrot.slane %v3907_v44, %v12255_v29  ;;  %v12258_v45 = vld [vmem:[#allocation35_spill] sm:$0xff]  ;;  %vm2374_vm3 = vcmask 523264  }
 0x883   : > { %3050 = vmin.xlane.f32.xlu1 %v3049_v49  ;;  %3065 = vmin.xlane.f32.xlu0 %v3064_v50  ;;  %v9778_v0 = vrot.slane %v3907_v44, %v12258_v45  ;;  %v3924_v49 = vsub.f32 %v12259_v48, %v9768_v2  ;;  %v12260_v50 = vld [vmem:[#allocation38_spill] sm:$0xff]  ;;  %v2197_v44 = vsel %vm1577_vm0, %v9648_v24, 0.0  ;;  %v12266_v24 = vld [vmem:[#allocation55_spill] sm:$0xff] }
 0x884   : > { %v9758_v9 = vpop.xlane.xlu1 %3076  ;;  %v9760_v13 = vpop.xlane.xlu0 %3091 }
 0x885   : > { %vm3078_vm7 = vcmp.eq.f32.partialorder %v3075_v46, %v9758_v9  ;;  %vm3093_vm8 = vcmp.eq.f32.partialorder %v3090_v17, %v9760_v13  ;;  %v2194_v46 = vsel %vm1577_vm0, %v9645_v4, 0.0  ;;  %v12257_v17 = vld [vmem:[#allocation37_spill] sm:$0xff]  ;;  %v3914_v4 = vsub.f32 %v12262_v40, %v9765_v60  ;;  %v12265_v40 = vld [vmem:[#allocation54_spill] sm:$0xff] }
 0x886   : > { %v3079_v3 = vsel %vm3078_vm7, %v3074_v41, inf  ;;  %v3094_v58 = vsel %vm3093_vm8, %v3089_v14, inf  ;;  %v3912_v28 = vsub.f32 %v12257_v17, %v9765_v60  ;;  %v3913_v41 = vsub.f32 %v12260_v50, %v9765_v60 }
 0x887   : > { %3080 = vmin.xlane.f32.xlu1 %v3079_v3  ;;  %3095 = vmin.xlane.f32.xlu0 %v3094_v58  ;;  %v12263_v3 = vld [vmem:[#allocation47_spill] sm:$0xff]  ;;  %v3952_v50 = vmul.f32 %v3924_v49, %v3924_v49  ;;  %v3937_v48 = vsub.f32 %v12265_v40, %v9778_v0  ;;  %v3938_v6 = vsub.f32 %v12266_v24, %v9778_v0  ;;  %v12268_v49 = vld [vmem:[#allocation48_spill] sm:$0xff]  ;;  %v12270_v24 = vld [vmem:[#allocation49_spill] sm:$0xff] }
 0x888   : > { %v9770_v33 = vpop.xlane.xlu1 %3106  ;;  %v3926_v58 = vsub.f32 %v12263_v3, %v9768_v2  ;;  %v3944_v45 = vmul.f32 %v3912_v28, %v3912_v28  ;;  %v3945_v3 = vmul.f32 %v3913_v41, %v3913_v41  ;;  %v3946_v29 = vmul.f32 %v3914_v4, %v3914_v4  ;;  %v12269_v4 = vld [vmem:[#allocation41_spill] sm:$0xff]  ;;  %v9820_v32 = vpop.xlane.xlu0 %3121 }
 0x889   : > { %vm3108_vm10 = vcmp.eq.f32.partialorder %v3105_v53, %v9770_v33  ;;  %v12261_v53 = vld [vmem:[#allocation46_spill] sm:$0xff]  ;;  %v2209_v28 = vsel %vm1577_vm0, %v9671_v27, 0.0  ;;  %v2212_v41 = vsel %vm1577_vm0, %v9682_v20, 0.0  ;;  %v2215_v27 = vsel %vm1577_vm0, %v9685_v19, 0.0 }
 0x88a   : > { %v3109_v56 = vsel %vm3108_vm10, %v3104_v5, inf  ;;  %v3925_v14 = vsub.f32 %v12261_v53, %v9768_v2  ;;  %v2200_v5 = vsel %vm1577_vm0, %v9656_v15, 0.0  ;;  %v2203_v53 = vsel %vm1577_vm0, %v9659_v26, 0.0 }
 0x88b   : > { %3110 = vmin.xlane.f32.xlu1 %v3109_v56  ;;  %2195 = vadd.xlane.f32.xlu0 %v2194_v46  ;;  %v12264_v56 = vld [vmem:[#allocation53_spill] sm:$0xff]  ;;  %v3954_v15 = vmul.f32 %v3926_v58, %v3926_v58  ;;  %v3916_v58 = vsub.f32 %v12269_v4, %v9765_v60  ;;  %v3960_v40 = vadd.f32 %v3952_v50, %v3944_v45  ;;  %v12271_v4 = vld [vmem:[#allocation56_spill] sm:$0xff] }
 0x88c   : > { %v3936_v46 = vsub.f32 %v12264_v56, %v9778_v0  ;;  %v3953_v17 = vmul.f32 %v3925_v14, %v3925_v14  ;;  %v2206_v56 = vsel %vm1577_vm0, %v9668_v59, 0.0  ;;  %v3117_v14 = vand.u32 65535, %v9728_v30  ;;  %v9834_v50 = vpop.xlane.xlu1 %3136 }
 0x88d   : > { %v3928_v59 = vsub.f32 %v12270_v24, %v9768_v2  ;;  %v3969_v12 = vmul.f32 %v3937_v48, %v3937_v48  ;;  %v3962_v30 = vadd.f32 %v3954_v15, %v3946_v29  ;;  %v3970_v51 = vmul.f32 %v3938_v6, %v3938_v6 }
 0x88e   : > { %v3961_v20 = vadd.f32 %v3953_v17, %v3945_v3  ;;  %v3939_v52 = vsub.f32 %v12271_v4, %v9778_v0  ;;  %v3119_v21 = vcvt.s32.f32 %v3117_v14  ;;  %v3948_v19 = vmul.f32 %v3916_v58, %v3916_v58  ;;  %v12274_v17 = vld [vmem:[#allocation50_spill] sm:$0xff] }
 0x88f   : > { %2198 = vadd.xlane.f32.xlu1 %v2197_v44  ;;  %2201 = vadd.xlane.f32.xlu0 %v2200_v5  ;;  %v12267_v44 = vld [vmem:[#allocation40_spill] sm:$0xff]  ;;  %v3927_v5 = vsub.f32 %v12268_v49, %v9768_v2  ;;  %v3968_v49 = vmul.f32 %v3936_v46, %v3936_v46  ;;  %v3956_v38 = vmul.f32 %v3928_v59, %v3928_v59  ;;  %v12275_v46 = vld [vmem:[#allocation43_spill] sm:$0xff]  ;;  %v12277_v14 = vld [vmem:[#allocation58_spill] sm:$0xff] }
 0x890   : > { %v3915_v26 = vsub.f32 %v12267_v44, %v9765_v60  ;;  %v3132_v44 = vand.u32 65535, %v9739_v16  ;;  %v12273_v16 = vld [vmem:[#allocation42_spill] sm:$0xff]  ;;  %vm3123_vm11 = vcmp.eq.f32.partialorder %v9736_v63, %v9820_v32  ;;  %v3929_v48 = vsub.f32 %v12274_v17, %v9768_v2 }
 0x891   : > { %v3955_v24 = vmul.f32 %v3927_v5, %v3927_v5  ;;  %v3917_v45 = vsub.f32 %v12273_v16, %v9765_v60  ;;  %v9830_v6 = vadd.f32 %v3968_v49, %v3960_v40  ;;  %v9836_v3 = vadd.f32 %v3969_v12, %v3961_v20 }
 0x892   : > { %v3947_v36 = vmul.f32 %v3915_v26, %v3915_v26  ;;  %v3134_v29 = vcvt.s32.f32 %v3132_v44  ;;  %v3918_v15 = vsub.f32 %v12275_v46, %v9765_v60  ;;  %v9842_v5 = vadd.f32 %v3970_v51, %v3962_v30  ;;  %v12278_v51 = vld [vmem:[#allocation59_spill] sm:$0xff]  ;;  %v12280_v30 = vld [vmem:[#allocation52_spill] sm:$0xff] }
 0x893   : > { %2204 = vadd.xlane.f32.xlu1 %v2203_v53  ;;  %2207 = vadd.xlane.f32.xlu0 %v2206_v56  ;;  %v12272_v53 = vld [vmem:[#allocation57_spill] sm:$0xff]  ;;  %v3971_v44 = vmul.f32 %v3939_v52, %v3939_v52  ;;  %v3124_v49 = vsel %vm3123_vm11, %v3119_v21, inf  ;;  %v3941_v58 = vsub.f32 %v12277_v14, %v9778_v0  ;;  %v3949_v59 = vmul.f32 %v3917_v45, %v3917_v45  ;;  %v12279_v21 = vld [vmem:[#allocation44_spill] sm:$0xff] }
 0x894   : > { %v3940_v56 = vsub.f32 %v12272_v53, %v9778_v0  ;;  %v3963_v63 = vadd.f32 %v3955_v24, %v3947_v36  ;;  %vm3138_vm1 = vcmp.eq.f32.partialorder %v9743_v25, %v9834_v50  ;;  %v3984_v12 = vsel %vm2374_vm3, %v9830_v6, inf }
 0x895   : > { %v3957_v20 = vmul.f32 %v3929_v48, %v3929_v48  ;;  %v3942_v36 = vsub.f32 %v12278_v51, %v9778_v0  ;;  %v3950_v52 = vmul.f32 %v3918_v15, %v3918_v15  ;;  %v3987_v25 = vsel %vm2374_vm3, %v9836_v3, inf  ;;  %v7516_v51 = vld [vmem:[%s8137_s14 + $0x18] sm:$0xff]  }
 0x896   : > { %v3972_v40 = vmul.f32 %v3940_v56, %v3940_v56  ;;  %v3139_v56 = vsel %vm3138_vm1, %v3134_v29, inf  ;;  %v3973_v45 = vmul.f32 %v3941_v58, %v3941_v58  ;;  %v3990_v48 = vsel %vm2374_vm3, %v9842_v5, inf  ;;  %7022 = vmatprep.subr.bf16.mxu1 %v7516_v51 }
 0x897   : > { %2210 = vadd.xlane.f32.xlu1 %v2209_v28  ;;  %2213 = vadd.xlane.f32.xlu0 %v2212_v41  ;;  %v12276_v28 = vld [vmem:[#allocation51_spill] sm:$0xff]  ;;  %v3964_v41 = vadd.f32 %v3956_v38, %v3948_v19  ;;  %v3919_v38 = vsub.f32 %v12279_v21, %v9765_v60  ;;  %v9858_v19 = vadd.f32 %v3971_v44, %v3963_v63 }
 0x898   : > { %v3930_v26 = vsub.f32 %v12276_v28, %v9768_v2  ;;  %v3974_v60 = vmul.f32 %v3942_v36, %v3942_v36  ;;  %7023 = vmatpush3.bf16.msra.mxu1 %v7516_v51 }
 0x899   : > { %v9862_v15 = vadd.f32 %v3972_v40, %v3964_v41  ;;  %v3993_v63 = vsel %vm2374_vm3, %v9858_v19, inf }
 0x89a   : > { %v3958_v24 = vmul.f32 %v3930_v26, %v3930_v26  ;;  %v3965_v26 = vadd.f32 %v3957_v20, %v3949_v59 }
 0x89b   : > { %2216 = vadd.xlane.f32.xlu1 %v2215_v27  ;;  %3125 = vmin.xlane.f32.xlu0 %v3124_v49  ;;  %v3931_v27 = vsub.f32 %v12280_v30, %v9768_v2  ;;  %v12281_v2 = vld [vmem:[#allocation60_spill] sm:$0xff]  ;;  %v3951_v30 = vmul.f32 %v3919_v38, %v3919_v38  ;;  %v3996_v44 = vsel %vm2374_vm3, %v9862_v15, inf  ;;  %v12282_v38 = vld [vmem:[#allocation27_spill] sm:$0xff] }
 0x89c   : > { %v3966_v49 = vadd.f32 %v3958_v24, %v3950_v52  ;;  %v3943_v29 = vsub.f32 %v12281_v2, %v9778_v0  ;;  %v9871_v40 = vadd.f32 %v3973_v45, %v3965_v26  ;;  %v7517_v0 = vld [vmem:[%s8137_s14 + $0x10] sm:$0xff]   ;;  %v7518_v52 = vld [vmem:[%s8137_s14 + $0x8] sm:$0xff]   ;;  %v7519_v24 = vld [vmem:[%s8137_s14] sm:$0xff]  }
 0x89d   : > { %v3959_v21 = vmul.f32 %v3931_v27, %v3931_v27  ;;  %7024 = vmatprep.subr.bf16.mxu1 %v7517_v0  ;;  %v12283_v27 = vld [vmem:[#allocation28_spill] sm:$0xff] }
 0x89e   : > { %v9873_v41 = vadd.f32 %v3974_v60, %v3966_v49  ;;  %v3975_v59 = vmul.f32 %v3943_v29, %v3943_v29  ;;  %7025 = vmatpush3.bf16.msra.mxu1 %v7517_v0  ;;  %v12285_v26 = vld [vmem:[#allocation32_spill] sm:$0xff]  ;;  %v3155_v49 = vadd.f32 1e-08, %v9689_v22  ;;  %v3156_v29 = vadd.f32 1e-08, %v9691_v18 }
 0x89f   : > { %3140 = vmin.xlane.f32.xlu1 %v3139_v56  ;;  %3985 = vmin.xlane.f32.xlu0 %v3984_v12  ;;  %v3967_v58 = vadd.f32 %v3959_v21, %v3951_v30  ;;  %v3999_v12 = vsel %vm2374_vm3, %v9871_v40, inf  ;;  %v9887_v21 = vld [vmem:[%s8157_s6 + $0x18] sm:$0xff]   ;;  %v2946_v30 = vadd.f32 1e-08, %v12282_v38  ;;  %v2947_v56 = vadd.f32 1e-08, %v12283_v27 }
 0x8a0   : > { %v4002_v20 = vsel %vm2374_vm3, %v9873_v41, inf  ;;  %7026 = vmatprep.subr.bf16.mxu1 %v7518_v52  ;;  %v2949_v60 = vadd.f32 1e-08, %v12285_v26  ;;  %v12287_v0 = vld [vmem:[#allocation76_spill] sm:$0xff]  ;;  %v3159_v22 = vadd.f32 1e-08, %v9716_v61  ;;  %v3053_v18 = vcvt.f32.s32 %v9749_v37 }
 0x8a1   : > { %v9880_v36 = vadd.f32 %v3975_v59, %v3967_v58  ;;  %7614 = vrcp.f32 %v2946_v30  ;;  %v3157_v58 = vadd.f32 1e-08, %v9704_v62  ;;  %v3158_v59 = vadd.f32 1e-08, %v9706_v23  ;;  %v12288_v23 = vld [vmem:[#allocation66_spill] sm:$0xff] }
 0x8a2   : > { %7027 = vmatpush3.bf16.msra.mxu1 %v7518_v52  ;;  %7616 = vrcp.f32 %v2947_v56  ;;  %v9906_v30 = vadd.f32 1e-08, %v12288_v23  ;;  %v3054_v61 = vshll.u32 %v3053_v18, 16  ;;  %v3083_v37 = vcvt.f32.s32 %v9758_v9 }
 0x8a3   : > { %3988 = vmin.xlane.f32.xlu1 %v3987_v25  ;;  %3991 = vmin.xlane.f32.xlu0 %v3990_v48  ;;  %v4005_v51 = vsel %vm2374_vm3, %v9880_v36, inf  ;;  %v12284_v25 = vld [vmem:[#allocation30_spill] sm:$0xff]  ;;  %v3154_v48 = vadd.f32 1e-08, %v9676_v11  ;;  %v3038_v11 = vcvt.f32.s32 %v9746_v47 }
 0x8a4   : > { %7028 = vmatprep.subr.bf16.mxu1 %v7519_v24  ;;  %v2948_v45 = vadd.f32 1e-08, %v12284_v25  ;;  %v3098_v25 = vcvt.f32.s32 %v9760_v13 }
 0x8a5   : > { %v3039_v52 = vshll.u32 %v3038_v11, 16 }
 0x8a6   : > { %7029 = vmatpush3.bf16.msra.mxu1 %v7519_v24  ;;  %7618 = vrcp.f32 %v2948_v45  ;;  %v3068_v24 = vcvt.f32.s32 %v9751_v34  ;;  %v3099_v55 = vshll.u32 %v3098_v25, 16 }
 0x8a7   : > { %3994 = vmin.xlane.f32.xlu1 %v3993_v63  ;;  %3997 = vmin.xlane.f32.xlu0 %v3996_v44  ;;  %7620 = vrcp.f32 %v3154_v48  ;;  %v12286_v63 = vld [vmem:[#allocation61_spill] sm:$0xff] }
 0x8a8   : > { %7054 = vmatprep.subr.bf16.mxu1 %v9887_v21  ;;  %7622 = vrcp.f32 %v2949_v60  ;;  %v2950_v44 = vadd.f32 1e-08, %v12286_v63  ;;  %v3069_v26 = vshll.u32 %v3068_v24, 16 }
 0x8a9   : > { %7624 = vrcp.f32 %v3155_v49 }
 0x8aa   : > { %7626 = vrcp.f32 %v3156_v29 }
 0x8ab   : > { %4000 = vmin.xlane.f32.xlu1 %v3999_v12  ;;  %4003 = vmin.xlane.f32.xlu0 %v4002_v20  ;;  %7628 = vrcp.f32 %v2950_v44  ;;  %v2951_v12 = vadd.f32 1e-08, %v12287_v0 }
 0x8ac   : > { %7630 = vrcp.f32 %v3157_v58 }
 0x8ad   : > { %7632 = vrcp.f32 %v3158_v59 }
 0x8ae   : > { %v7615_v62 = vpop.eup %7614  ;;  %7634 = vrcp.f32 %v2951_v12  ;;  %v3084_v12 = vshll.u32 %v3083_v37, 16 }
 0x8af   : > { %4006 = vmin.xlane.f32.xlu1 %v4005_v51  ;;  %v7617_v38 = vpop.eup %7616  ;;  %v2962_v47 = vsel %vm2938_vm9, %v7615_v62, 0.0  ;;  %7636 = vrcp.f32 %v3159_v22  ;;  %v3113_v22 = vcvt.f32.s32 %v9770_v33 }
 0x8b0   : > { %v2963_v29 = vsel %vm2939_vm2, %v7617_v38, 0.0 }
 0x8b3   : > { %v7619_v56 = vpop.eup %7618 }
 0x8b4   : > { %v7621_v48 = vpop.eup %7620  ;;  %v2964_v8 = vsel %vm2940_vm12, %v7619_v56, 0.0 }
 0x8b5   : > { %v7623_v63 = vpop.eup %7622 }
 0x8b6   : > { %v7625_v0 = vpop.eup %7624  ;;  %v2965_v10 = vsel %vm2941_vm4, %v7623_v63, 0.0 }
 0x908   : > { %v3036_v20 = vpop.xlane.xlu0 %3035 }
 0x909   : > { %v3037_v51 = vcvt.f32.s32 %v3036_v20  ;;  %v7627_v20 = vpop.eup %7626 }
 0x90a   : > { %v7629_v23 = vpop.eup %7628 }
 0x90b   : > { %v3040_v27 = vadd.s32 %v3039_v52, %v3037_v51  ;;  %v2966_v37 = vsel %vm2942_vm5, %v7629_v23, 0.0 }
 0x90c   : > { %v3051_v34 = vpop.xlane.xlu1 %3050  ;;  %v3066_v45 = vpop.xlane.xlu0 %3065 }
 0x90d   : > { %v3052_v60 = vcvt.f32.s32 %v3051_v34  ;;  %v3067_v49 = vcvt.f32.s32 %v3066_v45  ;;  %vm3146_vm7 = vcmp.eq.s32.totalorder %v8284_v1, %v3040_v27 }
 0x90e   : > { %v9921_v9 = vsel %vm3146_vm7, 1e+10, %v9529_v43  ;;  %v3170_v13 = vsel %vm3146_vm7, %v7621_v48, 0.0 }
 0x90f   : > { %v3055_v44 = vadd.s32 %v3054_v61, %v3052_v60  ;;  %v3070_v58 = vadd.s32 %v3069_v26, %v3067_v49  ;;  %v3194_v59 = vsel %vm2777_vm14, %v9921_v9, inf  ;;  %v9925_v11 = vadd.f32 %v3170_v13, %v2962_v47  ;;  %v7631_v61 = vpop.eup %7630  ;;  %v9952_v60 = vpop.f32.mrf.mxu1 }
 0x910   : > { %v3081_v43 = vpop.xlane.xlu1 %3080  ;;  %3195 = vmin.xlane.f32.xlu0 %v3194_v59  ;;  %v3096_v18 = vpop.xlane.xlu0 %3095 }
 0x911   : > { %v3082_v52 = vcvt.f32.s32 %v3081_v43  ;;  %v3097_v24 = vcvt.f32.s32 %v3096_v18  ;;  %vm3147_vm9 = vcmp.eq.s32.totalorder %v8284_v1, %v3055_v44  ;;  %vm3148_vm12 = vcmp.eq.s32.totalorder %v8284_v1, %v3070_v58  ;;  %v7633_v48 = vpop.eup %7632  ;;  %v2284_v43 = vpop.f32.mrf.mxu1  ;;  %v12291_v18 = vld [vmem:[#allocation64_spill] sm:$0xff] }
 0x912   : > { %v9934_v51 = vsel %vm3147_vm9, 1e+10, %v9548_v31  ;;  %v3171_v62 = vsel %vm3147_vm9, %v7625_v0, 0.0  ;;  %v9937_v35 = vsel %vm3148_vm12, 1e+10, %v9554_v54  ;;  %v3172_v38 = vsel %vm3148_vm12, %v7627_v20, 0.0  ;;  %v7635_v59 = vpop.eup %7634 }
 0x913   : > { %v3085_v33 = vadd.s32 %v3084_v12, %v3082_v52  ;;  %v3100_v47 = vadd.s32 %v3099_v55, %v3097_v24  ;;  %v3197_v27 = vsel %vm2777_vm14, %v9934_v51, inf  ;;  %v9941_v56 = vadd.f32 %v3171_v62, %v2963_v29  ;;  %v7637_v55 = vpop.eup %7636 }
 0x914   : > { %v3114_v31 = vshll.u32 %v3113_v22, 16  ;;  %3198 = vmin.xlane.f32.xlu1 %v3197_v27  ;;  %v3111_v25 = vpop.xlane.xlu1 %3110  ;;  %v3200_v54 = vsel %vm2777_vm14, %v9937_v35, inf  ;;  %v9948_v34 = vadd.f32 %v3172_v38, %v2964_v8  ;;  %v2196_v45 = vpop.xlane.xlu0 %2195  ;;  %v12293_v38 = vld [vmem:[#allocation77_spill] sm:$0xff] }
 0x915   : > { %v3112_v26 = vcvt.f32.s32 %v3111_v25  ;;  %3201 = vmin.xlane.f32.xlu0 %v3200_v54  ;;  %7638 = vrcp.f32 %v2196_v45  ;;  %vm3149_vm2 = vcmp.eq.s32.totalorder %v8284_v1, %v3085_v33  ;;  %vm3150_vm4 = vcmp.eq.s32.totalorder %v8284_v1, %v3100_v47  ;;  %v12294_v47 = vld [vmem:[#allocation69_spill] sm:$0xff] }
 0x916   : > { %v9955_v57 = vsel %vm3149_vm2, 1e+10, %v9578_v42  ;;  %v3173_v49 = vsel %vm3149_vm2, %v7631_v61, 0.0  ;;  %v9958_v29 = vsel %vm3150_vm4, 1e+10, %v9584_v7  ;;  %v3174_v8 = vsel %vm3150_vm4, %v7633_v48, 0.0  ;;  %v7017_v61 = vpop.f32.mrf.mxu1 }
 0x917   : > { %v3115_v13 = vadd.s32 %v3114_v31, %v3112_v26  ;;  %v3203_v63 = vsel %vm2777_vm14, %v9955_v57, inf  ;;  %v9962_v44 = vadd.f32 %v3173_v49, %v2965_v10  ;;  %v3206_v58 = vsel %vm2777_vm14, %v9958_v29, inf  ;;  %v12290_v10 = vld [vmem:[#allocation70_spill] sm:$0xff] }
 0x918   : > { %3204 = vmin.xlane.f32.xlu1 %v3203_v63  ;;  %v2199_v0 = vpop.xlane.xlu1 %2198  ;;  %v9966_v12 = vadd.f32 %v3174_v8, %v2966_v37  ;;  %v2202_v42 = vpop.xlane.xlu0 %2201  ;;  %v2967_v7 = vsel %vm2943_vm13, %v7635_v59, 0.0  ;;  %v3160_v22 = vadd.f32 1e-08, %v12290_v10  ;;  %v2953_v23 = vadd.f32 1e-08, %v12293_v38 }
 0x919   : > { %7640 = vrcp.f32 %v2199_v0  ;;  %3207 = vmin.xlane.f32.xlu0 %v3206_v58  ;;  %vm3151_vm5 = vcmp.eq.s32.totalorder %v8284_v1, %v3115_v13  ;;  %v3161_v27 = vadd.f32 1e-08, %v12294_v47  ;;  %v2287_v54 = vpop.f32.mrf.mxu1  ;;  %v3143_v49 = vcvt.f32.s32 %v9834_v50 }
 0x91a   : > { %12289 = vst [vmem:[#allocation71_spill] sm:$0xff] %v9966_v12  ;;  %v9974_v20 = vsel %vm3151_vm5, 1e+10, %v12291_v18  ;;  %v3175_v52 = vsel %vm3151_vm5, %v7637_v55, 0.0  ;;  %7642 = vrcp.f32 %v9906_v30  ;;  %v3128_v30 = vcvt.f32.s32 %v9820_v32 }
 0x91b   : > { %v3209_v24 = vsel %vm2777_vm14, %v9974_v20, inf  ;;  %v9979_v62 = vadd.f32 %v3175_v52, %v2967_v7  ;;  %7644 = vrcp.f32 %v2202_v42  ;;  %v9985_v63 = vpop.f32.mrf.mxu1  ;;  %v3144_v10 = vshll.u32 %v3143_v49, 16 }
 0x91c   : > { %3210 = vmin.xlane.f32.xlu1 %v3209_v24  ;;  %v2205_v39 = vpop.xlane.xlu1 %2204  ;;  %v2208_v33 = vpop.xlane.xlu0 %2207  ;;  %v3129_v26 = vshll.u32 %v3128_v30, 16 }
 0x91d   : > { %12292 = vst [vmem:[#allocation72_spill] sm:$0xff] %v9979_v62  ;;  %7646 = vrcp.f32 %v2205_v39  ;;  %v2300_v52 = vpop.f32.mrf.mxu1 }
 0x91e   : > { %7648 = vrcp.f32 %v3160_v22 }
 0x91f   : > { %7650 = vrcp.f32 %v2953_v23 }
 0x920   : > { %v2211_v37 = vpop.xlane.xlu1 %2210  ;;  %v2214_v31 = vpop.xlane.xlu0 %2213  ;;  %7652 = vrcp.f32 %v3161_v27 }
 0x921   : > { %7654 = vrcp.f32 %v2208_v33 }
 0x922   : > { %v7639_v25 = vpop.eup %7638  ;;  %7656 = vrcp.f32 %v2211_v37 }
 0x923   : > { %7658 = vrcp.f32 %v2214_v31  ;;  %v2323_v59 = vmul.f32 %v7639_v25, %v2284_v43  ;;  %v12298_v31 = vld [vmem:[#allocation65_spill] sm:$0xff] }
 0x924   : > { %v2217_v45 = vpop.xlane.xlu1 %2216  ;;  %v3126_v48 = vpop.xlane.xlu0 %3125 }
 0x925   : > { %v3127_v8 = vcvt.f32.s32 %v3126_v48  ;;  %7660 = vrcp.f32 %v2217_v45 }
 0x926   : > { %v7641_v13 = vpop.eup %7640 }
 0x927   : > { %v3130_v58 = vadd.s32 %v3129_v26, %v3127_v8  ;;  %v2324_v0 = vmul.f32 %v7641_v13, %v2287_v54  ;;  %v7643_v42 = vpop.eup %7642 }
 0x928   : > { %v3141_v32 = vpop.xlane.xlu1 %3140  ;;  %v9987_v55 = vpop.xlane.xlu0 %3985  ;;  %v2968_v47 = vsel %vm2944_vm6, %v7643_v42, 0.0 }
 0x929   : > { %12295 = vst [vmem:[#allocation74_spill] sm:$0xff] %v9987_v55  ;;  %v7645_v7 = vpop.eup %7644  ;;  %v3142_v22 = vcvt.f32.s32 %v3141_v32  ;;  %vm4008_vm13 = vcmp.le.f32.partialorder %v9830_v6, %v9987_v55  ;;  %v9991_v50 = vpack.c.bf16 %v2324_v0, %v2323_v59  ;;  %vm3152_vm8 = vcmp.eq.s32.totalorder %v8284_v1, %v3130_v58  ;;  %v7521_v58 = vld [vmem:[%s8157_s6 + $0x10] sm:$0xff]  }
 0x92a   : > { %v7647_v18 = vpop.eup %7646  ;;  %v4016_v24 = vsel %vm4008_vm13, %v8284_v1, 64  ;;  %v2325_v27 = vmul.f32 %v7645_v7, %v9952_v60  ;;  %v10007_v30 = vsel %vm3152_vm8, 1e+10, %v12298_v31  ;;  %v7021_v60 = vpop.f32.mrf.mxu1 }
 0x92b   : > { %v7649_v43 = vpop.eup %7648  ;;  %v2326_v38 = vmul.f32 %v7647_v18, %v7017_v61  ;;  %v3145_v23 = vadd.s32 %v3144_v10, %v3142_v22  ;;  %v9996_v39 = vsel %vm2374_vm3, %v4016_v24, 2147483647  ;;  %7030 = vmatprep.mubr.msk.bf16.mxu1 %vm2374_vm3, %v9991_v50  ;;  %v3212_v45 = vsel %vm2777_vm14, %v10007_v30, inf  ;;  %v12302_v22 = vld [vmem:[#allocation68_spill] sm:$0xff] }
 0x92c   : > { %v10004_v37 = vpop.xlane.xlu1 %3988  ;;  %v3176_v61 = vsel %vm3152_vm8, %v7649_v43, 0.0  ;;  %v10009_v25 = vpop.xlane.xlu0 %3991  ;;  %3213 = vmin.xlane.f32.xlu0 %v3212_v45  ;;  %v4026_v13 = vshra.s32 %v9996_v39, 16 }
 0x92d   : > { %12297 = vst [vmem:[#allocation73_spill] sm:$0xff] %v10004_v37  ;;  %12299 = vst [vmem:[#allocation75_spill] sm:$0xff] %v10009_v25  ;;  %v7651_v54 = vpop.eup %7650  ;;  %vm4009_vm10 = vcmp.le.f32.partialorder %v9836_v3, %v10004_v37  ;;  %v10015_v48 = vadd.f32 %v3176_v61, %v2968_v47  ;;  %vm4010_vm6 = vcmp.le.f32.partialorder %v9842_v5, %v10009_v25 }
 0x92e   : > { %v7653_v26 = vpop.eup %7652  ;;  %v4017_v49 = vsel %vm4009_vm10, %v8284_v1, 64  ;;  %v10020_v8 = vpack.c.bf16 %v2326_v38, %v2325_v27  ;;  %v4018_v0 = vsel %vm4010_vm6, %v8284_v1, 64  ;;  %vm3153_vm11 = vcmp.eq.s32.totalorder %v8284_v1, %v3145_v23  ;;  %v2303_v27 = vpop.f32.mrf.mxu1 }
 0x92f   : > { %12300 = vst [vmem:[#allocation36_spill] sm:$0xff] %v10015_v48  ;;  %v7655_v59 = vpop.eup %7654  ;;  %v2969_v7 = vsel %vm2945_vm15, %v7651_v54, 0.0  ;;  %v10030_v10 = vsel %vm2374_vm3, %v4017_v49, 2147483647  ;;  %v10035_v18 = vsel %vm3153_vm11, 1e+10, %v12302_v22  ;;  %v10052_v61 = vcvt.s32.f32 %v4026_v13 }
 0x930   : > { %v7657_v42 = vpop.eup %7656  ;;  %7031 = vmatmul.mubr.msk.bf16.vlgmr.msra.gmra.mxu1 %vm2374_vm3, %v10020_v8  ;;  %v3177_v24 = vsel %vm3153_vm11, %v7653_v26, 0.0  ;;  %v10037_v43 = vpop.xlane.xlu1 %3994  ;;  %v10042_v23 = vsel %vm2374_vm3, %v4018_v0, 2147483647  ;;  %v3215_v33 = vsel %vm2777_vm14, %v10035_v18, inf  ;;  %v7522_v54 = vld [vmem:[%s8157_s6 + $0x8] sm:$0xff]   ;;  %v2327_v26 = vmul.f32 %v7655_v59, %v2300_v52 }
 0x931   : > { %12303 = vst [vmem:[#allocation26_spill] sm:$0xff] %v10037_v43  ;;  %v10039_v38 = vpop.xlane.xlu0 %3997  ;;  %v10046_v47 = vadd.f32 %v3177_v24, %v2969_v7  ;;  %vm4011_vm15 = vcmp.le.f32.partialorder %v9858_v19, %v10037_v43  ;;  %7055 = vmatpush3.bf16.msra.mxu1 %v9887_v21  ;;  %3216 = vmin.xlane.f32.xlu1 %v3215_v33  ;;  %v7659_v0 = vpop.eup %7658  ;;  %v4041_v21 = vshra.s32 %v10030_v10, 16  ;;  %v4056_v7 = vshra.s32 %v10042_v23, 16 }
 0x932   : > { %12304 = vst [vmem:[#allocation29_spill] sm:$0xff] %v10039_v38  ;;  %v4019_v31 = vsel %vm4011_vm15, %v8284_v1, 64  ;;  %vm4012_vm1 = vcmp.le.f32.partialorder %v9862_v15, %v10039_v38  ;;  %7056 = vmatprep.subr.bf16.mxu1 %v7521_v58  ;;  %v2328_v49 = vmul.f32 %v7657_v42, %v2303_v27  ;;  %4029 = vmin.xlane.f32.xlu0 %v10052_v61  ;;  %v7661_v24 = vpop.eup %7660  ;;  %v7523_v38 = vld [vmem:[%s8157_s6] sm:$0xff]  }
 0x933   : > { %12305 = vst [vmem:[#allocation31_spill] sm:$0xff] %v10046_v47  ;;  %v4020_v45 = vsel %vm4012_vm1, %v8284_v1, 64  ;;  %v10059_v32 = vsel %vm2374_vm3, %v4019_v31, 2147483647  ;;  %v10075_v59 = vcvt.s32.f32 %v4041_v21  ;;  %v10078_v27 = vcvt.s32.f32 %v4056_v7 }
 0x934   : > { %v10063_v13 = vpop.xlane.xlu1 %4000  ;;  %v10069_v33 = vsel %vm2374_vm3, %v4020_v45, 2147483647  ;;  %v2333_v52 = vpack.c.bf16 %v2328_v49, %v2327_v26  ;;  %v2329_v26 = vmul.f32 %v7659_v0, %v9985_v63  ;;  %v2330_v49 = vmul.f32 %v7661_v24, %v7021_v60  ;;  %v7526_v24 = vld [vmem:[%s8147_s24 + $0x8] sm:$0xff]  }
 0x935   : > { %12306 = vst [vmem:[#allocation63_spill] sm:$0xff] %v10063_v13  ;;  %v10066_v22 = vpop.xlane.xlu0 %4003  ;;  %vm4013_vm7 = vcmp.le.f32.partialorder %v9871_v40, %v10063_v13  ;;  %7057 = vmatpush3.bf16.msra.mxu1 %v7521_v58  ;;  %4044 = vmin.xlane.f32.xlu1 %v10075_v59  ;;  %v4071_v21 = vshra.s32 %v10059_v32, 16 }
 0x936   : > { %12307 = vst [vmem:[#allocation27_spill] sm:$0xff] %v10066_v22  ;;  %vm4014_vm9 = vcmp.le.f32.partialorder %v9873_v41, %v10066_v22  ;;  %v4021_v42 = vsel %vm4013_vm7, %v8284_v1, 64  ;;  %7058 = vmatprep.subr.bf16.mxu1 %v7522_v54  ;;  %7034 = vmatprep.mubr.msk.bf16.mxu1 %vm2374_vm3, %v2333_v52  ;;  %v4086_v22 = vshra.s32 %v10069_v33, 16 }
 0x937   : > { %v4022_v31 = vsel %vm4014_vm9, %v8284_v1, 64  ;;  %v10084_v45 = vsel %vm2374_vm3, %v4021_v42, 2147483647  ;;  %4059 = vmin.xlane.f32.xlu0 %v10078_v27  ;;  %v10099_v13 = vcvt.s32.f32 %v4071_v21 }
 0x938   : > { %v10087_v58 = vsel %vm2374_vm3, %v4022_v31, 2147483647  ;;  %v10093_v7 = vpop.xlane.xlu1 %4006  ;;  %v4101_v42 = vshra.s32 %v10084_v45, 16  ;;  %v2334_v31 = vpack.c.bf16 %v2330_v49, %v2329_v26  ;;  %v10102_v25 = vcvt.s32.f32 %v4086_v22  ;;  %v7527_v26 = vld [vmem:[%s8147_s24] sm:$0xff]  }
 0x939   : > { %12308 = vst [vmem:[#allocation28_spill] sm:$0xff] %v10093_v7  ;;  %vm4015_vm12 = vcmp.le.f32.partialorder %v9880_v36, %v10093_v7  ;;  %7059 = vmatpush3.bf16.msra.mxu1 %v7522_v54  ;;  %v4116_v60 = vshra.s32 %v10087_v58, 16  ;;  %4074 = vmin.xlane.f32.xlu1 %v10099_v13 }
 0x93a   : > { %v4023_v43 = vsel %vm4015_vm12, %v8284_v1, 64  ;;  %7060 = vmatprep.subr.bf16.mxu1 %v7523_v38  ;;  %7035 = vmatmul.mubr.msk.bf16.gmra.mxu1 %vm2374_vm3, %v2334_v31  ;;  %v10110_v54 = vcvt.s32.f32 %v4101_v42 }
 0x93b   : > { %v10105_v63 = vsel %vm2374_vm3, %v4023_v43, 2147483647  ;;  %7062 = vmatprep.mubr.msk.bf16.mxu1 %vm2374_vm3, %v9991_v50  ;;  %4089 = vmin.xlane.f32.xlu0 %v10102_v25  ;;  %v10116_v43 = vcvt.s32.f32 %v4116_v60  ;;  %v7524_v50 = vld [vmem:[%s8147_s24 + $0x18] sm:$0xff]  }
 0x93c   : > { %v4131_v0 = vshra.s32 %v10105_v63, 16  ;;  %7038 = vmatprep.subr.bf16.mxu0 %v7524_v50 }
 0x93d   : > { %7061 = vmatpush3.bf16.msra.mxu1 %v7523_v38  ;;  %4104 = vmin.xlane.f32.xlu1 %v10110_v54  ;;  %v7525_v38 = vld [vmem:[%s8147_s24 + $0x10] sm:$0xff]  }
 0x93e   : > { %v10119_v22 = vcvt.s32.f32 %v4131_v0  ;;  %7039 = vmatpush3.bf16.msra.mxu0 %v7524_v50 }
 0x93f   : > { %4119 = vmin.xlane.f32.xlu0 %v10116_v43  ;;  %7040 = vmatprep.subr.bf16.mxu0 %v7525_v38 }
 0x941   : > { %4134 = vmin.xlane.f32.xlu1 %v10119_v22 }
 0x942   : > { %7063 = vmatmul.mubr.msk.bf16.vlgmr.msra.gmra.mxu1 %vm2374_vm3, %v10020_v8  ;;  %7041 = vmatpush3.bf16.msra.mxu0 %v7525_v38 }
 0x943   : > { %7066 = vmatprep.mubr.msk.bf16.mxu1 %vm2374_vm3, %v2333_v52  ;;  %7042 = vmatprep.subr.bf16.mxu0 %v7526_v24 }
 0x946   : > { %7043 = vmatpush3.bf16.msra.mxu0 %v7526_v24 }
 0x947   : > { %7044 = vmatprep.subr.bf16.mxu0 %v7527_v26 }
 0x94a   : > { %7067 = vmatmul.mubr.msk.bf16.gmra.mxu1 %vm2374_vm3, %v2334_v31  ;;  %7045 = vmatpush3.bf16.msra.mxu0 %v7527_v26 }
 0x999   : > { %v10131_v49 = vpop.xlane.xlu0 %3195 }
 0x99a   : > { %vm3218_vm2 = vcmp.le.f32.partialorder %v9921_v9, %v10131_v49 }
 0x99b   : > { %v3226_v8 = vsel %vm3218_vm2, %v8284_v1, 48 }
 0x99c   : > { %v10137_v52 = vsel %vm2777_vm14, %v3226_v8, 2147483647 }
 0x99d   : > { %v10139_v21 = vpop.xlane.xlu1 %3198  ;;  %v3236_v42 = vshra.s32 %v10137_v52, 16 }
 0x99e   : > { %vm3219_vm4 = vcmp.le.f32.partialorder %v9934_v51, %v10139_v21  ;;  %v10144_v31 = vpop.xlane.xlu0 %3201 }
 0x99f   : > { %v3227_v60 = vsel %vm3219_vm4, %v8284_v1, 48  ;;  %vm3220_vm5 = vcmp.le.f32.partialorder %v9937_v35, %v10144_v31  ;;  %v10149_v9 = vcvt.s32.f32 %v3236_v42 }
 0x9a0   : > { %v10152_v0 = vsel %vm2777_vm14, %v3227_v60, 2147483647  ;;  %v3228_v50 = vsel %vm3220_vm5, %v8284_v1, 48 }
 0x9a1   : > { %v10156_v38 = vsel %vm2777_vm14, %v3228_v50, 2147483647  ;;  %v10158_v24 = vpop.xlane.xlu1 %3204  ;;  %3239 = vmin.xlane.f32.xlu0 %v10149_v9  ;;  %v3251_v51 = vshra.s32 %v10152_v0, 16 }
 0x9a2   : > { %vm3221_vm13 = vcmp.le.f32.partialorder %v9955_v57, %v10158_v24  ;;  %v10164_v35 = vpop.xlane.xlu0 %3207  ;;  %v3266_v26 = vshra.s32 %v10156_v38, 16 }
 0x9a3   : > { %v3229_v8 = vsel %vm3221_vm13, %v8284_v1, 48  ;;  %vm3222_vm8 = vcmp.le.f32.partialorder %v9958_v29, %v10164_v35  ;;  %v10170_v42 = vcvt.s32.f32 %v3251_v51 }
 0x9a4   : > { %v10173_v60 = vsel %vm2777_vm14, %v3229_v8, 2147483647  ;;  %v3230_v50 = vsel %vm3222_vm8, %v8284_v1, 48  ;;  %v10176_v7 = vcvt.s32.f32 %v3266_v26 }
 0x9a5   : > { %v10179_v57 = vsel %vm2777_vm14, %v3230_v50, 2147483647  ;;  %3254 = vmin.xlane.f32.xlu1 %v10170_v42  ;;  %v10182_v37 = vpop.xlane.xlu1 %3210  ;;  %v3281_v55 = vshra.s32 %v10173_v60, 16 }
 0x9a6   : > { %vm3223_vm10 = vcmp.le.f32.partialorder %v9974_v20, %v10182_v37  ;;  %3269 = vmin.xlane.f32.xlu0 %v10176_v7  ;;  %v3296_v29 = vshra.s32 %v10179_v57, 16 }
 0x9a7   : > { %v3231_v51 = vsel %vm3223_vm10, %v8284_v1, 48  ;;  %v10190_v26 = vcvt.s32.f32 %v3281_v55 }
 0x9a8   : > { %v10193_v8 = vsel %vm2777_vm14, %v3231_v51, 2147483647  ;;  %v10195_v50 = vcvt.s32.f32 %v3296_v29 }
 0x9a9   : > { %3284 = vmin.xlane.f32.xlu1 %v10190_v26  ;;  %v3311_v2 = vshra.s32 %v10193_v8, 16 }
 0x9aa   : > { %3299 = vmin.xlane.f32.xlu0 %v10195_v50 }
 0x9ab   : > { %v10200_v20 = vcvt.s32.f32 %v3311_v2  ;;  %v4025_v2 = vand.u32 65535, %v9996_v39  ;;  %v4055_v39 = vand.u32 65535, %v10042_v23  ;;  %v4070_v23 = vand.u32 65535, %v10059_v32 }
 0x9ac   : > { %v4100_v32 = vand.u32 65535, %v10084_v45  ;;  %v4130_v45 = vand.u32 65535, %v10105_v63 }
 0x9ad   : > { %3314 = vmin.xlane.f32.xlu1 %v10200_v20  ;;  %v4027_v53 = vcvt.s32.f32 %v4025_v2  ;;  %v4085_v2 = vand.u32 65535, %v10069_v33  ;;  %v4115_v33 = vand.u32 65535, %v10087_v58 }
 0x9b5   : > { %v10203_v14 = vpop.xlane.xlu0 %3213 }
 0x9b6   : > { %12309 = vst [vmem:[#allocation30_spill] sm:$0xff] %v10203_v14  ;;  %vm3224_vm6 = vcmp.le.f32.partialorder %v10007_v30, %v10203_v14 }
 0x9b7   : > { %v3232_v55 = vsel %vm3224_vm6, %v8284_v1, 48 }
 0x9b8   : > { %v10209_v29 = vsel %vm2777_vm14, %v3232_v55, 2147483647 }
 0x9b9   : > { %v3326_v28 = vshra.s32 %v10209_v29, 16 }
 0x9ba   : > { %v10211_v51 = vpop.xlane.xlu1 %3216 }
 0x9bb   : > { %12310 = vst [vmem:[#allocation32_spill] sm:$0xff] %v10211_v51  ;;  %vm3225_vm11 = vcmp.le.f32.partialorder %v10035_v18, %v10211_v51  ;;  %v10218_v17 = vpop.xlane.xlu0 %4029  ;;  %v10220_v16 = vcvt.s32.f32 %v3326_v28  ;;  %v4040_v18 = vand.u32 65535, %v10030_v10  ;;  %v4057_v10 = vcvt.s32.f32 %v4055_v39 }
 0x9bc   : > { %v3233_v46 = vsel %vm3225_vm11, %v8284_v1, 48  ;;  %vm4031_vm15 = vcmp.eq.f32.partialorder %v10052_v61, %v10218_v17 }
 0x9bd   : > { %v10223_v30 = vsel %vm2777_vm14, %v3233_v46, 2147483647  ;;  %3329 = vmin.xlane.f32.xlu0 %v10220_v16  ;;  %v4032_v46 = vsel %vm4031_vm15, %v4027_v53, inf  ;;  %v4042_v61 = vcvt.s32.f32 %v4040_v18 }
 0x9be   : > { %v3341_v55 = vshra.s32 %v10223_v30, 16  ;;  %v10231_v4 = vpop.xlane.xlu1 %4044 }
 0x9bf   : > { %vm4046_vm1 = vcmp.eq.f32.partialorder %v10075_v59, %v10231_v4  ;;  %v4072_v59 = vcvt.s32.f32 %v4070_v23  ;;  %v4132_v23 = vcvt.s32.f32 %v4130_v45 }
 0x9c0   : > { %v10233_v47 = vpop.xlane.xlu0 %4059  ;;  %v10235_v28 = vcvt.s32.f32 %v3341_v55  ;;  %v4047_v53 = vsel %vm4046_vm1, %v4042_v61, inf }
 0x9c1   : > { %4033 = vmin.xlane.f32.xlu0 %v4032_v46  ;;  %vm4061_vm7 = vcmp.eq.f32.partialorder %v10078_v27, %v10233_v47  ;;  %v4087_v27 = vcvt.s32.f32 %v4085_v2 }
 0x9c2   : > { %3344 = vmin.xlane.f32.xlu1 %v10235_v28  ;;  %v10244_v48 = vpop.xlane.xlu1 %4074  ;;  %v4062_v51 = vsel %vm4061_vm7, %v4057_v10, inf }
 0x9c3   : > { %vm4076_vm9 = vcmp.eq.f32.partialorder %v10099_v13, %v10244_v48  ;;  %v4117_v13 = vcvt.s32.f32 %v4115_v33 }
 0x9c4   : > { %v10246_v55 = vpop.xlane.xlu0 %4089  ;;  %v4077_v46 = vsel %vm4076_vm9, %v4072_v59, inf  ;;  %v6757_v59 = vld [vmem:[%s8142_s19] ss:$0 sm:$0xff] }
 0x9c5   : > { %4063 = vmin.xlane.f32.xlu0 %v4062_v51  ;;  %vm4091_vm12 = vcmp.eq.f32.partialorder %v10102_v25, %v10246_v55  ;;  %v4102_v25 = vcvt.s32.f32 %v4100_v32 }
 0x9c6   : > { %4048 = vmin.xlane.f32.xlu1 %v4047_v53  ;;  %v10254_v18 = vpop.xlane.xlu1 %4104  ;;  %v4092_v61 = vsel %vm4091_vm12, %v4087_v27, inf }
 0x9c7   : > { %vm4106_vm2 = vcmp.eq.f32.partialorder %v10110_v54, %v10254_v18 }
 0x9c8   : > { %v10256_v39 = vpop.xlane.xlu0 %4119  ;;  %v4107_v51 = vsel %vm4106_vm2, %v4102_v25, inf }
 0x9c9   : > { %4093 = vmin.xlane.f32.xlu0 %v4092_v61  ;;  %vm4121_vm4 = vcmp.eq.f32.partialorder %v10116_v43, %v10256_v39 }
 0x9ca   : > { %4078 = vmin.xlane.f32.xlu1 %v4077_v46  ;;  %v10263_v58 = vpop.xlane.xlu1 %4134  ;;  %v4122_v10 = vsel %vm4121_vm4, %v4117_v13, inf }
 0x9cb   : > { %vm4136_vm5 = vcmp.eq.f32.partialorder %v10119_v22, %v10263_v58 }
 0x9cc   : > { %v4137_v2 = vsel %vm4136_vm5, %v4132_v23, inf }
 0x9cd   : > { %4123 = vmin.xlane.f32.xlu0 %v4122_v10 }
 0x9ce   : > { %4108 = vmin.xlane.f32.xlu1 %v4107_v51 }
 0x9d2   : > { %4138 = vmin.xlane.f32.xlu1 %v4137_v2 }
 0x9f0   : > { %v7032_v54 = vpop.f32.mrf.mxu1 }
 0x9f1   : > { %v2430_v33 = vadd.f32 %v7032_v54, %v6757_v59 }
 0x9f2   : > { %v2421_v53 = vpop.f32.mrf.mxu1 }
 0x9f3   : > { %v2422_v27 = vadd.f32 %v6757_v59, %v2421_v53  ;;  %v2454_v51 = vmax.f32 %v2430_v33, 0.0 }
 0x9f4   : > { %v7033_v43 = vpop.f32.mrf.mxu1 }
 0x9f5   : > { %v2433_v32 = vadd.f32 %v7033_v43, %v6757_v59  ;;  %v2452_v25 = vmax.f32 %v2422_v27, 0.0 }
 0x9f6   : > { %v2424_v63 = vpop.f32.mrf.mxu1 }
 0x9f7   : > { %v2425_v46 = vadd.f32 %v6757_v59, %v2424_v63  ;;  %v2455_v61 = vmax.f32 %v2433_v32, 0.0 }
 0x9f9   : > { %v2453_v13 = vmax.f32 %v2425_v46, 0.0  ;;  %v2461_v14 = vpack.c.bf16 %v2455_v61, %v2454_v51  ;;  %v3235_v61 = vand.u32 65535, %v10137_v52 }
 0x9fa   : > { %v7036_v62 = vpop.f32.mrf.mxu1 }
 0x9fb   : > { %v2460_v10 = vpack.c.bf16 %v2453_v13, %v2452_v25  ;;  %v2446_v53 = vadd.f32 %v7036_v62, %v6757_v59  ;;  %v3250_v13 = vand.u32 65535, %v10152_v0  ;;  %v3265_v62 = vand.u32 65535, %v10156_v38 }
 0x9fc   : > { %v2437_v22 = vpop.f32.mrf.mxu1  ;;  %v3295_v0 = vand.u32 65535, %v10179_v57 }
 0x9fd   : > { %7046 = vmatprep.mubr.msk.bf16.mxu0 %vm2374_vm3, %v2460_v10  ;;  %v2438_v23 = vadd.f32 %v6757_v59, %v2437_v22  ;;  %v2458_v27 = vmax.f32 %v2446_v53, 0.0  ;;  %v3280_v10 = vand.u32 65535, %v10173_v60  ;;  %v3267_v52 = vcvt.s32.f32 %v3265_v62 }
 0x9fe   : > { %7047 = vmatmul.mubr.msk.bf16.vlgmr.msra.gmra.mxu0 %vm2374_vm3, %v2461_v14  ;;  %v7037_v45 = vpop.f32.mrf.mxu1  ;;  %v3237_v14 = vcvt.s32.f32 %v3235_v61  ;;  %v3310_v60 = vand.u32 65535, %v10193_v8 }
 0x9ff   : > { %v2449_v2 = vadd.f32 %v7037_v45, %v6757_v59  ;;  %v2456_v63 = vmax.f32 %v2438_v23, 0.0  ;;  %v3282_v23 = vcvt.s32.f32 %v3280_v10  ;;  %v4096_v10 = vcvt.f32.s32 %v10246_v55 }
 0xa00   : > { %v2440_v43 = vpop.f32.mrf.mxu1 }
 0xa01   : > { %v2441_v54 = vadd.f32 %v6757_v59, %v2440_v43  ;;  %v2459_v12 = vmax.f32 %v2449_v2, 0.0  ;;  %v3312_v43 = vcvt.s32.f32 %v3310_v60 }
 0xa03   : > { %v2457_v32 = vmax.f32 %v2441_v54, 0.0  ;;  %v2463_v33 = vpack.c.bf16 %v2459_v12, %v2458_v27  ;;  %v3252_v12 = vcvt.s32.f32 %v3250_v13  ;;  %v7528_v54 = vld [vmem:[%s8332_s26 + $0x10] sm:$0xff]   ;;  %v7529_v27 = vld [vmem:[%s8332_s26 + $0x8] sm:$0xff]   ;;  %v7530_v13 = vld [vmem:[%s8332_s26] sm:$0xff]   ;;  %s12402_s26 = sld [smem:[#allocation10_spill]] }
 0xa04   : > { %7070 = vmatprep.subr.bf16.mxu0 %v7528_v54 }
 0xa05   : > { %v2462_v46 = vpack.c.bf16 %v2457_v32, %v2456_v63  ;;  %7071 = vmatpush3.bf16.msra.mxu0 %v7528_v54  ;;  %v3340_v32 = vand.u32 65535, %v10223_v30  ;;  %v4066_v30 = vcvt.f32.s32 %v10233_v47 }
 0xa06   : > { %7072 = vmatprep.subr.bf16.mxu0 %v7529_v27 }
 0xa07   : > { %7050 = vmatprep.mubr.msk.bf16.mxu0 %vm2374_vm3, %v2462_v46  ;;  %v4036_v46 = vcvt.f32.s32 %v10218_v17 }
 0xa08   : > { %7051 = vmatmul.mubr.msk.bf16.gmra.mxu0 %vm2374_vm3, %v2463_v33 }
 0xa09   : > { %7073 = vmatpush3.bf16.msra.mxu0 %v7529_v27  ;;  %v4037_v62 = vshll.u32 %v4036_v46, 16 }
 0xa0a   : > { %7074 = vmatprep.subr.bf16.mxu0 %v7530_v13 }
 0xa0d   : > { %7075 = vmatpush3.bf16.msra.mxu0 %v7530_v13 }
 0xa2a   : > { %v10273_v25 = vpop.xlane.xlu0 %3239 }
 0xa2b   : > { %vm3241_vm13 = vcmp.eq.f32.partialorder %v10149_v9, %v10273_v25 }
 0xa2c   : > { %v3242_v59 = vsel %vm3241_vm13, %v3237_v14, inf  ;;  %v3342_v14 = vcvt.s32.f32 %v3340_v32 }
 0xa2d   : > { %3243 = vmin.xlane.f32.xlu0 %v3242_v59 }
 0xa2e   : > { %v10279_v51 = vpop.xlane.xlu1 %3254 }
 0xa2f   : > { %v10282_v22 = vpop.xlane.xlu0 %3269  ;;  %vm3256_vm8 = vcmp.eq.f32.partialorder %v10170_v42, %v10279_v51  ;;  %v3297_v42 = vcvt.s32.f32 %v3295_v0 }
 0xa30   : > { %v3257_v45 = vsel %vm3256_vm8, %v3252_v12, inf  ;;  %vm3271_vm10 = vcmp.eq.f32.partialorder %v10176_v7, %v10282_v22 }
 0xa31   : > { %3258 = vmin.xlane.f32.xlu1 %v3257_v45  ;;  %v3272_v9 = vsel %vm3271_vm10, %v3267_v52, inf  ;;  %v4067_v45 = vshll.u32 %v4066_v30, 16 }
 0xa32   : > { %3273 = vmin.xlane.f32.xlu0 %v3272_v9  ;;  %v10289_v38 = vpop.xlane.xlu1 %3284 }
 0xa33   : > { %v10292_v2 = vpop.xlane.xlu0 %3299  ;;  %vm3286_vm6 = vcmp.eq.f32.partialorder %v10190_v26, %v10289_v38  ;;  %v3325_v26 = vand.u32 65535, %v10209_v29  ;;  %v4051_v29 = vcvt.f32.s32 %v10231_v4  ;;  %v4081_v4 = vcvt.f32.s32 %v10244_v48 }
 0xa34   : > { %v3287_v57 = vsel %vm3286_vm6, %v3282_v23, inf  ;;  %vm3301_vm11 = vcmp.eq.f32.partialorder %v10195_v50, %v10292_v2 }
 0xa35   : > { %3288 = vmin.xlane.f32.xlu1 %v3287_v57  ;;  %v3302_v7 = vsel %vm3301_vm11, %v3297_v42, inf  ;;  %v3327_v50 = vcvt.s32.f32 %v3325_v26  ;;  %v4052_v12 = vshll.u32 %v4051_v29, 16  ;;  %v4082_v55 = vshll.u32 %v4081_v4, 16 }
 0xa36   : > { %3303 = vmin.xlane.f32.xlu0 %v3302_v7  ;;  %v10298_v53 = vpop.xlane.xlu1 %3314  ;;  %v4097_v42 = vshll.u32 %v4096_v10, 16  ;;  %v4111_v57 = vcvt.f32.s32 %v10254_v18  ;;  %v4126_v7 = vcvt.f32.s32 %v10256_v39 }
 0xa37   : > { %vm3316_vm15 = vcmp.eq.f32.partialorder %v10200_v20, %v10298_v53 }
 0xa38   : > { %v3317_v8 = vsel %vm3316_vm15, %v3312_v43, inf  ;;  %v4112_v46 = vshll.u32 %v4111_v57, 16  ;;  %v3367_v57 = vadd.f32 1e-08, %v10182_v37 }
 0xa39   : > { %3318 = vmin.xlane.f32.xlu1 %v3317_v8 }
 0xa46   : > { %v10304_v63 = vpop.xlane.xlu0 %3329 }
 0xa47   : > { %vm3331_vm1 = vcmp.eq.f32.partialorder %v10220_v16, %v10304_v63 }
 0xa48   : > { %v3332_v20 = vsel %vm3331_vm1, %v3327_v50, inf }
 0xa49   : > { %3333 = vmin.xlane.f32.xlu0 %v3332_v20  ;;  %v4127_v20 = vshll.u32 %v4126_v7, 16 }
 0xa4a   : > { %v4034_v61 = vpop.xlane.xlu0 %4033 }
 0xa4b   : > { %v10312_v33 = vpop.xlane.xlu1 %3344  ;;  %v4035_v59 = vcvt.f32.s32 %v4034_v61 }
 0xa4c   : > { %vm3346_vm7 = vcmp.eq.f32.partialorder %v10235_v28, %v10312_v33 }
 0xa4d   : > { %v3347_v17 = vsel %vm3346_vm7, %v3342_v14, inf  ;;  %v10318_v16 = vadd.s32 %v4037_v62, %v4035_v59 }
 0xa4e   : > { %3348 = vmin.xlane.f32.xlu1 %v3347_v17  ;;  %v4064_v0 = vpop.xlane.xlu0 %4063 }
 0xa4f   : > { %v4049_v52 = vpop.xlane.xlu1 %4048  ;;  %vm4144_vm9 = vcmp.eq.s32.totalorder %v8284_v1, %v10318_v16  ;;  %v4065_v9 = vcvt.f32.s32 %v4064_v0 }
 0xa50   : > { %v4050_v47 = vcvt.f32.s32 %v4049_v52  ;;  %v10328_v28 = vsel %vm4144_vm9, 1e+10, %v9830_v6 }
 0xa51   : > { %v10332_v60 = vadd.s32 %v4067_v45, %v4065_v9  ;;  %v4192_v48 = vsel %vm2374_vm3, %v10328_v28, inf  ;;  %v3363_v9 = vadd.f32 1e-08, %v10139_v21  ;;  %v3276_v21 = vcvt.f32.s32 %v10282_v22 }
 0xa52   : > { %v10330_v23 = vadd.s32 %v4052_v12, %v4050_v47  ;;  %4193 = vmin.xlane.f32.xlu0 %v4192_v48  ;;  %v4094_v8 = vpop.xlane.xlu0 %4093  ;;  %v3362_v47 = vadd.f32 1e-08, %v10131_v49  ;;  %v3364_v48 = vadd.f32 1e-08, %v10144_v31  ;;  %v3261_v49 = vcvt.f32.s32 %v10279_v51 }
 0xa53   : > { %v4079_v43 = vpop.xlane.xlu1 %4078  ;;  %vm4146_vm2 = vcmp.eq.s32.totalorder %v8284_v1, %v10332_v60  ;;  %v4095_v54 = vcvt.f32.s32 %v4094_v8 }
 0xa54   : > { %vm4145_vm12 = vcmp.eq.s32.totalorder %v8284_v1, %v10330_v23  ;;  %v4080_v6 = vcvt.f32.s32 %v4079_v43  ;;  %v10352_v18 = vsel %vm4146_vm2, 1e+10, %v9842_v5  ;;  %7662 = vrcp.f32 %v3362_v47 }
 0xa55   : > { %v10346_v26 = vsel %vm4145_vm12, 1e+10, %v9836_v3  ;;  %v10356_v50 = vadd.s32 %v4097_v42, %v4095_v54  ;;  %v4198_v27 = vsel %vm2374_vm3, %v10352_v18, inf  ;;  %v4141_v3 = vcvt.f32.s32 %v10263_v58 }
 0xa56   : > { %v10354_v39 = vadd.s32 %v4082_v55, %v4080_v6  ;;  %v4195_v32 = vsel %vm2374_vm3, %v10346_v26, inf  ;;  %4199 = vmin.xlane.f32.xlu0 %v4198_v27  ;;  %v4124_v61 = vpop.xlane.xlu0 %4123  ;;  %7664 = vrcp.f32 %v3363_v9  ;;  %v3365_v55 = vadd.f32 1e-08, %v10158_v24 }
 0xa57   : > { %4196 = vmin.xlane.f32.xlu1 %v4195_v32  ;;  %v4109_v29 = vpop.xlane.xlu1 %4108  ;;  %vm4148_vm5 = vcmp.eq.s32.totalorder %v8284_v1, %v10356_v50  ;;  %v4125_v14 = vcvt.f32.s32 %v4124_v61  ;;  %v3246_v42 = vcvt.f32.s32 %v10273_v25  ;;  %7666 = vrcp.f32 %v3364_v48 }
 0xa58   : > { %vm4147_vm4 = vcmp.eq.s32.totalorder %v8284_v1, %v10354_v39  ;;  %v4110_v5 = vcvt.f32.s32 %v4109_v29  ;;  %v10377_v58 = vsel %vm4148_vm5, 1e+10, %v9862_v15  ;;  %7668 = vrcp.f32 %v3365_v55 }
 0xa59   : > { %v10371_v13 = vsel %vm4147_vm4, 1e+10, %v9858_v19  ;;  %v10381_v30 = vadd.s32 %v4127_v20, %v4125_v14  ;;  %v4204_v17 = vsel %vm2374_vm3, %v10377_v58, inf  ;;  %v4142_v19 = vshll.u32 %v4141_v3, 16 }
 0xa5a   : > { %v10379_v62 = vadd.s32 %v4112_v46, %v4110_v5  ;;  %v4201_v59 = vsel %vm2374_vm3, %v10371_v13, inf  ;;  %4205 = vmin.xlane.f32.xlu0 %v4204_v17  ;;  %v3247_v43 = vshll.u32 %v3246_v42, 16  ;;  %v3291_v24 = vcvt.f32.s32 %v10289_v38 }
 0xa5b   : > { %12312 = vst [vmem:[#allocation76_spill] sm:$0xff] %v10381_v30  ;;  %4202 = vmin.xlane.f32.xlu1 %v4201_v59  ;;  %v4139_v12 = vpop.xlane.xlu1 %4138  ;;  %vm4150_vm8 = vcmp.eq.s32.totalorder %v8284_v1, %v10381_v30  ;;  %v3262_v25 = vshll.u32 %v3261_v49, 16  ;;  %v3306_v27 = vcvt.f32.s32 %v10292_v2  ;;  %v3321_v61 = vcvt.f32.s32 %v10298_v53  ;;  %v12341_v30 = vld [vmem:[#allocation42_spill] sm:$0xff] }
 0xa5c   : > { %12311 = vst [vmem:[#allocation61_spill] sm:$0xff] %v10379_v62  ;;  %vm4149_vm13 = vcmp.eq.s32.totalorder %v8284_v1, %v10379_v62  ;;  %v4140_v15 = vcvt.f32.s32 %v4139_v12  ;;  %v10401_v10 = vsel %vm4150_vm8, 1e+10, %v9873_v41  ;;  %v3292_v20 = vshll.u32 %v3291_v24, 16  ;;  %v12318_v24 = vld [vmem:[#allocation72_spill] sm:$0xff]  ;;  %v12342_v62 = vld [vmem:[#allocation50_spill] sm:$0xff] }
 0xa5d   : > { %v10395_v4 = vsel %vm4149_vm13, 1e+10, %v9871_v40  ;;  %12314 = vst [vmem:[#allocation70_spill] sm:$0xff] %v10401_v10  ;;  %v4210_v45 = vsel %vm2374_vm3, %v10401_v10, inf  ;;  %v3307_v59 = vshll.u32 %v3306_v27, 16  ;;  %v3322_v9 = vshll.u32 %v3321_v61, 16 }
 0xa5e   : > { %12313 = vst [vmem:[#allocation66_spill] sm:$0xff] %v10395_v4  ;;  %v10403_v52 = vadd.s32 %v4142_v19, %v4140_v15  ;;  %v4207_v0 = vsel %vm2374_vm3, %v10395_v4, inf  ;;  %4211 = vmin.xlane.f32.xlu0 %v4210_v45 }
 0xa5f   : > { %4208 = vmin.xlane.f32.xlu1 %v4207_v0 }
 0xa60   : > { %12315 = vst [vmem:[#allocation64_spill] sm:$0xff] %v10403_v52  ;;  %vm4151_vm10 = vcmp.eq.s32.totalorder %v8284_v1, %v10403_v52  ;;  %v12340_v52 = vld [vmem:[#allocation57_spill] sm:$0xff] }
 0xa61   : > { %v10415_v40 = vsel %vm4151_vm10, 1e+10, %v9880_v36  ;;  %v3366_v36 = vadd.f32 1e-08, %v10164_v35  ;;  %v3277_v35 = vshll.u32 %v3276_v21, 16  ;;  %v7663_v51 = vpop.eup %7662  ;;  %v12317_v21 = vld [vmem:[#allocation71_spill] sm:$0xff] }
 0xa62   : > { %12316 = vst [vmem:[#allocation77_spill] sm:$0xff] %v10415_v40  ;;  %v4213_v41 = vsel %vm2374_vm3, %v10415_v40, inf }
 0xa63   : > { %4214 = vmin.xlane.f32.xlu1 %v4213_v41  ;;  %7670 = vrcp.f32 %v3366_v36  ;;  %v7665_v22 = vpop.eup %7664 }
 0xa64   : > { %7672 = vrcp.f32 %v3367_v57  ;;  %v7667_v12 = vpop.eup %7666 }
 0xa65   : > { %v7669_v47 = vpop.eup %7668 }
 0xab6   : > { %v3244_v7 = vpop.xlane.xlu0 %3243 }
 0xab7   : > { %v3245_v8 = vcvt.f32.s32 %v3244_v7 }
 0xab9   : > { %v3248_v31 = vadd.s32 %v3247_v43, %v3245_v8 }
 0xaba   : > { %v3259_v6 = vpop.xlane.xlu1 %3258 }
 0xabb   : > { %v3260_v54 = vcvt.f32.s32 %v3259_v6  ;;  %v3274_v32 = vpop.xlane.xlu0 %3273  ;;  %vm3354_vm6 = vcmp.eq.s32.totalorder %v8284_v1, %v3248_v31 }
 0xabc   : > { %v3275_v37 = vcvt.f32.s32 %v3274_v32  ;;  %v3378_v5 = vsel %vm3354_vm6, %v7663_v51, 0.0 }
 0xabd   : > { %v3263_v46 = vadd.s32 %v3262_v25, %v3260_v54  ;;  %v10438_v0 = vadd.f32 %v3378_v5, %v9925_v11  ;;  %v12320_v54 = vld [vmem:[#allocation32_spill] sm:$0xff] }
 0xabe   : > { %v3278_v3 = vadd.s32 %v3277_v35, %v3275_v37  ;;  %v3289_v29 = vpop.xlane.xlu1 %3288  ;;  %v3369_v32 = vadd.f32 1e-08, %v12320_v54  ;;  %v3336_v35 = vcvt.f32.s32 %v10304_v63 }
 0xabf   : > { %vm3355_vm11 = vcmp.eq.s32.totalorder %v8284_v1, %v3263_v46  ;;  %v3290_v38 = vcvt.f32.s32 %v3289_v29  ;;  %v3304_v14 = vpop.xlane.xlu0 %3303  ;;  %v3351_v46 = vcvt.f32.s32 %v10312_v33  ;;  %v12321_v33 = vld [vmem:[#allocation36_spill] sm:$0xff] }
 0xac0   : > { %v3379_v17 = vsel %vm3355_vm11, %v7665_v22, 0.0  ;;  %vm3356_vm15 = vcmp.eq.s32.totalorder %v8284_v1, %v3278_v3  ;;  %v3305_v2 = vcvt.f32.s32 %v3304_v14  ;;  %v3337_v37 = vshll.u32 %v3336_v35, 16 }
 0xac1   : > { %v10435_v19 = vadd.f32 %v3379_v17, %v9941_v56  ;;  %v3293_v15 = vadd.s32 %v3292_v20, %v3290_v38  ;;  %v3380_v45 = vsel %vm3356_vm15, %v7667_v12, 0.0  ;;  %v7671_v56 = vpop.eup %7670  ;;  %v3352_v29 = vshll.u32 %v3351_v46, 16 }
 0xac2   : > { %v3308_v53 = vadd.s32 %v3307_v59, %v3305_v2  ;;  %v3319_v41 = vpop.xlane.xlu1 %3318  ;;  %v10445_v36 = vadd.f32 %v3380_v45, %v9948_v34  ;;  %v7673_v43 = vpop.eup %7672  ;;  %v12322_v2 = vld [vmem:[#allocation31_spill] sm:$0xff] }
 0xac3   : > { %vm3357_vm1 = vcmp.eq.s32.totalorder %v8284_v1, %v3293_v15  ;;  %v3320_v48 = vcvt.f32.s32 %v3319_v41  ;;  %v3418_v42 = vpack.c.bf16 %v10435_v19, %v10438_v0 }
 0xac4   : > { %v3381_v55 = vsel %vm3357_vm1, %v7669_v47, 0.0  ;;  %vm3358_vm7 = vcmp.eq.s32.totalorder %v8284_v1, %v3308_v53 }
 0xac5   : > { %v10448_v11 = vadd.f32 %v3381_v55, %v9962_v44  ;;  %v3323_v57 = vadd.s32 %v3322_v9, %v3320_v48  ;;  %v3382_v7 = vsel %vm3358_vm7, %v7671_v56, 0.0  ;;  %7076 = vmatprep.mubr.msk.bf16.mxu0 %vm2777_vm14, %v3418_v42  ;;  %v12319_v44 = vld [vmem:[#allocation30_spill] sm:$0xff] }
 0xac6   : > { %v10455_v31 = vadd.f32 %v3382_v7, %v12317_v21  ;;  %v3368_v6 = vadd.f32 1e-08, %v12319_v44 }
 0xac7   : > { %v3419_v49 = vpack.c.bf16 %v10448_v11, %v10445_v36  ;;  %vm3359_vm6 = vcmp.eq.s32.totalorder %v8284_v1, %v3323_v57 }
 0xac8   : > { %v3383_v8 = vsel %vm3359_vm6, %v7673_v43, 0.0  ;;  %7674 = vrcp.f32 %v3368_v6 }
 0xac9   : > { %v10458_v34 = vadd.f32 %v3383_v8, %v12318_v24  ;;  %7077 = vmatmul.mubr.msk.bf16.vlgmr.msra.gmra.mxu0 %vm2777_vm14, %v3419_v49  ;;  %7676 = vrcp.f32 %v3369_v32 }
 0xacb   : > { %v3420_v25 = vpack.c.bf16 %v10458_v34, %v10455_v31 }
 0xacd   : > { %7080 = vmatprep.mubr.msk.bf16.mxu0 %vm2777_vm14, %v3420_v25 }
 0xad2   : > { %v3334_v27 = vpop.xlane.xlu0 %3333 }
 0xad3   : > { %v3335_v51 = vcvt.f32.s32 %v3334_v27 }
 0xad5   : > { %v3338_v20 = vadd.s32 %v3337_v37, %v3335_v51  ;;  %v7675_v61 = vpop.eup %7674 }
 0xad6   : > { %v7677_v14 = vpop.eup %7676 }
 0xad7   : > { %v3349_v3 = vpop.xlane.xlu1 %3348  ;;  %vm3360_vm11 = vcmp.eq.s32.totalorder %v8284_v1, %v3338_v20 }
 0xad8   : > { %v3350_v22 = vcvt.f32.s32 %v3349_v3  ;;  %v3384_v38 = vsel %vm3360_vm11, %v7675_v61, 0.0 }
 0xad9   : > { %v10475_v17 = vadd.f32 %v3384_v38, %v12321_v33 }
 0xada   : > { %v3353_v5 = vadd.s32 %v3352_v29, %v3350_v22 }
 0xadb   : > { %v10470_v59 = vpop.xlane.xlu0 %4193 }
 0xadc   : > { %vm3361_vm15 = vcmp.eq.s32.totalorder %v8284_v1, %v3353_v5  ;;  %vm4216_vm1 = vcmp.le.f32.partialorder %v10328_v28, %v10470_v59 }
 0xadd   : > { %v3385_v63 = vsel %vm3361_vm15, %v7677_v14, 0.0  ;;  %v4224_v15 = vsel %vm4216_vm1, %v8284_v1, 64 }
 0xade   : > { %v10478_v12 = vadd.f32 %v3385_v63, %v12322_v2  ;;  %v4232_v45 = vsel %vm2374_vm3, %v4224_v15, 2147483647 }
 0xadf   : > { %v10484_v41 = vpop.xlane.xlu0 %4199  ;;  %v4234_v9 = vshra.s32 %v4232_v45, 16 }
 0xae0   : > { %v10482_v53 = vpop.xlane.xlu1 %4196  ;;  %v3421_v47 = vpack.c.bf16 %v10478_v12, %v10475_v17  ;;  %vm4218_vm6 = vcmp.le.f32.partialorder %v10352_v18, %v10484_v41 }
 0xae1   : > { %vm4217_vm7 = vcmp.le.f32.partialorder %v10346_v26, %v10482_v53  ;;  %v4226_v55 = vsel %vm4218_vm6, %v8284_v1, 64  ;;  %v4236_v42 = vcvt.s32.f32 %v4234_v9  ;;  %v4233_v9 = vand.u32 65535, %v4232_v45 }
 0xae2   : > { %v4225_v48 = vsel %vm4217_vm7, %v8284_v1, 64  ;;  %7081 = vmatmul.mubr.msk.bf16.gmra.mxu0 %vm2777_vm14, %v3421_v47  ;;  %v4262_v57 = vsel %vm2374_vm3, %v4226_v55, 2147483647 }
 0xae3   : > { %v4247_v56 = vsel %vm2374_vm3, %v4225_v48, 2147483647  ;;  %4237 = vmin.xlane.f32.xlu0 %v4236_v42  ;;  %v10499_v43 = vpop.xlane.xlu0 %4205  ;;  %v4264_v8 = vshra.s32 %v4262_v57, 16  ;;  %v4235_v55 = vcvt.s32.f32 %v4233_v9 }
 0xae4   : > { %v10497_v7 = vpop.xlane.xlu1 %4202  ;;  %v4249_v49 = vshra.s32 %v4247_v56, 16  ;;  %vm4220_vm15 = vcmp.le.f32.partialorder %v10377_v58, %v10499_v43 }
 0xae5   : > { %vm4219_vm11 = vcmp.le.f32.partialorder %v10371_v13, %v10497_v7  ;;  %v4228_v24 = vsel %vm4220_vm15, %v8284_v1, 64  ;;  %v4266_v6 = vcvt.s32.f32 %v4264_v8  ;;  %v4263_v8 = vand.u32 65535, %v4262_v57 }
 0xae6   : > { %v4227_v21 = vsel %vm4219_vm11, %v8284_v1, 64  ;;  %v4251_v44 = vcvt.s32.f32 %v4249_v49  ;;  %v10509_v54 = vsel %vm2374_vm3, %v4228_v24, 2147483647  ;;  %v4248_v49 = vand.u32 65535, %v4247_v56 }
 0xae7   : > { %v4277_v25 = vsel %vm2374_vm3, %v4227_v21, 2147483647  ;;  %4267 = vmin.xlane.f32.xlu0 %v4266_v6  ;;  %v10513_v35 = vpop.xlane.xlu0 %4211  ;;  %v4294_v37 = vshra.s32 %v10509_v54, 16 }
 0xae8   : > { %4252 = vmin.xlane.f32.xlu1 %v4251_v44  ;;  %v10511_v32 = vpop.xlane.xlu1 %4208  ;;  %v4279_v27 = vshra.s32 %v4277_v25, 16  ;;  %vm4222_vm7 = vcmp.le.f32.partialorder %v10401_v10, %v10513_v35 }
 0xae9   : > { %vm4221_vm1 = vcmp.le.f32.partialorder %v10395_v4, %v10511_v32  ;;  %v4230_v51 = vsel %vm4222_vm7, %v8284_v1, 64  ;;  %v10522_v3 = vcvt.s32.f32 %v4294_v37  ;;  %v4250_v37 = vcvt.s32.f32 %v4248_v49  ;;  %v12326_v49 = vld [vmem:[#allocation45_spill] sm:$0xff] }
 0xaea   : > { %v4229_v46 = vsel %vm4221_vm1, %v8284_v1, 64  ;;  %v4281_v20 = vcvt.s32.f32 %v4279_v27  ;;  %v10528_v22 = vsel %vm2374_vm3, %v4230_v51, 2147483647  ;;  %v4278_v51 = vand.u32 65535, %v4277_v25 }
 0xaeb   : > { %v10525_v29 = vsel %vm2374_vm3, %v4229_v46, 2147483647  ;;  %4297 = vmin.xlane.f32.xlu0 %v10522_v3  ;;  %v4324_v38 = vshra.s32 %v10528_v22, 16  ;;  %v4265_v46 = vcvt.s32.f32 %v4263_v8 }
 0xaec   : > { %4282 = vmin.xlane.f32.xlu1 %v4281_v20  ;;  %v10530_v61 = vpop.xlane.xlu1 %4214  ;;  %v4309_v5 = vshra.s32 %v10525_v29, 16  ;;  %v4280_v9 = vcvt.s32.f32 %v4278_v51 }
 0xaed   : > { %vm4223_vm6 = vcmp.le.f32.partialorder %v10415_v40, %v10530_v61  ;;  %v10540_v33 = vcvt.s32.f32 %v4324_v38  ;;  %v12324_v38 = vld [vmem:[#allocation34_spill] sm:$0xff] }
 0xaee   : > { %v4231_v14 = vsel %vm4223_vm6, %v8284_v1, 64  ;;  %v10538_v63 = vcvt.s32.f32 %v4309_v5  ;;  %v5105_v5 = vld [vmem:[%s1243_s10] sm:$0x7]  ;;  %s12364_s10 = sld [smem:[#allocation4_spill]] }
 0xaef   : > { %v10543_v2 = vsel %vm2374_vm3, %v4231_v14, 2147483647  ;;  %4327 = vmin.xlane.f32.xlu0 %v10540_v33  ;;  %v10567_v14 = vrot.slane %v5105_v5, %v12324_v38 }
 0xaf0   : > { %4312 = vmin.xlane.f32.xlu1 %v10538_v63  ;;  %v4339_v15 = vshra.s32 %v10543_v2, 16 }
 0xaf1   : > { %v5122_v8 = vsub.f32 %v12326_v49, %v10567_v14  ;;  %v3406_v49 = vsel %vm2777_vm14, %v10455_v31, 0.0 }
 0xaf2   : > { %v10548_v47 = vcvt.s32.f32 %v4339_v15 }
 0xaf4   : > { %4342 = vmin.xlane.f32.xlu1 %v10548_v47 }
 0xb6c   : > { %v10551_v48 = vpop.xlane.xlu0 %4237 }
 0xb6d   : > { %vm4239_vm11 = vcmp.eq.f32.partialorder %v4236_v42, %v10551_v48  ;;  %v12323_v42 = vld [vmem:[#allocation33_spill] sm:$0xff] }
 0xb6e   : > { %v4240_v21 = vsel %vm4239_vm11, %v4235_v55, inf  ;;  %v10564_v57 = vrot.slane %v5105_v5, %v12323_v42  ;;  %v12329_v42 = vld [vmem:[#allocation38_spill] sm:$0xff] }
 0xb6f   : > { %4241 = vmin.xlane.f32.xlu0 %v4240_v21  ;;  %v12327_v21 = vld [vmem:[#allocation35_spill] sm:$0xff] }
 0xb70   : > { %v10556_v27 = vpop.xlane.xlu0 %4267  ;;  %v5111_v38 = vsub.f32 %v12329_v42, %v10564_v57 }
 0xb71   : > { %v10554_v24 = vpop.xlane.xlu1 %4252  ;;  %vm4269_vm1 = vcmp.eq.f32.partialorder %v4266_v6, %v10556_v27  ;;  %v12325_v6 = vld [vmem:[#allocation37_spill] sm:$0xff] }
 0xb72   : > { %vm4254_vm15 = vcmp.eq.f32.partialorder %v4251_v44, %v10554_v24  ;;  %v4270_v56 = vsel %vm4269_vm1, %v4265_v46, inf  ;;  %v3394_v44 = vsel %vm2777_vm14, %v10438_v0, 0.0  ;;  %v5110_v55 = vsub.f32 %v12325_v6, %v10564_v57  ;;  %v12328_v0 = vld [vmem:[#allocation53_spill] sm:$0xff] }
 0xb73   : > { %v4255_v45 = vsel %vm4254_vm15, %v4250_v37, inf  ;;  %4271 = vmin.xlane.f32.xlu0 %v4270_v56  ;;  %v10579_v37 = vrot.slane %v5105_v5, %v12327_v21  ;;  %v3397_v46 = vsel %vm2777_vm14, %v10435_v19, 0.0  ;;  %v5150_v56 = vmul.f32 %v5122_v8, %v5122_v8  ;;  %v12332_v19 = vld [vmem:[#allocation47_spill] sm:$0xff] }
 0xb74   : > { %4256 = vmin.xlane.f32.xlu1 %v4255_v45  ;;  %v5142_v45 = vmul.f32 %v5110_v55, %v5110_v55  ;;  %v5124_v6 = vsub.f32 %v12332_v19, %v10567_v14  ;;  %v3409_v55 = vsel %vm2777_vm14, %v10458_v34, 0.0  ;;  %v10601_v8 = vpop.xlane.xlu0 %4297  ;;  %v3412_v21 = vsel %vm2777_vm14, %v10475_v17, 0.0 }
 0xb75   : > { %v10569_v15 = vpop.xlane.xlu1 %4282  ;;  %v5134_v51 = vsub.f32 %v12328_v0, %v10579_v37  ;;  %v4323_v0 = vand.u32 65535, %v10528_v22  ;;  %v3415_v17 = vsel %vm2777_vm14, %v10478_v12, 0.0  ;;  %v12335_v22 = vld [vmem:[#allocation40_spill] sm:$0xff]  ;;  %vm5182_vm15 = vcmask 785408  }
 0xb76   : > { %vm4284_vm7 = vcmp.eq.f32.partialorder %v4281_v20, %v10569_v15  ;;  %v3400_v20 = vsel %vm2777_vm14, %v10445_v36, 0.0  ;;  %v3403_v36 = vsel %vm2777_vm14, %v10448_v11, 0.0  ;;  %v4338_v11 = vand.u32 65535, %v10543_v2  ;;  %v12336_v2 = vld [vmem:[#allocation48_spill] sm:$0xff] }
 0xb77   : > { %v4285_v25 = vsel %vm4284_vm7, %v4280_v9, inf  ;;  %3395 = vadd.xlane.f32.xlu0 %v3394_v44  ;;  %v12330_v9 = vld [vmem:[#allocation46_spill] sm:$0xff]  ;;  %v5158_v42 = vadd.f32 %v5150_v56, %v5142_v45  ;;  %v5166_v31 = vmul.f32 %v5134_v51, %v5134_v51  ;;  %v5152_v10 = vmul.f32 %v5124_v6, %v5124_v6 }
 0xb78   : > { %4286 = vmin.xlane.f32.xlu1 %v4285_v25  ;;  %v5123_v5 = vsub.f32 %v12330_v9, %v10567_v14  ;;  %v12331_v25 = vld [vmem:[#allocation39_spill] sm:$0xff]  ;;  %v12333_v9 = vld [vmem:[#allocation54_spill] sm:$0xff]  ;;  %v5125_v45 = vsub.f32 %v12336_v2, %v10567_v14  ;;  %vm4299_vm14 = vcmp.eq.f32.partialorder %v10522_v3, %v10601_v8  ;;  %v4340_v12 = vcvt.s32.f32 %v4338_v11 }
 0xb79   : > { %v5112_v44 = vsub.f32 %v12331_v25, %v10564_v57  ;;  %v5135_v34 = vsub.f32 %v12333_v9, %v10579_v37  ;;  %v5143_v25 = vmul.f32 %v5111_v38, %v5111_v38  ;;  %v10619_v51 = vpop.xlane.xlu1 %4312  ;;  %v4325_v38 = vcvt.s32.f32 %v4323_v0  ;;  %v12338_v9 = vld [vmem:[#allocation49_spill] sm:$0xff]  ;;  %v12339_v0 = vld [vmem:[#allocation56_spill] sm:$0xff] }
 0xb7a   : > { %v5151_v19 = vmul.f32 %v5123_v5, %v5123_v5  ;;  %v12337_v5 = vld [vmem:[#allocation41_spill] sm:$0xff]  ;;  %v10629_v2 = vadd.f32 %v5166_v31, %v5158_v42  ;;  %v5137_v4 = vsub.f32 %v12339_v0, %v10579_v37  ;;  %v5138_v3 = vsub.f32 %v12340_v52, %v10579_v37 }
 0xb7b   : > { %3401 = vadd.xlane.f32.xlu0 %v3400_v20  ;;  %v4308_v20 = vand.u32 65535, %v10525_v29  ;;  %v5144_v40 = vmul.f32 %v5112_v44, %v5112_v44  ;;  %v5114_v44 = vsub.f32 %v12337_v5, %v10564_v57  ;;  %v5167_v6 = vmul.f32 %v5135_v34, %v5135_v34 }
 0xb7c   : > { %3398 = vadd.xlane.f32.xlu1 %v3397_v46  ;;  %v4293_v46 = vand.u32 65535, %v10509_v54  ;;  %v12334_v54 = vld [vmem:[#allocation55_spill] sm:$0xff]  ;;  %v5127_v42 = vsub.f32 %v12342_v62, %v10567_v14  ;;  %vm4314_vm6 = vcmp.eq.f32.partialorder %v10538_v63, %v10619_v51  ;;  %v5169_v31 = vmul.f32 %v5137_v4, %v5137_v4 }
 0xb7d   : > { %v5136_v29 = vsub.f32 %v12334_v54, %v10579_v37  ;;  %v5126_v54 = vsub.f32 %v12338_v9, %v10567_v14  ;;  %v5146_v34 = vmul.f32 %v5114_v44, %v5114_v44  ;;  %v5115_v9 = vsub.f32 %v12341_v30, %v10564_v57  ;;  %v12343_v30 = vld [vmem:[#allocation43_spill] sm:$0xff] }
 0xb7e   : > { %v4295_v56 = vcvt.s32.f32 %v4293_v46  ;;  %v5159_v46 = vadd.f32 %v5151_v19, %v5143_v25  ;;  %v5116_v25 = vsub.f32 %v12343_v30, %v10564_v57  ;;  %v12344_v62 = vld [vmem:[#allocation51_spill] sm:$0xff]  ;;  %v5170_v63 = vmul.f32 %v5138_v3, %v5138_v3 }
 0xb7f   : > { %3407 = vadd.xlane.f32.xlu0 %v3406_v49  ;;  %v4310_v49 = vcvt.s32.f32 %v4308_v20  ;;  %v5160_v20 = vadd.f32 %v5152_v10, %v5144_v40  ;;  %v5168_v5 = vmul.f32 %v5136_v29, %v5136_v29  ;;  %v5154_v10 = vmul.f32 %v5126_v54, %v5126_v54  ;;  %v10643_v40 = vpop.xlane.xlu1 %4342 }
 0xb80   : > { %3404 = vadd.xlane.f32.xlu1 %v3403_v36  ;;  %v5113_v36 = vsub.f32 %v12335_v22, %v10564_v57  ;;  %v10627_v22 = vpop.xlane.xlu0 %4327  ;;  %v4300_v11 = vsel %vm4299_vm14, %v4295_v56, inf  ;;  %v10645_v52 = vadd.f32 %v5167_v6, %v5159_v46  ;;  %v5128_v19 = vsub.f32 %v12344_v62, %v10567_v14  ;;  %v12346_v46 = vld [vmem:[#allocation59_spill] sm:$0xff] }
 0xb81   : > { %vm4329_vm11 = vcmp.eq.f32.partialorder %v10540_v33, %v10627_v22  ;;  %v5147_v44 = vmul.f32 %v5115_v9, %v5115_v9  ;;  %v5155_v54 = vmul.f32 %v5127_v42, %v5127_v42  ;;  %vm4344_vm1 = vcmp.eq.f32.partialorder %v10548_v47, %v10643_v40 }
 0xb82   : > { %v4330_v56 = vsel %vm4329_vm11, %v4325_v38, inf  ;;  %v5183_v4 = vsel %vm5182_vm15, %v10629_v2, inf  ;;  %v5162_v6 = vadd.f32 %v5154_v10, %v5146_v34  ;;  %v5148_v0 = vmul.f32 %v5116_v25, %v5116_v25  ;;  %v12348_v38 = vld [vmem:[#allocation52_spill] sm:$0xff] }
 0xb83   : > { %3413 = vadd.xlane.f32.xlu0 %v3412_v21  ;;  %v5153_v21 = vmul.f32 %v5125_v45, %v5125_v45  ;;  %v4315_v45 = vsel %vm4314_vm6, %v4310_v49, inf  ;;  %v4345_v3 = vsel %vm4344_vm1, %v4340_v12, inf  ;;  %v5163_v10 = vadd.f32 %v5155_v54, %v5147_v44  ;;  %v7532_v54 = vld [vmem:[%s12350_s2] sm:$0xff]  }
 0xb84   : > { %3410 = vadd.xlane.f32.xlu1 %v3409_v55  ;;  %v5145_v55 = vmul.f32 %v5113_v36, %v5113_v36  ;;  %v12345_v36 = vld [vmem:[#allocation58_spill] sm:$0xff]  ;;  %v10671_v42 = vadd.f32 %v5170_v63, %v5162_v6  ;;  %v4349_v50 = vcvt.f32.s32 %v10643_v40 }
 0xb85   : > { %v5139_v33 = vsub.f32 %v12345_v36, %v10579_v37 }
 0xb86   : > { %v5161_v29 = vadd.f32 %v5153_v21, %v5145_v55  ;;  %v12347_v55 = vld [vmem:[#allocation44_spill] sm:$0xff]  ;;  %v5129_v21 = vsub.f32 %v12348_v38, %v10567_v14 }
 0xb87   : > { %4301 = vmin.xlane.f32.xlu0 %v4300_v11  ;;  %v5117_v49 = vsub.f32 %v12347_v55, %v10564_v57  ;;  %v5186_v11 = vsel %vm5182_vm15, %v10645_v52, inf  ;;  %v5171_v9 = vmul.f32 %v5139_v33, %v5139_v33  ;;  %v12351_v14 = vld [vmem:[#allocation60_spill] sm:$0xff]  ;;  %v4360_v55 = vadd.f32 1e-08, %v10470_v59 }
 0xb88   : > { %3416 = vadd.xlane.f32.xlu1 %v3415_v17  ;;  %v10651_v17 = vadd.f32 %v5168_v5, %v5160_v20  ;;  %v5140_v20 = vsub.f32 %v12346_v46, %v10579_v37  ;;  %v5156_v5 = vmul.f32 %v5128_v19, %v5128_v19  ;;  %v10667_v47 = vadd.f32 %v5169_v31, %v5161_v29  ;;  %v10697_v46 = vpop.f32.mrf.mxu0 }
 0xb89   : > { %v5141_v12 = vsub.f32 %v12351_v14, %v10579_v37  ;;  %v5149_v25 = vmul.f32 %v5117_v49, %v5117_v49  ;;  %v5157_v62 = vmul.f32 %v5129_v21, %v5129_v21  ;;  %v10677_v19 = vadd.f32 %v5171_v9, %v5163_v10  ;;  %v7531_v37 = vld [vmem:[%s12349_s28 + $0x8] sm:$0xff]   ;;  %v12354_v49 = vld [vmem:[#allocation73_spill] sm:$0xff]  ;;  %s12408_s28 = sld [smem:[#allocation16_spill]] }
 0xb8a   : > { %v5189_v34 = vsel %vm5182_vm15, %v10651_v17, inf  ;;  %v5172_v57 = vmul.f32 %v5140_v20, %v5140_v20  ;;  %v5164_v30 = vadd.f32 %v5156_v5, %v5148_v0  ;;  %v5192_v31 = vsel %vm5182_vm15, %v10667_v47, inf  ;;  %7084 = vmatprep.subr.bf16.mxu1 %v7531_v37  ;;  %v10699_v20 = vpop.f32.mrf.mxu0  ;;  %v12353_v0 = vld [vmem:[#allocation74_spill] sm:$0xff] }
 0xb8b   : > { %4331 = vmin.xlane.f32.xlu0 %v4330_v56  ;;  %v5195_v29 = vsel %vm5182_vm15, %v10671_v42, inf  ;;  %v5165_v36 = vadd.f32 %v5157_v62, %v5149_v25  ;;  %v5173_v33 = vmul.f32 %v5141_v12, %v5141_v12  ;;  %7085 = vmatpush3.bf16.msra.mxu1 %v7531_v37  ;;  %v4152_v5 = vadd.f32 1e-08, %v12353_v0 }
 0xb8c   : > { %4316 = vmin.xlane.f32.xlu1 %v4315_v45  ;;  %v10681_v63 = vadd.f32 %v5172_v57, %v5164_v30  ;;  %v5198_v45 = vsel %vm5182_vm15, %v10677_v19, inf  ;;  %7086 = vmatprep.subr.bf16.mxu1 %v7532_v54  ;;  %v4153_v38 = vadd.f32 1e-08, %v12354_v49  ;;  %v10704_v21 = vpop.f32.mrf.mxu0  ;;  %v4361_v9 = vadd.f32 1e-08, %v10482_v53  ;;  %v10711_v57 = vpop.f32.mrf.mxu1  ;;  %v12356_v30 = vld [vmem:[#allocation26_spill] sm:$0xff] }
 0xb8d   : > { %v10688_v44 = vadd.f32 %v5173_v33, %v5165_v36  ;;  %7678 = vrcp.f32 %v4152_v5  ;;  %v4155_v59 = vadd.f32 1e-08, %v12356_v30  ;;  %v4363_v14 = vadd.f32 1e-08, %v10497_v7 }
 0xb8e   : > { %v5201_v56 = vsel %vm5182_vm15, %v10681_v63, inf  ;;  %7680 = vrcp.f32 %v4360_v55  ;;  %v10709_v10 = vpop.f32.mrf.mxu0  ;;  %v4244_v25 = vcvt.f32.s32 %v10551_v48  ;;  %v10718_v53 = vpop.f32.mrf.mxu1  ;;  %v4274_v37 = vcvt.f32.s32 %v10556_v27 }
 0xb8f   : > { %5184 = vmin.xlane.f32.xlu0 %v5183_v4  ;;  %v10692_v4 = vld [vmem:[%s12352_s7 + $0x18] sm:$0xff]   ;;  %v5204_v6 = vsel %vm5182_vm15, %v10688_v44, inf  ;;  %7087 = vmatpush3.bf16.msra.mxu1 %v7532_v54  ;;  %7682 = vrcp.f32 %v4153_v38 }
 0xb90   : > { %4346 = vmin.xlane.f32.xlu1 %v4345_v3  ;;  %7112 = vmatprep.subr.bf16.mxu1 %v10692_v4  ;;  %v12355_v3 = vld [vmem:[#allocation75_spill] sm:$0xff]  ;;  %v10715_v12 = vpop.f32.mrf.mxu0  ;;  %v4245_v33 = vshll.u32 %v4244_v25, 16  ;;  %v10725_v7 = vpop.f32.mrf.mxu1 }
 0xb92   : > { %v10722_v36 = vpop.f32.mrf.mxu0 }
 0xb93   : > { %5190 = vmin.xlane.f32.xlu0 %v5189_v34  ;;  %v4362_v34 = vadd.f32 1e-08, %v10484_v41  ;;  %v12357_v41 = vld [vmem:[#allocation29_spill] sm:$0xff] }
 0xb94   : > { %5187 = vmin.xlane.f32.xlu1 %v5186_v11  ;;  %v4154_v11 = vadd.f32 1e-08, %v12355_v3  ;;  %v4156_v62 = vadd.f32 1e-08, %v12357_v41  ;;  %v10728_v49 = vpop.f32.mrf.mxu0 }
 0xb96   : > { %7684 = vrcp.f32 %v4154_v11  ;;  %v12358_v11 = vld [vmem:[#allocation63_spill] sm:$0xff] }
 0xb97   : > { %5196 = vmin.xlane.f32.xlu0 %v5195_v29  ;;  %7686 = vrcp.f32 %v4361_v9  ;;  %v4157_v9 = vadd.f32 1e-08, %v12358_v11 }
 0xb98   : > { %5193 = vmin.xlane.f32.xlu1 %v5192_v31  ;;  %7688 = vrcp.f32 %v4362_v34  ;;  %v4259_v31 = vcvt.f32.s32 %v10554_v24  ;;  %v4275_v24 = vshll.u32 %v4274_v37, 16  ;;  %v10732_v34 = vpop.f32.mrf.mxu1 }
 0xb99   : > { %7690 = vrcp.f32 %v4155_v59 }
 0xb9a   : > { %7692 = vrcp.f32 %v4363_v14  ;;  %v7679_v54 = vpop.eup %7678  ;;  %v4260_v48 = vshll.u32 %v4259_v31, 16 }
 0xb9b   : > { %5202 = vmin.xlane.f32.xlu0 %v5201_v56  ;;  %7694 = vrcp.f32 %v4156_v62  ;;  %v7681_v55 = vpop.eup %7680  ;;  %v4168_v30 = vsel %vm4144_vm9, %v7679_v54, 0.0 }
 0xb9c   : > { %5199 = vmin.xlane.f32.xlu1 %v5198_v45  ;;  %v7683_v27 = vpop.eup %7682 }
 0xb9d   : > { %v4169_v16 = vsel %vm4145_vm12, %v7683_v27, 0.0 }
 0xba0   : > { %5205 = vmin.xlane.f32.xlu1 %v5204_v6  ;;  %v4289_v6 = vcvt.f32.s32 %v10569_v15 }
 0xba3   : > { %v7685_v14 = vpop.eup %7684 }
 0xbf8   : > { %v4242_v29 = vpop.xlane.xlu0 %4241 }
 0xbf9   : > { %v4243_v45 = vcvt.f32.s32 %v4242_v29  ;;  %v7687_v29 = vpop.eup %7686 }
 0xbfb   : > { %v4246_v56 = vadd.s32 %v4245_v33, %v4243_v45  ;;  %v12360_v33 = vld [vmem:[#allocation27_spill] sm:$0xff]  ;;  %v4290_v45 = vshll.u32 %v4289_v6, 16 }
 0xbfc   : > { %v4272_v5 = vpop.xlane.xlu0 %4271  ;;  %v4158_v37 = vadd.f32 1e-08, %v12360_v33 }
 0xbfd   : > { %v4257_v0 = vpop.xlane.xlu1 %4256  ;;  %v4273_v3 = vcvt.f32.s32 %v4272_v5  ;;  %vm4352_vm7 = vcmp.eq.s32.totalorder %v8284_v1, %v4246_v56 }
 0xbfe   : > { %v4258_v38 = vcvt.f32.s32 %v4257_v0  ;;  %v10738_v15 = vsel %vm4352_vm7, 1e+10, %v10328_v28  ;;  %v4376_v59 = vsel %vm4352_vm7, %v7681_v55, 0.0  ;;  %v4170_v28 = vsel %vm4146_vm2, %v7685_v14, 0.0  ;;  %v10751_v0 = vpop.f32.mrf.mxu0  ;;  %v10755_v55 = vpop.f32.mrf.mxu1 }
 0xbff   : > { %v4276_v41 = vadd.s32 %v4275_v24, %v4273_v3  ;;  %v4400_v62 = vsel %vm2374_vm3, %v10738_v15, inf  ;;  %v10742_v31 = vadd.f32 %v4376_v59, %v4168_v30 }
 0xc00   : > { %v4261_v25 = vadd.s32 %v4260_v48, %v4258_v38  ;;  %4401 = vmin.xlane.f32.xlu0 %v4400_v62  ;;  %v3396_v54 = vpop.xlane.xlu0 %3395  ;;  %v7689_v48 = vpop.eup %7688  ;;  %v12363_v62 = vld [vmem:[#allocation28_spill] sm:$0xff] }
 0xc01   : > { %12359 = vst [vmem:[#allocation69_spill] sm:$0xff] %v10742_v31  ;;  %v4287_v56 = vpop.xlane.xlu1 %4286  ;;  %7696 = vrcp.f32 %v3396_v54  ;;  %vm4354_vm14 = vcmp.eq.s32.totalorder %v8284_v1, %v4276_v41  ;;  %v10763_v38 = vpop.f32.mrf.mxu0  ;;  %v4365_v54 = vadd.f32 1e-08, %v10511_v32  ;;  %v4304_v32 = vcvt.f32.s32 %v10601_v8 }
 0xc02   : > { %v4288_v5 = vcvt.f32.s32 %v4287_v56  ;;  %vm4353_vm9 = vcmp.eq.s32.totalorder %v8284_v1, %v4261_v25  ;;  %v10761_v6 = vsel %vm4354_vm14, 1e+10, %v10352_v18  ;;  %v4378_v24 = vsel %vm4354_vm14, %v7689_v48, 0.0  ;;  %v7691_v59 = vpop.eup %7690  ;;  %v2669_v33 = vpop.f32.mrf.mxu1 }
 0xc03   : > { %v10758_v23 = vsel %vm4353_vm9, 1e+10, %v10346_v26  ;;  %v4377_v60 = vsel %vm4353_vm9, %v7687_v29, 0.0  ;;  %v4406_v30 = vsel %vm2374_vm3, %v10761_v6, inf  ;;  %7698 = vrcp.f32 %v4157_v9  ;;  %v7693_v41 = vpop.eup %7692 }
 0xc04   : > { %v4291_v3 = vadd.s32 %v4290_v45, %v4288_v5  ;;  %v4403_v27 = vsel %vm2374_vm3, %v10758_v23, inf  ;;  %v10767_v11 = vadd.f32 %v4377_v60, %v4169_v16  ;;  %v4364_v26 = vadd.f32 1e-08, %v10499_v43  ;;  %4407 = vmin.xlane.f32.xlu0 %v4406_v30  ;;  %v3402_v25 = vpop.xlane.xlu0 %3401  ;;  %v7695_v5 = vpop.eup %7694 }
 0xc05   : > { %4404 = vmin.xlane.f32.xlu1 %v4403_v27  ;;  %v3399_v14 = vpop.xlane.xlu1 %3398  ;;  %v10772_v18 = vadd.f32 %v4378_v24, %v4170_v28  ;;  %v4159_v29 = vadd.f32 1e-08, %v12363_v62  ;;  %v4171_v16 = vsel %vm4147_vm4, %v7691_v59, 0.0  ;;  %v3492_v28 = vpop.f32.mrf.mxu0  ;;  %v4366_v60 = vadd.f32 1e-08, %v10513_v35 }
 0xc06   : > { %12361 = vst [vmem:[#allocation62_spill] sm:$0xff] %v10767_v11  ;;  %7700 = vrcp.f32 %v3399_v14  ;;  %vm4355_vm12 = vcmp.eq.s32.totalorder %v8284_v1, %v4291_v3  ;;  %v10791_v24 = vld [vmem:[%s12364_s10] ss:$0 sm:$0xff]  ;;  %v4319_v62 = vcvt.f32.s32 %v10619_v51  ;;  %s12409_s10 = sld [smem:[#allocation19_spill]] }
 0xc07   : > { %12362 = vst [vmem:[#allocation65_spill] sm:$0xff] %v10772_v18  ;;  %7702 = vrcp.f32 %v3402_v25  ;;  %v10780_v43 = vsel %vm4355_vm12, 1e+10, %v10371_v13  ;;  %v4379_v9 = vsel %vm4355_vm12, %v7693_v41, 0.0  ;;  %v10788_v13 = vpop.f32.mrf.mxu1  ;;  %v10797_v35 = vadd.f32 %v10711_v57, %v10791_v24  ;;  %v10804_v25 = vld [vmem:[%s12366_s11] ss:$0 sm:$0xff] }
 0xc08   : > { %7704 = vrcp.f32 %v4158_v37  ;;  %v4409_v45 = vsel %vm2374_vm3, %v10780_v43, inf  ;;  %v10784_v56 = vadd.f32 %v4379_v9, %v4171_v16  ;;  %v3408_v39 = vpop.xlane.xlu0 %3407  ;;  %v7079_v37 = vpop.f32.mrf.mxu0  ;;  %v10801_v14 = vadd.f32 %v10791_v24, %v10718_v53  ;;  %s12410_s11 = sld [smem:[#allocation18_spill]] }
 0xc09   : > { %7706 = vrcp.f32 %v4364_v26  ;;  %4410 = vmin.xlane.f32.xlu1 %v4409_v45  ;;  %v3405_v48 = vpop.xlane.xlu1 %3404  ;;  %v2672_v59 = vpop.f32.mrf.mxu1  ;;  %v4367_v26 = vadd.f32 1e-08, %v10530_v61  ;;  %v10808_v8 = vadd.f32 %v10725_v7, %v10791_v24  ;;  %v10812_v61 = vadd.f32 %v10791_v24, %v10732_v34 }
 0xc0a   : > { %12365 = vst [vmem:[#allocation67_spill] sm:$0xff] %v10784_v56  ;;  %7708 = vrcp.f32 %v3405_v48  ;;  %v3495_v41 = vpop.f32.mrf.mxu0  ;;  %v4334_v57 = vcvt.f32.s32 %v10627_v22  ;;  %v10817_v9 = vadd.f32 %v10791_v24, %v2669_v33  ;;  %v10820_v45 = vadd.f32 %v10791_v24, %v2672_v59 }
 0xc0b   : > { %7710 = vrcp.f32 %v4159_v29  ;;  %v4172_v34 = vsel %vm4148_vm5, %v7695_v5, 0.0  ;;  %v2558_v51 = vadd.f32 %v10697_v46, %v10804_v25  ;;  %v2550_v22 = vadd.f32 %v10804_v25, %v10699_v20 }
 0xc0c   : > { %7712 = vrcp.f32 %v4365_v54  ;;  %v3414_v27 = vpop.xlane.xlu0 %3413  ;;  %v4305_v54 = vshll.u32 %v4304_v32, 16  ;;  %v4335_v56 = vshll.u32 %v4334_v57, 16 }
 0xc0d   : > { %v3411_v3 = vpop.xlane.xlu1 %3410  ;;  %7714 = vrcp.f32 %v4366_v60 }
 0xc0e   : > { %v7697_v30 = vpop.eup %7696  ;;  %7716 = vrcp.f32 %v3408_v39  ;;  %v10829_v39 = vpop.f32.mrf.mxu0 }
 0xc0f   : > { %7718 = vrcp.f32 %v3411_v3  ;;  %v3531_v3 = vmul.f32 %v7697_v30, %v3492_v28 }
 0xc10   : > { %v4302_v16 = vpop.xlane.xlu0 %4301  ;;  %v7699_v53 = vpop.eup %7698  ;;  %7720 = vrcp.f32 %v4367_v26 }
 0xc11   : > { %v3417_v29 = vpop.xlane.xlu1 %3416  ;;  %v4303_v7 = vcvt.f32.s32 %v4302_v16  ;;  %7722 = vrcp.f32 %v3414_v27  ;;  %v4320_v16 = vshll.u32 %v4319_v62, 16  ;;  %v2553_v27 = vadd.f32 %v10804_v25, %v10709_v10  ;;  %v3508_v28 = vpop.f32.mrf.mxu0 }
 0xc12   : > { %7724 = vrcp.f32 %v3417_v29  ;;  %v4173_v10 = vsel %vm4149_vm13, %v7699_v53, 0.0 }
 0xc13   : > { %v7701_v48 = vpop.eup %7700  ;;  %v4306_v60 = vadd.s32 %v4305_v54, %v4303_v7 }
 0xc14   : > { %v7703_v33 = vpop.eup %7702  ;;  %v3532_v32 = vmul.f32 %v7701_v48, %v3495_v41  ;;  %v4332_v18 = vpop.xlane.xlu0 %4331 }
 0xc15   : > { %v7705_v59 = vpop.eup %7704  ;;  %v4317_v5 = vpop.xlane.xlu1 %4316  ;;  %v4333_v31 = vcvt.f32.s32 %v4332_v18  ;;  %vm4356_vm2 = vcmp.eq.s32.totalorder %v8284_v1, %v4306_v60  ;;  %v3533_v30 = vmul.f32 %v7703_v33, %v10763_v38  ;;  %v4350_v60 = vshll.u32 %v4349_v50, 16 }
 0xc16   : > { %v7707_v46 = vpop.eup %7706  ;;  %v4318_v11 = vcvt.f32.s32 %v4317_v5  ;;  %v3539_v20 = vpack.c.bf16 %v3532_v32, %v3531_v3  ;;  %v10837_v41 = vsel %vm4356_vm2, 1e+10, %v10377_v58  ;;  %v4174_v58 = vsel %vm4150_vm8, %v7705_v59, 0.0  ;;  %v7534_v32 = vld [vmem:[%s12352_s7 + $0x10] sm:$0xff]   ;;  %v10863_v5 = vpop.f32.mrf.mxu0 }
 0xc17   : > { %v7709_v26 = vpop.eup %7708  ;;  %v4380_v40 = vsel %vm4356_vm2, %v7707_v46, 0.0  ;;  %v4336_v54 = vadd.s32 %v4335_v56, %v4333_v31  ;;  %v4412_v18 = vsel %vm2374_vm3, %v10837_v41, inf  ;;  %v10869_v50 = vadd.f32 %v10797_v35, %v2558_v51  ;;  %v12373_v35 = vld [vmem:[#allocation70_spill] sm:$0xff] }
 0xc18   : > { %v7711_v62 = vpop.eup %7710  ;;  %v3534_v57 = vmul.f32 %v7709_v26, %v7079_v37  ;;  %v4321_v29 = vadd.s32 %v4320_v16, %v4318_v11  ;;  %7088 = vmatprep.mubr.msk.bf16.mxu1 %vm1577_vm0, %v3539_v20  ;;  %4413 = vmin.xlane.f32.xlu0 %v4412_v18  ;;  %v10853_v31 = vadd.f32 %v4380_v40, %v4172_v34  ;;  %v10855_v56 = vpop.xlane.xlu0 %5184 }
 0xc19   : > { %v10851_v37 = vsel %vm4151_vm10, %v7711_v62, 0.0  ;;  %v4347_v11 = vpop.xlane.xlu1 %4346  ;;  %12370 = vst [vmem:[#allocation68_spill] sm:$0xff] %v10855_v56  ;;  %v7713_v33 = vpop.eup %7712  ;;  %vm5207_vm4 = vcmp.le.f32.partialorder %v10629_v2, %v10855_v56  ;;  %v10861_v16 = vadd.f32 %v10801_v14, %v2550_v22  ;;  %vm4358_vm13 = vcmp.eq.s32.totalorder %v8284_v1, %v4336_v54 }
 0xc1a   : > { %v4348_v3 = vcvt.f32.s32 %v4347_v11  ;;  %v3540_v53 = vpack.c.bf16 %v3534_v57, %v3533_v30  ;;  %v7715_v59 = vpop.eup %7714  ;;  %v5215_v46 = vsel %vm5207_vm4, %v8284_v1, 96  ;;  %vm4357_vm5 = vcmp.eq.s32.totalorder %v8284_v1, %v4321_v29  ;;  %v12371_v30 = vld [vmem:[#allocation66_spill] sm:$0xff]  ;;  %v3511_v48 = vpop.f32.mrf.mxu0 }
 0xc1b   : > { %v7717_v34 = vpop.eup %7716  ;;  %v2685_v20 = vadd.f32 %v10812_v61, %v2553_v27  ;;  %v10874_v14 = vsel %vm4357_vm5, 1e+10, %v12371_v30  ;;  %v4381_v62 = vsel %vm4357_vm5, %v7713_v33, 0.0  ;;  %v10882_v51 = vsel %vm4358_vm13, 1e+10, %v12373_v35 }
 0xc1c   : > { %v4351_v26 = vadd.s32 %v4350_v60, %v4348_v3  ;;  %7089 = vmatmul.mubr.msk.bf16.vlgmr.msra.gmra.mxu1 %vm1577_vm0, %v3540_v53  ;;  %v7719_v22 = vpop.eup %7718  ;;  %v4415_v40 = vsel %vm2374_vm3, %v10874_v14, inf  ;;  %v4382_v61 = vsel %vm4358_vm13, %v7715_v59, 0.0  ;;  %v10884_v27 = vpop.xlane.xlu0 %5190  ;;  %v10887_v29 = vsel %vm5182_vm15, %v5215_v46, 2147483647 }
 0xc1d   : > { %v10878_v57 = vpop.xlane.xlu1 %5187  ;;  %7113 = vmatpush3.bf16.msra.mxu1 %v10692_v4  ;;  %12374 = vst [vmem:[#allocation72_spill] sm:$0xff] %v10884_v27  ;;  %4416 = vmin.xlane.f32.xlu1 %v4415_v40  ;;  %v10889_v54 = vadd.f32 %v4381_v62, %v4173_v10  ;;  %v4418_v18 = vsel %vm2374_vm3, %v10882_v51, inf  ;;  %v7535_v4 = vld [vmem:[%s12352_s7 + $0x8] sm:$0xff]   ;;  %v2692_v7 = vmax.f32 %v10861_v16, 0.0  ;;  %v2561_v38 = vadd.f32 %v10704_v21, %v10804_v25  ;;  %v7721_v10 = vpop.eup %7720 }
 0xc1e   : > { %12372 = vst [vmem:[#allocation71_spill] sm:$0xff] %v10878_v57  ;;  %vm5208_vm8 = vcmp.le.f32.partialorder %v10645_v52, %v10878_v57  ;;  %7114 = vmatprep.subr.bf16.mxu1 %v7534_v32  ;;  %4419 = vmin.xlane.f32.xlu0 %v4418_v18  ;;  %v10899_v11 = vadd.f32 %v4382_v61, %v4174_v58  ;;  %v2693_v33 = vmax.f32 %v2685_v20, 0.0  ;;  %v7723_v59 = vpop.eup %7722  ;;  %v5225_v46 = vshra.s32 %v10887_v29, 16 }
 0xc1f   : > { %vm5209_vm10 = vcmp.le.f32.partialorder %v10651_v17, %v10884_v27  ;;  %v5216_v60 = vsel %vm5208_vm8, %v8284_v1, 96  ;;  %v3535_v3 = vmul.f32 %v7717_v34, %v3508_v28  ;;  %v3536_v53 = vmul.f32 %v7719_v22, %v3511_v48  ;;  %v7725_v20 = vpop.eup %7724  ;;  %v12378_v28 = vld [vmem:[#allocation77_spill] sm:$0xff] }
 0xc20   : > { %12375 = vst [vmem:[#allocation30_spill] sm:$0xff] %v10899_v11  ;;  %v2569_v16 = vadd.f32 %v10804_v25, %v10751_v0  ;;  %v5217_v21 = vsel %vm5209_vm10, %v8284_v1, 96  ;;  %vm4359_vm6 = vcmp.eq.s32.totalorder %v8284_v1, %v4351_v26  ;;  %v10911_v30 = vpop.xlane.xlu0 %5196  ;;  %v7536_v0 = vld [vmem:[%s12352_s7] sm:$0xff]   ;;  %v10920_v26 = vsel %vm5182_vm15, %v5216_v60, 2147483647 }
 0xc21   : > { %v10908_v58 = vpop.xlane.xlu1 %5193  ;;  %7115 = vmatpush3.bf16.msra.mxu1 %v7534_v32  ;;  %12377 = vst [vmem:[#allocation36_spill] sm:$0xff] %v10911_v30  ;;  %v3541_v40 = vpack.c.bf16 %v3536_v53, %v3535_v3  ;;  %v10914_v34 = vsel %vm4359_vm6, 1e+10, %v12378_v28  ;;  %v4383_v22 = vsel %vm4359_vm6, %v7721_v10, 0.0  ;;  %v2687_v61 = vadd.f32 %v10808_v8, %v2561_v38 }
 0xc22   : > { %12376 = vst [vmem:[#allocation32_spill] sm:$0xff] %v10908_v58  ;;  %vm5210_vm11 = vcmp.le.f32.partialorder %v10667_v47, %v10908_v58  ;;  %7116 = vmatprep.subr.bf16.mxu1 %v7535_v4  ;;  %v4421_v32 = vsel %vm2374_vm3, %v10914_v34, inf  ;;  %v10925_v62 = vadd.f32 %v4383_v22, %v10851_v37  ;;  %v10930_v18 = vsel %vm5182_vm15, %v5217_v21, 2147483647 }
 0xc23   : > { %v5218_v35 = vsel %vm5210_vm11, %v8284_v1, 96  ;;  %7092 = vmatprep.mubr.msk.bf16.mxu1 %vm1577_vm0, %v3541_v40  ;;  %4422 = vmin.xlane.f32.xlu1 %v4421_v32  ;;  %v10933_v48 = vcvt.s32.f32 %v5225_v46  ;;  %vm5211_vm1 = vcmp.le.f32.partialorder %v10671_v42, %v10911_v30  ;;  %v3771_v10 = vpack.c.bf16 %v2693_v33, %v2692_v7 }
 0xc24   : > { %12379 = vst [vmem:[#allocation31_spill] sm:$0xff] %v10925_v62  ;;  %v5219_v60 = vsel %vm5211_vm1, %v8284_v1, 96  ;;  %v3537_v37 = vmul.f32 %v7723_v59, %v10829_v39  ;;  %v3538_v3 = vmul.f32 %v7725_v20, %v10863_v5  ;;  %v10942_v8 = vpop.xlane.xlu0 %5202  ;;  %v2566_v38 = vadd.f32 %v10804_v25, %v10722_v36 }
 0xc25   : > { %v10940_v53 = vpop.xlane.xlu1 %5199  ;;  %7117 = vmatpush3.bf16.msra.mxu1 %v7535_v4  ;;  %12381 = vst [vmem:[#allocation34_spill] sm:$0xff] %v10942_v8  ;;  %v10947_v21 = vsel %vm5182_vm15, %v5218_v35, 2147483647  ;;  %5228 = vmin.xlane.f32.xlu0 %v10933_v48  ;;  %v5240_v7 = vshra.s32 %v10920_v26, 16  ;;  %v2689_v39 = vadd.f32 %v10820_v45, %v2569_v16  ;;  %v5255_v33 = vshra.s32 %v10930_v18, 16 }
 0xc26   : > { %12380 = vst [vmem:[#allocation33_spill] sm:$0xff] %v10940_v53  ;;  %vm5212_vm7 = vcmp.le.f32.partialorder %v10677_v19, %v10940_v53  ;;  %7118 = vmatprep.subr.bf16.mxu1 %v7536_v0  ;;  %v3542_v5 = vpack.c.bf16 %v3538_v3, %v3537_v37  ;;  %v10957_v36 = vsel %vm5182_vm15, %v5219_v60, 2147483647  ;;  %vm5213_vm9 = vcmp.le.f32.partialorder %v10681_v63, %v10942_v8 }
 0xc27   : > { %v5220_v4 = vsel %vm5212_vm7, %v8284_v1, 96  ;;  %v10959_v59 = vcvt.s32.f32 %v5240_v7  ;;  %v2695_v20 = vmax.f32 %v2687_v61, 0.0  ;;  %v10967_v45 = vcvt.s32.f32 %v5255_v33 }
 0xc28   : > { %v10962_v46 = vsel %vm5182_vm15, %v5220_v4, 2147483647  ;;  %7093 = vmatmul.mubr.msk.bf16.gmra.mxu1 %vm1577_vm0, %v3542_v5  ;;  %v5221_v16 = vsel %vm5213_vm9, %v8284_v1, 96  ;;  %v5270_v40 = vshra.s32 %v10947_v21, 16  ;;  %v2688_v22 = vadd.f32 %v10817_v9, %v2566_v38 }
 0xc29   : > { %v10971_v28 = vpop.xlane.xlu1 %5205  ;;  %v2577_v32 = vadd.f32 %v10728_v49, %v10804_v25  ;;  %5243 = vmin.xlane.f32.xlu1 %v10959_v59  ;;  %7120 = vmatprep.mubr.msk.bf16.mxu1 %vm2374_vm3, %v3771_v10  ;;  %v10979_v35 = vsel %vm5182_vm15, %v5221_v16, 2147483647  ;;  %v5285_v9 = vshra.s32 %v10957_v36, 16  ;;  %v5300_v49 = vshra.s32 %v10962_v46, 16 }
 0xc2a   : > { %12382 = vst [vmem:[#allocation37_spill] sm:$0xff] %v10971_v28  ;;  %vm5214_vm14 = vcmp.le.f32.partialorder %v10688_v44, %v10971_v28  ;;  %5258 = vmin.xlane.f32.xlu0 %v10967_v45  ;;  %v10984_v61 = vcvt.s32.f32 %v5270_v40  ;;  %7119 = vmatpush3.bf16.msra.mxu1 %v7536_v0  ;;  %v2697_v37 = vmax.f32 %v2689_v39, 0.0  ;;  %v5315_v3 = vshra.s32 %v10979_v35, 16 }
 0xc2b   : > { %v5222_v60 = vsel %vm5214_vm14, %v8284_v1, 96  ;;  %v2681_v38 = vadd.f32 %v10788_v13, %v10791_v24  ;;  %v2694_v7 = vmax.f32 %v10869_v50, 0.0  ;;  %v2574_v5 = vadd.f32 %v10715_v12, %v10804_v25 }
 0xc2c   : > { %v10990_v10 = vsel %vm5182_vm15, %v5222_v60, 2147483647  ;;  %v10998_v4 = vcvt.s32.f32 %v5285_v9  ;;  %v2696_v0 = vmax.f32 %v2688_v22, 0.0  ;;  %v11001_v33 = vcvt.s32.f32 %v5300_v49  ;;  %v7538_v60 = vld [vmem:[%s12383_s15 + $0x10] sm:$0xff]   ;;  %v7539_v9 = vld [vmem:[%s12383_s15 + $0x8] sm:$0xff]   ;;  %v7540_v49 = vld [vmem:[%s12383_s15] sm:$0xff]  }
 0xc2d   : > { %5273 = vmin.xlane.f32.xlu1 %v10984_v61  ;;  %v5330_v39 = vshra.s32 %v10990_v10, 16  ;;  %v2678_v16 = vadd.f32 %v10755_v55, %v10791_v24  ;;  %v3772_v40 = vpack.c.bf16 %v2695_v20, %v2694_v7  ;;  %v2691_v13 = vadd.f32 %v2681_v38, %v2577_v32  ;;  %v7537_v32 = vld [vmem:[%s12383_s15 + $0x18] sm:$0xff]  }
 0xc2e   : > { %5288 = vmin.xlane.f32.xlu0 %v10998_v4  ;;  %v11007_v50 = vcvt.s32.f32 %v5315_v3  ;;  %v3773_v12 = vpack.c.bf16 %v2697_v37, %v2696_v0  ;;  %7096 = vmatprep.subr.bf16.mxu0 %v7537_v32 }
 0xc2f   : > { %v2690_v25 = vadd.f32 %v2678_v16, %v2574_v5  ;;  %v11012_v22 = vcvt.s32.f32 %v5330_v39  ;;  %v2699_v55 = vmax.f32 %v2691_v13, 0.0  ;;  %7097 = vmatpush3.bf16.msra.mxu0 %v7537_v32 }
 0xc30   : > { %7121 = vmatmul.mubr.msk.bf16.vlgmr.msra.gmra.mxu1 %vm2374_vm3, %v3772_v40  ;;  %7098 = vmatprep.subr.bf16.mxu0 %v7538_v60 }
 0xc31   : > { %5303 = vmin.xlane.f32.xlu1 %v11001_v33  ;;  %7124 = vmatprep.mubr.msk.bf16.mxu1 %vm2374_vm3, %v3773_v12  ;;  %v2698_v24 = vmax.f32 %v2690_v25, 0.0 }
 0xc32   : > { %5318 = vmin.xlane.f32.xlu0 %v11007_v50 }
 0xc33   : > { %v3774_v20 = vpack.c.bf16 %v2699_v55, %v2698_v24  ;;  %7099 = vmatpush3.bf16.msra.mxu0 %v7538_v60 }
 0xc34   : > { %7100 = vmatprep.subr.bf16.mxu0 %v7539_v9 }
 0xc35   : > { %5333 = vmin.xlane.f32.xlu1 %v11012_v22 }
 0xc37   : > { %7101 = vmatpush3.bf16.msra.mxu0 %v7539_v9 }
 0xc38   : > { %7125 = vmatmul.mubr.msk.bf16.gmra.mxu1 %vm2374_vm3, %v3774_v20  ;;  %7102 = vmatprep.subr.bf16.mxu0 %v7540_v49 }
 0xc3b   : > { %7103 = vmatpush3.bf16.msra.mxu0 %v7540_v49 }
 0xc89   : > { %v11021_v37 = vpop.xlane.xlu0 %4401 }
 0xc8a   : > { %vm4424_vm12 = vcmp.le.f32.partialorder %v10738_v15, %v11021_v37 }
 0xc8b   : > { %v4432_v3 = vsel %vm4424_vm12, %v8284_v1, 64 }
 0xc8c   : > { %v11027_v38 = vsel %vm2374_vm3, %v4432_v3, 2147483647 }
 0xc8d   : > { %v11031_v5 = vpop.xlane.xlu0 %4407  ;;  %v4442_v0 = vshra.s32 %v11027_v38, 16 }
 0xc8e   : > { %v11029_v7 = vpop.xlane.xlu1 %4404  ;;  %vm4426_vm4 = vcmp.le.f32.partialorder %v10761_v6, %v11031_v5 }
 0xc8f   : > { %vm4425_vm2 = vcmp.le.f32.partialorder %v10758_v23, %v11029_v7  ;;  %v4434_v15 = vsel %vm4426_vm4, %v8284_v1, 64  ;;  %v11040_v16 = vcvt.s32.f32 %v4442_v0 }
 0xc90   : > { %v4433_v39 = vsel %vm4425_vm2, %v8284_v1, 64  ;;  %v11046_v13 = vsel %vm2374_vm3, %v4434_v15, 2147483647 }
 0xc91   : > { %v11043_v40 = vsel %vm2374_vm3, %v4433_v39, 2147483647  ;;  %4445 = vmin.xlane.f32.xlu0 %v11040_v16  ;;  %v4472_v6 = vshra.s32 %v11046_v13, 16 }
 0xc92   : > { %v11048_v12 = vpop.xlane.xlu1 %4410  ;;  %v4457_v23 = vshra.s32 %v11043_v40, 16 }
 0xc93   : > { %vm4427_vm5 = vcmp.le.f32.partialorder %v10780_v43, %v11048_v12  ;;  %v11058_v24 = vcvt.s32.f32 %v4472_v6 }
 0xc94   : > { %v4435_v25 = vsel %vm4427_vm5, %v8284_v1, 64  ;;  %v11056_v55 = vcvt.s32.f32 %v4457_v23 }
 0xc95   : > { %v11061_v20 = vsel %vm2374_vm3, %v4435_v25, 2147483647  ;;  %4475 = vmin.xlane.f32.xlu0 %v11058_v24 }
 0xc96   : > { %4460 = vmin.xlane.f32.xlu1 %v11056_v55  ;;  %v4487_v32 = vshra.s32 %v11061_v20, 16 }
 0xc98   : > { %v11066_v60 = vcvt.s32.f32 %v4487_v32 }
 0xc9a   : > { %4490 = vmin.xlane.f32.xlu1 %v11066_v60 }
 0xca1   : > { %v11069_v43 = vpop.xlane.xlu0 %4413 }
 0xca2   : > { %vm4428_vm13 = vcmp.le.f32.partialorder %v10837_v41, %v11069_v43 }
 0xca3   : > { %v4436_v9 = vsel %vm4428_vm13, %v8284_v1, 64 }
 0xca4   : > { %v11075_v49 = vsel %vm2374_vm3, %v4436_v9, 2147483647 }
 0xca5   : > { %v4502_v3 = vshra.s32 %v11075_v49, 16 }
 0xca6   : > { %v11078_v0 = vpop.xlane.xlu1 %4416 }
 0xca7   : > { %vm4429_vm8 = vcmp.le.f32.partialorder %v10874_v14, %v11078_v0  ;;  %v11082_v39 = vpop.xlane.xlu0 %4419  ;;  %v11084_v15 = vcvt.s32.f32 %v4502_v3 }
 0xca8   : > { %v4437_v23 = vsel %vm4429_vm8, %v8284_v1, 64  ;;  %vm4430_vm10 = vcmp.le.f32.partialorder %v10882_v51, %v11082_v39  ;;  %v5224_v51 = vand.u32 65535, %v10887_v29 }
 0xca9   : > { %v11090_v41 = vsel %vm2374_vm3, %v4437_v23, 2147483647  ;;  %v4438_v6 = vsel %vm4430_vm10, %v8284_v1, 64  ;;  %4505 = vmin.xlane.f32.xlu0 %v11084_v15 }
 0xcaa   : > { %v11095_v25 = vsel %vm2374_vm3, %v4438_v6, 2147483647  ;;  %v4517_v14 = vshra.s32 %v11090_v41, 16 }
 0xcab   : > { %v4532_v32 = vshra.s32 %v11095_v25, 16 }
 0xcac   : > { %v11099_v9 = vpop.xlane.xlu1 %4422  ;;  %v11101_v3 = vcvt.s32.f32 %v4517_v14  ;;  %v5226_v14 = vcvt.s32.f32 %v5224_v51 }
 0xcad   : > { %vm4431_vm6 = vcmp.le.f32.partialorder %v10914_v34, %v11099_v9  ;;  %v11106_v23 = vcvt.s32.f32 %v4532_v32  ;;  %v5254_v34 = vand.u32 65535, %v10930_v18  ;;  %v5239_v32 = vand.u32 65535, %v10920_v26 }
 0xcae   : > { %v4439_v28 = vsel %vm4431_vm6, %v8284_v1, 64  ;;  %v11109_v8 = vpop.xlane.xlu0 %5228  ;;  %4520 = vmin.xlane.f32.xlu1 %v11101_v3  ;;  %v5284_v18 = vand.u32 65535, %v10957_v36  ;;  %v5314_v36 = vand.u32 65535, %v10979_v35 }
 0xcaf   : > { %v11113_v6 = vsel %vm2374_vm3, %v4439_v28, 2147483647  ;;  %vm5230_vm11 = vcmp.eq.f32.partialorder %v10933_v48, %v11109_v8  ;;  %4535 = vmin.xlane.f32.xlu0 %v11106_v23  ;;  %v5256_v48 = vcvt.s32.f32 %v5254_v34  ;;  %v5241_v26 = vcvt.s32.f32 %v5239_v32 }
 0xcb0   : > { %v4547_v29 = vshra.s32 %v11113_v6, 16  ;;  %v5231_v58 = vsel %vm5230_vm11, %v5226_v14, inf  ;;  %v5269_v28 = vand.u32 65535, %v10947_v21  ;;  %v5299_v21 = vand.u32 65535, %v10962_v46 }
 0xcb2   : > { %v11121_v53 = vpop.xlane.xlu1 %5243  ;;  %v11123_v30 = vcvt.s32.f32 %v4547_v29  ;;  %v5301_v35 = vcvt.s32.f32 %v5299_v21 }
 0xcb3   : > { %v11125_v27 = vpop.xlane.xlu0 %5258  ;;  %5232 = vmin.xlane.f32.xlu0 %v5231_v58  ;;  %vm5245_vm1 = vcmp.eq.f32.partialorder %v10959_v59, %v11121_v53  ;;  %v5286_v59 = vcvt.s32.f32 %v5284_v18 }
 0xcb4   : > { %vm5260_vm7 = vcmp.eq.f32.partialorder %v10967_v45, %v11125_v27  ;;  %4550 = vmin.xlane.f32.xlu1 %v11123_v30  ;;  %v5246_v58 = vsel %vm5245_vm1, %v5241_v26, inf  ;;  %v5271_v45 = vcvt.s32.f32 %v5269_v28 }
 0xcb5   : > { %v5261_v29 = vsel %vm5260_vm7, %v5256_v48, inf }
 0xcb6   : > { %v11134_v51 = vpop.xlane.xlu1 %5273 }
 0xcb7   : > { %v11136_v14 = vpop.xlane.xlu0 %5288  ;;  %5262 = vmin.xlane.f32.xlu0 %v5261_v29  ;;  %vm5275_vm9 = vcmp.eq.f32.partialorder %v10984_v61, %v11134_v51  ;;  %v5316_v61 = vcvt.s32.f32 %v5314_v36 }
 0xcb8   : > { %vm5290_vm14 = vcmp.eq.f32.partialorder %v10998_v4, %v11136_v14  ;;  %5247 = vmin.xlane.f32.xlu1 %v5246_v58  ;;  %v5276_v26 = vsel %vm5275_vm9, %v5271_v45, inf  ;;  %v5329_v4 = vand.u32 65535, %v10990_v10 }
 0xcb9   : > { %v5291_v32 = vsel %vm5290_vm14, %v5286_v59, inf  ;;  %v6791_v59 = vld [vmem:[%s12384_s16] ss:$0 sm:$0xff]  ;;  %s12411_s16 = sld [smem:[#allocation23_spill]] }
 0xcba   : > { %v11144_v34 = vpop.xlane.xlu1 %5303  ;;  %v5331_v29 = vcvt.s32.f32 %v5329_v4 }
 0xcbb   : > { %v11146_v48 = vpop.xlane.xlu0 %5318  ;;  %5292 = vmin.xlane.f32.xlu0 %v5291_v32  ;;  %vm5305_vm12 = vcmp.eq.f32.partialorder %v11001_v33, %v11144_v34 }
 0xcbc   : > { %vm5320_vm2 = vcmp.eq.f32.partialorder %v11007_v50, %v11146_v48  ;;  %5277 = vmin.xlane.f32.xlu1 %v5276_v26  ;;  %v5306_v28 = vsel %vm5305_vm12, %v5301_v35, inf }
 0xcbd   : > { %v5321_v18 = vsel %vm5320_vm2, %v5316_v61, inf }
 0xcbe   : > { %v11153_v46 = vpop.xlane.xlu1 %5333 }
 0xcbf   : > { %5322 = vmin.xlane.f32.xlu0 %v5321_v18  ;;  %vm5335_vm4 = vcmp.eq.f32.partialorder %v11012_v22, %v11153_v46 }
 0xcc0   : > { %5307 = vmin.xlane.f32.xlu1 %v5306_v28  ;;  %v5336_v33 = vsel %vm5335_vm4, %v5331_v29, inf }
 0xcc4   : > { %5337 = vmin.xlane.f32.xlu1 %v5336_v33 }
 0xcdc   : > { %v7090_v58 = vpop.f32.mrf.mxu1 }
 0xcdd   : > { %v3621_v32 = vadd.f32 %v7090_v58, %v6791_v59 }
 0xcde   : > { %v3612_v50 = vpop.f32.mrf.mxu1 }
 0xcdf   : > { %v3613_v36 = vadd.f32 %v6791_v59, %v3612_v50  ;;  %v3645_v18 = vmax.f32 %v3621_v32, 0.0 }
 0xce0   : > { %v7091_v45 = vpop.f32.mrf.mxu1 }
 0xce1   : > { %v3624_v21 = vadd.f32 %v7091_v45, %v6791_v59  ;;  %v3643_v61 = vmax.f32 %v3613_v36, 0.0 }
 0xce2   : > { %v3615_v10 = vpop.f32.mrf.mxu1 }
 0xce3   : > { %v3616_v26 = vadd.f32 %v6791_v59, %v3615_v10  ;;  %v3646_v57 = vmax.f32 %v3624_v21, 0.0 }
 0xce5   : > { %v3644_v35 = vmax.f32 %v3616_v26, 0.0  ;;  %v3652_v62 = vpack.c.bf16 %v3646_v57, %v3645_v18 }
 0xce7   : > { %v3651_v56 = vpack.c.bf16 %v3644_v35, %v3643_v61  ;;  %v4456_v61 = vand.u32 65535, %v11043_v40  ;;  %v4471_v35 = vand.u32 65535, %v11046_v13 }
 0xce8   : > { %v7094_v22 = vpop.f32.mrf.mxu1 }
 0xce9   : > { %7104 = vmatprep.mubr.msk.bf16.mxu0 %vm2374_vm3, %v3651_v56  ;;  %v3637_v50 = vadd.f32 %v7094_v22, %v6791_v59  ;;  %v4441_v56 = vand.u32 65535, %v11027_v38  ;;  %v4458_v22 = vcvt.s32.f32 %v4456_v61  ;;  %v4486_v38 = vand.u32 65535, %v11061_v20 }
 0xcea   : > { %7105 = vmatmul.mubr.msk.bf16.vlgmr.msra.gmra.mxu0 %vm2374_vm3, %v3652_v62  ;;  %v3628_v4 = vpop.f32.mrf.mxu1  ;;  %v4501_v20 = vand.u32 65535, %v11075_v49  ;;  %v5265_v61 = vcvt.f32.s32 %v11125_v27 }
 0xceb   : > { %v3629_v29 = vadd.f32 %v6791_v59, %v3628_v4  ;;  %v3649_v36 = vmax.f32 %v3637_v50, 0.0  ;;  %v4443_v62 = vcvt.s32.f32 %v4441_v56  ;;  %v4473_v4 = vcvt.s32.f32 %v4471_v35 }
 0xcec   : > { %v7095_v28 = vpop.f32.mrf.mxu1  ;;  %v4516_v50 = vand.u32 65535, %v11090_v41  ;;  %v4546_v41 = vand.u32 65535, %v11113_v6 }
 0xced   : > { %v3640_v33 = vadd.f32 %v7095_v28, %v6791_v59  ;;  %v3647_v10 = vmax.f32 %v3629_v29, 0.0  ;;  %v4488_v28 = vcvt.s32.f32 %v4486_v38 }
 0xcee   : > { %v3631_v45 = vpop.f32.mrf.mxu1  ;;  %v4518_v49 = vcvt.s32.f32 %v4516_v50  ;;  %v4548_v6 = vcvt.s32.f32 %v4546_v41 }
 0xcef   : > { %v3632_v58 = vadd.f32 %v6791_v59, %v3631_v45  ;;  %v3650_v11 = vmax.f32 %v3640_v33, 0.0  ;;  %v7541_v33 = vld [vmem:[%s8335_s0 + $0x18] sm:$0xff]   ;;  %v4531_v45 = vand.u32 65535, %v11095_v25  ;;  %v5235_v25 = vcvt.f32.s32 %v11109_v8 }
 0xcf0   : > { %7128 = vmatprep.subr.bf16.mxu0 %v7541_v33  ;;  %v5250_v8 = vcvt.f32.s32 %v11121_v53  ;;  %v5280_v53 = vcvt.f32.s32 %v11134_v51  ;;  %v5325_v51 = vcvt.f32.s32 %v11146_v48 }
 0xcf1   : > { %v3648_v21 = vmax.f32 %v3632_v58, 0.0  ;;  %v3654_v32 = vpack.c.bf16 %v3650_v11, %v3649_v36  ;;  %7129 = vmatpush3.bf16.msra.mxu0 %v7541_v33  ;;  %v4533_v36 = vcvt.s32.f32 %v4531_v45  ;;  %v5310_v45 = vcvt.f32.s32 %v11144_v34 }
 0xcf3   : > { %v3653_v26 = vpack.c.bf16 %v3648_v21, %v3647_v10 }
 0xcf5   : > { %7108 = vmatprep.mubr.msk.bf16.mxu0 %vm2374_vm3, %v3653_v26 }
 0xcf6   : > { %7109 = vmatmul.mubr.msk.bf16.gmra.mxu0 %vm2374_vm3, %v3654_v32 }
 0xd1a   : > { %v11163_v57 = vpop.xlane.xlu0 %4445 }
 0xd1b   : > { %vm4447_vm5 = vcmp.eq.f32.partialorder %v11040_v16, %v11163_v57 }
 0xd1c   : > { %v4448_v59 = vsel %vm4447_vm5, %v4443_v62, inf  ;;  %v7544_v62 = vld [vmem:[%s8335_s0] sm:$0xff]  }
 0xd1d   : > { %4449 = vmin.xlane.f32.xlu0 %v4448_v59 }
 0xd1e   : > { %v11171_v11 = vpop.xlane.xlu0 %4475 }
 0xd1f   : > { %v11169_v18 = vpop.xlane.xlu1 %4460  ;;  %vm4477_vm8 = vcmp.eq.f32.partialorder %v11058_v24, %v11171_v11  ;;  %v4503_v24 = vcvt.s32.f32 %v4501_v20 }
 0xd20   : > { %vm4462_vm13 = vcmp.eq.f32.partialorder %v11056_v55, %v11169_v18  ;;  %v4478_v13 = vsel %vm4477_vm8, %v4473_v4, inf  ;;  %v5295_v4 = vcvt.f32.s32 %v11136_v14 }
 0xd21   : > { %v4463_v40 = vsel %vm4462_vm13, %v4458_v22, inf  ;;  %4479 = vmin.xlane.f32.xlu0 %v4478_v13 }
 0xd22   : > { %4464 = vmin.xlane.f32.xlu1 %v4463_v40  ;;  %v5266_v40 = vshll.u32 %v5265_v61, 16  ;;  %v5296_v33 = vshll.u32 %v5295_v4, 16 }
 0xd23   : > { %v11178_v16 = vpop.xlane.xlu1 %4490 }
 0xd24   : > { %vm4492_vm10 = vcmp.eq.f32.partialorder %v11066_v60, %v11178_v16  ;;  %v7542_v60 = vld [vmem:[%s8335_s0 + $0x10] sm:$0xff]  }
 0xd25   : > { %v4493_v29 = vsel %vm4492_vm10, %v4488_v28, inf  ;;  %7130 = vmatprep.subr.bf16.mxu0 %v7542_v60  ;;  %v5251_v28 = vshll.u32 %v5250_v8, 16 }
 0xd26   : > { %4494 = vmin.xlane.f32.xlu1 %v4493_v29  ;;  %7131 = vmatpush3.bf16.msra.mxu0 %v7542_v60  ;;  %v5281_v60 = vshll.u32 %v5280_v53, 16  ;;  %v4568_v53 = vadd.f32 1e-08, %v11021_v37 }
 0xd28   : > { %7726 = vrcp.f32 %v4568_v53 }
 0xd32   : > { %v11184_v55 = vpop.xlane.xlu0 %4505 }
 0xd33   : > { %vm4507_vm6 = vcmp.eq.f32.partialorder %v11084_v15, %v11184_v55  ;;  %v7543_v15 = vld [vmem:[%s8335_s0 + $0x8] sm:$0xff]   ;;  %s12403_s0 = sld [smem:[#allocation13_spill]] }
 0xd34   : > { %v4508_v58 = vsel %vm4507_vm6, %v4503_v24, inf  ;;  %7132 = vmatprep.subr.bf16.mxu0 %v7543_v15 }
 0xd35   : > { %4509 = vmin.xlane.f32.xlu0 %v4508_v58  ;;  %7133 = vmatpush3.bf16.msra.mxu0 %v7543_v15 }
 0xd36   : > { %7134 = vmatprep.subr.bf16.mxu0 %v7544_v62 }
 0xd37   : > { %v11191_v10 = vpop.xlane.xlu1 %4520 }
 0xd38   : > { %vm4522_vm11 = vcmp.eq.f32.partialorder %v11101_v3, %v11191_v10  ;;  %v11195_v21 = vpop.xlane.xlu0 %4535  ;;  %v5236_v3 = vshll.u32 %v5235_v25, 16 }
 0xd39   : > { %vm4537_vm1 = vcmp.eq.f32.partialorder %v11106_v23, %v11195_v21  ;;  %v4523_v26 = vsel %vm4522_vm11, %v4518_v49, inf  ;;  %7135 = vmatpush3.bf16.msra.mxu0 %v7544_v62 }
 0xd3a   : > { %4524 = vmin.xlane.f32.xlu1 %v4523_v26  ;;  %v4538_v32 = vsel %vm4537_vm1, %v4533_v36, inf }
 0xd3b   : > { %4539 = vmin.xlane.f32.xlu0 %v4538_v32  ;;  %v5326_v32 = vshll.u32 %v5325_v51, 16 }
 0xd3c   : > { %v5233_v56 = vpop.xlane.xlu0 %5232 }
 0xd3d   : > { %v11204_v35 = vpop.xlane.xlu1 %4550  ;;  %v5234_v59 = vcvt.f32.s32 %v5233_v56 }
 0xd3e   : > { %vm4552_vm7 = vcmp.eq.f32.partialorder %v11123_v30, %v11204_v35 }
 0xd3f   : > { %v11209_v23 = vadd.s32 %v5236_v3, %v5234_v59  ;;  %v4553_v22 = vsel %vm4552_vm7, %v4548_v6, inf }
 0xd40   : > { %4554 = vmin.xlane.f32.xlu1 %v4553_v22  ;;  %v5263_v38 = vpop.xlane.xlu0 %5262 }
 0xd41   : > { %vm5343_vm9 = vcmp.eq.s32.totalorder %v8284_v1, %v11209_v23  ;;  %v5248_v27 = vpop.xlane.xlu1 %5247  ;;  %v5264_v13 = vcvt.f32.s32 %v5263_v38 }
 0xd42   : > { %v5249_v29 = vcvt.f32.s32 %v5248_v27  ;;  %v11219_v30 = vsel %vm5343_vm9, 1e+10, %v10629_v2 }
 0xd43   : > { %v11221_v20 = vadd.s32 %v5266_v40, %v5264_v13  ;;  %v5391_v14 = vsel %vm5182_vm15, %v11219_v30, inf }
 0xd44   : > { %v11225_v24 = vadd.s32 %v5251_v28, %v5249_v29  ;;  %5392 = vmin.xlane.f32.xlu0 %v5391_v14  ;;  %v5293_v50 = vpop.xlane.xlu0 %5292  ;;  %v4569_v29 = vadd.f32 1e-08, %v11029_v7  ;;  %v4570_v14 = vadd.f32 1e-08, %v11031_v5  ;;  %v7727_v5 = vpop.eup %7726 }
 0xd45   : > { %vm5345_vm14 = vcmp.eq.s32.totalorder %v8284_v1, %v11221_v20  ;;  %v5278_v58 = vpop.xlane.xlu1 %5277  ;;  %v5294_v2 = vcvt.f32.s32 %v5293_v50  ;;  %v4452_v50 = vcvt.f32.s32 %v11163_v57 }
 0xd46   : > { %vm5344_vm12 = vcmp.eq.s32.totalorder %v8284_v1, %v11225_v24  ;;  %v5279_v49 = vcvt.f32.s32 %v5278_v58  ;;  %v11237_v36 = vsel %vm5345_vm14, 1e+10, %v10651_v17  ;;  %v5311_v17 = vshll.u32 %v5310_v45, 16 }
 0xd47   : > { %v11239_v15 = vadd.s32 %v5296_v33, %v5294_v2  ;;  %v11245_v34 = vsel %vm5344_vm12, 1e+10, %v10645_v52  ;;  %v5397_v48 = vsel %vm5182_vm15, %v11237_v36, inf  ;;  %v5340_v52 = vcvt.f32.s32 %v11153_v46 }
 0xd48   : > { %v11249_v41 = vadd.s32 %v5281_v60, %v5279_v49  ;;  %v5394_v25 = vsel %vm5182_vm15, %v11245_v34, inf  ;;  %5398 = vmin.xlane.f32.xlu0 %v5397_v48  ;;  %v5323_v26 = vpop.xlane.xlu0 %5322  ;;  %7728 = vrcp.f32 %v4569_v29  ;;  %v4571_v33 = vadd.f32 1e-08, %v11048_v12 }
 0xd49   : > { %vm5347_vm2 = vcmp.eq.s32.totalorder %v8284_v1, %v11239_v15  ;;  %5395 = vmin.xlane.f32.xlu1 %v5394_v25  ;;  %v5308_v56 = vpop.xlane.xlu1 %5307  ;;  %v5324_v62 = vcvt.f32.s32 %v5323_v26  ;;  %v5341_v4 = vshll.u32 %v5340_v52, 16  ;;  %7730 = vrcp.f32 %v4570_v14 }
 0xd4a   : > { %vm5346_vm4 = vcmp.eq.s32.totalorder %v8284_v1, %v11249_v41  ;;  %v5309_v3 = vcvt.f32.s32 %v5308_v56  ;;  %v11262_v61 = vsel %vm5347_vm2, 1e+10, %v10671_v42  ;;  %7732 = vrcp.f32 %v4571_v33  ;;  %v12388_v33 = vld [vmem:[#allocation67_spill] sm:$0xff] }
 0xd4b   : > { %v11264_v59 = vadd.s32 %v5326_v32, %v5324_v62  ;;  %v11270_v6 = vsel %vm5346_vm4, 1e+10, %v10667_v47  ;;  %v5403_v46 = vsel %vm5182_vm15, %v11262_v61, inf  ;;  %v4482_v45 = vcvt.f32.s32 %v11171_v11 }
 0xd4c   : > { %v11274_v8 = vadd.s32 %v5311_v17, %v5309_v3  ;;  %v5400_v22 = vsel %vm5182_vm15, %v11270_v6, inf  ;;  %5404 = vmin.xlane.f32.xlu0 %v5403_v46  ;;  %v4453_v58 = vshll.u32 %v4452_v50, 16  ;;  %v4497_v25 = vcvt.f32.s32 %v11178_v16  ;;  %v12385_v17 = vld [vmem:[#allocation69_spill] sm:$0xff] }
 0xd4d   : > { %vm5349_vm5 = vcmp.eq.s32.totalorder %v8284_v1, %v11264_v59  ;;  %5401 = vmin.xlane.f32.xlu1 %v5400_v22  ;;  %v5338_v42 = vpop.xlane.xlu1 %5337  ;;  %v4483_v7 = vshll.u32 %v4482_v45, 16 }
 0xd4e   : > { %vm5348_vm13 = vcmp.eq.s32.totalorder %v8284_v1, %v11274_v8  ;;  %v5339_v47 = vcvt.f32.s32 %v5338_v42  ;;  %v11286_v38 = vsel %vm5349_vm5, 1e+10, %v10681_v63  ;;  %v4498_v3 = vshll.u32 %v4497_v25, 16  ;;  %v12386_v42 = vld [vmem:[#allocation62_spill] sm:$0xff] }
 0xd4f   : > { %v11292_v40 = vsel %vm5348_vm13, 1e+10, %v10677_v19  ;;  %v5409_v27 = vsel %vm5182_vm15, %v11286_v38, inf }
 0xd50   : > { %v11296_v13 = vadd.s32 %v5341_v4, %v5339_v47  ;;  %v5406_v28 = vsel %vm5182_vm15, %v11292_v40, inf  ;;  %5410 = vmin.xlane.f32.xlu0 %v5409_v27  ;;  %v12387_v47 = vld [vmem:[#allocation65_spill] sm:$0xff] }
 0xd51   : > { %5407 = vmin.xlane.f32.xlu1 %v5406_v28 }
 0xd52   : > { %vm5350_vm8 = vcmp.eq.s32.totalorder %v8284_v1, %v11296_v13 }
 0xd53   : > { %v11306_v63 = vsel %vm5350_vm8, 1e+10, %v10688_v44  ;;  %v4467_v44 = vcvt.f32.s32 %v11169_v18 }
 0xd54   : > { %v5412_v19 = vsel %vm5182_vm15, %v11306_v63, inf }
 0xd55   : > { %5413 = vmin.xlane.f32.xlu1 %v5412_v19  ;;  %v4468_v60 = vshll.u32 %v4467_v44, 16  ;;  %v7729_v56 = vpop.eup %7728  ;;  %v4572_v19 = vadd.f32 1e-08, %v11069_v43  ;;  %v4573_v44 = vadd.f32 1e-08, %v11078_v0  ;;  %v4542_v0 = vcvt.f32.s32 %v11195_v21 }
 0xd56   : > { %v7731_v52 = vpop.eup %7730  ;;  %v4574_v43 = vadd.f32 1e-08, %v11082_v39 }
 0xd57   : > { %v7733_v53 = vpop.eup %7732  ;;  %7734 = vrcp.f32 %v4572_v19 }
 0xd58   : > { %7736 = vrcp.f32 %v4573_v44 }
 0xd59   : > { %7738 = vrcp.f32 %v4574_v43 }
 0xda6   : > { %v4450_v51 = vpop.xlane.xlu0 %4449 }
 0xda7   : > { %v4451_v2 = vcvt.f32.s32 %v4450_v51  ;;  %v4512_v51 = vcvt.f32.s32 %v11184_v55 }
 0xda9   : > { %v4454_v37 = vadd.s32 %v4453_v58, %v4451_v2  ;;  %v4575_v58 = vadd.f32 1e-08, %v11099_v9 }
 0xdaa   : > { %v4480_v48 = vpop.xlane.xlu0 %4479 }
 0xdab   : > { %v4465_v49 = vpop.xlane.xlu1 %4464  ;;  %vm4560_vm10 = vcmp.eq.s32.totalorder %v8284_v1, %v4454_v37  ;;  %v4481_v57 = vcvt.f32.s32 %v4480_v48  ;;  %v4513_v37 = vshll.u32 %v4512_v51, 16  ;;  %7740 = vrcp.f32 %v4575_v58  ;;  %v7735_v48 = vpop.eup %7734 }
 0xdac   : > { %v4466_v12 = vcvt.f32.s32 %v4465_v49  ;;  %v4584_v26 = vsel %vm4560_vm10, %v7727_v5, 0.0 }
 0xdad   : > { %v11320_v18 = vadd.f32 %v4584_v26, %v12385_v17  ;;  %v4484_v32 = vadd.s32 %v4483_v7, %v4481_v57  ;;  %v4527_v7 = vcvt.f32.s32 %v11191_v10  ;;  %v4543_v57 = vshll.u32 %v4542_v0, 16 }
 0xdae   : > { %v4469_v11 = vadd.s32 %v4468_v60, %v4466_v12  ;;  %v4557_v17 = vcvt.f32.s32 %v11204_v35 }
 0xdaf   : > { %v4495_v62 = vpop.xlane.xlu1 %4494  ;;  %vm4562_vm11 = vcmp.eq.s32.totalorder %v8284_v1, %v4484_v32  ;;  %v4528_v5 = vshll.u32 %v4527_v7, 16  ;;  %v7737_v32 = vpop.eup %7736 }
 0xdb0   : > { %vm4561_vm6 = vcmp.eq.s32.totalorder %v8284_v1, %v4469_v11  ;;  %v4496_v46 = vcvt.f32.s32 %v4495_v62  ;;  %v4586_v22 = vsel %vm4562_vm11, %v7731_v52, 0.0  ;;  %v7739_v21 = vpop.eup %7738  ;;  %v4558_v52 = vshll.u32 %v4557_v17, 16 }
 0xdb1   : > { %v4585_v16 = vsel %vm4561_vm6, %v7729_v56, 0.0  ;;  %v11328_v27 = vadd.f32 %v4586_v22, %v12387_v47 }
 0xdb2   : > { %v11325_v4 = vadd.f32 %v4585_v16, %v12386_v42  ;;  %v4499_v28 = vadd.s32 %v4498_v3, %v4496_v46  ;;  %v12389_v16 = vld [vmem:[#allocation30_spill] sm:$0xff] }
 0xdb4   : > { %v4624_v29 = vpack.c.bf16 %v11325_v4, %v11320_v18  ;;  %vm4563_vm1 = vcmp.eq.s32.totalorder %v8284_v1, %v4499_v28 }
 0xdb5   : > { %v4587_v14 = vsel %vm4563_vm1, %v7733_v53, 0.0  ;;  %v12390_v53 = vld [vmem:[#allocation31_spill] sm:$0xff] }
 0xdb6   : > { %v11335_v50 = vadd.f32 %v4587_v14, %v12388_v33  ;;  %7136 = vmatprep.mubr.msk.bf16.mxu0 %vm2374_vm3, %v4624_v29 }
 0xdb8   : > { %v4625_v45 = vpack.c.bf16 %v11335_v50, %v11328_v27  ;;  %v7741_v28 = vpop.eup %7740 }
 0xdba   : > { %7137 = vmatmul.mubr.msk.bf16.vlgmr.msra.gmra.mxu0 %vm2374_vm3, %v4625_v45 }
 0xdbe   : > { %v4510_v2 = vpop.xlane.xlu0 %4509 }
 0xdbf   : > { %v4511_v60 = vcvt.f32.s32 %v4510_v2 }
 0xdc1   : > { %v4514_v49 = vadd.s32 %v4513_v37, %v4511_v60 }
 0xdc3   : > { %vm4564_vm7 = vcmp.eq.s32.totalorder %v8284_v1, %v4514_v49  ;;  %v4525_v39 = vpop.xlane.xlu1 %4524 }
 0xdc4   : > { %v4588_v25 = vsel %vm4564_vm7, %v7735_v48, 0.0  ;;  %v4526_v12 = vcvt.f32.s32 %v4525_v39  ;;  %v4540_v55 = vpop.xlane.xlu0 %4539 }
 0xdc5   : > { %v11349_v9 = vadd.f32 %v4588_v25, %v10853_v31  ;;  %v4541_v26 = vcvt.f32.s32 %v4540_v55 }
 0xdc6   : > { %v4529_v10 = vadd.s32 %v4528_v5, %v4526_v12 }
 0xdc7   : > { %v4544_v11 = vadd.s32 %v4543_v57, %v4541_v26 }
 0xdc8   : > { %vm4565_vm10 = vcmp.eq.s32.totalorder %v8284_v1, %v4529_v10 }
 0xdc9   : > { %v4589_v56 = vsel %vm4565_vm10, %v7737_v32, 0.0  ;;  %vm4566_vm6 = vcmp.eq.s32.totalorder %v8284_v1, %v4544_v11  ;;  %v4555_v62 = vpop.xlane.xlu1 %4554 }
 0xdca   : > { %v11355_v3 = vadd.f32 %v4589_v56, %v10889_v54  ;;  %v4590_v46 = vsel %vm4566_vm6, %v7739_v21, 0.0  ;;  %v4556_v31 = vcvt.f32.s32 %v4555_v62 }
 0xdcb   : > { %v11358_v22 = vadd.f32 %v4590_v46, %v12389_v16 }
 0xdcc   : > { %v4626_v35 = vpack.c.bf16 %v11355_v3, %v11349_v9  ;;  %v4559_v42 = vadd.s32 %v4558_v52, %v4556_v31 }
 0xdcd   : > { %v11362_v47 = vpop.xlane.xlu0 %5392 }
 0xdce   : > { %vm4567_vm11 = vcmp.eq.s32.totalorder %v8284_v1, %v4559_v42  ;;  %vm5415_vm1 = vcmp.le.f32.partialorder %v11219_v30, %v11362_v47  ;;  %7140 = vmatprep.mubr.msk.bf16.mxu0 %vm2374_vm3, %v4626_v35 }
 0xdcf   : > { %v4591_v54 = vsel %vm4567_vm11, %v7741_v28, 0.0  ;;  %v5423_v19 = vsel %vm5415_vm1, %v8284_v1, 96 }
 0xdd0   : > { %v11370_v29 = vadd.f32 %v4591_v54, %v12390_v53  ;;  %v5431_v14 = vsel %vm5182_vm15, %v5423_v19, 2147483647 }
 0xdd1   : > { %v5433_v33 = vshra.s32 %v5431_v14, 16  ;;  %v11373_v44 = vpop.xlane.xlu0 %5398 }
 0xdd2   : > { %v4627_v45 = vpack.c.bf16 %v11370_v29, %v11358_v22  ;;  %v11377_v43 = vpop.xlane.xlu1 %5395  ;;  %vm5417_vm7 = vcmp.le.f32.partialorder %v11237_v36, %v11373_v44 }
 0xdd3   : > { %vm5416_vm10 = vcmp.le.f32.partialorder %v11245_v34, %v11377_v43  ;;  %v5425_v51 = vsel %vm5417_vm7, %v8284_v1, 96  ;;  %v5435_v58 = vcvt.s32.f32 %v5433_v33 }
 0xdd4   : > { %v5424_v2 = vsel %vm5416_vm10, %v8284_v1, 96  ;;  %v11386_v37 = vsel %vm5182_vm15, %v5425_v51, 2147483647  ;;  %7141 = vmatmul.mubr.msk.bf16.gmra.mxu0 %vm2374_vm3, %v4627_v45  ;;  %v5432_v45 = vand.u32 65535, %v5431_v14 }
 0xdd5   : > { %v5446_v60 = vsel %vm5182_vm15, %v5424_v2, 2147483647  ;;  %v5463_v7 = vshra.s32 %v11386_v37, 16  ;;  %5436 = vmin.xlane.f32.xlu0 %v5435_v58  ;;  %v11391_v0 = vpop.xlane.xlu0 %5404  ;;  %v5462_v14 = vand.u32 65535, %v11386_v37 }
 0xdd6   : > { %v5448_v49 = vshra.s32 %v5446_v60, 16  ;;  %v11393_v48 = vpop.xlane.xlu1 %5401  ;;  %vm5419_vm6 = vcmp.le.f32.partialorder %v11262_v61, %v11391_v0  ;;  %v5434_v2 = vcvt.s32.f32 %v5432_v45 }
 0xdd7   : > { %vm5418_vm11 = vcmp.le.f32.partialorder %v11270_v6, %v11393_v48  ;;  %v5427_v39 = vsel %vm5419_vm6, %v8284_v1, 96  ;;  %v5465_v5 = vcvt.s32.f32 %v5463_v7  ;;  %v5447_v7 = vand.u32 65535, %v5446_v60 }
 0xdd8   : > { %v5426_v25 = vsel %vm5418_vm11, %v8284_v1, 96  ;;  %v11402_v12 = vsel %vm5182_vm15, %v5427_v39, 2147483647  ;;  %v5450_v55 = vcvt.s32.f32 %v5448_v49 }
 0xdd9   : > { %v11405_v57 = vsel %vm5182_vm15, %v5426_v25, 2147483647  ;;  %v5493_v26 = vshra.s32 %v11402_v12, 16  ;;  %5466 = vmin.xlane.f32.xlu0 %v5465_v5  ;;  %v11408_v17 = vpop.xlane.xlu0 %5410  ;;  %v5449_v25 = vcvt.s32.f32 %v5447_v7 }
 0xdda   : > { %v5478_v10 = vshra.s32 %v11405_v57, 16  ;;  %5451 = vmin.xlane.f32.xlu1 %v5450_v55  ;;  %v11411_v11 = vpop.xlane.xlu1 %5407  ;;  %vm5421_vm1 = vcmp.le.f32.partialorder %v11286_v38, %v11408_v17  ;;  %v5477_v37 = vand.u32 65535, %v11405_v57 }
 0xddb   : > { %vm5420_vm7 = vcmp.le.f32.partialorder %v11292_v40, %v11411_v11  ;;  %v5429_v32 = vsel %vm5421_vm1, %v8284_v1, 96  ;;  %v5495_v21 = vcvt.s32.f32 %v5493_v26 }
 0xddc   : > { %v5428_v56 = vsel %vm5420_vm7, %v8284_v1, 96  ;;  %v11420_v62 = vsel %vm5182_vm15, %v5429_v32, 2147483647  ;;  %v5480_v52 = vcvt.s32.f32 %v5478_v10  ;;  %v4600_v10 = vsel %vm2374_vm3, %v11320_v18, 0.0 }
 0xddd   : > { %v5506_v46 = vsel %vm5182_vm15, %v5428_v56, 2147483647  ;;  %v5523_v31 = vshra.s32 %v11420_v62, 16  ;;  %5496 = vmin.xlane.f32.xlu0 %v5495_v21  ;;  %v5492_v56 = vand.u32 65535, %v11402_v12  ;;  %v5464_v18 = vcvt.s32.f32 %v5462_v14  ;;  %v12393_v14 = vld [vmem:[#allocation68_spill] sm:$0xff] }
 0xdde   : > { %v5508_v16 = vshra.s32 %v5506_v46, 16  ;;  %5481 = vmin.xlane.f32.xlu1 %v5480_v52  ;;  %v11424_v35 = vpop.xlane.xlu1 %5413  ;;  %v5479_v12 = vcvt.s32.f32 %v5477_v37  ;;  %v5560_v37 = vadd.f32 1e-08, %v11377_v43 }
 0xddf   : > { %vm5422_vm10 = vcmp.le.f32.partialorder %v11306_v63, %v11424_v35  ;;  %v11428_v42 = vcvt.s32.f32 %v5523_v31 }
 0xde0   : > { %v5430_v28 = vsel %vm5422_vm10, %v8284_v1, 96  ;;  %v5510_v54 = vcvt.s32.f32 %v5508_v16 }
 0xde1   : > { %v11432_v19 = vsel %vm5182_vm15, %v5430_v28, 2147483647  ;;  %5526 = vmin.xlane.f32.xlu0 %v11428_v42 }
 0xde2   : > { %v5538_v53 = vshra.s32 %v11432_v19, 16  ;;  %5511 = vmin.xlane.f32.xlu1 %v5510_v54  ;;  %v5537_v7 = vand.u32 65535, %v11432_v19  ;;  %v11489_v19 = vld [vmem:[%s12392_s22 + $0x18] sm:$0xff]  }
 0xde4   : > { %v11436_v33 = vcvt.s32.f32 %v5538_v53 }
 0xde6   : > { %5541 = vmin.xlane.f32.xlu1 %v11436_v33 }
 0xe5e   : > { %v11439_v51 = vpop.xlane.xlu0 %5436 }
 0xe5f   : > { %vm5438_vm6 = vcmp.eq.f32.partialorder %v5435_v58, %v11439_v51  ;;  %v4606_v58 = vsel %vm2374_vm3, %v11328_v27, 0.0  ;;  %v4609_v27 = vsel %vm2374_vm3, %v11335_v50, 0.0 }
 0xe60   : > { %v5439_v49 = vsel %vm5438_vm6, %v5434_v2, inf }
 0xe61   : > { %5440 = vmin.xlane.f32.xlu0 %v5439_v49 }
 0xe62   : > { %v11445_v26 = vpop.xlane.xlu0 %5466 }
 0xe63   : > { %v11442_v39 = vpop.xlane.xlu1 %5451  ;;  %vm5468_vm1 = vcmp.eq.f32.partialorder %v5465_v5, %v11445_v26  ;;  %v5507_v5 = vand.u32 65535, %v5506_v46  ;;  %v4618_v46 = vsel %vm2374_vm3, %v11358_v22, 0.0  ;;  %v4621_v22 = vsel %vm2374_vm3, %v11370_v29, 0.0 }
 0xe64   : > { %vm5453_vm11 = vcmp.eq.f32.partialorder %v5450_v55, %v11442_v39  ;;  %v4603_v55 = vsel %vm2374_vm3, %v11325_v4, 0.0  ;;  %v5469_v16 = vsel %vm5468_vm1, %v5464_v18, inf  ;;  %v5494_v4 = vcvt.s32.f32 %v5492_v56  ;;  %v12394_v56 = vld [vmem:[#allocation71_spill] sm:$0xff] }
 0xe65   : > { %v5454_v32 = vsel %vm5453_vm11, %v5449_v25, inf  ;;  %4601 = vadd.xlane.f32.xlu0 %v4600_v10  ;;  %v5509_v57 = vcvt.s32.f32 %v5507_v5  ;;  %v7545_v25 = vld [vmem:[%s12391_s18 + $0x8] sm:$0xff]   ;;  %v7546_v10 = vld [vmem:[%s12391_s18] sm:$0xff]   ;;  %v5352_v18 = vadd.f32 1e-08, %v12394_v56 }
 0xe66   : > { %5455 = vmin.xlane.f32.xlu1 %v5454_v32  ;;  %v11458_v31 = vpop.xlane.xlu0 %5496  ;;  %7144 = vmatprep.subr.bf16.mxu1 %v7545_v25  ;;  %v11492_v32 = vpop.f32.mrf.mxu0 }
 0xe67   : > { %v11453_v60 = vpop.xlane.xlu1 %5481  ;;  %vm5498_vm7 = vcmp.eq.f32.partialorder %v5495_v21, %v11458_v31  ;;  %v4612_v21 = vsel %vm2374_vm3, %v11349_v9, 0.0  ;;  %7145 = vmatpush3.bf16.msra.mxu1 %v7545_v25  ;;  %v5503_v24 = vcvt.f32.s32 %v11458_v31  ;;  %v5565_v31 = vadd.f32 1e-08, %v11408_v17 }
 0xe68   : > { %vm5483_vm10 = vcmp.eq.f32.partialorder %v5480_v52, %v11453_v60  ;;  %v5499_v53 = vsel %vm5498_vm7, %v5494_v4, inf  ;;  %v5522_v52 = vand.u32 65535, %v11420_v62  ;;  %7146 = vmatprep.subr.bf16.mxu1 %v7546_v10  ;;  %v11494_v29 = vpop.f32.mrf.mxu0  ;;  %v12395_v4 = vld [vmem:[#allocation72_spill] sm:$0xff] }
 0xe69   : > { %4607 = vadd.xlane.f32.xlu0 %v4606_v58  ;;  %v5484_v45 = vsel %vm5483_vm10, %v5479_v12, inf  ;;  %v5559_v58 = vadd.f32 1e-08, %v11362_v47  ;;  %v5353_v5 = vadd.f32 1e-08, %v12395_v4  ;;  %v5473_v4 = vcvt.f32.s32 %v11445_v26 }
 0xe6a   : > { %4604 = vadd.xlane.f32.xlu1 %v4603_v55  ;;  %v11471_v2 = vpop.xlane.xlu0 %5526  ;;  %v5524_v9 = vcvt.s32.f32 %v5522_v52  ;;  %v11498_v55 = vpop.f32.mrf.mxu0 }
 0xe6b   : > { %v11465_v28 = vpop.xlane.xlu1 %5511  ;;  %vm5528_vm11 = vcmp.eq.f32.partialorder %v11428_v42, %v11471_v2  ;;  %v5539_v42 = vcvt.s32.f32 %v5537_v7  ;;  %7147 = vmatpush3.bf16.msra.mxu1 %v7546_v10 }
 0xe6c   : > { %vm5513_vm6 = vcmp.eq.f32.partialorder %v5510_v54, %v11465_v28  ;;  %v4615_v54 = vsel %vm2374_vm3, %v11355_v3, 0.0  ;;  %v5529_v49 = vsel %vm5528_vm11, %v5524_v9, inf  ;;  %7168 = vmatprep.subr.bf16.mxu1 %v11489_v19 }
 0xe6d   : > { %5470 = vmin.xlane.f32.xlu0 %v5469_v16  ;;  %v5514_v50 = vsel %vm5513_vm6, %v5509_v57, inf  ;;  %v11502_v16 = vpop.f32.mrf.mxu0 }
 0xe6e   : > { %4610 = vadd.xlane.f32.xlu1 %v4609_v27  ;;  %v5443_v27 = vcvt.f32.s32 %v11439_v51  ;;  %v5563_v51 = vadd.f32 1e-08, %v11391_v0 }
 0xe6f   : > { %v11480_v62 = vpop.xlane.xlu1 %5541  ;;  %v11506_v12 = vpop.f32.mrf.mxu0 }
 0xe70   : > { %vm5543_vm1 = vcmp.eq.f32.partialorder %v11436_v33, %v11480_v62  ;;  %v5351_v33 = vadd.f32 1e-08, %v12393_v14  ;;  %v5444_v52 = vshll.u32 %v5443_v27, 16  ;;  %v5564_v27 = vadd.f32 1e-08, %v11411_v11  ;;  %v12399_v11 = vld [vmem:[#allocation34_spill] sm:$0xff] }
 0xe71   : > { %5500 = vmin.xlane.f32.xlu0 %v5499_v53  ;;  %v5544_v3 = vsel %vm5543_vm1, %v5539_v42, inf  ;;  %v12396_v53 = vld [vmem:[#allocation32_spill] sm:$0xff]  ;;  %v11511_v43 = vpop.f32.mrf.mxu0  ;;  %v5357_v26 = vadd.f32 1e-08, %v12399_v11 }
 0xe72   : > { %5485 = vmin.xlane.f32.xlu1 %v5484_v45  ;;  %7742 = vrcp.f32 %v5351_v33  ;;  %v5354_v47 = vadd.f32 1e-08, %v12396_v53  ;;  %v5561_v45 = vadd.f32 1e-08, %v11373_v44 }
 0xe73   : > { %7744 = vrcp.f32 %v5559_v58  ;;  %v11520_v25 = vpop.f32.mrf.mxu0  ;;  %v12398_v58 = vld [vmem:[#allocation33_spill] sm:$0xff] }
 0xe74   : > { %7746 = vrcp.f32 %v5352_v18  ;;  %v5356_v23 = vadd.f32 1e-08, %v12398_v58  ;;  %v5504_v58 = vshll.u32 %v5503_v24, 16 }
 0xe75   : > { %4613 = vadd.xlane.f32.xlu0 %v4612_v21  ;;  %7748 = vrcp.f32 %v5560_v37  ;;  %v12397_v21 = vld [vmem:[#allocation36_spill] sm:$0xff]  ;;  %v11532_v53 = vpop.f32.mrf.mxu0 }
 0xe76   : > { %5515 = vmin.xlane.f32.xlu1 %v5514_v50  ;;  %v5355_v50 = vadd.f32 1e-08, %v12397_v21  ;;  %7750 = vrcp.f32 %v5353_v5 }
 0xe77   : > { %7752 = vrcp.f32 %v5354_v47 }
 0xe78   : > { %7754 = vrcp.f32 %v5561_v45 }
 0xe79   : > { %4619 = vadd.xlane.f32.xlu0 %v4618_v46  ;;  %7756 = vrcp.f32 %v5355_v50 }
 0xe7a   : > { %4616 = vadd.xlane.f32.xlu1 %v4615_v54  ;;  %v5458_v54 = vcvt.f32.s32 %v11442_v39  ;;  %7758 = vrcp.f32 %v5563_v51  ;;  %v11542_v21 = vpop.f32.mrf.mxu0 }
 0xe7c   : > { %v5459_v39 = vshll.u32 %v5458_v54, 16  ;;  %v5474_v54 = vshll.u32 %v5473_v4, 16 }
 0xe7d   : > { %5530 = vmin.xlane.f32.xlu0 %v5529_v49  ;;  %v5562_v49 = vadd.f32 1e-08, %v11393_v48 }
 0xe7e   : > { %4622 = vadd.xlane.f32.xlu1 %v4621_v22 }
 0xe7f   : > { %v7743_v7 = vpop.eup %7742  ;;  %7760 = vrcp.f32 %v5562_v49 }
 0xe80   : > { %v7745_v44 = vpop.eup %7744  ;;  %v5367_v42 = vsel %vm5343_vm9, %v7743_v7, 0.0  ;;  %v5488_v7 = vcvt.f32.s32 %v11453_v60 }
 0xe81   : > { %v7747_v37 = vpop.eup %7746 }
 0xe82   : > { %5545 = vmin.xlane.f32.xlu1 %v5544_v3  ;;  %v7749_v5 = vpop.eup %7748  ;;  %v5368_v47 = vsel %vm5344_vm12, %v7747_v37, 0.0 }
 0xe83   : > { %v7751_v49 = vpop.eup %7750 }
 0xeea   : > { %v5441_v57 = vpop.xlane.xlu0 %5440 }
 0xeeb   : > { %v5442_v46 = vcvt.f32.s32 %v5441_v57 }
 0xeed   : > { %v5445_v9 = vadd.s32 %v5444_v52, %v5442_v46 }
 0xeee   : > { %v4602_v22 = vpop.xlane.xlu0 %4601 }
 0xeef   : > { %vm5551_vm7 = vcmp.eq.s32.totalorder %v8284_v1, %v5445_v9  ;;  %v5456_v3 = vpop.xlane.xlu1 %5455  ;;  %7762 = vrcp.f32 %v4602_v22  ;;  %v12400_v22 = vld [vmem:[#allocation37_spill] sm:$0xff] }
 0xef0   : > { %v5575_v10 = vsel %vm5551_vm7, %v7745_v44, 0.0  ;;  %v5457_v0 = vcvt.f32.s32 %v5456_v3  ;;  %v11523_v14 = vsel %vm5551_vm7, 1e+10, %v11219_v30  ;;  %v5358_v44 = vadd.f32 1e-08, %v12400_v22  ;;  %v7753_v3 = vpop.eup %7752 }
 0xef1   : > { %v11525_v48 = vadd.f32 %v5575_v10, %v5367_v42  ;;  %v5599_v33 = vsel %vm5182_vm15, %v11523_v14, inf  ;;  %v4706_v10 = vpop.f32.mrf.mxu0 }
 0xef2   : > { %v5460_v56 = vadd.s32 %v5459_v39, %v5457_v0  ;;  %5600 = vmin.xlane.f32.xlu0 %v5599_v33  ;;  %v4608_v18 = vpop.xlane.xlu0 %4607  ;;  %v5369_v39 = vsel %vm5345_vm14, %v7751_v49, 0.0  ;;  %v7755_v33 = vpop.eup %7754 }
 0xef3   : > { %v4605_v30 = vpop.xlane.xlu1 %4604  ;;  %v7139_v11 = vpop.f32.mrf.mxu0 }
 0xef4   : > { %vm5552_vm9 = vcmp.eq.s32.totalorder %v8284_v1, %v5460_v56  ;;  %7764 = vrcp.f32 %v4605_v30 }
 0xef5   : > { %v5576_v45 = vsel %vm5552_vm9, %v7749_v5, 0.0  ;;  %7766 = vrcp.f32 %v4608_v18  ;;  %v11539_v57 = vsel %vm5552_vm9, 1e+10, %v11245_v34  ;;  %v11549_v34 = vpop.f32.mrf.mxu1  ;;  %v7757_v18 = vpop.eup %7756 }
 0xef6   : > { %7768 = vrcp.f32 %v5356_v23  ;;  %v11544_v50 = vadd.f32 %v5576_v45, %v5368_v47  ;;  %v5602_v52 = vsel %vm5182_vm15, %v11539_v57, inf  ;;  %v5471_v46 = vpop.xlane.xlu0 %5470  ;;  %v5518_v23 = vcvt.f32.s32 %v11465_v28  ;;  %v7759_v47 = vpop.eup %7758 }
 0xef7   : > { %7770 = vrcp.f32 %v5564_v27  ;;  %5603 = vmin.xlane.f32.xlu1 %v5602_v52  ;;  %v4611_v51 = vpop.xlane.xlu1 %4610  ;;  %v5472_v9 = vcvt.f32.s32 %v5471_v46  ;;  %v11559_v37 = vpop.f32.mrf.mxu1  ;;  %v5489_v27 = vshll.u32 %v5488_v7, 16  ;;  %v5371_v45 = vsel %vm5347_vm2, %v7757_v18, 0.0 }
 0xef8   : > { %7772 = vrcp.f32 %v4611_v51  ;;  %v7761_v46 = vpop.eup %7760  ;;  %v5519_v24 = vshll.u32 %v5518_v23, 16 }
 0xef9   : > { %v5475_v42 = vadd.s32 %v5474_v54, %v5472_v9  ;;  %7774 = vrcp.f32 %v5357_v26  ;;  %v5566_v54 = vadd.f32 1e-08, %v11424_v35  ;;  %v11576_v7 = vpop.f32.mrf.mxu1 }
 0xefa   : > { %v5501_v0 = vpop.xlane.xlu0 %5500  ;;  %7776 = vrcp.f32 %v5358_v44 }
 0xefb   : > { %vm5553_vm12 = vcmp.eq.s32.totalorder %v8284_v1, %v5475_v42  ;;  %v5486_v60 = vpop.xlane.xlu1 %5485  ;;  %v5502_v56 = vcvt.f32.s32 %v5501_v0  ;;  %7778 = vrcp.f32 %v5565_v31 }
 0xefc   : > { %v5577_v4 = vsel %vm5553_vm12, %v7755_v33, 0.0  ;;  %v5487_v30 = vcvt.f32.s32 %v5486_v60  ;;  %v11562_v20 = vsel %vm5553_vm12, 1e+10, %v11237_v36  ;;  %v5370_v36 = vsel %vm5346_vm4, %v7753_v3, 0.0  ;;  %v7763_v9 = vpop.eup %7762 }
 0xefd   : > { %v11564_v17 = vadd.f32 %v5577_v4, %v5369_v39  ;;  %v5505_v5 = vadd.s32 %v5504_v58, %v5502_v56  ;;  %v5605_v28 = vsel %vm5182_vm15, %v11562_v20, inf  ;;  %v4709_v39 = vpop.f32.mrf.mxu0  ;;  %v5533_v60 = vcvt.f32.s32 %v11471_v2  ;;  %v3863_v4 = vpop.f32.mrf.mxu1 }
 0xefe   : > { %v5490_v26 = vadd.s32 %v5489_v27, %v5487_v30  ;;  %5606 = vmin.xlane.f32.xlu0 %v5605_v28  ;;  %v4614_v52 = vpop.xlane.xlu0 %4613 }
 0xeff   : > { %vm5555_vm14 = vcmp.eq.s32.totalorder %v8284_v1, %v5505_v5  ;;  %v5516_v51 = vpop.xlane.xlu1 %5515  ;;  %7780 = vrcp.f32 %v4614_v52  ;;  %v11598_v28 = vpop.f32.mrf.mxu0 }
 0xf00   : > { %vm5554_vm2 = vcmp.eq.s32.totalorder %v8284_v1, %v5490_v26  ;;  %v5579_v15 = vsel %vm5555_vm14, %v7759_v47, 0.0  ;;  %v5517_v49 = vcvt.f32.s32 %v5516_v51  ;;  %v11580_v22 = vsel %vm5555_vm14, 1e+10, %v11262_v61  ;;  %v11609_v51 = vpop.f32.mrf.mxu1 }
 0xf01   : > { %v7765_v44 = vpop.eup %7764  ;;  %v5578_v42 = vsel %vm5554_vm2, %v7761_v46, 0.0  ;;  %v11582_v41 = vadd.f32 %v5579_v15, %v5371_v45  ;;  %v11585_v35 = vsel %vm5554_vm2, 1e+10, %v11270_v6  ;;  %v5611_v61 = vsel %vm5182_vm15, %v11580_v22, inf  ;;  %v4722_v15 = vpop.f32.mrf.mxu0 }
 0xf02   : > { %v7767_v3 = vpop.eup %7766  ;;  %v11587_v31 = vadd.f32 %v5578_v42, %v5370_v36  ;;  %v5520_v0 = vadd.s32 %v5519_v24, %v5517_v49  ;;  %v5608_v33 = vsel %vm5182_vm15, %v11585_v35, inf  ;;  %v4620_v58 = vpop.xlane.xlu0 %4619  ;;  %7782 = vrcp.f32 %v5566_v54  ;;  %5612 = vmin.xlane.f32.xlu0 %v5611_v61 }
 0xf03   : > { %v7769_v23 = vpop.eup %7768  ;;  %5609 = vmin.xlane.f32.xlu1 %v5608_v33  ;;  %v4617_v56 = vpop.xlane.xlu1 %4616  ;;  %v4745_v6 = vmul.f32 %v7763_v9, %v4706_v10  ;;  %v4746_v18 = vmul.f32 %v7765_v44, %v4709_v39  ;;  %v4747_v47 = vmul.f32 %v7767_v3, %v11542_v21  ;;  %v5534_v54 = vshll.u32 %v5533_v60, 16  ;;  %v7548_v9 = vld [vmem:[%s12392_s22 + $0x10] sm:$0xff]   ;;  %v11618_v39 = vld [vmem:[%s12401_s23] ss:$0 sm:$0xff]  ;;  %v7549_v60 = vld [vmem:[%s12392_s22 + $0x8] sm:$0xff]   ;;  %s12412_s23 = sld [smem:[#allocation20_spill]] }
 0xf04   : > { %v7771_v27 = vpop.eup %7770  ;;  %v5372_v30 = vsel %vm5348_vm13, %v7769_v23, 0.0  ;;  %vm5556_vm4 = vcmp.eq.s32.totalorder %v8284_v1, %v5520_v0  ;;  %7784 = vrcp.f32 %v4617_v56  ;;  %v3876_v0 = vpop.f32.mrf.mxu1  ;;  %v3744_v59 = vadd.f32 %v11618_v39, %v11502_v16 }
 0xf05   : > { %v7773_v5 = vpop.eup %7772  ;;  %v5580_v2 = vsel %vm5556_vm4, %v7771_v27, 0.0  ;;  %v4753_v45 = vpack.c.bf16 %v4746_v18, %v4745_v6  ;;  %v11602_v26 = vsel %vm5556_vm4, 1e+10, %v11292_v40  ;;  %7786 = vrcp.f32 %v4620_v58  ;;  %v7143_v56 = vpop.f32.mrf.mxu0  ;;  %v6807_v27 = vld [vmem:[%s12402_s26] ss:$0 sm:$0xff]  ;;  %s12413_s26 = sld [smem:[#allocation22_spill]] }
 0xf06   : > { %v4748_v10 = vmul.f32 %v7773_v5, %v7139_v11  ;;  %v11604_v52 = vadd.f32 %v5580_v2, %v5372_v30  ;;  %v5614_v8 = vsel %vm5182_vm15, %v11602_v26, inf  ;;  %v5531_v46 = vpop.xlane.xlu0 %5530  ;;  %v7775_v36 = vpop.eup %7774  ;;  %v5548_v40 = vcvt.f32.s32 %v11480_v62 }
 0xf07   : > { %7148 = vmatprep.mubr.msk.bf16.mxu1 %vm1577_vm0, %v4753_v45  ;;  %5615 = vmin.xlane.f32.xlu1 %v5614_v8  ;;  %v4623_v21 = vpop.xlane.xlu1 %4622  ;;  %v5532_v24 = vcvt.f32.s32 %v5531_v46  ;;  %v7777_v44 = vpop.eup %7776  ;;  %v5373_v3 = vsel %vm5349_vm5, %v7775_v36, 0.0  ;;  %v3864_v5 = vadd.f32 %v6807_v27, %v3863_v4  ;;  %v3861_v2 = vadd.f32 %v6807_v27, %v11559_v37  ;;  %v7550_v45 = vld [vmem:[%s12392_s22] sm:$0xff]  }
 0xf08   : > { %v4754_v11 = vpack.c.bf16 %v4748_v10, %v4747_v47  ;;  %7788 = vrcp.f32 %v4623_v21  ;;  %v7779_v42 = vpop.eup %7778  ;;  %v5549_v33 = vshll.u32 %v5548_v40, 16  ;;  %v7127_v16 = vpop.f32.mrf.mxu1  ;;  %v5374_v8 = vsel %vm5350_vm8, %v7777_v44, 0.0 }
 0xf09   : > { %v5535_v49 = vadd.s32 %v5534_v54, %v5532_v24  ;;  %v3892_v46 = vadd.f32 %v3864_v5, %v3744_v59  ;;  %v4725_v36 = vpop.f32.mrf.mxu0  ;;  %v3752_v13 = vadd.f32 %v11498_v55, %v11618_v39  ;;  %v3757_v55 = vadd.f32 %v11618_v39, %v11511_v43 }
 0xf0a   : > { %7149 = vmatmul.mubr.msk.bf16.vlgmr.msra.gmra.mxu1 %vm1577_vm0, %v4754_v11  ;;  %v3888_v43 = vadd.f32 %v7127_v16, %v6807_v27  ;;  %v7551_v16 = vld [vmem:[%s12403_s0 + $0x8] sm:$0xff]  }
 0xf0b   : > { %vm5557_vm13 = vcmp.eq.s32.totalorder %v8284_v1, %v5535_v49  ;;  %v5546_v62 = vpop.xlane.xlu1 %5545  ;;  %7169 = vmatpush3.bf16.msra.mxu1 %v11489_v19  ;;  %7156 = vmatprep.subr.bf16.mxu0 %v7551_v16 }
 0xf0c   : > { %v5581_v61 = vsel %vm5557_vm13, %v7779_v42, 0.0  ;;  %v5547_v58 = vcvt.f32.s32 %v5546_v62  ;;  %v11623_v23 = vsel %vm5557_vm13, 1e+10, %v11286_v38  ;;  %7170 = vmatprep.subr.bf16.mxu1 %v7548_v9  ;;  %v7781_v19 = vpop.eup %7780  ;;  %v3741_v38 = vadd.f32 %v11618_v39, %v11494_v29  ;;  %7157 = vmatpush3.bf16.msra.mxu0 %v7551_v16 }
 0xf0d   : > { %v11628_v6 = vadd.f32 %v5581_v61, %v5373_v3  ;;  %v5617_v18 = vsel %vm5182_vm15, %v11623_v23, inf  ;;  %v4749_v21 = vmul.f32 %v7781_v19, %v4722_v15  ;;  %v3760_v42 = vadd.f32 %v11618_v39, %v11532_v53 }
 0xf0e   : > { %v5550_v30 = vadd.s32 %v5549_v33, %v5547_v58  ;;  %5618 = vmin.xlane.f32.xlu0 %v5617_v18  ;;  %v3891_v11 = vadd.f32 %v3861_v2, %v3741_v38  ;;  %v3872_v3 = vadd.f32 %v11576_v7, %v6807_v27  ;;  %v3749_v15 = vadd.f32 %v11492_v32, %v11618_v39 }
 0xf0f   : > { %7171 = vmatpush3.bf16.msra.mxu1 %v7548_v9  ;;  %v7783_v47 = vpop.eup %7782  ;;  %v3879_v9 = vpop.f32.mrf.mxu1  ;;  %v3877_v18 = vadd.f32 %v6807_v27, %v3876_v0  ;;  %v3765_v0 = vadd.f32 %v11506_v12, %v11618_v39 }
 0xf10   : > { %vm5558_vm5 = vcmp.eq.s32.totalorder %v8284_v1, %v5550_v30  ;;  %7172 = vmatprep.subr.bf16.mxu1 %v7549_v60  ;;  %v3880_v61 = vadd.f32 %v6807_v27, %v3879_v9  ;;  %v3899_v58 = vmax.f32 %v3891_v11, 0.0  ;;  %v3894_v59 = vadd.f32 %v3872_v3, %v3752_v13 }
 0xf11   : > { %v7785_v10 = vpop.eup %7784  ;;  %v5582_v4 = vsel %vm5558_vm5, %v7783_v47, 0.0  ;;  %v11642_v54 = vsel %vm5558_vm5, 1e+10, %v11306_v63  ;;  %v3900_v63 = vmax.f32 %v3892_v46, 0.0  ;;  %v3895_v32 = vadd.f32 %v3877_v18, %v3757_v55 }
 0xf12   : > { %v11644_v29 = vadd.f32 %v5582_v4, %v5374_v8  ;;  %v5620_v37 = vsel %vm5182_vm15, %v11642_v54, inf  ;;  %v4750_v24 = vmul.f32 %v7785_v10, %v4725_v36  ;;  %v7787_v40 = vpop.eup %7786  ;;  %v3896_v19 = vadd.f32 %v3880_v61, %v3760_v42  ;;  %v7552_v4 = vld [vmem:[%s12403_s0] sm:$0xff]  }
 0xf13   : > { %5621 = vmin.xlane.f32.xlu1 %v5620_v37  ;;  %7173 = vmatpush3.bf16.msra.mxu1 %v7549_v60  ;;  %v4751_v62 = vmul.f32 %v7787_v40, %v11598_v28  ;;  %v3869_v60 = vadd.f32 %v11549_v34, %v6807_v27  ;;  %v4969_v7 = vpack.c.bf16 %v3900_v63, %v3899_v58  ;;  %v3902_v28 = vmax.f32 %v3894_v59, 0.0 }
 0xf14   : > { %v4755_v49 = vpack.c.bf16 %v4750_v24, %v4749_v21  ;;  %7174 = vmatprep.subr.bf16.mxu1 %v7550_v45  ;;  %v3904_v5 = vmax.f32 %v3896_v19, 0.0  ;;  %v3903_v38 = vmax.f32 %v3895_v32, 0.0  ;;  %v3885_v47 = vadd.f32 %v11609_v51, %v6807_v27  ;;  %7158 = vmatprep.subr.bf16.mxu0 %v7552_v4 }
 0xf15   : > { %v7789_v44 = vpop.eup %7788  ;;  %v3893_v30 = vadd.f32 %v3869_v60, %v3749_v15  ;;  %7159 = vmatpush3.bf16.msra.mxu0 %v7552_v4 }
 0xf16   : > { %7152 = vmatprep.mubr.msk.bf16.mxu1 %vm1577_vm0, %v4755_v49  ;;  %v4752_v33 = vmul.f32 %v7789_v44, %v7143_v56  ;;  %v3768_v56 = vadd.f32 %v11520_v25, %v11618_v39  ;;  %v4971_v10 = vpack.c.bf16 %v3904_v5, %v3903_v38  ;;  %v3897_v8 = vadd.f32 %v3885_v47, %v3765_v0  ;;  %v6824_v0 = vld [vmem:[%s12404_s5] ss:$0 sm:$0xff]  ;;  %s12414_s5 = sld [smem:[#allocation24_spill]] }
 0xf17   : > { %7175 = vmatpush3.bf16.msra.mxu1 %v7550_v45  ;;  %v3901_v34 = vmax.f32 %v3893_v30, 0.0 }
 0xf18   : > { %v4756_v53 = vpack.c.bf16 %v4752_v33, %v4751_v62  ;;  %v3898_v45 = vadd.f32 %v3888_v43, %v3768_v56  ;;  %v3905_v46 = vmax.f32 %v3897_v8, 0.0 }
 0xf19   : > { %v4970_v2 = vpack.c.bf16 %v3902_v28, %v3901_v34 }
 0xf1a   : > { %7153 = vmatmul.mubr.msk.bf16.gmra.mxu1 %vm1577_vm0, %v4756_v53  ;;  %v3906_v25 = vmax.f32 %v3898_v45, 0.0 }
 0xf1b   : > { %7176 = vmatprep.mubr.msk.bf16.mxu1 %vm2374_vm3, %v4969_v7 }
 0xf1c   : > { %v4972_v36 = vpack.c.bf16 %v3906_v25, %v3905_v46 }
 0xf22   : > { %7177 = vmatmul.mubr.msk.bf16.vlgmr.msra.gmra.mxu1 %vm2374_vm3, %v4970_v2 }
 0xf23   : > { %7180 = vmatprep.mubr.msk.bf16.mxu1 %vm2374_vm3, %v4971_v10 }
 0xf2a   : > { %7181 = vmatmul.mubr.msk.bf16.gmra.mxu1 %vm2374_vm3, %v4972_v36 }
 0xf7b   : > { %v11672_v12 = vpop.xlane.xlu0 %5600 }
 0xf7c   : > { %vm5623_vm8 = vcmp.le.f32.partialorder %v11523_v14, %v11672_v12 }
 0xf7d   : > { %v5631_v51 = vsel %vm5623_vm8, %v8284_v1, 96 }
 0xf7e   : > { %v11678_v39 = vsel %vm5182_vm15, %v5631_v51, 2147483647 }
 0xf7f   : > { %v5641_v27 = vshra.s32 %v11678_v39, 16 }
 0xf80   : > { %v11681_v37 = vpop.xlane.xlu1 %5603 }
 0xf81   : > { %vm5624_vm10 = vcmp.le.f32.partialorder %v11539_v57, %v11681_v37  ;;  %v11685_v21 = vcvt.s32.f32 %v5641_v27 }
 0xf82   : > { %v5632_v24 = vsel %vm5624_vm10, %v8284_v1, 96 }
 0xf83   : > { %v11689_v40 = vsel %vm5182_vm15, %v5632_v24, 2147483647  ;;  %5644 = vmin.xlane.f32.xlu0 %v11685_v21 }
 0xf84   : > { %v5656_v14 = vshra.s32 %v11689_v40, 16 }
 0xf86   : > { %v11693_v11 = vcvt.s32.f32 %v5656_v14 }
 0xf87   : > { %v11695_v9 = vpop.xlane.xlu0 %5606 }
 0xf88   : > { %5659 = vmin.xlane.f32.xlu1 %v11693_v11  ;;  %vm5625_vm6 = vcmp.le.f32.partialorder %v11562_v20, %v11695_v9 }
 0xf89   : > { %v5633_v57 = vsel %vm5625_vm6, %v8284_v1, 96 }
 0xf8a   : > { %v11702_v13 = vsel %vm5182_vm15, %v5633_v57, 2147483647 }
 0xf8b   : > { %v5671_v49 = vshra.s32 %v11702_v13, 16  ;;  %v11707_v63 = vpop.xlane.xlu0 %5612 }
 0xf8c   : > { %v11705_v44 = vpop.xlane.xlu1 %5609  ;;  %vm5627_vm1 = vcmp.le.f32.partialorder %v11580_v22, %v11707_v63 }
 0xf8d   : > { %vm5626_vm11 = vcmp.le.f32.partialorder %v11585_v35, %v11705_v44  ;;  %v5635_v20 = vsel %vm5627_vm1, %v8284_v1, 96  ;;  %v11715_v3 = vcvt.s32.f32 %v5671_v49 }
 0xf8e   : > { %v5634_v42 = vsel %vm5626_vm11, %v8284_v1, 96  ;;  %v11721_v62 = vsel %vm5182_vm15, %v5635_v20, 2147483647 }
 0xf8f   : > { %v11718_v15 = vsel %vm5182_vm15, %v5634_v42, 2147483647  ;;  %v5701_v61 = vshra.s32 %v11721_v62, 16  ;;  %5674 = vmin.xlane.f32.xlu0 %v11715_v3 }
 0xf90   : > { %v5686_v33 = vshra.s32 %v11718_v15, 16  ;;  %v11725_v35 = vpop.xlane.xlu1 %5615 }
 0xf91   : > { %vm5628_vm7 = vcmp.le.f32.partialorder %v11602_v26, %v11725_v35  ;;  %v11733_v55 = vcvt.s32.f32 %v5701_v61 }
 0xf92   : > { %v5636_v22 = vsel %vm5628_vm7, %v8284_v1, 96  ;;  %v11731_v58 = vcvt.s32.f32 %v5686_v33 }
 0xf93   : > { %v11736_v60 = vsel %vm5182_vm15, %v5636_v22, 2147483647  ;;  %5704 = vmin.xlane.f32.xlu0 %v11733_v55 }
 0xf94   : > { %v5716_v59 = vshra.s32 %v11736_v60, 16  ;;  %5689 = vmin.xlane.f32.xlu1 %v11731_v58 }
 0xf96   : > { %v11741_v53 = vcvt.s32.f32 %v5716_v59 }
 0xf97   : > { %v11743_v18 = vpop.xlane.xlu0 %5618 }
 0xf98   : > { %5719 = vmin.xlane.f32.xlu1 %v11741_v53  ;;  %vm5629_vm9 = vcmp.le.f32.partialorder %v11623_v23, %v11743_v18 }
 0xf99   : > { %v5637_v26 = vsel %vm5629_vm9, %v8284_v1, 96 }
 0xf9a   : > { %v11750_v7 = vsel %vm5182_vm15, %v5637_v26, 2147483647 }
 0xf9b   : > { %v5731_v19 = vshra.s32 %v11750_v7, 16 }
 0xf9c   : > { %v11753_v30 = vpop.xlane.xlu1 %5621 }
 0xf9d   : > { %vm5630_vm12 = vcmp.le.f32.partialorder %v11642_v54, %v11753_v30  ;;  %v11757_v32 = vcvt.s32.f32 %v5731_v19 }
 0xf9e   : > { %v5638_v28 = vsel %vm5630_vm12, %v8284_v1, 96 }
 0xf9f   : > { %v11761_v56 = vsel %vm5182_vm15, %v5638_v28, 2147483647  ;;  %5734 = vmin.xlane.f32.xlu0 %v11757_v32  ;;  %v5640_v28 = vand.u32 65535, %v11678_v39  ;;  %v5670_v39 = vand.u32 65535, %v11702_v13 }
 0xfa0   : > { %v5746_v23 = vshra.s32 %v11761_v56, 16 }
 0xfa2   : > { %v11765_v5 = vcvt.s32.f32 %v5746_v23 }
 0xfa4   : > { %5749 = vmin.xlane.f32.xlu1 %v11765_v5 }
 0xfca   : > { %v7150_v43 = vpop.f32.mrf.mxu1 }
 0xfcb   : > { %v4835_v2 = vadd.f32 %v7150_v43, %v6824_v0  ;;  %v5642_v43 = vcvt.s32.f32 %v5640_v28  ;;  %v5770_v28 = vadd.f32 1e-08, %v11705_v44 }
 0xfcc   : > { %v4826_v34 = vpop.f32.mrf.mxu1 }
 0xfcd   : > { %v4827_v54 = vadd.f32 %v6824_v0, %v4826_v34  ;;  %v4859_v36 = vmax.f32 %v4835_v2, 0.0  ;;  %v5655_v34 = vand.u32 65535, %v11689_v40  ;;  %v5685_v2 = vand.u32 65535, %v11718_v15 }
 0xfce   : > { %v7151_v38 = vpop.f32.mrf.mxu1 }
 0xfcf   : > { %v4838_v47 = vadd.f32 %v7151_v38, %v6824_v0  ;;  %v4857_v25 = vmax.f32 %v4827_v54, 0.0  ;;  %v5657_v54 = vcvt.s32.f32 %v5655_v34  ;;  %v5687_v13 = vcvt.s32.f32 %v5685_v2 }
 0xfd0   : > { %v4829_v45 = vpop.f32.mrf.mxu1 }
 0xfd1   : > { %v4830_v10 = vadd.f32 %v6824_v0, %v4829_v45  ;;  %v4860_v8 = vmax.f32 %v4838_v47, 0.0  ;;  %v5700_v45 = vand.u32 65535, %v11721_v62  ;;  %v7553_v62 = vld [vmem:[%s8344_s4 + $0x28] sm:$0xff]  }
 0xfd2   : > { %7184 = vmatprep.subr.bf16.mxu0 %v7553_v62 }
 0xfd3   : > { %v4858_v46 = vmax.f32 %v4830_v10, 0.0  ;;  %v4866_v4 = vpack.c.bf16 %v4860_v8, %v4859_v36  ;;  %v5715_v8 = vand.u32 65535, %v11736_v60 }
 0xfd5   : > { %v4865_v16 = vpack.c.bf16 %v4858_v46, %v4857_v25  ;;  %v5702_v46 = vcvt.s32.f32 %v5700_v45  ;;  %v5717_v36 = vcvt.s32.f32 %v5715_v8 }
 0xfd7   : > { %7160 = vmatprep.mubr.msk.bf16.mxu0 %vm1577_vm0, %v4865_v16 }
 0xfd8   : > { %7161 = vmatmul.mubr.msk.bf16.vlgmr.msra.gmra.mxu0 %vm1577_vm0, %v4866_v4  ;;  %v7554_v4 = vld [vmem:[%s8344_s4 + $0x20] sm:$0xff]  }
 0xfd9   : > { %7185 = vmatpush3.bf16.msra.mxu0 %v7553_v62 }
 0xfda   : > { %v7154_v51 = vpop.f32.mrf.mxu1  ;;  %7186 = vmatprep.subr.bf16.mxu0 %v7554_v4 }
 0xfdb   : > { %v4851_v49 = vadd.f32 %v7154_v51, %v6824_v0 }
 0xfdc   : > { %v4842_v27 = vpop.f32.mrf.mxu1 }
 0xfdd   : > { %v4843_v14 = vadd.f32 %v6824_v0, %v4842_v27  ;;  %v4863_v59 = vmax.f32 %v4851_v49, 0.0  ;;  %7187 = vmatpush3.bf16.msra.mxu0 %v7554_v4 }
 0xfde   : > { %v7155_v24 = vpop.f32.mrf.mxu1 }
 0xfdf   : > { %v4854_v57 = vadd.f32 %v7155_v24, %v6824_v0  ;;  %v4861_v61 = vmax.f32 %v4843_v14, 0.0  ;;  %v5745_v24 = vand.u32 65535, %v11761_v56  ;;  %v7558_v56 = vld [vmem:[%s8344_s4] sm:$0xff]  }
 0xfe0   : > { %v4845_v42 = vpop.f32.mrf.mxu1 }
 0xfe1   : > { %v4846_v20 = vadd.f32 %v6824_v0, %v4845_v42  ;;  %v4864_v33 = vmax.f32 %v4854_v57, 0.0  ;;  %v5747_v57 = vcvt.s32.f32 %v5745_v24  ;;  %v7557_v42 = vld [vmem:[%s8344_s4 + $0x8] sm:$0xff]   ;;  %v5774_v24 = vadd.f32 1e-08, %v11753_v30 }
 0xfe3   : > { %v4862_v22 = vmax.f32 %v4846_v20, 0.0  ;;  %v4868_v19 = vpack.c.bf16 %v4864_v33, %v4863_v59  ;;  %v5768_v20 = vadd.f32 1e-08, %v11681_v37 }
 0xfe5   : > { %v4867_v26 = vpack.c.bf16 %v4862_v22, %v4861_v61 }
 0xfe7   : > { %7164 = vmatprep.mubr.msk.bf16.mxu0 %vm1577_vm0, %v4867_v26 }
 0xfe8   : > { %7165 = vmatmul.mubr.msk.bf16.gmra.mxu0 %vm1577_vm0, %v4868_v19 }
0x100c   : > { %v11774_v23 = vpop.xlane.xlu0 %5644 }
0x100d   : > { %vm5646_vm14 = vcmp.eq.f32.partialorder %v11685_v21, %v11774_v23  ;;  %v5672_v21 = vcvt.s32.f32 %v5670_v39  ;;  %v5651_v33 = vcvt.f32.s32 %v11774_v23 }
0x100e   : > { %v5647_v0 = vsel %vm5646_vm14, %v5642_v43, inf }
0x100f   : > { %5648 = vmin.xlane.f32.xlu0 %v5647_v0  ;;  %v5652_v22 = vshll.u32 %v5651_v33, 16 }
0x1011   : > { %v11779_v38 = vpop.xlane.xlu1 %5659 }
0x1012   : > { %vm5661_vm2 = vcmp.eq.f32.partialorder %v11693_v11, %v11779_v38  ;;  %v5666_v26 = vcvt.f32.s32 %v11779_v38  ;;  %v5772_v38 = vadd.f32 1e-08, %v11725_v35 }
0x1013   : > { %v5662_v47 = vsel %vm5661_vm2, %v5657_v54, inf }
0x1014   : > { %5663 = vmin.xlane.f32.xlu1 %v5662_v47  ;;  %v5667_v34 = vshll.u32 %v5666_v26, 16 }
0x1018   : > { %v11786_v40 = vpop.xlane.xlu0 %5674 }
0x1019   : > { %vm5676_vm4 = vcmp.eq.f32.partialorder %v11715_v3, %v11786_v40  ;;  %v5681_v47 = vcvt.f32.s32 %v11786_v40 }
0x101a   : > { %v5677_v10 = vsel %vm5676_vm4, %v5672_v21, inf }
0x101b   : > { %5678 = vmin.xlane.f32.xlu0 %v5677_v10  ;;  %v5682_v45 = vshll.u32 %v5681_v47, 16 }
0x101c   : > { %v11793_v25 = vpop.xlane.xlu0 %5704 }
0x101d   : > { %v11791_v11 = vpop.xlane.xlu1 %5689  ;;  %vm5706_vm5 = vcmp.eq.f32.partialorder %v11733_v55, %v11793_v25  ;;  %v7555_v55 = vld [vmem:[%s8344_s4 + $0x18] sm:$0xff]   ;;  %v5711_v10 = vcvt.f32.s32 %v11793_v25 }
0x101e   : > { %vm5691_vm13 = vcmp.eq.f32.partialorder %v11731_v58, %v11791_v11  ;;  %v5707_v3 = vsel %vm5706_vm5, %v5702_v46, inf  ;;  %v5730_v58 = vand.u32 65535, %v11750_v7  ;;  %7188 = vmatprep.subr.bf16.mxu0 %v7555_v55  ;;  %v7556_v7 = vld [vmem:[%s8344_s4 + $0x10] sm:$0xff]   ;;  %s12405_s4 = sld [smem:[#allocation17_spill]] }
0x101f   : > { %v5692_v15 = vsel %vm5691_vm13, %v5687_v13, inf  ;;  %5708 = vmin.xlane.f32.xlu0 %v5707_v3  ;;  %7189 = vmatpush3.bf16.msra.mxu0 %v7555_v55  ;;  %v5773_v13 = vadd.f32 1e-08, %v11743_v18 }
0x1020   : > { %5693 = vmin.xlane.f32.xlu1 %v5692_v15  ;;  %v5732_v27 = vcvt.s32.f32 %v5730_v58  ;;  %7190 = vmatprep.subr.bf16.mxu0 %v7556_v7 }
0x1021   : > { %v11800_v60 = vpop.xlane.xlu1 %5719 }
0x1022   : > { %vm5721_vm8 = vcmp.eq.f32.partialorder %v11741_v53, %v11800_v60 }
0x1023   : > { %v5722_v16 = vsel %vm5721_vm8, %v5717_v36, inf  ;;  %7191 = vmatpush3.bf16.msra.mxu0 %v7556_v7 }
0x1024   : > { %5723 = vmin.xlane.f32.xlu1 %v5722_v16  ;;  %7192 = vmatprep.subr.bf16.mxu0 %v7557_v42 }
0x1027   : > { %7193 = vmatpush3.bf16.msra.mxu0 %v7557_v42 }
0x1028   : > { %v11807_v51 = vpop.xlane.xlu0 %5734  ;;  %7194 = vmatprep.subr.bf16.mxu0 %v7558_v56 }
0x1029   : > { %vm5736_vm10 = vcmp.eq.f32.partialorder %v11757_v32, %v11807_v51  ;;  %v5767_v32 = vadd.f32 1e-08, %v11672_v12  ;;  %v5771_v12 = vadd.f32 1e-08, %v11707_v63  ;;  %v5741_v30 = vcvt.f32.s32 %v11807_v51 }
0x102a   : > { %v5737_v53 = vsel %vm5736_vm10, %v5732_v27, inf }
0x102b   : > { %5738 = vmin.xlane.f32.xlu0 %v5737_v53  ;;  %7195 = vmatpush3.bf16.msra.mxu0 %v7558_v56  ;;  %7790 = vrcp.f32 %v5767_v32 }
0x102c   : > { %7792 = vrcp.f32 %v5768_v20 }
0x102d   : > { %v11813_v14 = vpop.xlane.xlu1 %5749 }
0x102e   : > { %vm5751_vm6 = vcmp.eq.f32.partialorder %v11765_v5, %v11813_v14  ;;  %v5769_v5 = vadd.f32 1e-08, %v11695_v9  ;;  %v5756_v51 = vcvt.f32.s32 %v11813_v14 }
0x102f   : > { %v5752_v49 = vsel %vm5751_vm6, %v5747_v57, inf }
0x1030   : > { %5753 = vmin.xlane.f32.xlu1 %v5752_v49  ;;  %7794 = vrcp.f32 %v5769_v5 }
0x1031   : > { %7796 = vrcp.f32 %v5770_v28 }
0x1032   : > { %7798 = vrcp.f32 %v5771_v12 }
0x1033   : > { %7800 = vrcp.f32 %v5772_v38 }
0x1034   : > { %7802 = vrcp.f32 %v5773_v13 }
0x1035   : > { %7804 = vrcp.f32 %v5774_v24 }
0x1038   : > { %v7791_v43 = vpop.eup %7790 }
0x1039   : > { %v7793_v39 = vpop.eup %7792 }
0x103d   : > { %v7795_v36 = vpop.eup %7794 }
0x103e   : > { %v7797_v27 = vpop.eup %7796 }
0x1098   : > { %v5649_v61 = vpop.xlane.xlu0 %5648 }
0x1099   : > { %v5650_v59 = vcvt.f32.s32 %v5649_v61 }
0x109b   : > { %v5653_v19 = vadd.s32 %v5652_v22, %v5650_v59 }
0x109d   : > { %vm5759_vm11 = vcmp.eq.s32.totalorder %v8284_v1, %v5653_v19  ;;  %v5664_v37 = vpop.xlane.xlu1 %5663 }
0x109e   : > { %v5783_v0 = vsel %vm5759_vm11, %v7791_v43, 0.0  ;;  %v5665_v23 = vcvt.f32.s32 %v5664_v37 }
0x109f   : > { %v5791_v54 = vadd.f32 %v5783_v0, %v11525_v48  ;;  %v5696_v48 = vcvt.f32.s32 %v11791_v11  ;;  %v5712_v11 = vshll.u32 %v5711_v10, 16  ;;  %v5757_v0 = vshll.u32 %v5756_v51, 16 }
0x10a0   : > { %v5668_v9 = vadd.s32 %v5667_v34, %v5665_v23 }
0x10a1   : > { %v5799_v44 = vsel %vm5182_vm15, %v5791_v54, 0.0  ;;  %v5697_v15 = vshll.u32 %v5696_v48, 16 }
0x10a2   : > { %vm5760_vm1 = vcmp.eq.s32.totalorder %v8284_v1, %v5668_v9  ;;  %5800 = vadd.xlane.f32.xlu0 %v5799_v44 }
0x10a3   : > { %v5784_v63 = vsel %vm5760_vm1, %v7793_v39, 0.0 }
0x10a4   : > { %v5792_v2 = vadd.f32 %v5784_v63, %v11544_v50  ;;  %v5679_v21 = vpop.xlane.xlu0 %5678  ;;  %v5726_v50 = vcvt.f32.s32 %v11800_v60  ;;  %v7799_v60 = vpop.eup %7798 }
0x10a5   : > { %v5680_v8 = vcvt.f32.s32 %v5679_v21  ;;  %v7801_v33 = vpop.eup %7800 }
0x10a6   : > { %v5802_v35 = vsel %vm5182_vm15, %v5792_v2, 0.0  ;;  %v5823_v40 = vpack.c.bf16 %v5792_v2, %v5791_v54  ;;  %v5727_v53 = vshll.u32 %v5726_v50, 16  ;;  %v7803_v37 = vpop.eup %7802  ;;  %v7559_v2 = vld [vmem:[%s12405_s4] sm:$0xff]  }
0x10a7   : > { %5803 = vadd.xlane.f32.xlu1 %v5802_v35  ;;  %v5683_v46 = vadd.s32 %v5682_v45, %v5680_v8  ;;  %v7805_v38 = vpop.eup %7804  ;;  %7204 = vmatprep.subr.bf16.mxu1 %v7559_v2  ;;  %v11865_v45 = vpop.f32.mrf.mxu0 }
0x10a8   : > { %7196 = vmatprep.mubr.msk.bf16.mxu0 %vm5182_vm15, %v5823_v40  ;;  %v5709_v62 = vpop.xlane.xlu0 %5708  ;;  %7205 = vmatpush3.bf16.msra.mxu1 %v7559_v2 }
0x10a9   : > { %v5694_v3 = vpop.xlane.xlu1 %5693  ;;  %vm5761_vm7 = vcmp.eq.s32.totalorder %v8284_v1, %v5683_v46  ;;  %v5710_v16 = vcvt.f32.s32 %v5709_v62  ;;  %v4938_v48 = vpop.f32.mrf.mxu0 }
0x10aa   : > { %v5695_v25 = vcvt.f32.s32 %v5694_v3  ;;  %v5785_v58 = vsel %vm5761_vm7, %v7795_v36, 0.0  ;;  %v11873_v46 = vpop.f32.mrf.mxu1 }
0x10ab   : > { %v5713_v55 = vadd.s32 %v5712_v11, %v5710_v16  ;;  %v5793_v18 = vadd.f32 %v5785_v58, %v11564_v17  ;;  %v11867_v21 = vpop.f32.mrf.mxu0 }
0x10ac   : > { %v5698_v4 = vadd.s32 %v5697_v15, %v5695_v25  ;;  %v5058_v50 = vpop.f32.mrf.mxu1 }
0x10ad   : > { %v5724_v7 = vpop.xlane.xlu1 %5723  ;;  %vm5763_vm12 = vcmp.eq.s32.totalorder %v8284_v1, %v5713_v55  ;;  %v5805_v49 = vsel %vm5182_vm15, %v5793_v18, 0.0 }
0x10ae   : > { %vm5762_vm9 = vcmp.eq.s32.totalorder %v8284_v1, %v5698_v4  ;;  %v5725_v57 = vcvt.f32.s32 %v5724_v7  ;;  %v5787_v56 = vsel %vm5763_vm12, %v7799_v60, 0.0  ;;  %5806 = vadd.xlane.f32.xlu0 %v5805_v49  ;;  %v7179_v11 = vpop.f32.mrf.mxu1 }
0x10af   : > { %v5786_v42 = vsel %vm5762_vm9, %v7797_v27, 0.0  ;;  %v5795_v17 = vadd.f32 %v5787_v56, %v11582_v41  ;;  %v5742_v41 = vshll.u32 %v5741_v30, 16  ;;  %v7561_v30 = vld [vmem:[%s12406_s30] sm:$0xff]  }
0x10b0   : > { %v5728_v32 = vadd.s32 %v5727_v53, %v5725_v57  ;;  %v5794_v20 = vadd.f32 %v5786_v42, %v11587_v31  ;;  %v5061_v24 = vpop.f32.mrf.mxu1 }
0x10b1   : > { %v5811_v59 = vsel %vm5182_vm15, %v5795_v17, 0.0 }
0x10b2   : > { %vm5764_vm14 = vcmp.eq.s32.totalorder %v8284_v1, %v5728_v32  ;;  %v5808_v61 = vsel %vm5182_vm15, %v5794_v20, 0.0  ;;  %v5824_v5 = vpack.c.bf16 %v5794_v20, %v5793_v18  ;;  %5812 = vadd.xlane.f32.xlu0 %v5811_v59  ;;  %v7182_v20 = vpop.f32.mrf.mxu1 }
0x10b3   : > { %v5788_v22 = vsel %vm5764_vm14, %v7801_v33, 0.0  ;;  %5809 = vadd.xlane.f32.xlu1 %v5808_v61  ;;  %v6831_v61 = vld [vmem:[%s12407_s1] ss:$0 sm:$0xff] }
0x10b4   : > { %7197 = vmatmul.mubr.msk.bf16.vlgmr.msra.gmra.mxu0 %vm5182_vm15, %v5824_v5  ;;  %v5739_v26 = vpop.xlane.xlu0 %5738  ;;  %v5796_v31 = vadd.f32 %v5788_v22, %v11604_v52  ;;  %v5074_v33 = vpop.f32.mrf.mxu1  ;;  %v6838_v22 = vld [vmem:[%s12408_s28] ss:$0 sm:$0xff]  ;;  %v4947_v2 = vadd.f32 %v11865_v45, %v6831_v61 }
0x10b5   : > { %v5740_v19 = vcvt.f32.s32 %v5739_v26  ;;  %v5062_v26 = vadd.f32 %v6838_v22, %v5061_v24  ;;  %v5059_v51 = vadd.f32 %v6838_v22, %v5058_v50  ;;  %v5075_v50 = vadd.f32 %v6838_v22, %v5074_v33 }
0x10b6   : > { %v5814_v28 = vsel %vm5182_vm15, %v5796_v31, 0.0  ;;  %v5825_v43 = vpack.c.bf16 %v5796_v31, %v5795_v17  ;;  %v4939_v31 = vadd.f32 %v6831_v61, %v4938_v48 }
0x10b7   : > { %v5743_v12 = vadd.s32 %v5742_v41, %v5740_v19  ;;  %5815 = vadd.xlane.f32.xlu1 %v5814_v28  ;;  %v7183_v41 = vpop.f32.mrf.mxu1 }
0x10b8   : > { %7200 = vmatprep.mubr.msk.bf16.mxu0 %vm5182_vm15, %v5825_v43 }
0x10b9   : > { %vm5765_vm2 = vcmp.eq.s32.totalorder %v8284_v1, %v5743_v12  ;;  %v5754_v34 = vpop.xlane.xlu1 %5753 }
0x10ba   : > { %v5789_v23 = vsel %vm5765_vm2, %v7803_v37, 0.0  ;;  %v5755_v54 = vcvt.f32.s32 %v5754_v34  ;;  %v5089_v34 = vadd.f32 %v5059_v51, %v4939_v31 }
0x10bb   : > { %v5797_v52 = vadd.f32 %v5789_v23, %v11628_v6  ;;  %v7560_v6 = vld [vmem:[%s12406_s30 + $0x8] sm:$0xff]   ;;  %v5077_v23 = vpop.f32.mrf.mxu1 }
0x10bc   : > { %v5758_v9 = vadd.s32 %v5757_v0, %v5755_v54  ;;  %7226 = vmatprep.subr.bf16.mxu1 %v7560_v6  ;;  %v4950_v54 = vadd.f32 %v11867_v21, %v6831_v61  ;;  %v5078_v48 = vadd.f32 %v6838_v22, %v5077_v23 }
0x10bd   : > { %v5817_v14 = vsel %vm5182_vm15, %v5797_v52, 0.0 }
0x10be   : > { %vm5766_vm4 = vcmp.eq.s32.totalorder %v8284_v1, %v5758_v9  ;;  %5818 = vadd.xlane.f32.xlu0 %v5817_v14  ;;  %v4941_v1 = vpop.f32.mrf.mxu0 }
0x10bf   : > { %v5790_v47 = vsel %vm5766_vm4, %v7805_v38, 0.0  ;;  %v4942_v5 = vadd.f32 %v6831_v61, %v4941_v1  ;;  %v5097_v1 = vmax.f32 %v5089_v34, 0.0 }
0x10c0   : > { %v5798_v44 = vadd.f32 %v5790_v47, %v11644_v29  ;;  %v11869_v8 = vpop.f32.mrf.mxu0 }
0x10c1   : > { %v5090_v28 = vadd.f32 %v5062_v26, %v4942_v5 }
0x10c2   : > { %v5820_v39 = vsel %vm5182_vm15, %v5798_v44, 0.0  ;;  %v5826_v63 = vpack.c.bf16 %v5798_v44, %v5797_v52  ;;  %v11871_v40 = vpop.f32.mrf.mxu0 }
0x10c3   : > { %5821 = vadd.xlane.f32.xlu1 %v5820_v39  ;;  %v5098_v38 = vmax.f32 %v5090_v28, 0.0 }
0x10c4   : > { %7201 = vmatmul.mubr.msk.bf16.gmra.mxu0 %vm5182_vm15, %v5826_v63  ;;  %v11875_v15 = vpop.f32.mrf.mxu0  ;;  %vm5987_vm15 = vcmask 130048   ;;  %v5070_v63 = vadd.f32 %v7179_v11, %v6838_v22 }
0x10c6   : > { %v4957_v3 = vpop.f32.mrf.mxu0 }
0x10c7   : > { %v4958_v47 = vadd.f32 %v6831_v61, %v4957_v3 }
0x112b   : > { %v5801_v29 = vpop.xlane.xlu0 %5800 }
0x112c   : > { %7806 = vrcp.f32 %v5801_v29 }
0x1130   : > { %v5804_v10 = vpop.xlane.xlu1 %5803 }
0x1137   : > { %v5807_v13 = vpop.xlane.xlu0 %5806 }
0x1139   : > { %v7807_v58 = vpop.eup %7806 }
0x113b   : > { %v5813_v16 = vpop.xlane.xlu0 %5812 }
0x113c   : > { %v5810_v35 = vpop.xlane.xlu1 %5809 }
0x113d   : > { %7808 = vrcp.f32 %v5810_v35  ;;  %v5067_v35 = vadd.f32 %v11873_v46, %v6838_v22 }
0x113e   : > { %7810 = vrcp.f32 %v5804_v10  ;;  %v4955_v10 = vadd.f32 %v6831_v61, %v11871_v40 }
0x113f   : > { %7812 = vrcp.f32 %v5807_v13  ;;  %v5092_v13 = vadd.f32 %v5070_v63, %v4950_v54  ;;  %v5091_v3 = vadd.f32 %v5067_v35, %v4947_v2 }
0x1140   : > { %v5816_v36 = vpop.xlane.xlu1 %5815  ;;  %7814 = vrcp.f32 %v5813_v16  ;;  %v5093_v11 = vadd.f32 %v5075_v50, %v4955_v10  ;;  %v5086_v16 = vadd.f32 %v7183_v41, %v6838_v22  ;;  %v6870_v10 = vld [vmem:[%s12413_s26] ss:$0 sm:$0xff] }
0x1141   : > { %v5100_v45 = vmax.f32 %v5092_v13, 0.0  ;;  %v5099_v46 = vmax.f32 %v5091_v3, 0.0 }
0x1147   : > { %v5819_v57 = vpop.xlane.xlu0 %5818 }
0x114a   : > { %v7809_v55 = vpop.eup %7808 }
0x114b   : > { %v7811_v27 = vpop.eup %7810 }
0x114c   : > { %v5822_v18 = vpop.xlane.xlu1 %5821  ;;  %v7813_v60 = vpop.eup %7812 }
0x114d   : > { %7816 = vrcp.f32 %v5822_v18  ;;  %v7815_v43 = vpop.eup %7814  ;;  %v6178_v18 = vpack.c.bf16 %v5100_v45, %v5099_v46 }
0x114e   : > { %7818 = vrcp.f32 %v5816_v36  ;;  %v5094_v36 = vadd.f32 %v5078_v48, %v4958_v47  ;;  %v7564_v47 = vld [vmem:[%s12411_s16 + $0x8] sm:$0xff]   ;;  %v6863_v48 = vld [vmem:[%s12412_s23] ss:$0 sm:$0xff] }
0x114f   : > { %7820 = vrcp.f32 %v5819_v57  ;;  %v7562_v57 = vld [vmem:[%s12409_s10 + $0x8] sm:$0xff]  }
0x1150   : > { %v5102_v40 = vmax.f32 %v5094_v36, 0.0  ;;  %7214 = vmatprep.subr.bf16.mxu0 %v7562_v57 }
0x1151   : > { %7215 = vmatpush3.bf16.msra.mxu0 %v7562_v57 }
0x115a   : > { %v7817_v37 = vpop.eup %7816 }
0x115b   : > { %v7819_v0 = vpop.eup %7818 }
0x115c   : > { %v7821_v14 = vpop.eup %7820 }
0x1174   : > { %v7198_v62 = vpop.f32.mrf.mxu0 }
0x1175   : > { %v5962_v56 = vmul.f32 %v7813_v60, %v7198_v62  ;;  %v6177_v62 = vpack.c.bf16 %v5098_v38, %v5097_v1 }
0x1176   : > { %v5921_v25 = vpop.f32.mrf.mxu0 }
0x1177   : > { %v5960_v49 = vmul.f32 %v7807_v58, %v5921_v25  ;;  %v4966_v25 = vadd.f32 %v11875_v15, %v6831_v61  ;;  %v4963_v58 = vadd.f32 %v11869_v8, %v6831_v61 }
0x1178   : > { %v7199_v4 = vpop.f32.mrf.mxu0 }
0x1179   : > { %v5963_v53 = vmul.f32 %v7809_v55, %v7199_v4  ;;  %v5101_v4 = vmax.f32 %v5093_v11, 0.0  ;;  %v5083_v55 = vadd.f32 %v7182_v20, %v6838_v22 }
0x117a   : > { %v5924_v7 = vpop.f32.mrf.mxu0 }
0x117b   : > { %v5961_v42 = vmul.f32 %v7811_v27, %v5924_v7  ;;  %v5969_v17 = vpack.c.bf16 %v5963_v53, %v5962_v56  ;;  %v5096_v27 = vadd.f32 %v5086_v16, %v4966_v25  ;;  %v6179_v24 = vpack.c.bf16 %v5102_v40, %v5101_v4  ;;  %v6857_v56 = vld [vmem:[%s12410_s11] ss:$0 sm:$0xff] }
0x117c   : > { %v5095_v53 = vadd.f32 %v5083_v55, %v4963_v58 }
0x117d   : > { %v5968_v32 = vpack.c.bf16 %v5961_v42, %v5960_v49  ;;  %v5104_v7 = vmax.f32 %v5096_v27, 0.0  ;;  %v7563_v49 = vld [vmem:[%s12409_s10] sm:$0xff]  }
0x117e   : > { %v5103_v15 = vmax.f32 %v5095_v53, 0.0  ;;  %7216 = vmatprep.subr.bf16.mxu0 %v7563_v49 }
0x117f   : > { %7206 = vmatprep.mubr.msk.bf16.mxu1 %vm5987_vm15, %v5968_v32  ;;  %7217 = vmatpush3.bf16.msra.mxu0 %v7563_v49 }
0x1180   : > { %7207 = vmatmul.mubr.msk.bf16.vlgmr.msra.gmra.mxu1 %vm5987_vm15, %v5969_v17  ;;  %v6180_v60 = vpack.c.bf16 %v5104_v7, %v5103_v15  ;;  %7238 = vmatprep.subr.bf16.mxu0 %v7564_v47 }
0x1181   : > { %7227 = vmatpush3.bf16.msra.mxu1 %v7560_v6 }
0x1182   : > { %7228 = vmatprep.subr.bf16.mxu1 %v7561_v30 }
0x1184   : > { %v7202_v59 = vpop.f32.mrf.mxu0 }
0x1185   : > { %7229 = vmatpush3.bf16.msra.mxu1 %v7561_v30  ;;  %v5966_v6 = vmul.f32 %v7821_v14, %v7202_v59 }
0x1186   : > { %v5937_v19 = vpop.f32.mrf.mxu0 }
0x1187   : > { %v5964_v44 = vmul.f32 %v7815_v43, %v5937_v19 }
0x1188   : > { %v7203_v12 = vpop.f32.mrf.mxu0 }
0x1189   : > { %v5967_v52 = vmul.f32 %v7817_v37, %v7203_v12 }
0x118a   : > { %v5940_v9 = vpop.f32.mrf.mxu0 }
0x118b   : > { %v5965_v39 = vmul.f32 %v7819_v0, %v5940_v9  ;;  %v5971_v21 = vpack.c.bf16 %v5967_v52, %v5966_v6 }
0x118d   : > { %v5970_v29 = vpack.c.bf16 %v5965_v39, %v5964_v44  ;;  %v7565_v44 = vld [vmem:[%s12411_s16] sm:$0xff]  }
0x118f   : > { %7210 = vmatprep.mubr.msk.bf16.mxu1 %vm5987_vm15, %v5970_v29 }
0x1190   : > { %7211 = vmatmul.mubr.msk.bf16.gmra.mxu1 %vm5987_vm15, %v5971_v21 }
0x1191   : > { %7230 = vmatprep.mubr.msk.bf16.mxu1 %vm1577_vm0, %v6177_v62 }
0x1198   : > { %7231 = vmatmul.mubr.msk.bf16.vlgmr.msra.gmra.mxu1 %vm1577_vm0, %v6178_v18 }
0x1199   : > { %7234 = vmatprep.mubr.msk.bf16.mxu1 %vm1577_vm0, %v6179_v24 }
0x11a0   : > { %7235 = vmatmul.mubr.msk.bf16.gmra.mxu1 %vm1577_vm0, %v6180_v60 }
0x1240   : > { %v7208_v8 = vpop.f32.mrf.mxu1 }
0x1241   : > { %v6043_v30 = vadd.f32 %v7208_v8, %v6857_v56 }
0x1242   : > { %v6034_v42 = vpop.f32.mrf.mxu1 }
0x1243   : > { %v6035_v20 = vadd.f32 %v6857_v56, %v6034_v42  ;;  %v6067_v26 = vmax.f32 %v6043_v30, 0.0 }
0x1244   : > { %v7209_v32 = vpop.f32.mrf.mxu1 }
0x1245   : > { %v6046_v17 = vadd.f32 %v7209_v32, %v6857_v56  ;;  %v6065_v22 = vmax.f32 %v6035_v20, 0.0 }
0x1246   : > { %v6037_v33 = vpop.f32.mrf.mxu1 }
0x1247   : > { %v6038_v61 = vadd.f32 %v6857_v56, %v6037_v33  ;;  %v6068_v5 = vmax.f32 %v6046_v17, 0.0 }
0x1249   : > { %v6066_v59 = vmax.f32 %v6038_v61, 0.0  ;;  %v6074_v41 = vpack.c.bf16 %v6068_v5, %v6067_v26 }
0x124b   : > { %v6073_v31 = vpack.c.bf16 %v6066_v59, %v6065_v22 }
0x124d   : > { %7218 = vmatprep.mubr.msk.bf16.mxu0 %vm1577_vm0, %v6073_v31 }
0x124e   : > { %7219 = vmatmul.mubr.msk.bf16.vlgmr.msra.gmra.mxu0 %vm1577_vm0, %v6074_v41 }
0x124f   : > { %7239 = vmatpush3.bf16.msra.mxu0 %v7564_v47 }
0x1250   : > { %v7212_v19 = vpop.f32.mrf.mxu1  ;;  %7240 = vmatprep.subr.bf16.mxu0 %v7565_v44 }
0x1251   : > { %v6059_v37 = vadd.f32 %v7212_v19, %v6857_v56 }
0x1252   : > { %v6050_v51 = vpop.f32.mrf.mxu1 }
0x1253   : > { %v6051_v43 = vadd.f32 %v6857_v56, %v6050_v51  ;;  %v6071_v9 = vmax.f32 %v6059_v37, 0.0  ;;  %7241 = vmatpush3.bf16.msra.mxu0 %v7565_v44 }
0x1254   : > { %v7213_v28 = vpop.f32.mrf.mxu1 }
0x1255   : > { %v6062_v12 = vadd.f32 %v7213_v28, %v6857_v56  ;;  %v6069_v54 = vmax.f32 %v6051_v43, 0.0 }
0x1256   : > { %v6053_v34 = vpop.f32.mrf.mxu1 }
0x1257   : > { %v6054_v0 = vadd.f32 %v6857_v56, %v6053_v34  ;;  %v6072_v23 = vmax.f32 %v6062_v12, 0.0  ;;  %v6877_v34 = vld [vmem:[%s12414_s5] ss:$0 sm:$0xff] }
0x1258   : > { %v7232_v39 = vpop.f32.mrf.mxu1 }
0x1259   : > { %v6070_v52 = vmax.f32 %v6054_v0, 0.0  ;;  %v6076_v38 = vpack.c.bf16 %v6072_v23, %v6071_v9  ;;  %v6259_v3 = vadd.f32 %v7232_v39, %v6870_v10 }
0x125a   : > { %v6250_v63 = vpop.f32.mrf.mxu1 }
0x125b   : > { %v6075_v14 = vpack.c.bf16 %v6070_v52, %v6069_v54  ;;  %v6251_v50 = vadd.f32 %v6870_v10, %v6250_v63 }
0x125c   : > { %v7233_v2 = vpop.f32.mrf.mxu1 }
0x125d   : > { %7222 = vmatprep.mubr.msk.bf16.mxu0 %vm1577_vm0, %v6075_v14  ;;  %v6262_v62 = vadd.f32 %v7233_v2, %v6870_v10 }
0x125e   : > { %7223 = vmatmul.mubr.msk.bf16.gmra.mxu0 %vm1577_vm0, %v6076_v38  ;;  %v6253_v35 = vpop.f32.mrf.mxu1 }
0x125f   : > { %v6254_v45 = vadd.f32 %v6870_v10, %v6253_v35 }
0x1260   : > { %v7236_v46 = vpop.f32.mrf.mxu1 }
0x1261   : > { %v6275_v33 = vadd.f32 %v7236_v46, %v6870_v10 }
0x1262   : > { %v6266_v24 = vpop.f32.mrf.mxu1 }
0x1263   : > { %v6267_v20 = vadd.f32 %v6870_v10, %v6266_v24 }
0x1264   : > { %v7237_v60 = vpop.f32.mrf.mxu1 }
0x1265   : > { %v6278_v17 = vadd.f32 %v7237_v60, %v6870_v10 }
0x1266   : > { %v6269_v42 = vpop.f32.mrf.mxu1 }
0x1267   : > { %v6270_v5 = vadd.f32 %v6870_v10, %v6269_v42 }
0x130e   : > { %v7220_v6 = vpop.f32.mrf.mxu0 }
0x130f   : > { %v6155_v13 = vadd.f32 %v7220_v6, %v6863_v48 }
0x1310   : > { %v6146_v1 = vpop.f32.mrf.mxu0 }
0x1311   : > { %v6147_v29 = vadd.f32 %v6863_v48, %v6146_v1  ;;  %v6283_v58 = vadd.f32 %v6259_v3, %v6155_v13 }
0x1312   : > { %v7221_v21 = vpop.f32.mrf.mxu0 }
0x1313   : > { %v6158_v36 = vadd.f32 %v7221_v21, %v6863_v48  ;;  %v6281_v25 = vadd.f32 %v6251_v50, %v6147_v29  ;;  %v6291_v53 = vmax.f32 %v6283_v58, 0.0 }
0x1314   : > { %v6149_v11 = vpop.f32.mrf.mxu0 }
0x1315   : > { %v6284_v40 = vadd.f32 %v6262_v62, %v6158_v36  ;;  %v6150_v16 = vadd.f32 %v6863_v48, %v6149_v11  ;;  %v6289_v18 = vmax.f32 %v6281_v25, 0.0 }
0x1317   : > { %v6282_v4 = vadd.f32 %v6254_v45, %v6150_v16  ;;  %v6292_v55 = vmax.f32 %v6284_v40, 0.0 }
0x1319   : > { %v6290_v27 = vmax.f32 %v6282_v4, 0.0  ;;  %v6298_v15 = vpack.c.bf16 %v6292_v55, %v6291_v53 }
0x131b   : > { %v6297_v7 = vpack.c.bf16 %v6290_v27, %v6289_v18 }
0x131d   : > { %7242 = vmatprep.mubr.msk.bf16.mxu0 %vm1577_vm0, %v6297_v7 }
0x131e   : > { %v7224_v57 = vpop.f32.mrf.mxu0  ;;  %7243 = vmatmul.mubr.msk.bf16.vlgmr.msra.gmra.mxu0 %vm1577_vm0, %v6298_v15 }
0x131f   : > { %v6171_v56 = vadd.f32 %v7224_v57, %v6863_v48 }
0x1320   : > { %v6162_v49 = vpop.f32.mrf.mxu0 }
0x1321   : > { %v6163_v8 = vadd.f32 %v6863_v48, %v6162_v49  ;;  %v6287_v31 = vadd.f32 %v6275_v33, %v6171_v56 }
0x1322   : > { %v7225_v32 = vpop.f32.mrf.mxu0 }
0x1323   : > { %v6174_v30 = vadd.f32 %v7225_v32, %v6863_v48  ;;  %v6285_v22 = vadd.f32 %v6267_v20, %v6163_v8  ;;  %v6295_v43 = vmax.f32 %v6287_v31, 0.0 }
0x1324   : > { %v6165_v61 = vpop.f32.mrf.mxu0 }
0x1325   : > { %v6288_v59 = vadd.f32 %v6278_v17, %v6174_v30  ;;  %v6166_v26 = vadd.f32 %v6863_v48, %v6165_v61  ;;  %v6293_v51 = vmax.f32 %v6285_v22, 0.0 }
0x1327   : > { %v6286_v41 = vadd.f32 %v6270_v5, %v6166_v26  ;;  %v6296_v19 = vmax.f32 %v6288_v59, 0.0 }
0x1329   : > { %v6294_v28 = vmax.f32 %v6286_v41, 0.0  ;;  %v6300_v37 = vpack.c.bf16 %v6296_v19, %v6295_v43 }
0x132b   : > { %v6299_v12 = vpack.c.bf16 %v6294_v28, %v6293_v51 }
0x132d   : > { %7246 = vmatprep.mubr.msk.bf16.mxu0 %vm1577_vm0, %v6299_v12 }
0x132e   : > { %7247 = vmatmul.mubr.msk.bf16.gmra.mxu0 %vm1577_vm0, %v6300_v37 }
0x13de   : > { %v7244_v0 = vpop.f32.mrf.mxu0 }
0x13df   : > { %v6379_v23 = vadd.f32 %v7244_v0, %v6877_v34 }
0x13e0   : > { %v6370_v54 = vpop.f32.mrf.mxu0 }
0x13e1   : > { %v6403_v52 = vmax.f32 %v6379_v23, 0.0  ;;  %v6371_v9 = vadd.f32 %v6877_v34, %v6370_v54 }
0x13e2   : > { %v7245_v14 = vpop.f32.mrf.mxu0 }
0x13e3   : > { %6411 = vst.msk [vmem:[%s8347_s20 + $0x10] sm:$0xff] %vm2374_vm3, %v6403_v52  ;;  %v6401_v38 = vmax.f32 %v6371_v9, 0.0  ;;  %v6382_v47 = vadd.f32 %v7245_v14, %v6877_v34 }
0x13e4   : > { %v6373_v44 = vpop.f32.mrf.mxu0 }
0x13e5   : > { %6409 = vst.msk [vmem:[%s8347_s20] sm:$0xff] %vm2374_vm3, %v6401_v38  ;;  %v6404_v39 = vmax.f32 %v6382_v47, 0.0  ;;  %v6374_v63 = vadd.f32 %v6877_v34, %v6373_v44 }
0x13e7   : > { %6412 = vst.msk [vmem:[%s8347_s20 + $0x18] sm:$0xff] %vm2374_vm3, %v6404_v39  ;;  %v6402_v2 = vmax.f32 %v6374_v63, 0.0 }
0x13e9   : > { %6410 = vst.msk [vmem:[%s8347_s20 + $0x8] sm:$0xff] %vm2374_vm3, %v6402_v2 }
0x13ee   : > { %v7248_v6 = vpop.f32.mrf.mxu0 }
0x13ef   : > { %v6395_v48 = vadd.f32 %v7248_v6, %v6877_v34 }
0x13f0   : > { %v6386_v1 = vpop.f32.mrf.mxu0 }
0x13f1   : > { %v6407_v10 = vmax.f32 %v6395_v48, 0.0  ;;  %v6387_v29 = vadd.f32 %v6877_v34, %v6386_v1 }
0x13f2   : > { %v7249_v35 = vpop.f32.mrf.mxu0 }
0x13f3   : > { %6415 = vst.msk [vmem:[%s8347_s20 + $0x30] sm:$0xff] %vm2374_vm3, %v6407_v10  ;;  %v6405_v13 = vmax.f32 %v6387_v29, 0.0  ;;  %v6398_v21 = vadd.f32 %v7249_v35, %v6877_v34 }
0x13f4   : > { %v6389_v50 = vpop.f32.mrf.mxu0 }
0x13f5   : > { %6413 = vst.msk [vmem:[%s8347_s20 + $0x20] sm:$0xff] %vm2374_vm3, %v6405_v13  ;;  %v6408_v62 = vmax.f32 %v6398_v21, 0.0  ;;  %v6390_v36 = vadd.f32 %v6877_v34, %v6389_v50 }
0x13f7   : > { %6416 = vst.msk [vmem:[%s8347_s20 + $0x38] sm:$0xff] %vm2374_vm3, %v6408_v62  ;;  %v6406_v3 = vmax.f32 %v6390_v36, 0.0 }
0x13f9   : > { %6414 = vst.msk [vmem:[%s8347_s20 + $0x28] sm:$0xff] %vm2374_vm3, %v6406_v3 }
0x13fa PF: > { %s12415_s4 = sld [smem:[#allocation25_spill]] }
0x1400   : > { %s84_s28 = sadd.s32 1, %s12415_s4  }
0x1401   : > { %p81_p5 = scmp.ge.s32.totalorder %s84_s28, 4  }
0x1403   :  { %83 = sbr.rel (!%p81_p5) target bundleno = 66 (0x42), region = 280 }

</bundles_post_ra>
